<compile_context>
chip_gen: v7x
topology: tpu7x:2x2x1
jax: 0.10.0
libtpu: 0.0.40
codegen_flags: <defaults>
</compile_context>

<pallas_src>
import functools

import jax
import jax.numpy as jnp
from jax.experimental import pallas as pl
from jax.experimental.pallas import tpu as pltpu

F32 = jnp.float32
BF16 = jnp.bfloat16
EPS = 1e-5
LANE = 128


# ------------------------------ small utilities -------------------------------

def _rup(x, m):
    return ((x + m - 1) // m) * m


@functools.lru_cache(maxsize=1)
def _vmem_limit():
    # ~48 MiB on v7x (64 MiB physical VMEM per TC), ~96 MiB on v5e/v6e (128 MiB).
    try:
        kind = jax.devices()[0].device_kind.lower()
    except Exception:  # pragma: no cover
        kind = ""
    if "v5" in kind or "v6" in kind:
        return 96 * 1024 * 1024
    return 48 * 1024 * 1024


def _cp(sems=None):
    return pltpu.CompilerParams(dimension_semantics=sems,
                                vmem_limit_bytes=_vmem_limit())


def _vspec():
    return pl.BlockSpec(memory_space=pltpu.MemorySpace.VMEM)


def _c1(i):
    return (0, 0)


def _pick_simple_tile(total, candidates=(512, 256, 128)):
    for c in candidates:
        if total % c == 0:
            return c
    return total


def _pick_gene_tile(gp, b, hp):
    # ~6 live (B*tg, Hp) f32 intermediates in the fused row kernels plus
    # double-buffered (tg, Hp) input tiles must fit in half the VMEM budget.
    budget = _vmem_limit() // 2
    for tg in (1024, 512, 256, 128):
        if gp % tg == 0 and (6 * b * tg * hp * 4 + 4 * tg * hp * 4) <= budget:
            return tg
    return 128


# --------------------------- in-kernel math helpers ---------------------------

def _renorm_rows(x, max_norm=1.0):
    # nn.Embedding(max_norm=True): rows renormalised to norm <= 1 on lookup.
    nsq = jnp.sum(x * x, axis=1, keepdims=True)
    return x * jnp.minimum(1.0, max_norm * jax.lax.rsqrt(nsq + 1e-12))


def _batch_stats_full(x, n):
    m = jnp.sum(x, axis=0, keepdims=True) / n
    v = jnp.sum(jnp.square(x - m), axis=0, keepdims=True) / n
    return jnp.concatenate([m, v], axis=0)


def _batch_stats_masked(x, mask, n):
    m = jnp.sum(x * mask, axis=0, keepdims=True) / n
    v = jnp.sum(jnp.square(x - m) * mask, axis=0, keepdims=True) / n
    return jnp.concatenate([m, v], axis=0)


def _bn_apply_raw(x, stats, gb):
    # stats: (2, W) = [mean; var], gb: (2, W) = [gamma; beta]
    return (x - stats[0:1, :]) * jax.lax.rsqrt(stats[1:2, :] + EPS) * gb[0:1, :] + gb[1:2, :]


def _moments(z):
    return jnp.concatenate([jnp.sum(z, axis=0, keepdims=True),
                            jnp.sum(z * z, axis=0, keepdims=True)], axis=0)


def _moments_masked(z, mask):
    return jnp.concatenate([jnp.sum(z * mask, axis=0, keepdims=True),
                            jnp.sum(z * z * mask, axis=0, keepdims=True)], axis=0)


def _moments_to_meanvar(acc_ref, n):
    # TODO(synk): E[z^2] - mean^2 in f32 can cancel for large means; a centered
    # (Welford-style) accumulation would match PyTorch more tightly.
    acc = acc_ref[...]
    mean = acc[0:1, :] / n
    var = jnp.maximum(acc[1:2, :] / n - mean * mean, 0.0)
    acc_ref[...] = jnp.concatenate([mean, var], axis=0)


def _accumulate(acc_ref, z, gi, b, tg, n_genes, needs_mask):
    # Row mask only on the last (partial) gene tile; interior tiles unmasked.
    if needs_mask:
        last = pl.num_programs(0) - 1

        @pl.when(gi == last)
        def _():
            r = jax.lax.broadcasted_iota(jnp.int32, (b * tg, 1), 0)
            mask = ((gi * tg + (r % tg)) < n_genes).astype(F32)
            acc_ref[...] += _moments_masked(z, mask)

        @pl.when(gi != last)
        def _():
            acc_ref[...] += _moments(z)
    else:
        acc_ref[...] += _moments(z)


# --- BN-folded row-pipeline chain: bn_pert_base is pre-folded into the operands
#     (gene_scaled / emb_aff), so u0 is just add + relu; later BNs are scale/shift.

def _u0(gs_blk, ea):
    b, hp = ea.shape
    tg = gs_blk.shape[0]
    return jnp.maximum(gs_blk[None, :, :] + ea[:, None, :], 0.0).reshape(b * tg, hp)


def _z1(gs_blk, ea, w1, b1):
    return jnp.dot(_u0(gs_blk, ea).astype(w1.dtype), w1, preferred_element_type=F32) + b1


def _z2(gs_blk, ea, w1, b1, ss1, w2, b2):
    u1 = jnp.maximum(_z1(gs_blk, ea, w1, b1) * ss1[0:1, :] + ss1[1:2, :], 0.0)
    return jnp.dot(u1.astype(w2.dtype), w2, preferred_element_type=F32) + b2


# --------------------------------- kernels -----------------------------------

def _gene_kernel(emb_ref, gb_ref, base_ref, stats_ref, *, n_real):
    # gene_emb -> renorm -> bn_emb (stats over real rows) -> ReLU, plus output moments.
    tab = _renorm_rows(emb_ref[...])
    gp = tab.shape[0]
    row = jax.lax.broadcasted_iota(jnp.int32, (gp, 1), 0)
    mask = (row < n_real).astype(F32)
    n = float(n_real)
    y = jnp.maximum(_bn_apply_raw(tab, _batch_stats_masked(tab, mask, n), gb_ref[...]), 0.0) * mask
    base_ref[...] = y
    stats_ref[...] = _batch_stats_masked(y, mask, n)


def _renorm_bf16_kernel(x_ref, o_ref):
    # pert_emb renorm hoisted out of the sgconv inner loop; emits bf16 MXU operand.
    o_ref[...] = _renorm_rows(x_ref[...]).astype(BF16)


def _sgconv_kernel(a_ref, x_ref, w_ref, b_ref, o_ref, acc_ref):
    # SGConv K=1, tiled: acc += A[i,k] @ X[k] (bf16 MXU, f32 acc); last k: out = acc @ W + b.
    k = pl.program_id(1)

    @pl.when(k == 0)
    def _init():
        acc_ref[...] = jnp.zeros_like(acc_ref)

    acc_ref[...] += jnp.dot(a_ref[...], x_ref[...], preferred_element_type=F32)

    @pl.when(k == pl.num_programs(1) - 1)
    def _fin():
        o_ref[...] = jnp.dot(acc_ref[...], w_ref[...], preferred_element_type=F32) + b_ref[...]


def _pert_fuse_kernel(m_ref, pge_ref, w1_ref, b1_ref, gb1_ref, w2_ref, b2_ref, gb2_ref,
                      emb_ref, stats_ref):
    # per-graph pert sum (M @ pert_global_emb) -> pert_fuse MLP (Linear/BN/ReLU/Linear/BN)
    b = m_ref.shape[0]
    nb = float(b)
    ps = jnp.dot(m_ref[...], pge_ref[...], preferred_element_type=F32)
    h = jnp.dot(ps, w1_ref[...], preferred_element_type=F32) + b1_ref[...]
    h = jnp.maximum(_bn_apply_raw(h, _batch_stats_full(h, nb), gb1_ref[...]), 0.0)
    h = jnp.dot(h, w2_ref[...], preferred_element_type=F32) + b2_ref[...]
    h = _bn_apply_raw(h, _batch_stats_full(h, nb), gb2_ref[...])
    emb_ref[...] = h
    stats_ref[...] = _batch_stats_full(h, nb)


def _stats_z1_kernel(gs_ref, ea_ref, w1_ref, b1_ref, acc_ref, *, n_genes, tg, needs_mask):
    gi = pl.program_id(0)

    @pl.when(gi == 0)
    def _init():
        acc_ref[...] = jnp.zeros_like(acc_ref)

    ea = ea_ref[...]
    b = ea.shape[0]
    z1 = _z1(gs_ref[...], ea, w1_ref[...], b1_ref[...])
    _accumulate(acc_ref, z1, gi, b, tg, n_genes, needs_mask)

    @pl.when(gi == pl.num_programs(0) - 1)
    def _fin():
        _moments_to_meanvar(acc_ref, float(b * n_genes))


def _stats_z2_kernel(gs_ref, ea_ref, w1_ref, b1_ref, ss1_ref, w2_ref, b2_ref, acc_ref,
                     *, n_genes, tg, needs_mask):
    gi = pl.program_id(0)

    @pl.when(gi == 0)
    def _init():
        acc_ref[...] = jnp.zeros_like(acc_ref)

    ea = ea_ref[...]
    b = ea.shape[0]
    z2 = _z2(gs_ref[...], ea, w1_ref[...], b1_ref[...], ss1_ref[...], w2_ref[...], b2_ref[...])
    _accumulate(acc_ref, z2, gi, b, tg, n_genes, needs_mask)

    @pl.when(gi == pl.num_programs(0) - 1)
    def _fin():
        _moments_to_meanvar(acc_ref, float(b * n_genes))


def _decoder1_kernel(gs_ref, ea_ref, w1_ref, b1_ref, ss1_ref, w2_ref, b2_ref, ss2_ref,
                     iw1_ref, ib1_ref, o_ref):
    # fused: (folded) bn_pert_base -> recovery_w MLP -> per-gene decoder (indv_w1 / indv_b1)
    ea = ea_ref[...]
    b = ea.shape[0]
    tg, hp = iw1_ref.shape
    z2 = _z2(gs_ref[...], ea, w1_ref[...], b1_ref[...], ss1_ref[...], w2_ref[...], b2_ref[...])
    ss2 = ss2_ref[...]
    u2 = (z2 * ss2[0:1, :] + ss2[1:2, :]).reshape(b, tg, hp)
    # TODO(synk): if bundle dumps show XLU-hot relayouts for this lane-reduce +
    # lane-dense store, emit out1 gene-major and transpose once outside.
    o_ref[...] = jnp.sum(u2 * iw1_ref[...][None, :, :], axis=-1) + ib1_ref[...]


def _cross_gene_kernel(o1_ref, w1_ref, b1_ref, gb1_ref, w2_ref, b2_ref, gb2_ref,
                       cge_ref, acc_ref):
    # cross_gene_state MLP([G, H, H]): tiled Gp reduction for the first matmul,
    # small BN/ReLU/matmul/BN finalize (ends with BN).
    k = pl.program_id(0)

    @pl.when(k == 0)
    def _init():
        acc_ref[...] = jnp.zeros_like(acc_ref)

    acc_ref[...] += jnp.dot(o1_ref[...].astype(BF16), w1_ref[...], preferred_element_type=F32)

    @pl.when(k == pl.num_programs(0) - 1)
    def _fin():
        h = acc_ref[...] + b1_ref[...]
        nb = float(h.shape[0])
        h = jnp.maximum(_bn_apply_raw(h, _batch_stats_full(h, nb), gb1_ref[...]), 0.0)
        h = jnp.dot(h, w2_ref[...], preferred_element_type=F32) + b2_ref[...]
        cge_ref[...] = _bn_apply_raw(h, _batch_stats_full(h, nb), gb2_ref[...])


def _final_kernel(o1_ref, cge_ref, gate_ref, wrest_ref, b2_ref, o_ref):
    # final[b,g] = out1[b,g]*w2[g,0] + sum_h cge[b,h]*w2[g,1+h] + b2[g]
    contrib = jnp.dot(cge_ref[...], wrest_ref[...], preferred_element_type=F32)
    o_ref[...] = o1_ref[...] * gate_ref[...] + contrib + b2_ref[...]


# ------------------------------ kernel wrappers -------------------------------

def gene_base_path(gene_emb, bn_gb, n_real):
    gp, hp = gene_emb.shape
    return pl.pallas_call(
        functools.partial(_gene_kernel, n_real=n_real),
        out_shape=(jax.ShapeDtypeStruct((gp, hp), F32),
                   jax.ShapeDtypeStruct((2, hp), F32)),
        in_specs=[_vspec(), _vspec()],
        out_specs=(_vspec(), _vspec()),
        compiler_params=_cp(),
    )(gene_emb, bn_gb)


def renorm_bf16(table):
    pp, hp = table.shape
    tp = _pick_simple_tile(pp)
    return pl.pallas_call(
        _renorm_bf16_kernel,
        out_shape=jax.ShapeDtypeStruct((pp, hp), BF16),
        grid=(pp // tp,),
        in_specs=[pl.BlockSpec((tp, hp), lambda i: (i, 0))],
        out_specs=pl.BlockSpec((tp, hp), lambda i: (i, 0)),
        compiler_params=_cp(("parallel",)),
    )(table)


def sgconv(a_norm_bf16, x_bf16, w, b_row):
    pp, hp = x_bf16.shape
    tp = _pick_simple_tile(pp)
    return pl.pallas_call(
        _sgconv_kernel,
        out_shape=jax.ShapeDtypeStruct((pp, hp), F32),
        grid=(pp // tp, pp // tp),
        in_specs=[pl.BlockSpec((tp, tp), lambda i, k: (i, k)),
                  pl.BlockSpec((tp, hp), lambda i, k: (k, 0)),
                  pl.BlockSpec((hp, hp), lambda i, k: (0, 0)),
                  pl.BlockSpec((1, hp), lambda i, k: (0, 0))],
        out_specs=pl.BlockSpec((tp, hp), lambda i, k: (i, 0)),
        scratch_shapes=[pltpu.VMEM((tp, hp), F32)],
        compiler_params=_cp(("parallel", "arbitrary")),
    )(a_norm_bf16, x_bf16, w, b_row)


def pert_fuse(m, pge, p):
    b = m.shape[0]
    hp = pge.shape[1]
    return pl.pallas_call(
        _pert_fuse_kernel,
        out_shape=(jax.ShapeDtypeStruct((b, hp), F32),
                   jax.ShapeDtypeStruct((2, hp), F32)),
        in_specs=[_vspec() for _ in range(8)],
        out_specs=(_vspec(), _vspec()),
        compiler_params=_cp(),
    )(m, pge, p["pf_w1"], p["pf_b1"], p["pf_gb1"], p["pf_w2"], p["pf_b2"], p["pf_gb2"])


def stats_of_z1(gene_scaled, emb_aff, w1, b1, *, n_genes, tg, needs_mask):
    gp, hp = gene_scaled.shape
    b = emb_aff.shape[0]
    h2 = w1.shape[1]
    return pl.pallas_call(
        functools.partial(_stats_z1_kernel, n_genes=n_genes, tg=tg, needs_mask=needs_mask),
        out_shape=jax.ShapeDtypeStruct((2, h2), F32),
        grid=(gp // tg,),
        in_specs=[pl.BlockSpec((tg, hp), lambda i: (i, 0)),
                  pl.BlockSpec((b, hp), _c1),
                  pl.BlockSpec((hp, h2), _c1),
                  pl.BlockSpec((1, h2), _c1)],
        out_specs=pl.BlockSpec((2, h2), _c1),
        compiler_params=_cp(("arbitrary",)),
    )(gene_scaled, emb_aff, w1, b1)


def stats_of_z2(gene_scaled, emb_aff, w1, b1, ss1, w2, b2, *, n_genes, tg, needs_mask):
    gp, hp = gene_scaled.shape
    b = emb_aff.shape[0]
    h2 = w1.shape[1]
    return pl.pallas_call(
        functools.partial(_stats_z2_kernel, n_genes=n_genes, tg=tg, needs_mask=needs_mask),
        out_shape=jax.ShapeDtypeStruct((2, hp), F32),
        grid=(gp // tg,),
        in_specs=[pl.BlockSpec((tg, hp), lambda i: (i, 0)),
                  pl.BlockSpec((b, hp), _c1),
                  pl.BlockSpec((hp, h2), _c1),
                  pl.BlockSpec((1, h2), _c1),
                  pl.BlockSpec((2, h2), _c1),
                  pl.BlockSpec((h2, hp), _c1),
                  pl.BlockSpec((1, hp), _c1)],
        out_specs=pl.BlockSpec((2, hp), _c1),
        compiler_params=_cp(("arbitrary",)),
    )(gene_scaled, emb_aff, w1, b1, ss1, w2, b2)


def fused_decoder1(gene_scaled, emb_aff, w1, b1, ss1, w2, b2, ss2, iw1, ib1, *, tg):
    gp, hp = gene_scaled.shape
    b = emb_aff.shape[0]
    h2 = w1.shape[1]
    return pl.pallas_call(
        _decoder1_kernel,
        out_shape=jax.ShapeDtypeStruct((b, gp), F32),
        grid=(gp // tg,),
        in_specs=[pl.BlockSpec((tg, hp), lambda i: (i, 0)),
                  pl.BlockSpec((b, hp), _c1),
                  pl.BlockSpec((hp, h2), _c1),
                  pl.BlockSpec((1, h2), _c1),
                  pl.BlockSpec((2, h2), _c1),
                  pl.BlockSpec((h2, hp), _c1),
                  pl.BlockSpec((1, hp), _c1),
                  pl.BlockSpec((2, hp), _c1),
                  pl.BlockSpec((tg, hp), lambda i: (i, 0)),
                  pl.BlockSpec((1, tg), lambda i: (0, i))],
        out_specs=pl.BlockSpec((b, tg), lambda i: (0, i)),
        compiler_params=_cp(("parallel",)),
    )(gene_scaled, emb_aff, w1, b1, ss1, w2, b2, ss2, iw1, ib1)


def cross_gene_state(out1, p, *, tg):
    b, gp = out1.shape
    hp = p["cg_w1"].shape[1]
    return pl.pallas_call(
        _cross_gene_kernel,
        out_shape=jax.ShapeDtypeStruct((b, hp), F32),
        grid=(gp // tg,),
        in_specs=[pl.BlockSpec((b, tg), lambda k: (0, k)),
                  pl.BlockSpec((tg, hp), lambda k: (k, 0)),
                  pl.BlockSpec((1, hp), _c1),
                  pl.BlockSpec((2, hp), _c1),
                  pl.BlockSpec((hp, hp), _c1),
                  pl.BlockSpec((1, hp), _c1),
                  pl.BlockSpec((2, hp), _c1)],
        out_specs=pl.BlockSpec((b, hp), _c1),
        scratch_shapes=[pltpu.VMEM((b, hp), F32)],
        compiler_params=_cp(("arbitrary",)),
    )(out1, p["cg_w1"], p["cg_b1"], p["cg_gb1"], p["cg_w2"], p["cg_b2"], p["cg_gb2"])


def final_decode(out1, cge, gate, wrest, b2, *, tg):
    b, gp = out1.shape
    hp = cge.shape[1]
    return pl.pallas_call(
        _final_kernel,
        out_shape=jax.ShapeDtypeStruct((b, gp), F32),
        grid=(gp // tg,),
        in_specs=[pl.BlockSpec((b, tg), lambda i: (0, i)),
                  pl.BlockSpec((b, hp), _c1),
                  pl.BlockSpec((1, tg), lambda i: (0, i)),
                  pl.BlockSpec((hp, tg), lambda i: (0, i)),
                  pl.BlockSpec((1, tg), lambda i: (0, i))],
        out_specs=pl.BlockSpec((b, tg), lambda i: (0, i)),
        compiler_params=_cp(("parallel",)),
    )(out1, cge, gate, wrest, b2)


# -------------------------------- forward ------------------------------------

def _fold(stats, gb):
    # BatchNorm (mean, var, gamma, beta) -> (scale, shift): y = x*scale + shift
    scale = gb[0:1, :] * jax.lax.rsqrt(stats[1:2, :] + EPS)
    shift = gb[1:2, :] - stats[0:1, :] * scale
    return jnp.concatenate([scale, shift], axis=0)


def gears_forward(params, x, pert_idx, num_genes, num_perts, hidden):
    del num_perts, hidden  # padded dims are read from the parameter shapes
    B = pert_idx.shape[0]
    G = num_genes
    gp, hp = params["gene_emb"].shape
    pp = params["pert_emb"].shape[0]
    tg = _pick_gene_tile(gp, B, hp)
    needs_mask = (gp != G)

    # --- gene path: gene_emb -> bn_emb -> ReLU, computed once per gene -------------------
    # (BN stats over B identical gene copies equal the per-gene stats.)
    # TODO(synk): the original forward overwrites base_emb with scFoundation embeddings
    # loaded from pickle/h5ad files; that file-based lookup cannot be reproduced, so the
    # in-forward gene_emb -> bn_emb -> ReLU path is used as base_emb instead.
    gene_base, gene_stats = gene_base_path(params["gene_emb"], params["bn_emb_gb"], G)

    # pos_emb / layers_emb_pos: dead code in this forward variant -> skipped.

    # --- perturbation path: SGConv (K=1) on the GO graph, then pert_fuse MLP --------------
    pert_bf = renorm_bf16(params["pert_emb"])
    pge = sgconv(params["A_go_norm"], pert_bf, params["sg_w"], params["sg_b"])
    # TODO(synk): dict-based pert_track loop replaced by a dense count-matrix matmul;
    # control graphs (all -1) also receive pert_fuse(0), unlike the reference.
    m = jnp.sum(jax.nn.one_hot(pert_idx, pp, dtype=F32), axis=1)          # (B, Pp), -1 dropped
    emb_total, pert_stats = pert_fuse(m, pge, params)

    # Exact bn_pert_base batch stats: z0[b,g] = gene_base[g] + emb_total[b]
    # => mean = mean_g + mean_b, var = var_g + var_b (zero cross term).
    ss0 = _fold(gene_stats + pert_stats, params["bn_pb_gb"])
    # Fold bn_pert_base into the two broadcast operands (removes per-element BN from z0).
    gene_scaled = gene_base * ss0[0:1, :]                                  # (Gp, Hp)
    emb_aff = emb_total * ss0[0:1, :] + ss0[1:2, :]                        # (B, Hp)

    # --- fused row pipeline: two streaming stats passes + one parallel compute pass -------
    s1 = stats_of_z1(gene_scaled, emb_aff, params["rec_w1"], params["rec_b1"],
                     n_genes=G, tg=tg, needs_mask=needs_mask)
    ss1 = _fold(s1, params["rec_gb1"])
    s2 = stats_of_z2(gene_scaled, emb_aff, params["rec_w1"], params["rec_b1"], ss1,
                     params["rec_w2"], params["rec_b2"],
                     n_genes=G, tg=tg, needs_mask=needs_mask)
    ss2 = _fold(s2, params["rec_gb2"])
    out1 = fused_decoder1(gene_scaled, emb_aff, params["rec_w1"], params["rec_b1"], ss1,
                          params["rec_w2"], params["rec_b2"], ss2,
                          params["indv_w1"], params["indv_b1"], tg=tg)     # (B, Gp)

    # --- cross-gene decoder ----------------------------------------------------------------
    cge = cross_gene_state(out1, params, tg=tg)                            # (B, Hp)
    out = final_decode(out1, cge, params["w2_gate"], params["w2_rest"],
                       params["indv_b2"], tg=tg)                           # (B, Gp)
    # x added after the slice (no (B, Gp) x_pad materialisation).
    return out[:, :G] + x.reshape(B, G)


# ------------------------------ parameter setup -------------------------------

def _pad2(a, r, c):
    return jnp.zeros((r, c), F32).at[:a.shape[0], :a.shape[1]].set(a)


def _pad_row(v, c):
    return jnp.zeros((1, c), F32).at[0, :v.shape[0]].set(v)


def _gb(n, c):
    out = jnp.zeros((2, c), F32)
    return out.at[0, :n].set(jnp.ones((n,), F32))   # gamma=1, beta=0 (fresh BatchNorm1d)


def make_norm_adj(key, n):
    # dense symmetric adjacency with self loops, GCN normalisation
    a = jax.random.uniform(key, (n, n), F32)
    a = (a + a.T) * 0.5
    a = jnp.where(a > 0.5, a, 0.0) * (1.0 - jnp.eye(n, dtype=F32))
    a_hat = a + jnp.eye(n, dtype=F32)
    dinv = jax.lax.rsqrt(jnp.sum(a_hat, axis=1))
    return dinv[:, None] * a_hat * dinv[None, :]


def init_params(key, G, P, H):
    gp, pp = _rup(G, LANE), _rup(P, LANE)
    hp, h2p = _rup(H, LANE), _rup(2 * H, LANE)
    ks = iter(jax.random.split(key, 32))

    def nrm(shape, scale=0.1):
        return jax.random.normal(next(ks), shape, F32) * scale

    return {
        "gene_emb":   _pad2(nrm((G, H), 1.0), gp, hp),
        "bn_emb_gb":  _gb(H, hp),
        "pert_emb":   _pad2(nrm((P, H), 1.0), pp, hp),
        "A_go_norm":  _pad2(make_norm_adj(next(ks), P), pp, pp).astype(BF16),
        "sg_w":       _pad2(nrm((H, H)), hp, hp),
        "sg_b":       _pad_row(nrm((H,)), hp),
        "pf_w1":      _pad2(nrm((H, H)), hp, hp),
        "pf_b1":      _pad_row(nrm((H,)), hp),
        "pf_gb1":     _gb(H, hp),
        "pf_w2":      _pad2(nrm((H, H)), hp, hp),
        "pf_b2":      _pad_row(nrm((H,)), hp),
        "pf_gb2":     _gb(H, hp),
        "bn_pb_gb":   _gb(H, hp),
        "rec_w1":     _pad2(nrm((H, 2 * H)), hp, h2p).astype(BF16),
        "rec_b1":     _pad_row(nrm((2 * H,)), h2p),
        "rec_gb1":    _gb(2 * H, h2p),
        "rec_w2":     _pad2(nrm((2 * H, H)), h2p, hp).astype(BF16),
        "rec_b2":     _pad_row(nrm((H,)), hp),
        "rec_gb2":    _gb(H, hp),
        "indv_w1":    _pad2(nrm((G, H)), gp, hp),               # indv_w1 (G,H,1) squeezed
        "indv_b1":    _pad_row(nrm((G,)), gp),                  # indv_b1 (G,1) -> (1,G)
        "cg_w1":      _pad2(nrm((G, H)), gp, hp).astype(BF16),
        "cg_b1":      _pad_row(nrm((H,)), hp),
        "cg_gb1":     _gb(H, hp),
        "cg_w2":      _pad2(nrm((H, H)), hp, hp),
        "cg_b2":      _pad_row(nrm((H,)), hp),
        "cg_gb2":     _gb(H, hp),
        "w2_gate":    _pad_row(nrm((G,)), gp),                  # indv_w2[0,:,0]
        "w2_rest":    _pad2(nrm((H, G)), hp, gp),               # indv_w2[0,:,1:].T
        "indv_b2":    _pad_row(nrm((G,)), gp),
    }


if __name__ == "__main__":
    NUM_GENES, NUM_PERTS, HIDDEN, NUM_GRAPHS = 64, 8, 32, 2

    key = jax.random.PRNGKey(0)
    kp, kx = jax.random.split(key)
    params = init_params(kp, NUM_GENES, NUM_PERTS, HIDDEN)

    x = jax.random.normal(kx, (NUM_GRAPHS * NUM_GENES, 1), F32)     # data.x
    pert_idx = jnp.array([[1, -1], [3, 5]], dtype=jnp.int32)        # data.pert_idx

    fwd = jax.jit(functools.partial(gears_forward, num_genes=NUM_GENES,
                                    num_perts=NUM_PERTS, hidden=HIDDEN))
    out = jax.block_until_ready(fwd(params, x, pert_idx))
    assert out.shape == (NUM_GRAPHS, NUM_GENES) and out.dtype == jnp.float32
    assert bool(jnp.all(jnp.isfinite(out)))
    print("KERNEL_OK")
</pallas_src>

<mosaic_0001>
module attributes {stable_mosaic.version = 11 : i64} {
  func.func @_renorm_bf16_kernel(%arg0: i32, %arg1: memref<128x128xf32, #tpu.memory_space<vmem>>, %arg2: memref<128x128xbf16, #tpu.memory_space<vmem>>) attributes {dimension_semantics = [#tpu.dimension_semantics<parallel>], iteration_bounds = array<i64: 1>, scalar_prefetch = 0 : i64, scratch_operands = 0 : i64, tpu.core_type = #tpu.core_type<tc>, window_params = [{transform_indices = @transform_0, window_bounds = array<i64: 128, 128>}, {transform_indices = @transform_1, window_bounds = array<i64: 128, 128>}]} {
    %c0 = arith.constant 0 : index
    %c0_0 = arith.constant 0 : index
    %0 = vector.load %arg1[%c0, %c0_0] : memref<128x128xf32, #tpu.memory_space<vmem>>, vector<128x128xf32>
    %1 = arith.mulf %0, %0 : vector<128x128xf32>
    %cst = arith.constant dense<0.000000e+00> : vector<128xf32>
    %2 = vector.multi_reduction <add>, %1, %cst [1] : vector<128x128xf32> to vector<128xf32>
    %3 = vector.shape_cast %2 : vector<128xf32> to vector<128x1xf32>
    %cst_1 = arith.constant 9.99999996E-13 : f32
    %4 = vector.broadcast %cst_1 : f32 to vector<128x1xf32>
    %5 = arith.addf %3, %4 : vector<128x1xf32>
    %6 = math.rsqrt %5 : vector<128x1xf32>
    %cst_2 = arith.constant 1.000000e+00 : f32
    %7 = vector.broadcast %cst_2 : f32 to vector<128x1xf32>
    %8 = arith.mulf %7, %6 : vector<128x1xf32>
    %cst_3 = arith.constant 1.000000e+00 : f32
    %9 = vector.broadcast %cst_3 : f32 to vector<128x1xf32>
    %10 = arith.minimumf %9, %8 : vector<128x1xf32>
    %11 = vector.broadcast %10 : vector<128x1xf32> to vector<128x128xf32>
    %12 = arith.mulf %0, %11 : vector<128x128xf32>
    %13 = arith.truncf %12 : vector<128x128xf32> to vector<128x128xbf16>
    %c0_4 = arith.constant 0 : index
    %c0_5 = arith.constant 0 : index
    %14 = vector.load %arg2[%c0_4, %c0_5] : memref<128x128xbf16, #tpu.memory_space<vmem>>, vector<128x128xbf16>
    tpu.vector_store %arg2[%c0_4, %c0_5], %13 {strides = array<i32>} : memref<128x128xbf16, #tpu.memory_space<vmem>>, vector<128x128xbf16>,
    return
  }
  func.func @transform_0(%arg0: i32) -> (i32, i32) {
    %c0_i32 = arith.constant 0 : i32
    %c0_i32_0 = arith.constant 0 : i32
    return %arg0, %c0_i32 : i32, i32
  }
  func.func @transform_1(%arg0: i32) -> (i32, i32) {
    %c0_i32 = arith.constant 0 : i32
    %c0_i32_0 = arith.constant 0 : i32
    return %arg0, %c0_i32 : i32, i32
  }
}

module attributes {stable_mosaic.version = 11 : i64} {
  func.func @_sgconv_kernel(%arg0: i32, %arg1: i32, %arg2: memref<128x128xbf16, #tpu.memory_space<vmem>>, %arg3: memref<128x128xbf16, #tpu.memory_space<vmem>>, %arg4: memref<128x128xf32, #tpu.memory_space<vmem>>, %arg5: memref<1x128xf32, #tpu.memory_space<vmem>>, %arg6: memref<128x128xf32, #tpu.memory_space<vmem>>, %arg7: memref<128x128xf32, #tpu.memory_space<vmem>>) attributes {dimension_semantics = [#tpu.dimension_semantics<parallel>, #tpu.dimension_semantics<arbitrary>], iteration_bounds = array<i64: 1, 1>, scalar_prefetch = 0 : i64, scratch_operands = 1 : i64, tpu.core_type = #tpu.core_type<tc>, window_params = [{transform_indices = @transform_0, window_bounds = array<i64: 128, 128>}, {transform_indices = @transform_1, window_bounds = array<i64: 128, 128>}, {pipeline_mode = #tpu.pipeline_mode<synchronous>, transform_indices = @transform_2, window_bounds = array<i64: 128, 128>}, {pipeline_mode = #tpu.pipeline_mode<synchronous>, transform_indices = @transform_3, window_bounds = array<i64: 1, 128>}, {transform_indices = @transform_4, window_bounds = array<i64: 128, 128>}]} {
    %c0_i32 = arith.constant 0 : i32
    %0 = arith.cmpi eq, %arg1, %c0_i32 : i32
    %1 = arith.extui %0 : i1 to i32
    %c0_i32_0 = arith.constant 0 : i32
    %2 = arith.cmpi ne, %1, %c0_i32_0 : i32
    scf.if %2 {
      %cst_10 = arith.constant 0.000000e+00 : f32
      %12 = vector.broadcast %cst_10 : f32 to vector<128x128xf32>
      %c0_11 = arith.constant 0 : index
      %c0_12 = arith.constant 0 : index
      %13 = vector.load %arg7[%c0_11, %c0_12] : memref<128x128xf32, #tpu.memory_space<vmem>>, vector<128x128xf32>
      tpu.vector_store %arg7[%c0_11, %c0_12], %12 {strides = array<i32>} : memref<128x128xf32, #tpu.memory_space<vmem>>, vector<128x128xf32>,
    } else {
    }
    %c0 = arith.constant 0 : index
    %c0_1 = arith.constant 0 : index
    %3 = vector.load %arg7[%c0, %c0_1] : memref<128x128xf32, #tpu.memory_space<vmem>>, vector<128x128xf32>
    %c0_2 = arith.constant 0 : index
    %c0_3 = arith.constant 0 : index
    %4 = vector.load %arg2[%c0_2, %c0_3] : memref<128x128xbf16, #tpu.memory_space<vmem>>, vector<128x128xbf16>
    %c0_4 = arith.constant 0 : index
    %c0_5 = arith.constant 0 : index
    %5 = vector.load %arg3[%c0_4, %c0_5] : memref<128x128xbf16, #tpu.memory_space<vmem>>, vector<128x128xbf16>
    %cst = arith.constant dense<0.000000e+00> : vector<128x128xf32>
    %6 = tpu.matmul %4, %5, %cst {dimension_numbers = #tpu.dot_dimension_numbers<[1], [0], [0], [1], [0, 0, 1, 1], [], []>} : vector<128x128xbf16>, vector<128x128xbf16>, vector<128x128xf32> -> vector<128x128xf32>
    %7 = arith.addf %3, %6 : vector<128x128xf32>
    %c0_6 = arith.constant 0 : index
    %c0_7 = arith.constant 0 : index
    %8 = vector.load %arg7[%c0_6, %c0_7] : memref<128x128xf32, #tpu.memory_space<vmem>>, vector<128x128xf32>
    tpu.vector_store %arg7[%c0_6, %c0_7], %7 {strides = array<i32>} : memref<128x128xf32, #tpu.memory_space<vmem>>, vector<128x128xf32>,
    %c0_i32_8 = arith.constant 0 : i32
    %9 = arith.cmpi eq, %arg1, %c0_i32_8 : i32
    %10 = arith.extui %9 : i1 to i32
    %c0_i32_9 = arith.constant 0 : i32
    %11 = arith.cmpi ne, %10, %c0_i32_9 : i32
    scf.if %11 {
      %c0_10 = arith.constant 0 : index
      %c0_11 = arith.constant 0 : index
      %12 = vector.load %arg7[%c0_10, %c0_11] : memref<128x128xf32, #tpu.memory_space<vmem>>, vector<128x128xf32>
      %c0_12 = arith.constant 0 : index
      %c0_13 = arith.constant 0 : index
      %13 = vector.load %arg4[%c0_12, %c0_13] : memref<128x128xf32, #tpu.memory_space<vmem>>, vector<128x128xf32>
      %cst_14 = arith.constant dense<0.000000e+00> : vector<128x128xf32>
      %14 = tpu.matmul %12, %13, %cst_14 {dimension_numbers = #tpu.dot_dimension_numbers<[1], [0], [0], [1], [0, 0, 1, 1], [], []>} : vector<128x128xf32>, vector<128x128xf32>, vector<128x128xf32> -> vector<128x128xf32>
      %c0_15 = arith.constant 0 : index
      %c0_16 = arith.constant 0 : index
      %15 = vector.load %arg5[%c0_15, %c0_16] : memref<1x128xf32, #tpu.memory_space<vmem>>, vector<1x128xf32>
      %16 = vector.broadcast %15 : vector<1x128xf32> to vector<128x128xf32>
      %17 = arith.addf %14, %16 : vector<128x128xf32>
      %c0_17 = arith.constant 0 : index
      %c0_18 = arith.constant 0 : index
      %18 = vector.load %arg6[%c0_17, %c0_18] : memref<128x128xf32, #tpu.memory_space<vmem>>, vector<128x128xf32>
      tpu.vector_store %arg6[%c0_17, %c0_18], %17 {strides = array<i32>} : memref<128x128xf32, #tpu.memory_space<vmem>>, vector<128x128xf32>,
    } else {
    }
    return
  }
  func.func @transform_0(%arg0: i32, %arg1: i32) -> (i32, i32) {
    %c0_i32 = arith.constant 0 : i32
    return %arg0, %arg1 : i32, i32
  }
  func.func @transform_1(%arg0: i32, %arg1: i32) -> (i32, i32) {
    %c0_i32 = arith.constant 0 : i32
    %c0_i32_0 = arith.constant 0 : i32
    return %arg1, %c0_i32 : i32, i32
  }
  func.func @transform_2(%arg0: i32, %arg1: i32) -> (i32, i32) {
    %c0_i32 = arith.constant 0 : i32
    %c0_i32_0 = arith.constant 0 : i32
    %c0_i32_1 = arith.constant 0 : i32
    return %c0_i32, %c0_i32_0 : i32, i32
  }
  func.func @transform_3(%arg0: i32, %arg1: i32) -> (i32, i32) {
    %c0_i32 = arith.constant 0 : i32
    %c0_i32_0 = arith.constant 0 : i32
    %c0_i32_1 = arith.constant 0 : i32
    return %c0_i32, %c0_i32_0 : i32, i32
  }
  func.func @transform_4(%arg0: i32, %arg1: i32) -> (i32, i32) {
    %c0_i32 = arith.constant 0 : i32
    %c0_i32_0 = arith.constant 0 : i32
    return %arg0, %c0_i32 : i32, i32
  }
}

module attributes {stable_mosaic.version = 11 : i64} {
  func.func @_pert_fuse_kernel(%arg0: memref<2x128xf32, #tpu.memory_space<vmem>>, %arg1: memref<128x128xf32, #tpu.memory_space<vmem>>, %arg2: memref<128x128xf32, #tpu.memory_space<vmem>>, %arg3: memref<1x128xf32, #tpu.memory_space<vmem>>, %arg4: memref<2x128xf32, #tpu.memory_space<vmem>>, %arg5: memref<128x128xf32, #tpu.memory_space<vmem>>, %arg6: memref<1x128xf32, #tpu.memory_space<vmem>>, %arg7: memref<2x128xf32, #tpu.memory_space<vmem>>, %arg8: memref<2x128xf32, #tpu.memory_space<vmem>>, %arg9: memref<2x128xf32, #tpu.memory_space<vmem>>) attributes {dimension_semantics = [], scalar_prefetch = 0 : i64, scratch_operands = 0 : i64, tpu.core_type = #tpu.core_type<tc>} {
    %c0 = arith.constant 0 : index
    %c0_0 = arith.constant 0 : index
    %0 = vector.load %arg0[%c0, %c0_0] : memref<2x128xf32, #tpu.memory_space<vmem>>, vector<2x128xf32>
    %c0_1 = arith.constant 0 : index
    %c0_2 = arith.constant 0 : index
    %1 = vector.load %arg1[%c0_1, %c0_2] : memref<128x128xf32, #tpu.memory_space<vmem>>, vector<128x128xf32>
    %cst = arith.constant dense<0.000000e+00> : vector<2x128xf32>
    %2 = tpu.matmul %0, %1, %cst {dimension_numbers = #tpu.dot_dimension_numbers<[1], [0], [0], [1], [0, 0, 1, 1], [], []>} : vector<2x128xf32>, vector<128x128xf32>, vector<2x128xf32> -> vector<2x128xf32>
    %c0_3 = arith.constant 0 : index
    %c0_4 = arith.constant 0 : index
    %3 = vector.load %arg2[%c0_3, %c0_4] : memref<128x128xf32, #tpu.memory_space<vmem>>, vector<128x128xf32>
    %cst_5 = arith.constant dense<0.000000e+00> : vector<2x128xf32>
    %4 = tpu.matmul %2, %3, %cst_5 {dimension_numbers = #tpu.dot_dimension_numbers<[1], [0], [0], [1], [0, 0, 1, 1], [], []>} : vector<2x128xf32>, vector<128x128xf32>, vector<2x128xf32> -> vector<2x128xf32>
    %c0_6 = arith.constant 0 : index
    %c0_7 = arith.constant 0 : index
    %5 = vector.load %arg3[%c0_6, %c0_7] : memref<1x128xf32, #tpu.memory_space<vmem>>, vector<1x128xf32>
    %6 = vector.broadcast %5 : vector<1x128xf32> to vector<2x128xf32>
    %7 = arith.addf %4, %6 : vector<2x128xf32>
    %cst_8 = arith.constant dense<0.000000e+00> : vector<128xf32>
    %8 = vector.multi_reduction <add>, %7, %cst_8 [0] : vector<2x128xf32> to vector<128xf32>
    %9 = vector.shape_cast %8 : vector<128xf32> to vector<1x128xf32>
    %cst_9 = arith.constant 2.000000e+00 : f32
    %10 = vector.broadcast %cst_9 : f32 to vector<1x128xf32>
    %11 = arith.divf %9, %10 : vector<1x128xf32>
    %12 = vector.broadcast %11 : vector<1x128xf32> to vector<2x128xf32>
    %13 = arith.subf %7, %12 : vector<2x128xf32>
    %14 = arith.mulf %13, %13 : vector<2x128xf32>
    %cst_10 = arith.constant dense<0.000000e+00> : vector<128xf32>
    %15 = vector.multi_reduction <add>, %14, %cst_10 [0] : vector<2x128xf32> to vector<128xf32>
    %16 = vector.shape_cast %15 : vector<128xf32> to vector<1x128xf32>
    %cst_11 = arith.constant 2.000000e+00 : f32
    %17 = vector.broadcast %cst_11 : f32 to vector<1x128xf32>
    %18 = arith.divf %16, %17 : vector<1x128xf32>
    %19 = tpu.concatenate %11, %18 in 0 : vector<1x128xf32>, vector<1x128xf32> -> vector<2x128xf32>
    %c0_12 = arith.constant 0 : index
    %c0_13 = arith.constant 0 : index
    %20 = vector.load %arg4[%c0_12, %c0_13] : memref<2x128xf32, #tpu.memory_space<vmem>>, vector<2x128xf32>
    %21 = vector.extract_strided_slice %19 {offsets = [0, 0], sizes = [1, 128], strides = [1, 1]} : vector<2x128xf32> to vector<1x128xf32>
    %22 = vector.broadcast %21 : vector<1x128xf32> to vector<2x128xf32>
    %23 = arith.subf %7, %22 : vector<2x128xf32>
    %24 = vector.extract_strided_slice %19 {offsets = [1, 0], sizes = [1, 128], strides = [1, 1]} : vector<2x128xf32> to vector<1x128xf32>
    %cst_14 = arith.constant 9.99999974E-6 : f32
    %25 = vector.broadcast %cst_14 : f32 to vector<1x128xf32>
    %26 = arith.addf %24, %25 : vector<1x128xf32>
    %27 = math.rsqrt %26 : vector<1x128xf32>
    %28 = vector.broadcast %27 : vector<1x128xf32> to vector<2x128xf32>
    %29 = arith.mulf %23, %28 : vector<2x128xf32>
    %30 = vector.extract_strided_slice %20 {offsets = [0, 0], sizes = [1, 128], strides = [1, 1]} : vector<2x128xf32> to vector<1x128xf32>
    %31 = vector.broadcast %30 : vector<1x128xf32> to vector<2x128xf32>
    %32 = arith.mulf %29, %31 : vector<2x128xf32>
    %33 = vector.extract_strided_slice %20 {offsets = [1, 0], sizes = [1, 128], strides = [1, 1]} : vector<2x128xf32> to vector<1x128xf32>
    %34 = vector.broadcast %33 : vector<1x128xf32> to vector<2x128xf32>
    %35 = arith.addf %32, %34 : vector<2x128xf32>
    %cst_15 = arith.constant 0.000000e+00 : f32
    %36 = vector.broadcast %cst_15 : f32 to vector<2x128xf32>
    %37 = arith.maximumf %35, %36 : vector<2x128xf32>
    %c0_16 = arith.constant 0 : index
    %c0_17 = arith.constant 0 : index
    %38 = vector.load %arg5[%c0_16, %c0_17] : memref<128x128xf32, #tpu.memory_space<vmem>>, vector<128x128xf32>
    %cst_18 = arith.constant dense<0.000000e+00> : vector<2x128xf32>
    %39 = tpu.matmul %37, %38, %cst_18 {dimension_numbers = #tpu.dot_dimension_numbers<[1], [0], [0], [1], [0, 0, 1, 1], [], []>} : vector<2x128xf32>, vector<128x128xf32>, vector<2x128xf32> -> vector<2x128xf32>
    %c0_19 = arith.constant 0 : index
    %c0_20 = arith.constant 0 : index
    %40 = vector.load %arg6[%c0_19, %c0_20] : memref<1x128xf32, #tpu.memory_space<vmem>>, vector<1x128xf32>
    %41 = vector.broadcast %40 : vector<1x128xf32> to vector<2x128xf32>
    %42 = arith.addf %39, %41 : vector<2x128xf32>
    %cst_21 = arith.constant dense<0.000000e+00> : vector<128xf32>
    %43 = vector.multi_reduction <add>, %42, %cst_21 [0] : vector<2x128xf32> to vector<128xf32>
    %44 = vector.shape_cast %43 : vector<128xf32> to vector<1x128xf32>
    %cst_22 = arith.constant 2.000000e+00 : f32
    %45 = vector.broadcast %cst_22 : f32 to vector<1x128xf32>
    %46 = arith.divf %44, %45 : vector<1x128xf32>
    %47 = vector.broadcast %46 : vector<1x128xf32> to vector<2x128xf32>
    %48 = arith.subf %42, %47 : vector<2x128xf32>
    %49 = arith.mulf %48, %48 : vector<2x128xf32>
    %cst_23 = arith.constant dense<0.000000e+00> : vector<128xf32>
    %50 = vector.multi_reduction <add>, %49, %cst_23 [0] : vector<2x128xf32> to vector<128xf32>
    %51 = vector.shape_cast %50 : vector<128xf32> to vector<1x128xf32>
    %cst_24 = arith.constant 2.000000e+00 : f32
    %52 = vector.broadcast %cst_24 : f32 to vector<1x128xf32>
    %53 = arith.divf %51, %52 : vector<1x128xf32>
    %54 = tpu.concatenate %46, %53 in 0 : vector<1x128xf32>, vector<1x128xf32> -> vector<2x128xf32>
    %c0_25 = arith.constant 0 : index
    %c0_26 = arith.constant 0 : index
    %55 = vector.load %arg7[%c0_25, %c0_26] : memref<2x128xf32, #tpu.memory_space<vmem>>, vector<2x128xf32>
    %56 = vector.extract_strided_slice %54 {offsets = [0, 0], sizes = [1, 128], strides = [1, 1]} : vector<2x128xf32> to vector<1x128xf32>
    %57 = vector.broadcast %56 : vector<1x128xf32> to vector<2x128xf32>
    %58 = arith.subf %42, %57 : vector<2x128xf32>
    %59 = vector.extract_strided_slice %54 {offsets = [1, 0], sizes = [1, 128], strides = [1, 1]} : vector<2x128xf32> to vector<1x128xf32>
    %cst_27 = arith.constant 9.99999974E-6 : f32
    %60 = vector.broadcast %cst_27 : f32 to vector<1x128xf32>
    %61 = arith.addf %59, %60 : vector<1x128xf32>
    %62 = math.rsqrt %61 : vector<1x128xf32>
    %63 = vector.broadcast %62 : vector<1x128xf32> to vector<2x128xf32>
    %64 = arith.mulf %58, %63 : vector<2x128xf32>
    %65 = vector.extract_strided_slice %55 {offsets = [0, 0], sizes = [1, 128], strides = [1, 1]} : vector<2x128xf32> to vector<1x128xf32>
    %66 = vector.broadcast %65 : vector<1x128xf32> to vector<2x128xf32>
    %67 = arith.mulf %64, %66 : vector<2x128xf32>
    %68 = vector.extract_strided_slice %55 {offsets = [1, 0], sizes = [1, 128], strides = [1, 1]} : vector<2x128xf32> to vector<1x128xf32>
    %69 = vector.broadcast %68 : vector<1x128xf32> to vector<2x128xf32>
    %70 = arith.addf %67, %69 : vector<2x128xf32>
    %c0_28 = arith.constant 0 : index
    %c0_29 = arith.constant 0 : index
    %71 = vector.load %arg8[%c0_28, %c0_29] : memref<2x128xf32, #tpu.memory_space<vmem>>, vector<2x128xf32>
    tpu.vector_store %arg8[%c0_28, %c0_29], %70 {strides = array<i32>} : memref<2x128xf32, #tpu.memory_space<vmem>>, vector<2x128xf32>,
    %cst_30 = arith.constant dense<0.000000e+00> : vector<128xf32>
    %72 = vector.multi_reduction <add>, %70, %cst_30 [0] : vector<2x128xf32> to vector<128xf32>
    %73 = vector.shape_cast %72 : vector<128xf32> to vector<1x128xf32>
    %cst_31 = arith.constant 2.000000e+00 : f32
    %74 = vector.broadcast %cst_31 : f32 to vector<1x128xf32>
    %75 = arith.divf %73, %74 : vector<1x128xf32>
    %76 = vector.broadcast %75 : vector<1x128xf32> to vector<2x128xf32>
    %77 = arith.subf %70, %76 : vector<2x128xf32>
    %78 = arith.mulf %77, %77 : vector<2x128xf32>
    %cst_32 = arith.constant dense<0.000000e+00> : vector<128xf32>
    %79 = vector.multi_reduction <add>, %78, %cst_32 [0] : vector<2x128xf32> to vector<128xf32>
    %80 = vector.shape_cast %79 : vector<128xf32> to vector<1x128xf32>
    %cst_33 = arith.constant 2.000000e+00 : f32
    %81 = vector.broadcast %cst_33 : f32 to vector<1x128xf32>
    %82 = arith.divf %80, %81 : vector<1x128xf32>
    %83 = tpu.concatenate %75, %82 in 0 : vector<1x128xf32>, vector<1x128xf32> -> vector<2x128xf32>
    %c0_34 = arith.constant 0 : index
    %c0_35 = arith.constant 0 : index
    %84 = vector.load %arg9[%c0_34, %c0_35] : memref<2x128xf32, #tpu.memory_space<vmem>>, vector<2x128xf32>
    tpu.vector_store %arg9[%c0_34, %c0_35], %83 {strides = array<i32>} : memref<2x128xf32, #tpu.memory_space<vmem>>, vector<2x128xf32>,
    return
  }
}

module attributes {stable_mosaic.version = 11 : i64} {
  func.func @_gene_kernel(%arg0: memref<128x128xf32, #tpu.memory_space<vmem>>, %arg1: memref<2x128xf32, #tpu.memory_space<vmem>>, %arg2: memref<128x128xf32, #tpu.memory_space<vmem>>, %arg3: memref<2x128xf32, #tpu.memory_space<vmem>>) attributes {dimension_semantics = [], scalar_prefetch = 0 : i64, scratch_operands = 0 : i64, tpu.core_type = #tpu.core_type<tc>} {
    %c0 = arith.constant 0 : index
    %c0_0 = arith.constant 0 : index
    %0 = vector.load %arg0[%c0, %c0_0] : memref<128x128xf32, #tpu.memory_space<vmem>>, vector<128x128xf32>
    %1 = arith.mulf %0, %0 : vector<128x128xf32>
    %cst = arith.constant dense<0.000000e+00> : vector<128xf32>
    %2 = vector.multi_reduction <add>, %1, %cst [1] : vector<128x128xf32> to vector<128xf32>
    %3 = vector.shape_cast %2 : vector<128xf32> to vector<128x1xf32>
    %cst_1 = arith.constant 9.99999996E-13 : f32
    %4 = vector.broadcast %cst_1 : f32 to vector<128x1xf32>
    %5 = arith.addf %3, %4 : vector<128x1xf32>
    %6 = math.rsqrt %5 : vector<128x1xf32>
    %cst_2 = arith.constant 1.000000e+00 : f32
    %7 = vector.broadcast %cst_2 : f32 to vector<128x1xf32>
    %8 = arith.mulf %7, %6 : vector<128x1xf32>
    %cst_3 = arith.constant 1.000000e+00 : f32
    %9 = vector.broadcast %cst_3 : f32 to vector<128x1xf32>
    %10 = arith.minimumf %9, %8 : vector<128x1xf32>
    %11 = vector.broadcast %10 : vector<128x1xf32> to vector<128x128xf32>
    %12 = arith.mulf %0, %11 : vector<128x128xf32>
    %13 = tpu.iota {dimensions = array<i32: 0>} : vector<128x1xi32>
    %c64_i32 = arith.constant 64 : i32
    %14 = vector.broadcast %c64_i32 : i32 to vector<128x1xi32>
    %15 = arith.cmpi slt, %13, %14 : vector<128x1xi32>
    %16 = arith.extui %15 : vector<128x1xi1> to vector<128x1xi32>
    %17 = arith.sitofp %16 : vector<128x1xi32> to vector<128x1xf32>
    %18 = vector.broadcast %17 : vector<128x1xf32> to vector<128x128xf32>
    %19 = arith.mulf %12, %18 : vector<128x128xf32>
    %cst_4 = arith.constant dense<0.000000e+00> : vector<128xf32>
    %20 = vector.multi_reduction <add>, %19, %cst_4 [0] : vector<128x128xf32> to vector<128xf32>
    %21 = vector.shape_cast %20 : vector<128xf32> to vector<1x128xf32>
    %cst_5 = arith.constant 6.400000e+01 : f32
    %22 = vector.broadcast %cst_5 : f32 to vector<1x128xf32>
    %23 = arith.divf %21, %22 : vector<1x128xf32>
    %24 = vector.broadcast %23 : vector<1x128xf32> to vector<128x128xf32>
    %25 = arith.subf %12, %24 : vector<128x128xf32>
    %26 = arith.mulf %25, %25 : vector<128x128xf32>
    %27 = vector.broadcast %17 : vector<128x1xf32> to vector<128x128xf32>
    %28 = arith.mulf %26, %27 : vector<128x128xf32>
    %cst_6 = arith.constant dense<0.000000e+00> : vector<128xf32>
    %29 = vector.multi_reduction <add>, %28, %cst_6 [0] : vector<128x128xf32> to vector<128xf32>
    %30 = vector.shape_cast %29 : vector<128xf32> to vector<1x128xf32>
    %cst_7 = arith.constant 6.400000e+01 : f32
    %31 = vector.broadcast %cst_7 : f32 to vector<1x128xf32>
    %32 = arith.divf %30, %31 : vector<1x128xf32>
    %33 = tpu.concatenate %23, %32 in 0 : vector<1x128xf32>, vector<1x128xf32> -> vector<2x128xf32>
    %c0_8 = arith.constant 0 : index
    %c0_9 = arith.constant 0 : index
    %34 = vector.load %arg1[%c0_8, %c0_9] : memref<2x128xf32, #tpu.memory_space<vmem>>, vector<2x128xf32>
    %35 = vector.extract_strided_slice %33 {offsets = [0, 0], sizes = [1, 128], strides = [1, 1]} : vector<2x128xf32> to vector<1x128xf32>
    %36 = vector.broadcast %35 : vector<1x128xf32> to vector<128x128xf32>
    %37 = arith.subf %12, %36 : vector<128x128xf32>
    %38 = vector.extract_strided_slice %33 {offsets = [1, 0], sizes = [1, 128], strides = [1, 1]} : vector<2x128xf32> to vector<1x128xf32>
    %cst_10 = arith.constant 9.99999974E-6 : f32
    %39 = vector.broadcast %cst_10 : f32 to vector<1x128xf32>
    %40 = arith.addf %38, %39 : vector<1x128xf32>
    %41 = math.rsqrt %40 : vector<1x128xf32>
    %42 = vector.broadcast %41 : vector<1x128xf32> to vector<128x128xf32>
    %43 = arith.mulf %37, %42 : vector<128x128xf32>
    %44 = vector.extract_strided_slice %34 {offsets = [0, 0], sizes = [1, 128], strides = [1, 1]} : vector<2x128xf32> to vector<1x128xf32>
    %45 = vector.broadcast %44 : vector<1x128xf32> to vector<128x128xf32>
    %46 = arith.mulf %43, %45 : vector<128x128xf32>
    %47 = vector.extract_strided_slice %34 {offsets = [1, 0], sizes = [1, 128], strides = [1, 1]} : vector<2x128xf32> to vector<1x128xf32>
    %48 = vector.broadcast %47 : vector<1x128xf32> to vector<128x128xf32>
    %49 = arith.addf %46, %48 : vector<128x128xf32>
    %cst_11 = arith.constant 0.000000e+00 : f32
    %50 = vector.broadcast %cst_11 : f32 to vector<128x128xf32>
    %51 = arith.maximumf %49, %50 : vector<128x128xf32>
    %52 = vector.broadcast %17 : vector<128x1xf32> to vector<128x128xf32>
    %53 = arith.mulf %51, %52 : vector<128x128xf32>
    %c0_12 = arith.constant 0 : index
    %c0_13 = arith.constant 0 : index
    %54 = vector.load %arg2[%c0_12, %c0_13] : memref<128x128xf32, #tpu.memory_space<vmem>>, vector<128x128xf32>
    tpu.vector_store %arg2[%c0_12, %c0_13], %53 {strides = array<i32>} : memref<128x128xf32, #tpu.memory_space<vmem>>, vector<128x128xf32>,
    %55 = vector.broadcast %17 : vector<128x1xf32> to vector<128x128xf32>
    %56 = arith.mulf %53, %55 : vector<128x128xf32>
    %cst_14 = arith.constant dense<0.000000e+00> : vector<128xf32>
    %57 = vector.multi_reduction <add>, %56, %cst_14 [0] : vector<128x128xf32> to vector<128xf32>
    %58 = vector.shape_cast %57 : vector<128xf32> to vector<1x128xf32>
    %cst_15 = arith.constant 6.400000e+01 : f32
    %59 = vector.broadcast %cst_15 : f32 to vector<1x128xf32>
    %60 = arith.divf %58, %59 : vector<1x128xf32>
    %61 = vector.broadcast %60 : vector<1x128xf32> to vector<128x128xf32>
    %62 = arith.subf %53, %61 : vector<128x128xf32>
    %63 = arith.mulf %62, %62 : vector<128x128xf32>
    %64 = vector.broadcast %17 : vector<128x1xf32> to vector<128x128xf32>
    %65 = arith.mulf %63, %64 : vector<128x128xf32>
    %cst_16 = arith.constant dense<0.000000e+00> : vector<128xf32>
    %66 = vector.multi_reduction <add>, %65, %cst_16 [0] : vector<128x128xf32> to vector<128xf32>
    %67 = vector.shape_cast %66 : vector<128xf32> to vector<1x128xf32>
    %cst_17 = arith.constant 6.400000e+01 : f32
    %68 = vector.broadcast %cst_17 : f32 to vector<1x128xf32>
    %69 = arith.divf %67, %68 : vector<1x128xf32>
    %70 = tpu.concatenate %60, %69 in 0 : vector<1x128xf32>, vector<1x128xf32> -> vector<2x128xf32>
    %c0_18 = arith.constant 0 : index
    %c0_19 = arith.constant 0 : index
    %71 = vector.load %arg3[%c0_18, %c0_19] : memref<2x128xf32, #tpu.memory_space<vmem>>, vector<2x128xf32>
    tpu.vector_store %arg3[%c0_18, %c0_19], %70 {strides = array<i32>} : memref<2x128xf32, #tpu.memory_space<vmem>>, vector<2x128xf32>,
    return
  }
}

module attributes {stable_mosaic.version = 11 : i64} {
  func.func @_stats_z2_kernel(%arg0: i32, %arg1: memref<128x128xf32, #tpu.memory_space<vmem>>, %arg2: memref<2x128xf32, #tpu.memory_space<vmem>>, %arg3: memref<128x128xbf16, #tpu.memory_space<vmem>>, %arg4: memref<1x128xf32, #tpu.memory_space<vmem>>, %arg5: memref<2x128xf32, #tpu.memory_space<vmem>>, %arg6: memref<128x128xbf16, #tpu.memory_space<vmem>>, %arg7: memref<1x128xf32, #tpu.memory_space<vmem>>, %arg8: memref<2x128xf32, #tpu.memory_space<vmem>>) attributes {dimension_semantics = [#tpu.dimension_semantics<arbitrary>], iteration_bounds = array<i64: 1>, scalar_prefetch = 0 : i64, scratch_operands = 0 : i64, tpu.core_type = #tpu.core_type<tc>, window_params = [{transform_indices = @transform_0, window_bounds = array<i64: 128, 128>}, {pipeline_mode = #tpu.pipeline_mode<synchronous>, transform_indices = @transform_1, window_bounds = array<i64: 2, 128>}, {pipeline_mode = #tpu.pipeline_mode<synchronous>, transform_indices = @transform_2, window_bounds = array<i64: 128, 128>}, {pipeline_mode = #tpu.pipeline_mode<synchronous>, transform_indices = @transform_3, window_bounds = array<i64: 1, 128>}, {pipeline_mode = #tpu.pipeline_mode<synchronous>, transform_indices = @transform_4, window_bounds = array<i64: 2, 128>}, {pipeline_mode = #tpu.pipeline_mode<synchronous>, transform_indices = @transform_5, window_bounds = array<i64: 128, 128>}, {pipeline_mode = #tpu.pipeline_mode<synchronous>, transform_indices = @transform_6, window_bounds = array<i64: 1, 128>}, {pipeline_mode = #tpu.pipeline_mode<synchronous>, transform_indices = @transform_7, window_bounds = array<i64: 2, 128>}]} {
    %c0_i32 = arith.constant 0 : i32
    %0 = arith.cmpi eq, %arg0, %c0_i32 : i32
    %1 = arith.extui %0 : i1 to i32
    %c0_i32_0 = arith.constant 0 : i32
    %2 = arith.cmpi ne, %1, %c0_i32_0 : i32
    scf.if %2 {
      %cst_23 = arith.constant 0.000000e+00 : f32
      %43 = vector.broadcast %cst_23 : f32 to vector<2x128xf32>
      %c0_24 = arith.constant 0 : index
      %c0_25 = arith.constant 0 : index
      %44 = vector.load %arg8[%c0_24, %c0_25] : memref<2x128xf32, #tpu.memory_space<vmem>>, vector<2x128xf32>
      tpu.vector_store %arg8[%c0_24, %c0_25], %43 {strides = array<i32>} : memref<2x128xf32, #tpu.memory_space<vmem>>, vector<2x128xf32>,
    } else {
    }
    %c0 = arith.constant 0 : index
    %c0_1 = arith.constant 0 : index
    %3 = vector.load %arg2[%c0, %c0_1] : memref<2x128xf32, #tpu.memory_space<vmem>>, vector<2x128xf32>
    %c0_2 = arith.constant 0 : index
    %c0_3 = arith.constant 0 : index
    %4 = vector.load %arg1[%c0_2, %c0_3] : memref<128x128xf32, #tpu.memory_space<vmem>>, vector<128x128xf32>
    %c0_4 = arith.constant 0 : index
    %c0_5 = arith.constant 0 : index
    %5 = vector.load %arg3[%c0_4, %c0_5] : memref<128x128xbf16, #tpu.memory_space<vmem>>, vector<128x128xbf16>
    %c0_6 = arith.constant 0 : index
    %c0_7 = arith.constant 0 : index
    %6 = vector.load %arg4[%c0_6, %c0_7] : memref<1x128xf32, #tpu.memory_space<vmem>>, vector<1x128xf32>
    %c0_8 = arith.constant 0 : index
    %c0_9 = arith.constant 0 : index
    %7 = vector.load %arg5[%c0_8, %c0_9] : memref<2x128xf32, #tpu.memory_space<vmem>>, vector<2x128xf32>
    %c0_10 = arith.constant 0 : index
    %c0_11 = arith.constant 0 : index
    %8 = vector.load %arg6[%c0_10, %c0_11] : memref<128x128xbf16, #tpu.memory_space<vmem>>, vector<128x128xbf16>
    %c0_12 = arith.constant 0 : index
    %c0_13 = arith.constant 0 : index
    %9 = vector.load %arg7[%c0_12, %c0_13] : memref<1x128xf32, #tpu.memory_space<vmem>>, vector<1x128xf32>
    %10 = vector.shape_cast %4 : vector<128x128xf32> to vector<1x128x128xf32>
    %11 = vector.shape_cast %3 : vector<2x128xf32> to vector<2x1x128xf32>
    %12 = vector.broadcast %10 : vector<1x128x128xf32> to vector<2x128x128xf32>
    %13 = vector.broadcast %11 : vector<2x1x128xf32> to vector<2x128x128xf32>
    %14 = arith.addf %12, %13 : vector<2x128x128xf32>
    %cst = arith.constant 0.000000e+00 : f32
    %15 = vector.broadcast %cst : f32 to vector<2x128x128xf32>
    %16 = arith.maximumf %14, %15 : vector<2x128x128xf32>
    %17 = vector.shape_cast %16 : vector<2x128x128xf32> to vector<256x128xf32>
    %18 = arith.truncf %17 : vector<256x128xf32> to vector<256x128xbf16>
    %cst_14 = arith.constant dense<0.000000e+00> : vector<256x128xf32>
    %19 = tpu.matmul %18, %5, %cst_14 {dimension_numbers = #tpu.dot_dimension_numbers<[1], [0], [0], [1], [0, 0, 1, 1], [], []>} : vector<256x128xbf16>, vector<128x128xbf16>, vector<256x128xf32> -> vector<256x128xf32>
    %20 = vector.broadcast %6 : vector<1x128xf32> to vector<256x128xf32>
    %21 = arith.addf %19, %20 : vector<256x128xf32>
    %22 = vector.extract_strided_slice %7 {offsets = [0, 0], sizes = [1, 128], strides = [1, 1]} : vector<2x128xf32> to vector<1x128xf32>
    %23 = vector.broadcast %22 : vector<1x128xf32> to vector<256x128xf32>
    %24 = arith.mulf %21, %23 : vector<256x128xf32>
    %25 = vector.extract_strided_slice %7 {offsets = [1, 0], sizes = [1, 128], strides = [1, 1]} : vector<2x128xf32> to vector<1x128xf32>
    %26 = vector.broadcast %25 : vector<1x128xf32> to vector<256x128xf32>
    %27 = arith.addf %24, %26 : vector<256x128xf32>
    %cst_15 = arith.constant 0.000000e+00 : f32
    %28 = vector.broadcast %cst_15 : f32 to vector<256x128xf32>
    %29 = arith.maximumf %27, %28 : vector<256x128xf32>
    %30 = arith.truncf %29 : vector<256x128xf32> to vector<256x128xbf16>
    %cst_16 = arith.constant dense<0.000000e+00> : vector<256x128xf32>
    %31 = tpu.matmul %30, %8, %cst_16 {dimension_numbers = #tpu.dot_dimension_numbers<[1], [0], [0], [1], [0, 0, 1, 1], [], []>} : vector<256x128xbf16>, vector<128x128xbf16>, vector<256x128xf32> -> vector<256x128xf32>
    %32 = vector.broadcast %9 : vector<1x128xf32> to vector<256x128xf32>
    %33 = arith.addf %31, %32 : vector<256x128xf32>
    %c0_i32_17 = arith.constant 0 : i32
    %34 = arith.cmpi eq, %arg0, %c0_i32_17 : i32
    %35 = arith.extui %34 : i1 to i32
    %c0_i32_18 = arith.constant 0 : i32
    %36 = arith.cmpi ne, %35, %c0_i32_18 : i32
    scf.if %36 {
      %43 = tpu.iota {dimensions = array<i32: 0>} : vector<256x1xi32>
      %c128_i32 = arith.constant 128 : i32
      %44 = arith.muli %arg0, %c128_i32 : i32
      %c128_i32_23 = arith.constant 128 : i32
      %c0_i32_24 = arith.constant 0 : i32
      %45 = arith.cmpi eq, %c128_i32_23, %c0_i32_24 : i32
      %c1_i32 = arith.constant 1 : i32
      %46 = arith.select %45, %c1_i32, %c128_i32_23 : i32
      %47 = vector.broadcast %46 : i32 to vector<256x1xi32>
      %48 = arith.remsi %43, %47 : vector<256x1xi32>
      %c0_i32_25 = arith.constant 0 : i32
      %49 = vector.broadcast %c0_i32_25 : i32 to vector<256x1xi32>
      %50 = arith.cmpi ne, %48, %49 : vector<256x1xi32>
      %c0_i32_26 = arith.constant 0 : i32
      %51 = vector.broadcast %c0_i32_26 : i32 to vector<256x1xi32>
      %52 = arith.cmpi slt, %48, %51 : vector<256x1xi32>
      %c0_i32_27 = arith.constant 0 : i32
      %53 = arith.cmpi slt, %46, %c0_i32_27 : i32
      %54 = vector.broadcast %53 : i1 to vector<256x1xi1>
      %55 = vector.broadcast %54 : vector<256x1xi1> to vector<256x1xi1>
      %56 = arith.xori %52, %55 : vector<256x1xi1>
      %57 = arith.andi %56, %50 : vector<256x1xi1>
      %58 = vector.broadcast %46 : i32 to vector<256x1xi32>
      %59 = arith.addi %48, %58 : vector<256x1xi32>
      %60 = arith.select %57, %59, %48 : vector<256x1xi1>, vector<256x1xi32>
      %61 = vector.broadcast %44 : i32 to vector<256x1xi32>
      %62 = arith.addi %61, %60 : vector<256x1xi32>
      %c64_i32 = arith.constant 64 : i32
      %63 = vector.broadcast %c64_i32 : i32 to vector<256x1xi32>
      %64 = arith.cmpi slt, %62, %63 : vector<256x1xi32>
      %65 = arith.extui %64 : vector<256x1xi1> to vector<256x1xi32>
      %66 = arith.sitofp %65 : vector<256x1xi32> to vector<256x1xf32>
      %c0_28 = arith.constant 0 : index
      %c0_29 = arith.constant 0 : index
      %67 = vector.load %arg8[%c0_28, %c0_29] : memref<2x128xf32, #tpu.memory_space<vmem>>, vector<2x128xf32>
      %68 = vector.broadcast %66 : vector<256x1xf32> to vector<256x128xf32>
      %69 = arith.mulf %33, %68 : vector<256x128xf32>
      %cst_30 = arith.constant dense<0.000000e+00> : vector<128xf32>
      %70 = vector.multi_reduction <add>, %69, %cst_30 [0] : vector<256x128xf32> to vector<128xf32>
      %71 = vector.shape_cast %70 : vector<128xf32> to vector<1x128xf32>
      %72 = arith.mulf %33, %33 : vector<256x128xf32>
      %73 = vector.broadcast %66 : vector<256x1xf32> to vector<256x128xf32>
      %74 = arith.mulf %72, %73 : vector<256x128xf32>
      %cst_31 = arith.constant dense<0.000000e+00> : vector<128xf32>
      %75 = vector.multi_reduction <add>, %74, %cst_31 [0] : vector<256x128xf32> to vector<128xf32>
      %76 = vector.shape_cast %75 : vector<128xf32> to vector<1x128xf32>
      %77 = tpu.concatenate %71, %76 in 0 : vector<1x128xf32>, vector<1x128xf32> -> vector<2x128xf32>
      %78 = arith.addf %67, %77 : vector<2x128xf32>
      %c0_32 = arith.constant 0 : index
      %c0_33 = arith.constant 0 : index
      %79 = vector.load %arg8[%c0_32, %c0_33] : memref<2x128xf32, #tpu.memory_space<vmem>>, vector<2x128xf32>
      tpu.vector_store %arg8[%c0_32, %c0_33], %78 {strides = array<i32>} : memref<2x128xf32, #tpu.memory_space<vmem>>, vector<2x128xf32>,
    } else {
    }
    %c0_i32_19 = arith.constant 0 : i32
    %37 = arith.cmpi ne, %arg0, %c0_i32_19 : i32
    %38 = arith.extui %37 : i1 to i32
    %c0_i32_20 = arith.constant 0 : i32
    %39 = arith.cmpi ne, %38, %c0_i32_20 : i32
    scf.if %39 {
      %c0_23 = arith.constant 0 : index
      %c0_24 = arith.constant 0 : index
      %43 = vector.load %arg8[%c0_23, %c0_24] : memref<2x128xf32, #tpu.memory_space<vmem>>, vector<2x128xf32>
      %cst_25 = arith.constant dense<0.000000e+00> : vector<128xf32>
      %44 = vector.multi_reduction <add>, %33, %cst_25 [0] : vector<256x128xf32> to vector<128xf32>
      %45 = vector.shape_cast %44 : vector<128xf32> to vector<1x128xf32>
      %46 = arith.mulf %33, %33 : vector<256x128xf32>
      %cst_26 = arith.constant dense<0.000000e+00> : vector<128xf32>
      %47 = vector.multi_reduction <add>, %46, %cst_26 [0] : vector<256x128xf32> to vector<128xf32>
      %48 = vector.shape_cast %47 : vector<128xf32> to vector<1x128xf32>
      %49 = tpu.concatenate %45, %48 in 0 : vector<1x128xf32>, vector<1x128xf32> -> vector<2x128xf32>
      %50 = arith.addf %43, %49 : vector<2x128xf32>
      %c0_27 = arith.constant 0 : index
      %c0_28 = arith.constant 0 : index
      %51 = vector.load %arg8[%c0_27, %c0_28] : memref<2x128xf32, #tpu.memory_space<vmem>>, vector<2x128xf32>
      tpu.vector_store %arg8[%c0_27, %c0_28], %50 {strides = array<i32>} : memref<2x128xf32, #tpu.memory_space<vmem>>, vector<2x128xf32>,
    } else {
    }
    %c0_i32_21 = arith.constant 0 : i32
    %40 = arith.cmpi eq, %arg0, %c0_i32_21 : i32
    %41 = arith.extui %40 : i1 to i32
    %c0_i32_22 = arith.constant 0 : i32
    %42 = arith.cmpi ne, %41, %c0_i32_22 : i32
    scf.if %42 {
      %c0_23 = arith.constant 0 : index
      %c0_24 = arith.constant 0 : index
      %43 = vector.load %arg8[%c0_23, %c0_24] : memref<2x128xf32, #tpu.memory_space<vmem>>, vector<2x128xf32>
      %44 = vector.extract_strided_slice %43 {offsets = [0, 0], sizes = [1, 128], strides = [1, 1]} : vector<2x128xf32> to vector<1x128xf32>
      %cst_25 = arith.constant 1.280000e+02 : f32
      %45 = vector.broadcast %cst_25 : f32 to vector<1x128xf32>
      %46 = arith.divf %44, %45 : vector<1x128xf32>
      %47 = vector.extract_strided_slice %43 {offsets = [1, 0], sizes = [1, 128], strides = [1, 1]} : vector<2x128xf32> to vector<1x128xf32>
      %cst_26 = arith.constant 1.280000e+02 : f32
      %48 = vector.broadcast %cst_26 : f32 to vector<1x128xf32>
      %49 = arith.divf %47, %48 : vector<1x128xf32>
      %50 = arith.mulf %46, %46 : vector<1x128xf32>
      %51 = arith.subf %49, %50 : vector<1x128xf32>
      %cst_27 = arith.constant 0.000000e+00 : f32
      %52 = vector.broadcast %cst_27 : f32 to vector<1x128xf32>
      %53 = arith.maximumf %51, %52 : vector<1x128xf32>
      %54 = tpu.concatenate %46, %53 in 0 : vector<1x128xf32>, vector<1x128xf32> -> vector<2x128xf32>
      %c0_28 = arith.constant 0 : index
      %c0_29 = arith.constant 0 : index
      %55 = vector.load %arg8[%c0_28, %c0_29] : memref<2x128xf32, #tpu.memory_space<vmem>>, vector<2x128xf32>
      tpu.vector_store %arg8[%c0_28, %c0_29], %54 {strides = array<i32>} : memref<2x128xf32, #tpu.memory_space<vmem>>, vector<2x128xf32>,
    } else {
    }
    return
  }
  func.func @transform_0(%arg0: i32) -> (i32, i32) {
    %c0_i32 = arith.constant 0 : i32
    %c0_i32_0 = arith.constant 0 : i32
    return %arg0, %c0_i32 : i32, i32
  }
  func.func @transform_1(%arg0: i32) -> (i32, i32) {
    %c0_i32 = arith.constant 0 : i32
    %c0_i32_0 = arith.constant 0 : i32
    %c0_i32_1 = arith.constant 0 : i32
    return %c0_i32, %c0_i32_0 : i32, i32
  }
  func.func @transform_2(%arg0: i32) -> (i32, i32) {
    %c0_i32 = arith.constant 0 : i32
    %c0_i32_0 = arith.constant 0 : i32
    %c0_i32_1 = arith.constant 0 : i32
    return %c0_i32, %c0_i32_0 : i32, i32
  }
  func.func @transform_3(%arg0: i32) -> (i32, i32) {
    %c0_i32 = arith.constant 0 : i32
    %c0_i32_0 = arith.constant 0 : i32
    %c0_i32_1 = arith.constant 0 : i32
    return %c0_i32, %c0_i32_0 : i32, i32
  }
  func.func @transform_4(%arg0: i32) -> (i32, i32) {
    %c0_i32 = arith.constant 0 : i32
    %c0_i32_0 = arith.constant 0 : i32
    %c0_i32_1 = arith.constant 0 : i32
    return %c0_i32, %c0_i32_0 : i32, i32
  }
  func.func @transform_5(%arg0: i32) -> (i32, i32) {
    %c0_i32 = arith.constant 0 : i32
    %c0_i32_0 = arith.constant 0 : i32
    %c0_i32_1 = arith.constant 0 : i32
    return %c0_i32, %c0_i32_0 : i32, i32
  }
  func.func @transform_6(%arg0: i32) -> (i32, i32) {
    %c0_i32 = arith.constant 0 : i32
    %c0_i32_0 = arith.constant 0 : i32
    %c0_i32_1 = arith.constant 0 : i32
    return %c0_i32, %c0_i32_0 : i32, i32
  }
  func.func @transform_7(%arg0: i32) -> (i32, i32) {
    %c0_i32 = arith.constant 0 : i32
    %c0_i32_0 = arith.constant 0 : i32
    %c0_i32_1 = arith.constant 0 : i32
    return %c0_i32, %c0_i32_0 : i32, i32
  }
}

module attributes {stable_mosaic.version = 11 : i64} {
  func.func @_decoder1_kernel(%arg0: i32, %arg1: memref<128x128xf32, #tpu.memory_space<vmem>>, %arg2: memref<2x128xf32, #tpu.memory_space<vmem>>, %arg3: memref<128x128xbf16, #tpu.memory_space<vmem>>, %arg4: memref<1x128xf32, #tpu.memory_space<vmem>>, %arg5: memref<2x128xf32, #tpu.memory_space<vmem>>, %arg6: memref<128x128xbf16, #tpu.memory_space<vmem>>, %arg7: memref<1x128xf32, #tpu.memory_space<vmem>>, %arg8: memref<2x128xf32, #tpu.memory_space<vmem>>, %arg9: memref<128x128xf32, #tpu.memory_space<vmem>>, %arg10: memref<1x128xf32, #tpu.memory_space<vmem>>, %arg11: memref<2x128xf32, #tpu.memory_space<vmem>>) attributes {dimension_semantics = [#tpu.dimension_semantics<parallel>], iteration_bounds = array<i64: 1>, scalar_prefetch = 0 : i64, scratch_operands = 0 : i64, tpu.core_type = #tpu.core_type<tc>, window_params = [{transform_indices = @transform_0, window_bounds = array<i64: 128, 128>}, {pipeline_mode = #tpu.pipeline_mode<synchronous>, transform_indices = @transform_1, window_bounds = array<i64: 2, 128>}, {pipeline_mode = #tpu.pipeline_mode<synchronous>, transform_indices = @transform_2, window_bounds = array<i64: 128, 128>}, {pipeline_mode = #tpu.pipeline_mode<synchronous>, transform_indices = @transform_3, window_bounds = array<i64: 1, 128>}, {pipeline_mode = #tpu.pipeline_mode<synchronous>, transform_indices = @transform_4, window_bounds = array<i64: 2, 128>}, {pipeline_mode = #tpu.pipeline_mode<synchronous>, transform_indices = @transform_5, window_bounds = array<i64: 128, 128>}, {pipeline_mode = #tpu.pipeline_mode<synchronous>, transform_indices = @transform_6, window_bounds = array<i64: 1, 128>}, {pipeline_mode = #tpu.pipeline_mode<synchronous>, transform_indices = @transform_7, window_bounds = array<i64: 2, 128>}, {transform_indices = @transform_8, window_bounds = array<i64: 128, 128>}, {transform_indices = @transform_9, window_bounds = array<i64: 1, 128>}, {transform_indices = @transform_10, window_bounds = array<i64: 2, 128>}]} {
    %c0 = arith.constant 0 : index
    %c0_0 = arith.constant 0 : index
    %0 = vector.load %arg2[%c0, %c0_0] : memref<2x128xf32, #tpu.memory_space<vmem>>, vector<2x128xf32>
    %c0_1 = arith.constant 0 : index
    %c0_2 = arith.constant 0 : index
    %1 = vector.load %arg1[%c0_1, %c0_2] : memref<128x128xf32, #tpu.memory_space<vmem>>, vector<128x128xf32>
    %c0_3 = arith.constant 0 : index
    %c0_4 = arith.constant 0 : index
    %2 = vector.load %arg3[%c0_3, %c0_4] : memref<128x128xbf16, #tpu.memory_space<vmem>>, vector<128x128xbf16>
    %c0_5 = arith.constant 0 : index
    %c0_6 = arith.constant 0 : index
    %3 = vector.load %arg4[%c0_5, %c0_6] : memref<1x128xf32, #tpu.memory_space<vmem>>, vector<1x128xf32>
    %c0_7 = arith.constant 0 : index
    %c0_8 = arith.constant 0 : index
    %4 = vector.load %arg5[%c0_7, %c0_8] : memref<2x128xf32, #tpu.memory_space<vmem>>, vector<2x128xf32>
    %c0_9 = arith.constant 0 : index
    %c0_10 = arith.constant 0 : index
    %5 = vector.load %arg6[%c0_9, %c0_10] : memref<128x128xbf16, #tpu.memory_space<vmem>>, vector<128x128xbf16>
    %c0_11 = arith.constant 0 : index
    %c0_12 = arith.constant 0 : index
    %6 = vector.load %arg7[%c0_11, %c0_12] : memref<1x128xf32, #tpu.memory_space<vmem>>, vector<1x128xf32>
    %7 = vector.shape_cast %1 : vector<128x128xf32> to vector<1x128x128xf32>
    %8 = vector.shape_cast %0 : vector<2x128xf32> to vector<2x1x128xf32>
    %9 = vector.broadcast %7 : vector<1x128x128xf32> to vector<2x128x128xf32>
    %10 = vector.broadcast %8 : vector<2x1x128xf32> to vector<2x128x128xf32>
    %11 = arith.addf %9, %10 : vector<2x128x128xf32>
    %cst = arith.constant 0.000000e+00 : f32
    %12 = vector.broadcast %cst : f32 to vector<2x128x128xf32>
    %13 = arith.maximumf %11, %12 : vector<2x128x128xf32>
    %14 = vector.shape_cast %13 : vector<2x128x128xf32> to vector<256x128xf32>
    %15 = arith.truncf %14 : vector<256x128xf32> to vector<256x128xbf16>
    %cst_13 = arith.constant dense<0.000000e+00> : vector<256x128xf32>
    %16 = tpu.matmul %15, %2, %cst_13 {dimension_numbers = #tpu.dot_dimension_numbers<[1], [0], [0], [1], [0, 0, 1, 1], [], []>} : vector<256x128xbf16>, vector<128x128xbf16>, vector<256x128xf32> -> vector<256x128xf32>
    %17 = vector.broadcast %3 : vector<1x128xf32> to vector<256x128xf32>
    %18 = arith.addf %16, %17 : vector<256x128xf32>
    %19 = vector.extract_strided_slice %4 {offsets = [0, 0], sizes = [1, 128], strides = [1, 1]} : vector<2x128xf32> to vector<1x128xf32>
    %20 = vector.broadcast %19 : vector<1x128xf32> to vector<256x128xf32>
    %21 = arith.mulf %18, %20 : vector<256x128xf32>
    %22 = vector.extract_strided_slice %4 {offsets = [1, 0], sizes = [1, 128], strides = [1, 1]} : vector<2x128xf32> to vector<1x128xf32>
    %23 = vector.broadcast %22 : vector<1x128xf32> to vector<256x128xf32>
    %24 = arith.addf %21, %23 : vector<256x128xf32>
    %cst_14 = arith.constant 0.000000e+00 : f32
    %25 = vector.broadcast %cst_14 : f32 to vector<256x128xf32>
    %26 = arith.maximumf %24, %25 : vector<256x128xf32>
    %27 = arith.truncf %26 : vector<256x128xf32> to vector<256x128xbf16>
    %cst_15 = arith.constant dense<0.000000e+00> : vector<256x128xf32>
    %28 = tpu.matmul %27, %5, %cst_15 {dimension_numbers = #tpu.dot_dimension_numbers<[1], [0], [0], [1], [0, 0, 1, 1], [], []>} : vector<256x128xbf16>, vector<128x128xbf16>, vector<256x128xf32> -> vector<256x128xf32>
    %29 = vector.broadcast %6 : vector<1x128xf32> to vector<256x128xf32>
    %30 = arith.addf %28, %29 : vector<256x128xf32>
    %c0_16 = arith.constant 0 : index
    %c0_17 = arith.constant 0 : index
    %31 = vector.load %arg8[%c0_16, %c0_17] : memref<2x128xf32, #tpu.memory_space<vmem>>, vector<2x128xf32>
    %32 = vector.extract_strided_slice %31 {offsets = [0, 0], sizes = [1, 128], strides = [1, 1]} : vector<2x128xf32> to vector<1x128xf32>
    %33 = vector.broadcast %32 : vector<1x128xf32> to vector<256x128xf32>
    %34 = arith.mulf %30, %33 : vector<256x128xf32>
    %35 = vector.extract_strided_slice %31 {offsets = [1, 0], sizes = [1, 128], strides = [1, 1]} : vector<2x128xf32> to vector<1x128xf32>
    %36 = vector.broadcast %35 : vector<1x128xf32> to vector<256x128xf32>
    %37 = arith.addf %34, %36 : vector<256x128xf32>
    %38 = vector.shape_cast %37 : vector<256x128xf32> to vector<2x128x128xf32>
    %c0_18 = arith.constant 0 : index
    %c0_19 = arith.constant 0 : index
    %39 = vector.load %arg9[%c0_18, %c0_19] : memref<128x128xf32, #tpu.memory_space<vmem>>, vector<128x128xf32>
    %40 = vector.shape_cast %39 : vector<128x128xf32> to vector<1x128x128xf32>
    %41 = vector.broadcast %40 : vector<1x128x128xf32> to vector<2x128x128xf32>
    %42 = arith.mulf %38, %41 : vector<2x128x128xf32>
    %cst_20 = arith.constant dense<0.000000e+00> : vector<2x128xf32>
    %43 = vector.multi_reduction <add>, %42, %cst_20 [2] : vector<2x128x128xf32> to vector<2x128xf32>
    %c0_21 = arith.constant 0 : index
    %c0_22 = arith.constant 0 : index
    %44 = vector.load %arg10[%c0_21, %c0_22] : memref<1x128xf32, #tpu.memory_space<vmem>>, vector<1x128xf32>
    %45 = vector.broadcast %44 : vector<1x128xf32> to vector<2x128xf32>
    %46 = arith.addf %43, %45 : vector<2x128xf32>
    %c0_23 = arith.constant 0 : index
    %c0_24 = arith.constant 0 : index
    %47 = vector.load %arg11[%c0_23, %c0_24] : memref<2x128xf32, #tpu.memory_space<vmem>>, vector<2x128xf32>
    tpu.vector_store %arg11[%c0_23, %c0_24], %46 {strides = array<i32>} : memref<2x128xf32, #tpu.memory_space<vmem>>, vector<2x128xf32>,
    return
  }
  func.func @transform_0(%arg0: i32) -> (i32, i32) {
    %c0_i32 = arith.constant 0 : i32
    %c0_i32_0 = arith.constant 0 : i32
    return %arg0, %c0_i32 : i32, i32
  }
  func.func @transform_1(%arg0: i32) -> (i32, i32) {
    %c0_i32 = arith.constant 0 : i32
    %c0_i32_0 = arith.constant 0 : i32
    %c0_i32_1 = arith.constant 0 : i32
    return %c0_i32, %c0_i32_0 : i32, i32
  }
  func.func @transform_2(%arg0: i32) -> (i32, i32) {
    %c0_i32 = arith.constant 0 : i32
    %c0_i32_0 = arith.constant 0 : i32
    %c0_i32_1 = arith.constant 0 : i32
    return %c0_i32, %c0_i32_0 : i32, i32
  }
  func.func @transform_3(%arg0: i32) -> (i32, i32) {
    %c0_i32 = arith.constant 0 : i32
    %c0_i32_0 = arith.constant 0 : i32
    %c0_i32_1 = arith.constant 0 : i32
    return %c0_i32, %c0_i32_0 : i32, i32
  }
  func.func @transform_4(%arg0: i32) -> (i32, i32) {
    %c0_i32 = arith.constant 0 : i32
    %c0_i32_0 = arith.constant 0 : i32
    %c0_i32_1 = arith.constant 0 : i32
    return %c0_i32, %c0_i32_0 : i32, i32
  }
  func.func @transform_5(%arg0: i32) -> (i32, i32) {
    %c0_i32 = arith.constant 0 : i32
    %c0_i32_0 = arith.constant 0 : i32
    %c0_i32_1 = arith.constant 0 : i32
    return %c0_i32, %c0_i32_0 : i32, i32
  }
  func.func @transform_6(%arg0: i32) -> (i32, i32) {
    %c0_i32 = arith.constant 0 : i32
    %c0_i32_0 = arith.constant 0 : i32
    %c0_i32_1 = arith.constant 0 : i32
    return %c0_i32, %c0_i32_0 : i32, i32
  }
  func.func @transform_7(%arg0: i32) -> (i32, i32) {
    %c0_i32 = arith.constant 0 : i32
    %c0_i32_0 = arith.constant 0 : i32
    %c0_i32_1 = arith.constant 0 : i32
    return %c0_i32, %c0_i32_0 : i32, i32
  }
  func.func @transform_8(%arg0: i32) -> (i32, i32) {
    %c0_i32 = arith.constant 0 : i32
    %c0_i32_0 = arith.constant 0 : i32
    return %arg0, %c0_i32 : i32, i32
  }
  func.func @transform_9(%arg0: i32) -> (i32, i32) {
    %c0_i32 = arith.constant 0 : i32
    %c0_i32_0 = arith.constant 0 : i32
    return %c0_i32, %arg0 : i32, i32
  }
  func.func @transform_10(%arg0: i32) -> (i32, i32) {
    %c0_i32 = arith.constant 0 : i32
    %c0_i32_0 = arith.constant 0 : i32
    return %c0_i32, %arg0 : i32, i32
  }
}

module attributes {stable_mosaic.version = 11 : i64} {
  func.func @_stats_z1_kernel(%arg0: i32, %arg1: memref<128x128xf32, #tpu.memory_space<vmem>>, %arg2: memref<2x128xf32, #tpu.memory_space<vmem>>, %arg3: memref<128x128xbf16, #tpu.memory_space<vmem>>, %arg4: memref<1x128xf32, #tpu.memory_space<vmem>>, %arg5: memref<2x128xf32, #tpu.memory_space<vmem>>) attributes {dimension_semantics = [#tpu.dimension_semantics<arbitrary>], iteration_bounds = array<i64: 1>, scalar_prefetch = 0 : i64, scratch_operands = 0 : i64, tpu.core_type = #tpu.core_type<tc>, window_params = [{transform_indices = @transform_0, window_bounds = array<i64: 128, 128>}, {pipeline_mode = #tpu.pipeline_mode<synchronous>, transform_indices = @transform_1, window_bounds = array<i64: 2, 128>}, {pipeline_mode = #tpu.pipeline_mode<synchronous>, transform_indices = @transform_2, window_bounds = array<i64: 128, 128>}, {pipeline_mode = #tpu.pipeline_mode<synchronous>, transform_indices = @transform_3, window_bounds = array<i64: 1, 128>}, {pipeline_mode = #tpu.pipeline_mode<synchronous>, transform_indices = @transform_4, window_bounds = array<i64: 2, 128>}]} {
    %c0_i32 = arith.constant 0 : i32
    %0 = arith.cmpi eq, %arg0, %c0_i32 : i32
    %1 = arith.extui %0 : i1 to i32
    %c0_i32_0 = arith.constant 0 : i32
    %2 = arith.cmpi ne, %1, %c0_i32_0 : i32
    scf.if %2 {
      %cst_15 = arith.constant 0.000000e+00 : f32
      %28 = vector.broadcast %cst_15 : f32 to vector<2x128xf32>
      %c0_16 = arith.constant 0 : index
      %c0_17 = arith.constant 0 : index
      %29 = vector.load %arg5[%c0_16, %c0_17] : memref<2x128xf32, #tpu.memory_space<vmem>>, vector<2x128xf32>
      tpu.vector_store %arg5[%c0_16, %c0_17], %28 {strides = array<i32>} : memref<2x128xf32, #tpu.memory_space<vmem>>, vector<2x128xf32>,
    } else {
    }
    %c0 = arith.constant 0 : index
    %c0_1 = arith.constant 0 : index
    %3 = vector.load %arg2[%c0, %c0_1] : memref<2x128xf32, #tpu.memory_space<vmem>>, vector<2x128xf32>
    %c0_2 = arith.constant 0 : index
    %c0_3 = arith.constant 0 : index
    %4 = vector.load %arg1[%c0_2, %c0_3] : memref<128x128xf32, #tpu.memory_space<vmem>>, vector<128x128xf32>
    %c0_4 = arith.constant 0 : index
    %c0_5 = arith.constant 0 : index
    %5 = vector.load %arg3[%c0_4, %c0_5] : memref<128x128xbf16, #tpu.memory_space<vmem>>, vector<128x128xbf16>
    %c0_6 = arith.constant 0 : index
    %c0_7 = arith.constant 0 : index
    %6 = vector.load %arg4[%c0_6, %c0_7] : memref<1x128xf32, #tpu.memory_space<vmem>>, vector<1x128xf32>
    %7 = vector.shape_cast %4 : vector<128x128xf32> to vector<1x128x128xf32>
    %8 = vector.shape_cast %3 : vector<2x128xf32> to vector<2x1x128xf32>
    %9 = vector.broadcast %7 : vector<1x128x128xf32> to vector<2x128x128xf32>
    %10 = vector.broadcast %8 : vector<2x1x128xf32> to vector<2x128x128xf32>
    %11 = arith.addf %9, %10 : vector<2x128x128xf32>
    %cst = arith.constant 0.000000e+00 : f32
    %12 = vector.broadcast %cst : f32 to vector<2x128x128xf32>
    %13 = arith.maximumf %11, %12 : vector<2x128x128xf32>
    %14 = vector.shape_cast %13 : vector<2x128x128xf32> to vector<256x128xf32>
    %15 = arith.truncf %14 : vector<256x128xf32> to vector<256x128xbf16>
    %cst_8 = arith.constant dense<0.000000e+00> : vector<256x128xf32>
    %16 = tpu.matmul %15, %5, %cst_8 {dimension_numbers = #tpu.dot_dimension_numbers<[1], [0], [0], [1], [0, 0, 1, 1], [], []>} : vector<256x128xbf16>, vector<128x128xbf16>, vector<256x128xf32> -> vector<256x128xf32>
    %17 = vector.broadcast %6 : vector<1x128xf32> to vector<256x128xf32>
    %18 = arith.addf %16, %17 : vector<256x128xf32>
    %c0_i32_9 = arith.constant 0 : i32
    %19 = arith.cmpi eq, %arg0, %c0_i32_9 : i32
    %20 = arith.extui %19 : i1 to i32
    %c0_i32_10 = arith.constant 0 : i32
    %21 = arith.cmpi ne, %20, %c0_i32_10 : i32
    scf.if %21 {
      %28 = tpu.iota {dimensions = array<i32: 0>} : vector<256x1xi32>
      %c128_i32 = arith.constant 128 : i32
      %29 = arith.muli %arg0, %c128_i32 : i32
      %c128_i32_15 = arith.constant 128 : i32
      %c0_i32_16 = arith.constant 0 : i32
      %30 = arith.cmpi eq, %c128_i32_15, %c0_i32_16 : i32
      %c1_i32 = arith.constant 1 : i32
      %31 = arith.select %30, %c1_i32, %c128_i32_15 : i32
      %32 = vector.broadcast %31 : i32 to vector<256x1xi32>
      %33 = arith.remsi %28, %32 : vector<256x1xi32>
      %c0_i32_17 = arith.constant 0 : i32
      %34 = vector.broadcast %c0_i32_17 : i32 to vector<256x1xi32>
      %35 = arith.cmpi ne, %33, %34 : vector<256x1xi32>
      %c0_i32_18 = arith.constant 0 : i32
      %36 = vector.broadcast %c0_i32_18 : i32 to vector<256x1xi32>
      %37 = arith.cmpi slt, %33, %36 : vector<256x1xi32>
      %c0_i32_19 = arith.constant 0 : i32
      %38 = arith.cmpi slt, %31, %c0_i32_19 : i32
      %39 = vector.broadcast %38 : i1 to vector<256x1xi1>
      %40 = vector.broadcast %39 : vector<256x1xi1> to vector<256x1xi1>
      %41 = arith.xori %37, %40 : vector<256x1xi1>
      %42 = arith.andi %41, %35 : vector<256x1xi1>
      %43 = vector.broadcast %31 : i32 to vector<256x1xi32>
      %44 = arith.addi %33, %43 : vector<256x1xi32>
      %45 = arith.select %42, %44, %33 : vector<256x1xi1>, vector<256x1xi32>
      %46 = vector.broadcast %29 : i32 to vector<256x1xi32>
      %47 = arith.addi %46, %45 : vector<256x1xi32>
      %c64_i32 = arith.constant 64 : i32
      %48 = vector.broadcast %c64_i32 : i32 to vector<256x1xi32>
      %49 = arith.cmpi slt, %47, %48 : vector<256x1xi32>
      %50 = arith.extui %49 : vector<256x1xi1> to vector<256x1xi32>
      %51 = arith.sitofp %50 : vector<256x1xi32> to vector<256x1xf32>
      %c0_20 = arith.constant 0 : index
      %c0_21 = arith.constant 0 : index
      %52 = vector.load %arg5[%c0_20, %c0_21] : memref<2x128xf32, #tpu.memory_space<vmem>>, vector<2x128xf32>
      %53 = vector.broadcast %51 : vector<256x1xf32> to vector<256x128xf32>
      %54 = arith.mulf %18, %53 : vector<256x128xf32>
      %cst_22 = arith.constant dense<0.000000e+00> : vector<128xf32>
      %55 = vector.multi_reduction <add>, %54, %cst_22 [0] : vector<256x128xf32> to vector<128xf32>
      %56 = vector.shape_cast %55 : vector<128xf32> to vector<1x128xf32>
      %57 = arith.mulf %18, %18 : vector<256x128xf32>
      %58 = vector.broadcast %51 : vector<256x1xf32> to vector<256x128xf32>
      %59 = arith.mulf %57, %58 : vector<256x128xf32>
      %cst_23 = arith.constant dense<0.000000e+00> : vector<128xf32>
      %60 = vector.multi_reduction <add>, %59, %cst_23 [0] : vector<256x128xf32> to vector<128xf32>
      %61 = vector.shape_cast %60 : vector<128xf32> to vector<1x128xf32>
      %62 = tpu.concatenate %56, %61 in 0 : vector<1x128xf32>, vector<1x128xf32> -> vector<2x128xf32>
      %63 = arith.addf %52, %62 : vector<2x128xf32>
      %c0_24 = arith.constant 0 : index
      %c0_25 = arith.constant 0 : index
      %64 = vector.load %arg5[%c0_24, %c0_25] : memref<2x128xf32, #tpu.memory_space<vmem>>, vector<2x128xf32>
      tpu.vector_store %arg5[%c0_24, %c0_25], %63 {strides = array<i32>} : memref<2x128xf32, #tpu.memory_space<vmem>>, vector<2x128xf32>,
    } else {
    }
    %c0_i32_11 = arith.constant 0 : i32
    %22 = arith.cmpi ne, %arg0, %c0_i32_11 : i32
    %23 = arith.extui %22 : i1 to i32
    %c0_i32_12 = arith.constant 0 : i32
    %24 = arith.cmpi ne, %23, %c0_i32_12 : i32
    scf.if %24 {
      %c0_15 = arith.constant 0 : index
      %c0_16 = arith.constant 0 : index
      %28 = vector.load %arg5[%c0_15, %c0_16] : memref<2x128xf32, #tpu.memory_space<vmem>>, vector<2x128xf32>
      %cst_17 = arith.constant dense<0.000000e+00> : vector<128xf32>
      %29 = vector.multi_reduction <add>, %18, %cst_17 [0] : vector<256x128xf32> to vector<128xf32>
      %30 = vector.shape_cast %29 : vector<128xf32> to vector<1x128xf32>
      %31 = arith.mulf %18, %18 : vector<256x128xf32>
      %cst_18 = arith.constant dense<0.000000e+00> : vector<128xf32>
      %32 = vector.multi_reduction <add>, %31, %cst_18 [0] : vector<256x128xf32> to vector<128xf32>
      %33 = vector.shape_cast %32 : vector<128xf32> to vector<1x128xf32>
      %34 = tpu.concatenate %30, %33 in 0 : vector<1x128xf32>, vector<1x128xf32> -> vector<2x128xf32>
      %35 = arith.addf %28, %34 : vector<2x128xf32>
      %c0_19 = arith.constant 0 : index
      %c0_20 = arith.constant 0 : index
      %36 = vector.load %arg5[%c0_19, %c0_20] : memref<2x128xf32, #tpu.memory_space<vmem>>, vector<2x128xf32>
      tpu.vector_store %arg5[%c0_19, %c0_20], %35 {strides = array<i32>} : memref<2x128xf32, #tpu.memory_space<vmem>>, vector<2x128xf32>,
    } else {
    }
    %c0_i32_13 = arith.constant 0 : i32
    %25 = arith.cmpi eq, %arg0, %c0_i32_13 : i32
    %26 = arith.extui %25 : i1 to i32
    %c0_i32_14 = arith.constant 0 : i32
    %27 = arith.cmpi ne, %26, %c0_i32_14 : i32
    scf.if %27 {
      %c0_15 = arith.constant 0 : index
      %c0_16 = arith.constant 0 : index
      %28 = vector.load %arg5[%c0_15, %c0_16] : memref<2x128xf32, #tpu.memory_space<vmem>>, vector<2x128xf32>
      %29 = vector.extract_strided_slice %28 {offsets = [0, 0], sizes = [1, 128], strides = [1, 1]} : vector<2x128xf32> to vector<1x128xf32>
      %cst_17 = arith.constant 1.280000e+02 : f32
      %30 = vector.broadcast %cst_17 : f32 to vector<1x128xf32>
      %31 = arith.divf %29, %30 : vector<1x128xf32>
      %32 = vector.extract_strided_slice %28 {offsets = [1, 0], sizes = [1, 128], strides = [1, 1]} : vector<2x128xf32> to vector<1x128xf32>
      %cst_18 = arith.constant 1.280000e+02 : f32
      %33 = vector.broadcast %cst_18 : f32 to vector<1x128xf32>
      %34 = arith.divf %32, %33 : vector<1x128xf32>
      %35 = arith.mulf %31, %31 : vector<1x128xf32>
      %36 = arith.subf %34, %35 : vector<1x128xf32>
      %cst_19 = arith.constant 0.000000e+00 : f32
      %37 = vector.broadcast %cst_19 : f32 to vector<1x128xf32>
      %38 = arith.maximumf %36, %37 : vector<1x128xf32>
      %39 = tpu.concatenate %31, %38 in 0 : vector<1x128xf32>, vector<1x128xf32> -> vector<2x128xf32>
      %c0_20 = arith.constant 0 : index
      %c0_21 = arith.constant 0 : index
      %40 = vector.load %arg5[%c0_20, %c0_21] : memref<2x128xf32, #tpu.memory_space<vmem>>, vector<2x128xf32>
      tpu.vector_store %arg5[%c0_20, %c0_21], %39 {strides = array<i32>} : memref<2x128xf32, #tpu.memory_space<vmem>>, vector<2x128xf32>,
    } else {
    }
    return
  }
  func.func @transform_0(%arg0: i32) -> (i32, i32) {
    %c0_i32 = arith.constant 0 : i32
    %c0_i32_0 = arith.constant 0 : i32
    return %arg0, %c0_i32 : i32, i32
  }
  func.func @transform_1(%arg0: i32) -> (i32, i32) {
    %c0_i32 = arith.constant 0 : i32
    %c0_i32_0 = arith.constant 0 : i32
    %c0_i32_1 = arith.constant 0 : i32
    return %c0_i32, %c0_i32_0 : i32, i32
  }
  func.func @transform_2(%arg0: i32) -> (i32, i32) {
    %c0_i32 = arith.constant 0 : i32
    %c0_i32_0 = arith.constant 0 : i32
    %c0_i32_1 = arith.constant 0 : i32
    return %c0_i32, %c0_i32_0 : i32, i32
  }
  func.func @transform_3(%arg0: i32) -> (i32, i32) {
    %c0_i32 = arith.constant 0 : i32
    %c0_i32_0 = arith.constant 0 : i32
    %c0_i32_1 = arith.constant 0 : i32
    return %c0_i32, %c0_i32_0 : i32, i32
  }
  func.func @transform_4(%arg0: i32) -> (i32, i32) {
    %c0_i32 = arith.constant 0 : i32
    %c0_i32_0 = arith.constant 0 : i32
    %c0_i32_1 = arith.constant 0 : i32
    return %c0_i32, %c0_i32_0 : i32, i32
  }
}

module attributes {stable_mosaic.version = 11 : i64} {
  func.func @_cross_gene_kernel(%arg0: i32, %arg1: memref<2x128xf32, #tpu.memory_space<vmem>>, %arg2: memref<128x128xbf16, #tpu.memory_space<vmem>>, %arg3: memref<1x128xf32, #tpu.memory_space<vmem>>, %arg4: memref<2x128xf32, #tpu.memory_space<vmem>>, %arg5: memref<128x128xf32, #tpu.memory_space<vmem>>, %arg6: memref<1x128xf32, #tpu.memory_space<vmem>>, %arg7: memref<2x128xf32, #tpu.memory_space<vmem>>, %arg8: memref<2x128xf32, #tpu.memory_space<vmem>>, %arg9: memref<2x128xf32, #tpu.memory_space<vmem>>) attributes {dimension_semantics = [#tpu.dimension_semantics<arbitrary>], iteration_bounds = array<i64: 1>, scalar_prefetch = 0 : i64, scratch_operands = 1 : i64, tpu.core_type = #tpu.core_type<tc>, window_params = [{transform_indices = @transform_0, window_bounds = array<i64: 2, 128>}, {transform_indices = @transform_1, window_bounds = array<i64: 128, 128>}, {pipeline_mode = #tpu.pipeline_mode<synchronous>, transform_indices = @transform_2, window_bounds = array<i64: 1, 128>}, {pipeline_mode = #tpu.pipeline_mode<synchronous>, transform_indices = @transform_3, window_bounds = array<i64: 2, 128>}, {pipeline_mode = #tpu.pipeline_mode<synchronous>, transform_indices = @transform_4, window_bounds = array<i64: 128, 128>}, {pipeline_mode = #tpu.pipeline_mode<synchronous>, transform_indices = @transform_5, window_bounds = array<i64: 1, 128>}, {pipeline_mode = #tpu.pipeline_mode<synchronous>, transform_indices = @transform_6, window_bounds = array<i64: 2, 128>}, {pipeline_mode = #tpu.pipeline_mode<synchronous>, transform_indices = @transform_7, window_bounds = array<i64: 2, 128>}]} {
    %c0_i32 = arith.constant 0 : i32
    %0 = arith.cmpi eq, %arg0, %c0_i32 : i32
    %1 = arith.extui %0 : i1 to i32
    %c0_i32_0 = arith.constant 0 : i32
    %2 = arith.cmpi ne, %1, %c0_i32_0 : i32
    scf.if %2 {
      %cst_10 = arith.constant 0.000000e+00 : f32
      %13 = vector.broadcast %cst_10 : f32 to vector<2x128xf32>
      %c0_11 = arith.constant 0 : index
      %c0_12 = arith.constant 0 : index
      %14 = vector.load %arg9[%c0_11, %c0_12] : memref<2x128xf32, #tpu.memory_space<vmem>>, vector<2x128xf32>
      tpu.vector_store %arg9[%c0_11, %c0_12], %13 {strides = array<i32>} : memref<2x128xf32, #tpu.memory_space<vmem>>, vector<2x128xf32>,
    } else {
    }
    %c0 = arith.constant 0 : index
    %c0_1 = arith.constant 0 : index
    %3 = vector.load %arg9[%c0, %c0_1] : memref<2x128xf32, #tpu.memory_space<vmem>>, vector<2x128xf32>
    %c0_2 = arith.constant 0 : index
    %c0_3 = arith.constant 0 : index
    %4 = vector.load %arg1[%c0_2, %c0_3] : memref<2x128xf32, #tpu.memory_space<vmem>>, vector<2x128xf32>
    %5 = arith.truncf %4 : vector<2x128xf32> to vector<2x128xbf16>
    %c0_4 = arith.constant 0 : index
    %c0_5 = arith.constant 0 : index
    %6 = vector.load %arg2[%c0_4, %c0_5] : memref<128x128xbf16, #tpu.memory_space<vmem>>, vector<128x128xbf16>
    %cst = arith.constant dense<0.000000e+00> : vector<2x128xf32>
    %7 = tpu.matmul %5, %6, %cst {dimension_numbers = #tpu.dot_dimension_numbers<[1], [0], [0], [1], [0, 0, 1, 1], [], []>} : vector<2x128xbf16>, vector<128x128xbf16>, vector<2x128xf32> -> vector<2x128xf32>
    %8 = arith.addf %3, %7 : vector<2x128xf32>
    %c0_6 = arith.constant 0 : index
    %c0_7 = arith.constant 0 : index
    %9 = vector.load %arg9[%c0_6, %c0_7] : memref<2x128xf32, #tpu.memory_space<vmem>>, vector<2x128xf32>
    tpu.vector_store %arg9[%c0_6, %c0_7], %8 {strides = array<i32>} : memref<2x128xf32, #tpu.memory_space<vmem>>, vector<2x128xf32>,
    %c0_i32_8 = arith.constant 0 : i32
    %10 = arith.cmpi eq, %arg0, %c0_i32_8 : i32
    %11 = arith.extui %10 : i1 to i32
    %c0_i32_9 = arith.constant 0 : i32
    %12 = arith.cmpi ne, %11, %c0_i32_9 : i32
    scf.if %12 {
      %c0_10 = arith.constant 0 : index
      %c0_11 = arith.constant 0 : index
      %13 = vector.load %arg9[%c0_10, %c0_11] : memref<2x128xf32, #tpu.memory_space<vmem>>, vector<2x128xf32>
      %c0_12 = arith.constant 0 : index
      %c0_13 = arith.constant 0 : index
      %14 = vector.load %arg3[%c0_12, %c0_13] : memref<1x128xf32, #tpu.memory_space<vmem>>, vector<1x128xf32>
      %15 = vector.broadcast %14 : vector<1x128xf32> to vector<2x128xf32>
      %16 = arith.addf %13, %15 : vector<2x128xf32>
      %cst_14 = arith.constant dense<0.000000e+00> : vector<128xf32>
      %17 = vector.multi_reduction <add>, %16, %cst_14 [0] : vector<2x128xf32> to vector<128xf32>
      %18 = vector.shape_cast %17 : vector<128xf32> to vector<1x128xf32>
      %cst_15 = arith.constant 2.000000e+00 : f32
      %19 = vector.broadcast %cst_15 : f32 to vector<1x128xf32>
      %20 = arith.divf %18, %19 : vector<1x128xf32>
      %21 = vector.broadcast %20 : vector<1x128xf32> to vector<2x128xf32>
      %22 = arith.subf %16, %21 : vector<2x128xf32>
      %23 = arith.mulf %22, %22 : vector<2x128xf32>
      %cst_16 = arith.constant dense<0.000000e+00> : vector<128xf32>
      %24 = vector.multi_reduction <add>, %23, %cst_16 [0] : vector<2x128xf32> to vector<128xf32>
      %25 = vector.shape_cast %24 : vector<128xf32> to vector<1x128xf32>
      %cst_17 = arith.constant 2.000000e+00 : f32
      %26 = vector.broadcast %cst_17 : f32 to vector<1x128xf32>
      %27 = arith.divf %25, %26 : vector<1x128xf32>
      %28 = tpu.concatenate %20, %27 in 0 : vector<1x128xf32>, vector<1x128xf32> -> vector<2x128xf32>
      %c0_18 = arith.constant 0 : index
      %c0_19 = arith.constant 0 : index
      %29 = vector.load %arg4[%c0_18, %c0_19] : memref<2x128xf32, #tpu.memory_space<vmem>>, vector<2x128xf32>
      %30 = vector.extract_strided_slice %28 {offsets = [0, 0], sizes = [1, 128], strides = [1, 1]} : vector<2x128xf32> to vector<1x128xf32>
      %31 = vector.broadcast %30 : vector<1x128xf32> to vector<2x128xf32>
      %32 = arith.subf %16, %31 : vector<2x128xf32>
      %33 = vector.extract_strided_slice %28 {offsets = [1, 0], sizes = [1, 128], strides = [1, 1]} : vector<2x128xf32> to vector<1x128xf32>
      %cst_20 = arith.constant 9.99999974E-6 : f32
      %34 = vector.broadcast %cst_20 : f32 to vector<1x128xf32>
      %35 = arith.addf %33, %34 : vector<1x128xf32>
      %36 = math.rsqrt %35 : vector<1x128xf32>
      %37 = vector.broadcast %36 : vector<1x128xf32> to vector<2x128xf32>
      %38 = arith.mulf %32, %37 : vector<2x128xf32>
      %39 = vector.extract_strided_slice %29 {offsets = [0, 0], sizes = [1, 128], strides = [1, 1]} : vector<2x128xf32> to vector<1x128xf32>
      %40 = vector.broadcast %39 : vector<1x128xf32> to vector<2x128xf32>
      %41 = arith.mulf %38, %40 : vector<2x128xf32>
      %42 = vector.extract_strided_slice %29 {offsets = [1, 0], sizes = [1, 128], strides = [1, 1]} : vector<2x128xf32> to vector<1x128xf32>
      %43 = vector.broadcast %42 : vector<1x128xf32> to vector<2x128xf32>
      %44 = arith.addf %41, %43 : vector<2x128xf32>
      %cst_21 = arith.constant 0.000000e+00 : f32
      %45 = vector.broadcast %cst_21 : f32 to vector<2x128xf32>
      %46 = arith.maximumf %44, %45 : vector<2x128xf32>
      %c0_22 = arith.constant 0 : index
      %c0_23 = arith.constant 0 : index
      %47 = vector.load %arg5[%c0_22, %c0_23] : memref<128x128xf32, #tpu.memory_space<vmem>>, vector<128x128xf32>
      %cst_24 = arith.constant dense<0.000000e+00> : vector<2x128xf32>
      %48 = tpu.matmul %46, %47, %cst_24 {dimension_numbers = #tpu.dot_dimension_numbers<[1], [0], [0], [1], [0, 0, 1, 1], [], []>} : vector<2x128xf32>, vector<128x128xf32>, vector<2x128xf32> -> vector<2x128xf32>
      %c0_25 = arith.constant 0 : index
      %c0_26 = arith.constant 0 : index
      %49 = vector.load %arg6[%c0_25, %c0_26] : memref<1x128xf32, #tpu.memory_space<vmem>>, vector<1x128xf32>
      %50 = vector.broadcast %49 : vector<1x128xf32> to vector<2x128xf32>
      %51 = arith.addf %48, %50 : vector<2x128xf32>
      %cst_27 = arith.constant dense<0.000000e+00> : vector<128xf32>
      %52 = vector.multi_reduction <add>, %51, %cst_27 [0] : vector<2x128xf32> to vector<128xf32>
      %53 = vector.shape_cast %52 : vector<128xf32> to vector<1x128xf32>
      %cst_28 = arith.constant 2.000000e+00 : f32
      %54 = vector.broadcast %cst_28 : f32 to vector<1x128xf32>
      %55 = arith.divf %53, %54 : vector<1x128xf32>
      %56 = vector.broadcast %55 : vector<1x128xf32> to vector<2x128xf32>
      %57 = arith.subf %51, %56 : vector<2x128xf32>
      %58 = arith.mulf %57, %57 : vector<2x128xf32>
      %cst_29 = arith.constant dense<0.000000e+00> : vector<128xf32>
      %59 = vector.multi_reduction <add>, %58, %cst_29 [0] : vector<2x128xf32> to vector<128xf32>
      %60 = vector.shape_cast %59 : vector<128xf32> to vector<1x128xf32>
      %cst_30 = arith.constant 2.000000e+00 : f32
      %61 = vector.broadcast %cst_30 : f32 to vector<1x128xf32>
      %62 = arith.divf %60, %61 : vector<1x128xf32>
      %63 = tpu.concatenate %55, %62 in 0 : vector<1x128xf32>, vector<1x128xf32> -> vector<2x128xf32>
      %c0_31 = arith.constant 0 : index
      %c0_32 = arith.constant 0 : index
      %64 = vector.load %arg7[%c0_31, %c0_32] : memref<2x128xf32, #tpu.memory_space<vmem>>, vector<2x128xf32>
      %65 = vector.extract_strided_slice %63 {offsets = [0, 0], sizes = [1, 128], strides = [1, 1]} : vector<2x128xf32> to vector<1x128xf32>
      %66 = vector.broadcast %65 : vector<1x128xf32> to vector<2x128xf32>
      %67 = arith.subf %51, %66 : vector<2x128xf32>
      %68 = vector.extract_strided_slice %63 {offsets = [1, 0], sizes = [1, 128], strides = [1, 1]} : vector<2x128xf32> to vector<1x128xf32>
      %cst_33 = arith.constant 9.99999974E-6 : f32
      %69 = vector.broadcast %cst_33 : f32 to vector<1x128xf32>
      %70 = arith.addf %68, %69 : vector<1x128xf32>
      %71 = math.rsqrt %70 : vector<1x128xf32>
      %72 = vector.broadcast %71 : vector<1x128xf32> to vector<2x128xf32>
      %73 = arith.mulf %67, %72 : vector<2x128xf32>
      %74 = vector.extract_strided_slice %64 {offsets = [0, 0], sizes = [1, 128], strides = [1, 1]} : vector<2x128xf32> to vector<1x128xf32>
      %75 = vector.broadcast %74 : vector<1x128xf32> to vector<2x128xf32>
      %76 = arith.mulf %73, %75 : vector<2x128xf32>
      %77 = vector.extract_strided_slice %64 {offsets = [1, 0], sizes = [1, 128], strides = [1, 1]} : vector<2x128xf32> to vector<1x128xf32>
      %78 = vector.broadcast %77 : vector<1x128xf32> to vector<2x128xf32>
      %79 = arith.addf %76, %78 : vector<2x128xf32>
      %c0_34 = arith.constant 0 : index
      %c0_35 = arith.constant 0 : index
      %80 = vector.load %arg8[%c0_34, %c0_35] : memref<2x128xf32, #tpu.memory_space<vmem>>, vector<2x128xf32>
      tpu.vector_store %arg8[%c0_34, %c0_35], %79 {strides = array<i32>} : memref<2x128xf32, #tpu.memory_space<vmem>>, vector<2x128xf32>,
    } else {
    }
    return
  }
  func.func @transform_0(%arg0: i32) -> (i32, i32) {
    %c0_i32 = arith.constant 0 : i32
    %c0_i32_0 = arith.constant 0 : i32
    return %c0_i32, %arg0 : i32, i32
  }
  func.func @transform_1(%arg0: i32) -> (i32, i32) {
    %c0_i32 = arith.constant 0 : i32
    %c0_i32_0 = arith.constant 0 : i32
    return %arg0, %c0_i32 : i32, i32
  }
  func.func @transform_2(%arg0: i32) -> (i32, i32) {
    %c0_i32 = arith.constant 0 : i32
    %c0_i32_0 = arith.constant 0 : i32
    %c0_i32_1 = arith.constant 0 : i32
    return %c0_i32, %c0_i32_0 : i32, i32
  }
  func.func @transform_3(%arg0: i32) -> (i32, i32) {
    %c0_i32 = arith.constant 0 : i32
    %c0_i32_0 = arith.constant 0 : i32
    %c0_i32_1 = arith.constant 0 : i32
    return %c0_i32, %c0_i32_0 : i32, i32
  }
  func.func @transform_4(%arg0: i32) -> (i32, i32) {
    %c0_i32 = arith.constant 0 : i32
    %c0_i32_0 = arith.constant 0 : i32
    %c0_i32_1 = arith.constant 0 : i32
    return %c0_i32, %c0_i32_0 : i32, i32
  }
  func.func @transform_5(%arg0: i32) -> (i32, i32) {
    %c0_i32 = arith.constant 0 : i32
    %c0_i32_0 = arith.constant 0 : i32
    %c0_i32_1 = arith.constant 0 : i32
    return %c0_i32, %c0_i32_0 : i32, i32
  }
  func.func @transform_6(%arg0: i32) -> (i32, i32) {
    %c0_i32 = arith.constant 0 : i32
    %c0_i32_0 = arith.constant 0 : i32
    %c0_i32_1 = arith.constant 0 : i32
    return %c0_i32, %c0_i32_0 : i32, i32
  }
  func.func @transform_7(%arg0: i32) -> (i32, i32) {
    %c0_i32 = arith.constant 0 : i32
    %c0_i32_0 = arith.constant 0 : i32
    %c0_i32_1 = arith.constant 0 : i32
    return %c0_i32, %c0_i32_0 : i32, i32
  }
}

module attributes {stable_mosaic.version = 11 : i64} {
  func.func @_final_kernel(%arg0: i32, %arg1: memref<2x128xf32, #tpu.memory_space<vmem>>, %arg2: memref<2x128xf32, #tpu.memory_space<vmem>>, %arg3: memref<1x128xf32, #tpu.memory_space<vmem>>, %arg4: memref<128x128xf32, #tpu.memory_space<vmem>>, %arg5: memref<1x128xf32, #tpu.memory_space<vmem>>, %arg6: memref<2x128xf32, #tpu.memory_space<vmem>>) attributes {dimension_semantics = [#tpu.dimension_semantics<parallel>], iteration_bounds = array<i64: 1>, scalar_prefetch = 0 : i64, scratch_operands = 0 : i64, tpu.core_type = #tpu.core_type<tc>, window_params = [{transform_indices = @transform_0, window_bounds = array<i64: 2, 128>}, {pipeline_mode = #tpu.pipeline_mode<synchronous>, transform_indices = @transform_1, window_bounds = array<i64: 2, 128>}, {transform_indices = @transform_2, window_bounds = array<i64: 1, 128>}, {transform_indices = @transform_3, window_bounds = array<i64: 128, 128>}, {transform_indices = @transform_4, window_bounds = array<i64: 1, 128>}, {transform_indices = @transform_5, window_bounds = array<i64: 2, 128>}]} {
    %c0 = arith.constant 0 : index
    %c0_0 = arith.constant 0 : index
    %0 = vector.load %arg2[%c0, %c0_0] : memref<2x128xf32, #tpu.memory_space<vmem>>, vector<2x128xf32>
    %c0_1 = arith.constant 0 : index
    %c0_2 = arith.constant 0 : index
    %1 = vector.load %arg4[%c0_1, %c0_2] : memref<128x128xf32, #tpu.memory_space<vmem>>, vector<128x128xf32>
    %cst = arith.constant dense<0.000000e+00> : vector<2x128xf32>
    %2 = tpu.matmul %0, %1, %cst {dimension_numbers = #tpu.dot_dimension_numbers<[1], [0], [0], [1], [0, 0, 1, 1], [], []>} : vector<2x128xf32>, vector<128x128xf32>, vector<2x128xf32> -> vector<2x128xf32>
    %c0_3 = arith.constant 0 : index
    %c0_4 = arith.constant 0 : index
    %3 = vector.load %arg1[%c0_3, %c0_4] : memref<2x128xf32, #tpu.memory_space<vmem>>, vector<2x128xf32>
    %c0_5 = arith.constant 0 : index
    %c0_6 = arith.constant 0 : index
    %4 = vector.load %arg3[%c0_5, %c0_6] : memref<1x128xf32, #tpu.memory_space<vmem>>, vector<1x128xf32>
    %5 = vector.broadcast %4 : vector<1x128xf32> to vector<2x128xf32>
    %6 = arith.mulf %3, %5 : vector<2x128xf32>
    %7 = arith.addf %6, %2 : vector<2x128xf32>
    %c0_7 = arith.constant 0 : index
    %c0_8 = arith.constant 0 : index
    %8 = vector.load %arg5[%c0_7, %c0_8] : memref<1x128xf32, #tpu.memory_space<vmem>>, vector<1x128xf32>
    %9 = vector.broadcast %8 : vector<1x128xf32> to vector<2x128xf32>
    %10 = arith.addf %7, %9 : vector<2x128xf32>
    %c0_9 = arith.constant 0 : index
    %c0_10 = arith.constant 0 : index
    %11 = vector.load %arg6[%c0_9, %c0_10] : memref<2x128xf32, #tpu.memory_space<vmem>>, vector<2x128xf32>
    tpu.vector_store %arg6[%c0_9, %c0_10], %10 {strides = array<i32>} : memref<2x128xf32, #tpu.memory_space<vmem>>, vector<2x128xf32>,
    return
  }
  func.func @transform_0(%arg0: i32) -> (i32, i32) {
    %c0_i32 = arith.constant 0 : i32
    %c0_i32_0 = arith.constant 0 : i32
    return %c0_i32, %arg0 : i32, i32
  }
  func.func @transform_1(%arg0: i32) -> (i32, i32) {
    %c0_i32 = arith.constant 0 : i32
    %c0_i32_0 = arith.constant 0 : i32
    %c0_i32_1 = arith.constant 0 : i32
    return %c0_i32, %c0_i32_0 : i32, i32
  }
  func.func @transform_2(%arg0: i32) -> (i32, i32) {
    %c0_i32 = arith.constant 0 : i32
    %c0_i32_0 = arith.constant 0 : i32
    return %c0_i32, %arg0 : i32, i32
  }
  func.func @transform_3(%arg0: i32) -> (i32, i32) {
    %c0_i32 = arith.constant 0 : i32
    %c0_i32_0 = arith.constant 0 : i32
    return %c0_i32, %arg0 : i32, i32
  }
  func.func @transform_4(%arg0: i32) -> (i32, i32) {
    %c0_i32 = arith.constant 0 : i32
    %c0_i32_0 = arith.constant 0 : i32
    return %c0_i32, %arg0 : i32, i32
  }
  func.func @transform_5(%arg0: i32) -> (i32, i32) {
    %c0_i32 = arith.constant 0 : i32
    %c0_i32_0 = arith.constant 0 : i32
    return %c0_i32, %arg0 : i32, i32
  }
}

</mosaic_0001>

<bundles_post_ra>
// kernel: gears_forward.10
= control target key start
LH: loop header
LB: loop body
LE: loop exit
PB: predicated region body
PF: predicated region fallthrough
CT: control target
= control target key end

     0   :  { %6 = vsyncpa [#allocation3], 0  ;;  %s373_s6 = smov [#allocation2]   ;;  %s502_s0 = inlined_call_operand.hbm [shape: f32[128,128], index: 0, kind: input, shape index: {}]   ;;  %s503_s1 = inlined_call_operand.vmem [shape: bf16[128,128], index: 1, kind: output, shape index: {}]  }
   0x1   :  { %s12_s7 = sshll.u32 %s373_s6, 4  ;;  %s349_s10 = scalar_lea.hbm %s502_s0, 2048  ;;  %s13_s7 = int_to_ptr.vmem [resolvable:$true] %s12_s7 }
   0x2   :  { %p350_p0 = scmp.ne.s32.totalorder %s502_s0, %s349_s10  ;;  %p353_p1 = scmp.lt.u32.totalorder %s349_s10, %s502_s0 }
   0x4   :  { %p355_p2 = pnand %p353_p1, %p350_p0 }
   0x6   :  { %358 = shalt.err (!%p355_p2)
}
   0x7   :  { %s359_s15 = scalar_lea.vmem %s13_s7, 2048  ;;  %p364_p4 = scmp.lt.s32.totalorder %s13_s7, %s13_s7 }
   0x8   :  { %p360_p3 = scmp.ne.s32.totalorder %s13_s7, %s359_s15  ;;  %p365_p5 = scmp.lt.s32.totalorder %s359_s15, %s359_s15 }
   0xa   :  { %p366_p6 = por %p365_p5, %p364_p4 }
   0xc   :  { %p367_p7 = pnand %p366_p6, %p360_p3 }
   0xe   :  { %370 = shalt.err (!%p367_p7)
}
   0xf   :  { %s374_s16 = smov 128   ;;  %s375_s17 = smov 8  }
  0x10   :  { %18 = dma.hbm_to_vmem [thread:$0]  %s502_s0, 2048, %s13_s7, [#allocation3], %s374_s16, %s374_s16, %s375_s17  }
  0x11   :  { %371 = dma.done.wait [#allocation3], 2048  }
  0x12   :  { %372 = vsyncadd [#allocation3], 4294965248  ;;  %v398_v0 = vld [vmem:[#allocation2 + $0x10] sm:$0xff]  ;;  %v400_v1 = vld [vmem:[#allocation2] sm:$0xff] }
  0x13   :  { %v402_v2 = vld [vmem:[#allocation2 + $0x18] sm:$0xff]  ;;  %v40_v3 = vmul.f32 %v398_v0, %v398_v0  ;;  %v38_v4 = vmul.f32 %v400_v1, %v400_v1  ;;  %v408_v5 = vld [vmem:[#allocation2 + $0x8] sm:$0xff]  ;;  %v416_v9 = vld [vmem:[#allocation2 + $0x20] sm:$0xff] }
  0x14   :  { %v41_v6 = vmul.f32 %v402_v2, %v402_v2  ;;  %v39_v7 = vmul.f32 %v408_v5, %v408_v5  ;;  %v414_v8 = vld [vmem:[#allocation2 + $0x28] sm:$0xff]  ;;  %v42_v11 = vmul.f32 %v416_v9, %v416_v9  ;;  %v422_v12 = vld [vmem:[#allocation2 + $0x38] sm:$0xff]  ;;  %v424_v13 = vld [vmem:[#allocation2 + $0x30] sm:$0xff] }
  0x15   :  { %58 = vadd.xlane.f32.xlu1 %v40_v3  ;;  %54 = vadd.xlane.f32.xlu0 %v38_v4  ;;  %v43_v10 = vmul.f32 %v414_v8, %v414_v8  ;;  %v45_v14 = vmul.f32 %v422_v12, %v422_v12  ;;  %v44_v15 = vmul.f32 %v424_v13, %v424_v13  ;;  %v430_v16 = vld [vmem:[#allocation2 + $0x48] sm:$0xff]  ;;  %v432_v17 = vld [vmem:[#allocation2 + $0x40] sm:$0xff]  ;;  %v438_v20 = vld [vmem:[#allocation2 + $0x58] sm:$0xff] }
  0x16   :  { %v47_v18 = vmul.f32 %v430_v16, %v430_v16  ;;  %v46_v19 = vmul.f32 %v432_v17, %v432_v17  ;;  %v440_v21 = vld [vmem:[#allocation2 + $0x50] sm:$0xff]  ;;  %v49_v22 = vmul.f32 %v438_v20, %v438_v20  ;;  %v446_v24 = vld [vmem:[#allocation2 + $0x68] sm:$0xff]  ;;  %v448_v25 = vld [vmem:[#allocation2 + $0x60] sm:$0xff] }
  0x17   :  { %v48_v23 = vmul.f32 %v440_v21, %v440_v21  ;;  %v51_v26 = vmul.f32 %v446_v24, %v446_v24  ;;  %v50_v27 = vmul.f32 %v448_v25, %v448_v25  ;;  %v454_v28 = vld [vmem:[#allocation2 + $0x78] sm:$0xff]  ;;  %v456_v29 = vld [vmem:[#allocation2 + $0x70] sm:$0xff] }
  0x18   :  { %v53_v30 = vmul.f32 %v454_v28, %v454_v28  ;;  %v52_v31 = vmul.f32 %v456_v29, %v456_v29 }
  0x19   :  { %60 = vadd.xlane.f32.xlu1 %v41_v6  ;;  %56 = vadd.xlane.f32.xlu0 %v39_v7 }
  0x1d   :  { %64 = vadd.xlane.f32.xlu1 %v43_v10  ;;  %62 = vadd.xlane.f32.xlu0 %v42_v11 }
  0x21   :  { %68 = vadd.xlane.f32.xlu1 %v45_v14  ;;  %66 = vadd.xlane.f32.xlu0 %v44_v15 }
  0x25   :  { %72 = vadd.xlane.f32.xlu1 %v47_v18  ;;  %70 = vadd.xlane.f32.xlu0 %v46_v19 }
  0x29   :  { %76 = vadd.xlane.f32.xlu1 %v49_v22  ;;  %74 = vadd.xlane.f32.xlu0 %v48_v23 }
  0x2d   :  { %80 = vadd.xlane.f32.xlu1 %v51_v26  ;;  %78 = vadd.xlane.f32.xlu0 %v50_v27 }
  0x31   :  { %84 = vadd.xlane.f32.xlu1 %v53_v30  ;;  %82 = vadd.xlane.f32.xlu0 %v52_v31 }
  0xa2   :  { %v59_v32 = vpop.xlane.xlu1 %58  ;;  %v55_v33 = vpop.xlane.xlu0 %54 }
  0xa3   :  { %v88_v34 = vadd.f32 1e-12, %v59_v32  ;;  %v86_v35 = vadd.f32 1e-12, %v55_v33 }
  0xa5   :  { %317 = vrsqrt.f32 %v88_v34 }
  0xa6   :  { %319 = vrsqrt.f32 %v86_v35  ;;  %v61_v36 = vpop.xlane.xlu1 %60  ;;  %v57_v37 = vpop.xlane.xlu0 %56 }
  0xa7   :  { %v89_v38 = vadd.f32 1e-12, %v61_v36  ;;  %v87_v39 = vadd.f32 1e-12, %v57_v37 }
  0xa9   :  { %321 = vrsqrt.f32 %v89_v38 }
  0xaa   :  { %323 = vrsqrt.f32 %v87_v39  ;;  %v65_v40 = vpop.xlane.xlu1 %64  ;;  %v63_v41 = vpop.xlane.xlu0 %62 }
  0xab   :  { %v91_v42 = vadd.f32 1e-12, %v65_v40  ;;  %v90_v43 = vadd.f32 1e-12, %v63_v41 }
  0xad   :  { %325 = vrsqrt.f32 %v91_v42 }
  0xae   :  { %327 = vrsqrt.f32 %v90_v43  ;;  %v69_v44 = vpop.xlane.xlu1 %68  ;;  %v67_v45 = vpop.xlane.xlu0 %66 }
  0xaf   :  { %v318_v46 = vpop.eup %317  ;;  %v93_v47 = vadd.f32 1e-12, %v69_v44  ;;  %v92_v48 = vadd.f32 1e-12, %v67_v45 }
  0xb0   :  { %v320_v49 = vpop.eup %319  ;;  %v120_v50 = vmin.f32 %v318_v46, 1.0 }
  0xb1   :  { %329 = vrsqrt.f32 %v93_v47  ;;  %v118_v54 = vmin.f32 %v320_v49, 1.0 }
  0xb2   :  { %331 = vrsqrt.f32 %v92_v48  ;;  %v73_v51 = vpop.xlane.xlu1 %72  ;;  %v71_v52 = vpop.xlane.xlu0 %70  ;;  %v136_v60 = vmul.f32 %v120_v50, %v398_v0 }
  0xb3   :  { %v322_v53 = vpop.eup %321  ;;  %v95_v55 = vadd.f32 1e-12, %v73_v51  ;;  %v94_v56 = vadd.f32 1e-12, %v71_v52  ;;  %v134_v4 = vmul.f32 %v118_v54, %v400_v1 }
  0xb4   :  { %v324_v57 = vpop.eup %323  ;;  %v121_v58 = vmin.f32 %v322_v53, 1.0 }
  0xb5   :  { %v119_v59 = vmin.f32 %v324_v57, 1.0  ;;  %333 = vrsqrt.f32 %v95_v55 }
  0xb6   :  { %v137_v61 = vmul.f32 %v121_v58, %v402_v2  ;;  %335 = vrsqrt.f32 %v94_v56  ;;  %v77_v62 = vpop.xlane.xlu1 %76  ;;  %v75_v63 = vpop.xlane.xlu0 %74 }
  0xb7   :  { %v326_v3 = vpop.eup %325  ;;  %v135_v6 = vmul.f32 %v119_v59, %v408_v5  ;;  %v97_v7 = vadd.f32 1e-12, %v77_v62  ;;  %v96_v10 = vadd.f32 1e-12, %v75_v63 }
  0xb8   :  { %v328_v11 = vpop.eup %327  ;;  %v275_v14 = vpack.c.bf16 %v137_v61, %v136_v60  ;;  %v123_v15 = vmin.f32 %v326_v3, 1.0 }
  0xb9   :  { %v270_v18 = vpack.c.bf16 %v135_v6, %v134_v4  ;;  %v122_v19 = vmin.f32 %v328_v11, 1.0  ;;  %337 = vrsqrt.f32 %v97_v7 }
  0xba   :  { %307 = vst [vmem:[%s503_s1 + $0x8] sm:$0xff] %v275_v14   ;;  %v139_v0 = vmul.f32 %v123_v15, %v414_v8  ;;  %339 = vrsqrt.f32 %v96_v10  ;;  %v81_v2 = vpop.xlane.xlu1 %80  ;;  %v79_v22 = vpop.xlane.xlu0 %78 }
  0xbb   :  { %v330_v1 = vpop.eup %329  ;;  %271 = vst [vmem:[%s503_s1] sm:$0xff] %v270_v18   ;;  %v138_v5 = vmul.f32 %v122_v19, %v416_v9  ;;  %v99_v23 = vadd.f32 1e-12, %v81_v2  ;;  %v98_v26 = vadd.f32 1e-12, %v79_v22 }
  0xbc   :  { %v332_v27 = vpop.eup %331  ;;  %v125_v30 = vmin.f32 %v330_v1, 1.0 }
  0xbd   :  { %v280_v31 = vpack.c.bf16 %v139_v0, %v138_v5  ;;  %v124_v32 = vmin.f32 %v332_v27, 1.0  ;;  %341 = vrsqrt.f32 %v99_v23 }
  0xbe   :  { %v141_v33 = vmul.f32 %v125_v30, %v422_v12  ;;  %343 = vrsqrt.f32 %v98_v26  ;;  %v85_v8 = vpop.xlane.xlu1 %84  ;;  %v83_v34 = vpop.xlane.xlu0 %82 }
  0xbf   :  { %v334_v35 = vpop.eup %333  ;;  %308 = vst [vmem:[%s503_s1 + $0x10] sm:$0xff] %v280_v31   ;;  %v140_v36 = vmul.f32 %v124_v32, %v424_v13  ;;  %v101_v9 = vadd.f32 1e-12, %v85_v8  ;;  %v100_v37 = vadd.f32 1e-12, %v83_v34 }
  0xc0   :  { %v336_v38 = vpop.eup %335  ;;  %v127_v39 = vmin.f32 %v334_v35, 1.0 }
  0xc1   :  { %v285_v40 = vpack.c.bf16 %v141_v33, %v140_v36  ;;  %v126_v41 = vmin.f32 %v336_v38, 1.0  ;;  %345 = vrsqrt.f32 %v101_v9 }
  0xc2   :  { %v143_v42 = vmul.f32 %v127_v39, %v430_v16  ;;  %347 = vrsqrt.f32 %v100_v37 }
  0xc3   :  { %v338_v12 = vpop.eup %337  ;;  %309 = vst [vmem:[%s503_s1 + $0x18] sm:$0xff] %v285_v40   ;;  %v142_v43 = vmul.f32 %v126_v41, %v432_v17 }
  0xc4   :  { %v340_v44 = vpop.eup %339  ;;  %v129_v45 = vmin.f32 %v338_v12, 1.0 }
  0xc5   :  { %v290_v13 = vpack.c.bf16 %v143_v42, %v142_v43  ;;  %v128_v46 = vmin.f32 %v340_v44, 1.0 }
  0xc6   :  { %v145_v47 = vmul.f32 %v129_v45, %v438_v20 }
  0xc7   :  { %v342_v48 = vpop.eup %341  ;;  %310 = vst [vmem:[%s503_s1 + $0x20] sm:$0xff] %v290_v13   ;;  %v144_v16 = vmul.f32 %v128_v46, %v440_v21 }
  0xc8   :  { %v344_v49 = vpop.eup %343  ;;  %v131_v50 = vmin.f32 %v342_v48, 1.0 }
  0xc9   :  { %v295_v51 = vpack.c.bf16 %v145_v47, %v144_v16  ;;  %v130_v52 = vmin.f32 %v344_v49, 1.0 }
  0xca   :  { %v147_v53 = vmul.f32 %v131_v50, %v446_v24 }
  0xcb   :  { %v346_v17 = vpop.eup %345  ;;  %311 = vst [vmem:[%s503_s1 + $0x28] sm:$0xff] %v295_v51   ;;  %v146_v20 = vmul.f32 %v130_v52, %v448_v25 }
  0xcc   :  { %v348_v54 = vpop.eup %347  ;;  %v133_v55 = vmin.f32 %v346_v17, 1.0 }
  0xcd   :  { %v300_v56 = vpack.c.bf16 %v147_v53, %v146_v20  ;;  %v132_v57 = vmin.f32 %v348_v54, 1.0 }
  0xce   :  { %v149_v58 = vmul.f32 %v133_v55, %v454_v28 }
  0xcf   :  { %312 = vst [vmem:[%s503_s1 + $0x30] sm:$0xff] %v300_v56   ;;  %v148_v21 = vmul.f32 %v132_v57, %v456_v29 }
  0xd1   :  { %v305_v24 = vpack.c.bf16 %v149_v58, %v148_v21 }
  0xd3   :  { %313 = vst [vmem:[%s503_s1 + $0x38] sm:$0xff] %v305_v24  }
  0xd4   :  { %234 = vsyncpa [#allocation3], 1 }

// kernel: gears_forward.11
= control target key start
LH: loop header
LB: loop body
LE: loop exit
PB: predicated region body
PF: predicated region fallthrough
CT: control target
= control target key end

     0   :  { %s891_s1 = inlined_call_operand.vmem [shape: bf16[128,128], index: 1, kind: input, shape index: {}]   ;;  %s892_s0 = inlined_call_operand.vmem [shape: bf16[128,128], index: 0, kind: input, shape index: {}]   ;;  %s893_s2 = inlined_call_operand.vmem [shape: f32[128,128], index: 2, kind: input, shape index: {}]   ;;  %s894_s3 = inlined_call_operand.vmem [shape: f32[1,128], index: 3, kind: input, shape index: {}]   ;;  %s895_s4 = inlined_call_operand.vmem [shape: f32[128,128], index: 4, kind: output, shape index: {}]  }
   0x1   :  { %v703_v0 = vld [vmem:[%s891_s1] sm:$0xff]   ;;  %v704_v1 = vld [vmem:[%s891_s1 + $0x8] sm:$0xff]   ;;  %v705_v2 = vld [vmem:[%s891_s1 + $0x10] sm:$0xff]  }
   0x2   :  { %583 = vmatprep.subr.bf16.mxu0 %v703_v0  ;;  %v706_v3 = vld [vmem:[%s891_s1 + $0x18] sm:$0xff]   ;;  %v711_v4 = vld [vmem:[%s892_s0] sm:$0xff]   ;;  %v708_v6 = vld [vmem:[%s891_s1 + $0x28] sm:$0xff]  }
   0x3   :  { %584 = vmatpush3.bf16.msra.mxu0 %v703_v0  ;;  %599 = vmatprep.mubr.bf16.mxu0 %v711_v4  ;;  %v707_v5 = vld [vmem:[%s891_s1 + $0x20] sm:$0xff]   ;;  %v331_v8 = vld [vmem:[%s893_s2 + $0x8] sm:$0xff]  ;;  %v332_v9 = vld [vmem:[%s893_s2 + $0x10] sm:$0xff] }
   0x4   :  { %585 = vmatprep.subr.bf16.mxu0 %v704_v1  ;;  %v330_v7 = vld [vmem:[%s893_s2] sm:$0xff]  ;;  %v333_v11 = vld [vmem:[%s893_s2 + $0x18] sm:$0xff]  ;;  %v335_v14 = vld [vmem:[%s893_s2 + $0x28] sm:$0xff] }
   0x5   :  { %v671_v10 = vpack.c.bf16 %v331_v8, %v330_v7  ;;  %v675_v12 = vpack.c.bf16 %v333_v11, %v332_v9  ;;  %v334_v13 = vld [vmem:[%s893_s2 + $0x20] sm:$0xff]  ;;  %v709_v15 = vld [vmem:[%s891_s1 + $0x30] sm:$0xff]   ;;  %v337_v18 = vld [vmem:[%s893_s2 + $0x38] sm:$0xff] }
   0x6   :  { %v679_v16 = vpack.c.bf16 %v335_v14, %v334_v13  ;;  %v336_v17 = vld [vmem:[%s893_s2 + $0x30] sm:$0xff]  ;;  %v710_v19 = vld [vmem:[%s891_s1 + $0x38] sm:$0xff]   ;;  %v338_v21 = vld [vmem:[%s893_s2 + $0x40] sm:$0xff] }
   0x7   :  { %586 = vmatpush3.bf16.msra.mxu0 %v704_v1  ;;  %672 = vmatprep.subr.bf16.mxu1 %v671_v10  ;;  %v683_v20 = vpack.c.bf16 %v337_v18, %v336_v17  ;;  %v339_v22 = vld [vmem:[%s893_s2 + $0x48] sm:$0xff]  ;;  %v340_v25 = vld [vmem:[%s893_s2 + $0x50] sm:$0xff]  ;;  %v341_v26 = vld [vmem:[%s893_s2 + $0x58] sm:$0xff] }
   0x8   :  { %587 = vmatprep.subr.bf16.mxu0 %v705_v2  ;;  %674 = vmatpush3.bf16.msra.mxu1 %v671_v10  ;;  %v687_v23 = vpack.c.bf16 %v339_v22, %v338_v21  ;;  %v712_v24 = vld [vmem:[%s892_s0 + $0x8] sm:$0xff]   ;;  %v713_v27 = vld [vmem:[%s892_s0 + $0x10] sm:$0xff]   ;;  %v691_v28 = vpack.c.bf16 %v341_v26, %v340_v25  ;;  %v342_v29 = vld [vmem:[%s893_s2 + $0x60] sm:$0xff] }
   0x9   :  { %676 = vmatprep.subr.bf16.mxu1 %v675_v12  ;;  %v343_v30 = vld [vmem:[%s893_s2 + $0x68] sm:$0xff]  ;;  %v714_v32 = vld [vmem:[%s892_s0 + $0x18] sm:$0xff]   ;;  %v715_v33 = vld [vmem:[%s892_s0 + $0x20] sm:$0xff]  }
   0xa   :  { %v695_v31 = vpack.c.bf16 %v343_v30, %v342_v29  ;;  %v716_v34 = vld [vmem:[%s892_s0 + $0x28] sm:$0xff]   ;;  %v717_v35 = vld [vmem:[%s892_s0 + $0x30] sm:$0xff]   ;;  %v718_v36 = vld [vmem:[%s892_s0 + $0x38] sm:$0xff]  }
   0xb   :  { %588 = vmatpush3.bf16.msra.mxu0 %v705_v2  ;;  %v344_v37 = vld [vmem:[%s893_s2 + $0x70] sm:$0xff]  ;;  %v345_v38 = vld [vmem:[%s893_s2 + $0x78] sm:$0xff]  ;;  %v534_v56 = vld [vmem:[%s894_s3] ss:$0 sm:$0xff] }
   0xc   :  { %589 = vmatprep.subr.bf16.mxu0 %v706_v3  ;;  %678 = vmatpush3.bf16.msra.mxu1 %v675_v12  ;;  %v699_v39 = vpack.c.bf16 %v345_v38, %v344_v37 }
   0xd   :  { %680 = vmatprep.subr.bf16.mxu1 %v679_v16 }
   0xf   :  { %590 = vmatpush3.bf16.msra.mxu0 %v706_v3 }
  0x10   :  { %591 = vmatprep.subr.bf16.mxu0 %v707_v5  ;;  %682 = vmatpush3.bf16.msra.mxu1 %v679_v16 }
  0x11   :  { %684 = vmatprep.subr.bf16.mxu1 %v683_v20 }
  0x13   :  { %592 = vmatpush3.bf16.msra.mxu0 %v707_v5 }
  0x14   :  { %593 = vmatprep.subr.bf16.mxu0 %v708_v6  ;;  %686 = vmatpush3.bf16.msra.mxu1 %v683_v20 }
  0x15   :  { %688 = vmatprep.subr.bf16.mxu1 %v687_v23 }
  0x17   :  { %594 = vmatpush3.bf16.msra.mxu0 %v708_v6 }
  0x18   :  { %595 = vmatprep.subr.bf16.mxu0 %v709_v15  ;;  %690 = vmatpush3.bf16.msra.mxu1 %v687_v23 }
  0x19   :  { %692 = vmatprep.subr.bf16.mxu1 %v691_v28 }
  0x1b   :  { %596 = vmatpush3.bf16.msra.mxu0 %v709_v15 }
  0x1c   :  { %597 = vmatprep.subr.bf16.mxu0 %v710_v19  ;;  %694 = vmatpush3.bf16.msra.mxu1 %v691_v28 }
  0x1d   :  { %696 = vmatprep.subr.bf16.mxu1 %v695_v31 }
  0x1f   :  { %598 = vmatpush3.bf16.msra.mxu0 %v710_v19 }
  0x20   :  { %698 = vmatpush3.bf16.msra.mxu1 %v695_v31 }
  0x21   :  { %700 = vmatprep.subr.bf16.mxu1 %v699_v39 }
  0x22   :  { %600 = vmatmul.mubr.bf16.vlgmr.msra.gmra.mrb[0].mxu0 %v712_v24 }
  0x23   :  { %603 = vmatprep.mubr.bf16.mxu0 %v713_v27 }
  0x24   :  { %702 = vmatpush3.bf16.msra.mxu1 %v699_v39 }
  0x2a   :  { %604 = vmatmul.mubr.bf16.gmra.mrb[4].mxu0 %v714_v32 }
  0x2b   :  { %607 = vmatprep.mubr.bf16.mxu0 %v715_v33 }
  0x32   :  { %608 = vmatmul.mubr.bf16.gmra.mrb[8].mxu0 %v716_v34 }
  0x33   :  { %611 = vmatprep.mubr.bf16.mxu0 %v717_v35 }
  0x3a   :  { %612 = vmatmul.mubr.bf16.gmra.mrb[12].mxu0 %v718_v36 }
  0xf5   :  { %v601_v40 = vpop.f32.mrb[0].mxu0 }
  0xf6   :  { %v216_v41 = vpop.f32.mrb[1].mxu0 }
  0xf7   :  { %v602_v42 = vpop.f32.mrb[2].mxu0  ;;  %647 = vmatprep.mubr.f32.mxu1 %v216_v41 }
  0xf8   :  { %v219_v43 = vpop.f32.mrb[3].mxu0 }
  0xf9   :  { %648 = vmatmul.mubr.f32.vlgmr.msra.gmra.mrb[0].mxu1 %v219_v43 }
  0xfa   :  { %650 = vmatprep.mubr.f32.mxu1 %v601_v40 }
  0xfd   :  { %v605_v44 = vpop.f32.mrb[4].mxu0  ;;  %651 = vmatmul.mubr.f32.gmra.mrb[2].mxu1 %v602_v42 }
  0xfe   :  { %v232_v45 = vpop.f32.mrb[5].mxu0 }
  0xff   :  { %v606_v46 = vpop.f32.mrb[6].mxu0  ;;  %653 = vmatprep.mubr.f32.mxu1 %v232_v45 }
 0x100   :  { %v235_v47 = vpop.f32.mrb[7].mxu0 }
 0x101   :  { %654 = vmatmul.mubr.f32.gmra.mrb[4].mxu1 %v235_v47 }
 0x102   :  { %656 = vmatprep.mubr.f32.mxu1 %v605_v44 }
 0x105   :  { %v609_v48 = vpop.f32.mrb[8].mxu0  ;;  %657 = vmatmul.mubr.f32.gmra.mrb[6].mxu1 %v606_v46 }
 0x106   :  { %v248_v49 = vpop.f32.mrb[9].mxu0 }
 0x107   :  { %v610_v50 = vpop.f32.mrb[10].mxu0  ;;  %659 = vmatprep.mubr.f32.mxu1 %v248_v49 }
 0x108   :  { %v251_v51 = vpop.f32.mrb[11].mxu0 }
 0x109   :  { %660 = vmatmul.mubr.f32.gmra.mrb[8].mxu1 %v251_v51 }
 0x10a   :  { %662 = vmatprep.mubr.f32.mxu1 %v609_v48 }
 0x10d   :  { %v613_v52 = vpop.f32.mrb[12].mxu0  ;;  %663 = vmatmul.mubr.f32.gmra.mrb[10].mxu1 %v610_v50 }
 0x10e   :  { %v264_v53 = vpop.f32.mrb[13].mxu0 }
 0x10f   :  { %v614_v54 = vpop.f32.mrb[14].mxu0  ;;  %665 = vmatprep.mubr.f32.mxu1 %v264_v53 }
 0x110   :  { %v267_v55 = vpop.f32.mrb[15].mxu0 }
 0x111   :  { %666 = vmatmul.mubr.f32.gmra.mrb[12].mxu1 %v267_v55 }
 0x112   :  { %668 = vmatprep.mubr.f32.mxu1 %v613_v52 }
 0x115   :  { %669 = vmatmul.mubr.f32.gmra.mrb[14].mxu1 %v614_v54 }
 0x1cc   :  { %v649_v57 = vpop.f32.mrb[0].mxu1 }
 0x1cd   :  { %v425_v58 = vadd.f32 %v649_v57, %v534_v56  ;;  %v419_v59 = vpop.f32.mrb[1].mxu1 }
 0x1ce   :  { %v420_v60 = vadd.f32 %v534_v56, %v419_v59 }
 0x1cf   :  { %499 = vst [vmem:[%s895_s4 + $0x8] sm:$0xff] %v425_v58 }
 0x1d0   :  { %498 = vst [vmem:[%s895_s4] sm:$0xff] %v420_v60  ;;  %v652_v61 = vpop.f32.mrb[2].mxu1 }
 0x1d1   :  { %v435_v62 = vadd.f32 %v652_v61, %v534_v56  ;;  %v429_v63 = vpop.f32.mrb[3].mxu1 }
 0x1d2   :  { %v430_v0 = vadd.f32 %v534_v56, %v429_v63 }
 0x1d3   :  { %501 = vst [vmem:[%s895_s4 + $0x18] sm:$0xff] %v435_v62 }
 0x1d4   :  { %500 = vst [vmem:[%s895_s4 + $0x10] sm:$0xff] %v430_v0  ;;  %v655_v1 = vpop.f32.mrb[4].mxu1 }
 0x1d5   :  { %v445_v2 = vadd.f32 %v655_v1, %v534_v56  ;;  %v439_v3 = vpop.f32.mrb[5].mxu1 }
 0x1d6   :  { %v440_v4 = vadd.f32 %v534_v56, %v439_v3 }
 0x1d7   :  { %503 = vst [vmem:[%s895_s4 + $0x28] sm:$0xff] %v445_v2 }
 0x1d8   :  { %502 = vst [vmem:[%s895_s4 + $0x20] sm:$0xff] %v440_v4  ;;  %v658_v5 = vpop.f32.mrb[6].mxu1 }
 0x1d9   :  { %v455_v6 = vadd.f32 %v658_v5, %v534_v56  ;;  %v449_v7 = vpop.f32.mrb[7].mxu1 }
 0x1da   :  { %v450_v8 = vadd.f32 %v534_v56, %v449_v7 }
 0x1db   :  { %505 = vst [vmem:[%s895_s4 + $0x38] sm:$0xff] %v455_v6 }
 0x1dc   :  { %504 = vst [vmem:[%s895_s4 + $0x30] sm:$0xff] %v450_v8  ;;  %v661_v9 = vpop.f32.mrb[8].mxu1 }
 0x1dd   :  { %v465_v10 = vadd.f32 %v661_v9, %v534_v56  ;;  %v459_v11 = vpop.f32.mrb[9].mxu1 }
 0x1de   :  { %v460_v12 = vadd.f32 %v534_v56, %v459_v11 }
 0x1df   :  { %507 = vst [vmem:[%s895_s4 + $0x48] sm:$0xff] %v465_v10 }
 0x1e0   :  { %506 = vst [vmem:[%s895_s4 + $0x40] sm:$0xff] %v460_v12  ;;  %v664_v13 = vpop.f32.mrb[10].mxu1 }
 0x1e1   :  { %v475_v14 = vadd.f32 %v664_v13, %v534_v56  ;;  %v469_v15 = vpop.f32.mrb[11].mxu1 }
 0x1e2   :  { %v470_v16 = vadd.f32 %v534_v56, %v469_v15 }
 0x1e3   :  { %509 = vst [vmem:[%s895_s4 + $0x58] sm:$0xff] %v475_v14 }
 0x1e4   :  { %508 = vst [vmem:[%s895_s4 + $0x50] sm:$0xff] %v470_v16  ;;  %v667_v17 = vpop.f32.mrb[12].mxu1 }
 0x1e5   :  { %v485_v18 = vadd.f32 %v667_v17, %v534_v56  ;;  %v479_v19 = vpop.f32.mrb[13].mxu1 }
 0x1e6   :  { %v480_v20 = vadd.f32 %v534_v56, %v479_v19 }
 0x1e7   :  { %511 = vst [vmem:[%s895_s4 + $0x68] sm:$0xff] %v485_v18 }
 0x1e8   :  { %510 = vst [vmem:[%s895_s4 + $0x60] sm:$0xff] %v480_v20  ;;  %v670_v21 = vpop.f32.mrb[14].mxu1 }
 0x1e9   :  { %v495_v22 = vadd.f32 %v670_v21, %v534_v56  ;;  %v489_v23 = vpop.f32.mrb[15].mxu1 }
 0x1ea   :  { %v490_v24 = vadd.f32 %v534_v56, %v489_v23 }
 0x1eb   :  { %513 = vst [vmem:[%s895_s4 + $0x78] sm:$0xff] %v495_v22 }
 0x1ec   :  { %512 = vst [vmem:[%s895_s4 + $0x70] sm:$0xff] %v490_v24 }

// kernel: gears_forward.12
= control target key start
LH: loop header
LB: loop body
LE: loop exit
PB: predicated region body
PF: predicated region fallthrough
CT: control target
= control target key end

     0   :  { %v658_v0 = vmov 0.0|0.0   ;;  %vm659_vm0 = vmmov 0   ;;  %v660_v4 = vmov 0.0   ;;  %vm211_vm1 = vcmask 1041408   ;;  %s915_s1 = inlined_call_operand.vmem [shape: f32[128,128], index: 1, kind: input, shape index: {}]   ;;  %s916_s2 = inlined_call_operand.vmem [shape: f32[128,128], index: 2, kind: input, shape index: {}]   ;;  %s917_s0 = inlined_call_operand.vmem [shape: f32[2,128], index: 0, kind: input, shape index: {}]   ;;  %s918_s5 = inlined_call_operand.vmem [shape: f32[128,128], index: 5, kind: input, shape index: {}]   ;;  %s919_s3 = inlined_call_operand.vmem [shape: f32[1,128], index: 3, kind: input, shape index: {}]   ;;  %s920_s4 = inlined_call_operand.vmem [shape: f32[2,128], index: 4, kind: input, shape index: {}]   ;;  %s921_s6 = inlined_call_operand.vmem [shape: f32[1,128], index: 6, kind: input, shape index: {}]   ;;  %s922_s7 = inlined_call_operand.vmem [shape: f32[2,128], index: 7, kind: input, shape index: {}]   ;;  %s923_s8 = inlined_call_operand.vmem [shape: f32[2,128], index: 8, kind: output, shape index: {0}]   ;;  %s924_s9 = inlined_call_operand.vmem [shape: f32[2,128], index: 9, kind: output, shape index: {1}]  }
   0x1   :  { %579 = vmatprep.subr.bf16.mxu0 %v658_v0  ;;  %v32_v1 = vld [vmem:[%s915_s1] sm:$0xff]  ;;  %v33_v2 = vld [vmem:[%s915_s1 + $0x8] sm:$0xff]  ;;  %v34_v3 = vld [vmem:[%s915_s1 + $0x10] sm:$0xff]  ;;  %506 = vmatprep.mubr.msk.f32.mxu0 %vm659_vm0, %v660_v4  ;;  %vm231_vm2 = vcmask 1040384  }
   0x2   :  { %v580_v5 = vpack.c.bf16 %v33_v2, %v32_v1  ;;  %v35_v6 = vld [vmem:[%s915_s1 + $0x18] sm:$0xff]  ;;  %603 = vmatprep.subr.bf16.mxu1 %v658_v0  ;;  %541 = vmatprep.mubr.msk.f32.mxu1 %vm659_vm0, %v660_v4  ;;  %v36_v8 = vld [vmem:[%s915_s1 + $0x20] sm:$0xff]  ;;  %v37_v9 = vld [vmem:[%s915_s1 + $0x28] sm:$0xff] }
   0x3   :  { %v583_v7 = vpack.c.bf16 %v35_v6, %v34_v3  ;;  %v118_v10 = vld [vmem:[%s916_s2] sm:$0xff]  ;;  %v119_v11 = vld [vmem:[%s916_s2 + $0x8] sm:$0xff]  ;;  %v120_v12 = vld [vmem:[%s916_s2 + $0x10] sm:$0xff]  ;;  %v586_v14 = vpack.c.bf16 %v37_v9, %v36_v8 }
   0x4   :  { %581 = vmatpush3.bf16.msra.mxu0 %v580_v5  ;;  %v121_v13 = vld [vmem:[%s916_s2 + $0x18] sm:$0xff]  ;;  %v604_v15 = vpack.c.bf16 %v119_v11, %v118_v10  ;;  %v38_v16 = vld [vmem:[%s915_s1 + $0x30] sm:$0xff]  ;;  %v122_v19 = vld [vmem:[%s916_s2 + $0x20] sm:$0xff] }
   0x5   :  { %582 = vmatprep.subr.bf16.mxu0 %v658_v0  ;;  %v39_v17 = vld [vmem:[%s915_s1 + $0x38] sm:$0xff]  ;;  %v607_v18 = vpack.c.bf16 %v121_v13, %v120_v12  ;;  %v123_v20 = vld [vmem:[%s916_s2 + $0x28] sm:$0xff]  ;;  %v40_v22 = vld [vmem:[%s915_s1 + $0x40] sm:$0xff] }
   0x6   :  { %605 = vmatpush3.bf16.msra.mxu1 %v604_v15  ;;  %v589_v21 = vpack.c.bf16 %v39_v17, %v38_v16  ;;  %v41_v23 = vld [vmem:[%s915_s1 + $0x48] sm:$0xff]  ;;  %v610_v24 = vpack.c.bf16 %v123_v20, %v122_v19  ;;  %v124_v25 = vld [vmem:[%s916_s2 + $0x30] sm:$0xff]  ;;  %v125_v26 = vld [vmem:[%s916_s2 + $0x38] sm:$0xff] }
   0x7   :  { %606 = vmatprep.subr.bf16.mxu1 %v658_v0  ;;  %v592_v27 = vpack.c.bf16 %v41_v23, %v40_v22  ;;  %v42_v28 = vld [vmem:[%s915_s1 + $0x50] sm:$0xff]  ;;  %v43_v29 = vld [vmem:[%s915_s1 + $0x58] sm:$0xff]  ;;  %v613_v30 = vpack.c.bf16 %v125_v26, %v124_v25  ;;  %v126_v31 = vld [vmem:[%s916_s2 + $0x40] sm:$0xff] }
   0x8   :  { %584 = vmatpush3.bf16.msra.mxu0 %v583_v7  ;;  %v127_v32 = vld [vmem:[%s916_s2 + $0x48] sm:$0xff]  ;;  %v595_v33 = vpack.c.bf16 %v43_v29, %v42_v28  ;;  %v44_v34 = vld [vmem:[%s915_s1 + $0x60] sm:$0xff]  ;;  %v128_v37 = vld [vmem:[%s916_s2 + $0x50] sm:$0xff] }
   0x9   :  { %585 = vmatprep.subr.bf16.mxu0 %v658_v0  ;;  %v45_v35 = vld [vmem:[%s915_s1 + $0x68] sm:$0xff]  ;;  %v616_v36 = vpack.c.bf16 %v127_v32, %v126_v31  ;;  %v129_v38 = vld [vmem:[%s916_s2 + $0x58] sm:$0xff]  ;;  %v46_v40 = vld [vmem:[%s915_s1 + $0x70] sm:$0xff] }
   0xa   :  { %608 = vmatpush3.bf16.msra.mxu1 %v607_v18  ;;  %v598_v39 = vpack.c.bf16 %v45_v35, %v44_v34  ;;  %v47_v41 = vld [vmem:[%s915_s1 + $0x78] sm:$0xff]  ;;  %v619_v42 = vpack.c.bf16 %v129_v38, %v128_v37  ;;  %v130_v43 = vld [vmem:[%s916_s2 + $0x60] sm:$0xff]  ;;  %v131_v44 = vld [vmem:[%s916_s2 + $0x68] sm:$0xff]  ;;  %v234_v35 = vlaneseq }
   0xb   :  { %609 = vmatprep.subr.bf16.mxu1 %v658_v0  ;;  %v601_v45 = vpack.c.bf16 %v47_v41, %v46_v40  ;;  %v622_v46 = vpack.c.bf16 %v131_v44, %v130_v43  ;;  %v132_v47 = vld [vmem:[%s916_s2 + $0x70] sm:$0xff]  ;;  %v133_v48 = vld [vmem:[%s916_s2 + $0x78] sm:$0xff]  ;;  %v31_v49 = vld [vmem:[%s917_s0] sm:$0x3] }
   0xc   :  { %587 = vmatpush3.bf16.msra.mxu0 %v586_v14  ;;  %v625_v50 = vpack.c.bf16 %v133_v48, %v132_v47  ;;  %v257_v53 = vld [vmem:[%s918_s5] sm:$0xff]  ;;  %v258_v54 = vld [vmem:[%s918_s5 + $0x8] sm:$0xff]  ;;  %v259_v56 = vld [vmem:[%s918_s5 + $0x10] sm:$0xff]  ;;  %v235_v38 = vshrl.u32 %v234_v35, 7 }
   0xd   :  { %588 = vmatprep.subr.bf16.mxu0 %v658_v0  ;;  %v628_v55 = vpack.c.bf16 %v258_v54, %v257_v53  ;;  %v260_v57 = vld [vmem:[%s918_s5 + $0x18] sm:$0xff]  ;;  %v261_v59 = vld [vmem:[%s918_s5 + $0x20] sm:$0xff]  ;;  %v262_v60 = vld [vmem:[%s918_s5 + $0x28] sm:$0xff] }
   0xe   :  { %611 = vmatpush3.bf16.msra.mxu1 %v610_v24  ;;  %v631_v58 = vpack.c.bf16 %v260_v57, %v259_v56  ;;  %v634_v61 = vpack.c.bf16 %v262_v60, %v261_v59  ;;  %v263_v62 = vld [vmem:[%s918_s5 + $0x30] sm:$0xff]  ;;  %v264_v63 = vld [vmem:[%s918_s5 + $0x38] sm:$0xff]  ;;  %v265_v2 = vld [vmem:[%s918_s5 + $0x40] sm:$0xff]  ;;  %v243_v41 = vsub.s32 1, %v235_v38 }
   0xf   :  { %612 = vmatprep.subr.bf16.mxu1 %v658_v0  ;;  %v637_v1 = vpack.c.bf16 %v264_v63, %v263_v62  ;;  %v266_v3 = vld [vmem:[%s918_s5 + $0x48] sm:$0xff]  ;;  %v267_v5 = vld [vmem:[%s918_s5 + $0x50] sm:$0xff]  ;;  %v268_v6 = vld [vmem:[%s918_s5 + $0x58] sm:$0xff] }
  0x10   :  { %590 = vmatpush3.bf16.msra.mxu0 %v589_v21  ;;  %v643_v7 = vpack.c.bf16 %v268_v6, %v267_v5  ;;  %v269_v8 = vld [vmem:[%s918_s5 + $0x60] sm:$0xff]  ;;  %v270_v9 = vld [vmem:[%s918_s5 + $0x68] sm:$0xff]  ;;  %v271_v11 = vld [vmem:[%s918_s5 + $0x70] sm:$0xff] }
  0x11   :  { %591 = vmatprep.subr.bf16.mxu0 %v658_v0  ;;  %v646_v10 = vpack.c.bf16 %v270_v9, %v269_v8  ;;  %v272_v12 = vld [vmem:[%s918_s5 + $0x78] sm:$0xff]  ;;  %v421_v14 = vld [vmem:[%s919_s3] ss:$0 sm:$0xff] }
  0x12   :  { %614 = vmatpush3.bf16.msra.mxu1 %v613_v30  ;;  %v649_v13 = vpack.c.bf16 %v272_v12, %v271_v11 }
  0x13   :  { %615 = vmatprep.subr.bf16.mxu1 %v658_v0 }
  0x14   :  { %593 = vmatpush3.bf16.msra.mxu0 %v592_v27 }
  0x15   :  { %594 = vmatprep.subr.bf16.mxu0 %v658_v0 }
  0x16   :  { %617 = vmatpush3.bf16.msra.mxu1 %v616_v36 }
  0x17   :  { %618 = vmatprep.subr.bf16.mxu1 %v658_v0 }
  0x18   :  { %596 = vmatpush3.bf16.msra.mxu0 %v595_v33 }
  0x19   :  { %597 = vmatprep.subr.bf16.mxu0 %v658_v0 }
  0x1a   :  { %620 = vmatpush3.bf16.msra.mxu1 %v619_v42  ;;  %v233_v42 = vld [vmem:[%s920_s4] sm:$0x3] }
  0x1b   :  { %621 = vmatprep.subr.bf16.mxu1 %v658_v0  ;;  %v254_v48 = vrot.slane %v233_v42, %v243_v41 }
  0x1c   :  { %599 = vmatpush3.bf16.msra.mxu0 %v598_v39  ;;  %v236_v39 = vsub.s32 0, %v235_v38 }
  0x1d   :  { %600 = vmatprep.subr.bf16.mxu0 %v658_v0 }
  0x1e   :  { %623 = vmatpush3.bf16.msra.mxu1 %v622_v46  ;;  %v249_v46 = vrot.slane %v233_v42, %v236_v39 }
  0x1f   :  { %624 = vmatprep.subr.bf16.mxu1 %v658_v0 }
  0x20   :  { %602 = vmatpush3.bf16.msra.mxu0 %v601_v45 }
  0x21   :  { %627 = vmatprep.subr.bf16.mxu0 %v658_v0 }
  0x22   :  { %626 = vmatpush3.bf16.msra.mxu1 %v625_v50 }
  0x23   :  { %507 = vmatmul.mubr.f32.vlgmr.msra.gmra.mrb[0].mxu0 %v31_v49 }
  0x24   :  { %576 = vmatprep.mubr.msk.f32.mxu0 %vm659_vm0, %v660_v4  ;;  %629 = vmatpush3.bf16.msra.mxu0 %v628_v55  ;;  %v640_v4 = vpack.c.bf16 %v266_v3, %v265_v2 }
  0x25   :  { %630 = vmatprep.subr.bf16.mxu0 %v658_v0 }
  0x28   :  { %632 = vmatpush3.bf16.msra.mxu0 %v631_v58 }
  0x29   :  { %633 = vmatprep.subr.bf16.mxu0 %v658_v0 }
  0x2c   :  { %635 = vmatpush3.bf16.msra.mxu0 %v634_v61 }
  0x2d   :  { %636 = vmatprep.subr.bf16.mxu0 %v658_v0 }
  0x30   :  { %638 = vmatpush3.bf16.msra.mxu0 %v637_v1 }
  0x31   :  { %639 = vmatprep.subr.bf16.mxu0 %v658_v0 }
  0x34   :  { %641 = vmatpush3.bf16.msra.mxu0 %v640_v4 }
  0x35   :  { %642 = vmatprep.subr.bf16.mxu0 %v658_v0 }
  0x38   :  { %644 = vmatpush3.bf16.msra.mxu0 %v643_v7 }
  0x39   :  { %645 = vmatprep.subr.bf16.mxu0 %v658_v0 }
  0x3c   :  { %647 = vmatpush3.bf16.msra.mxu0 %v646_v10 }
  0x3d   :  { %648 = vmatprep.subr.bf16.mxu0 %v658_v0 }
  0x40   :  { %650 = vmatpush3.bf16.msra.mxu0 %v649_v13 }
  0xf6   :  { %v114_v51 = vpop.f32.mrb[0].mxu0 }
  0xf7   :  { %v508_v52 = vpop.f32.mrb[1].mxu0  ;;  %542 = vmatmul.mubr.f32.vlgmr.msra.gmra.mrb[0].mxu1 %v114_v51 }
  0xf8   :  { %v422_v52 = vld [vmem:[%s921_s6] ss:$0 sm:$0xff] }
 0x1ca   :  { %v207_v15 = vpop.f32.mrb[0].mxu1 }
 0x1cb   :  { %v208_v16 = vadd.f32 %v421_v14, %v207_v15  ;;  %v543_v17 = vpop.f32.mrb[1].mxu1  ;;  %v369_v14 = vld [vmem:[%s922_s7] sm:$0x3] }
 0x1cd   :  { %v212_v0 = vsel %vm211_vm1, %v208_v16, 0.0 }
 0x1ce   :  { %v213_v18 = vrot.slane %v212_v0, 4 }
 0x1d0   :  { %v214_v19 = vadd.f32 %v213_v18, %v212_v0  ;;  %v385_v0 = vrot.slane %v369_v14, %v236_v39 }
 0x1d2   :  { %v215_v20 = vrot.slane %v214_v19, 2 }
 0x1d4   :  { %v216_v21 = vadd.f32 %v215_v20, %v214_v19  ;;  %v390_v19 = vrot.slane %v369_v14, %v243_v41 }
 0x1d6   :  { %v217_v22 = vrot.slane %v216_v21, 1 }
 0x1d8   :  { %v218_v23 = vadd.f32 %v217_v22, %v216_v21 }
 0x1da   :  { %v220_v24 = vmul.f32 0.5, %v218_v23 }
 0x1dc   :  { %v221_v25 = vsub.f32 %v208_v16, %v220_v24 }
 0x1de   :  { %v222_v26 = vmul.f32 %v221_v25, %v221_v25 }
 0x1e0   :  { %v223_v27 = vsel %vm211_vm1, %v222_v26, 0.0 }
 0x1e1   :  { %v224_v28 = vrot.slane %v223_v27, 4 }
 0x1e3   :  { %v225_v29 = vadd.f32 %v224_v28, %v223_v27 }
 0x1e5   :  { %v226_v30 = vrot.slane %v225_v29, 2 }
 0x1e7   :  { %v227_v31 = vadd.f32 %v226_v30, %v225_v29 }
 0x1e9   :  { %v228_v32 = vrot.slane %v227_v31, 1 }
 0x1eb   :  { %v229_v33 = vadd.f32 %v228_v32, %v227_v31 }
 0x1ed   :  { %v230_v34 = vmul.f32 0.5, %v229_v33 }
 0x1ef   :  { %v232_v36 = vsel %vm231_vm2, %v220_v24, %v230_v34 }
 0x1f0   :  { %v239_v37 = vadd.f32 1e-05, %v232_v36  ;;  %v237_v40 = vrot.slane %v232_v36, %v236_v39 }
 0x1f2   :  { %654 = vrsqrt.f32 %v239_v37  ;;  %v238_v44 = vsub.f32 %v208_v16, %v237_v40 }
 0x1fc   :  { %v655_v43 = vpop.eup %654 }
 0x1fd   :  { %v244_v45 = vrot.slane %v655_v43, %v243_v41 }
 0x1ff   :  { %v245_v47 = vmul.f32 %v244_v45, %v238_v44 }
 0x201   :  { %v250_v49 = vmul.f32 %v249_v46, %v245_v47 }
 0x203   :  { %v255_v50 = vadd.f32 %v254_v48, %v250_v49 }
 0x205   :  { %v256_v51 = vmax.f32 %v255_v50, 0.0 }
 0x207   :  { %577 = vmatmul.mubr.f32.vlgmr.msra.gmra.mrb[2].mxu0 %v256_v51 }
 0x2da   :  { %v346_v53 = vpop.f32.mrb[2].mxu0 }
 0x2db   :  { %v347_v54 = vadd.f32 %v422_v52, %v346_v53  ;;  %v578_v55 = vpop.f32.mrb[3].mxu0 }
 0x2dd   :  { %v350_v56 = vsel %vm211_vm1, %v347_v54, 0.0 }
 0x2de   :  { %v351_v57 = vrot.slane %v350_v56, 4 }
 0x2e0   :  { %v352_v58 = vadd.f32 %v351_v57, %v350_v56 }
 0x2e2   :  { %v353_v59 = vrot.slane %v352_v58, 2 }
 0x2e4   :  { %v354_v60 = vadd.f32 %v353_v59, %v352_v58 }
 0x2e6   :  { %v355_v61 = vrot.slane %v354_v60, 1 }
 0x2e8   :  { %v356_v62 = vadd.f32 %v355_v61, %v354_v60 }
 0x2ea   :  { %v357_v63 = vmul.f32 0.5, %v356_v62 }
 0x2ec   :  { %v358_v1 = vsub.f32 %v347_v54, %v357_v63 }
 0x2ee   :  { %v359_v2 = vmul.f32 %v358_v1, %v358_v1 }
 0x2f0   :  { %v360_v3 = vsel %vm211_vm1, %v359_v2, 0.0 }
 0x2f1   :  { %v361_v4 = vrot.slane %v360_v3, 4 }
 0x2f3   :  { %v362_v5 = vadd.f32 %v361_v4, %v360_v3 }
 0x2f5   :  { %v363_v6 = vrot.slane %v362_v5, 2 }
 0x2f7   :  { %v364_v7 = vadd.f32 %v363_v6, %v362_v5 }
 0x2f9   :  { %v365_v8 = vrot.slane %v364_v7, 1 }
 0x2fb   :  { %v366_v9 = vadd.f32 %v365_v8, %v364_v7 }
 0x2fd   :  { %v367_v10 = vmul.f32 0.5, %v366_v9 }
 0x2ff   :  { %v368_v11 = vsel %vm231_vm2, %v357_v63, %v367_v10 }
 0x300   :  { %v375_v12 = vadd.f32 1e-05, %v368_v11  ;;  %v373_v13 = vrot.slane %v368_v11, %v236_v39 }
 0x302   :  { %656 = vrsqrt.f32 %v375_v12  ;;  %v374_v16 = vsub.f32 %v347_v54, %v373_v13 }
 0x30c   :  { %v657_v15 = vpop.eup %656 }
 0x30d   :  { %v380_v17 = vrot.slane %v657_v15, %v243_v41 }
 0x30f   :  { %v381_v18 = vmul.f32 %v380_v17, %v374_v16 }
 0x311   :  { %v386_v20 = vmul.f32 %v385_v0, %v381_v18 }
 0x313   :  { %v391_v21 = vadd.f32 %v390_v19, %v386_v20 }
 0x315   :  { %392 = vst [vmem:[%s923_s8] sm:$0x3] %v391_v21  ;;  %v393_v22 = vsel %vm211_vm1, %v391_v21, 0.0 }
 0x316   :  { %v394_v23 = vrot.slane %v393_v22, 4 }
 0x318   :  { %v395_v24 = vadd.f32 %v394_v23, %v393_v22 }
 0x31a   :  { %v396_v25 = vrot.slane %v395_v24, 2 }
 0x31c   :  { %v397_v26 = vadd.f32 %v396_v25, %v395_v24 }
 0x31e   :  { %v398_v27 = vrot.slane %v397_v26, 1 }
 0x320   :  { %v399_v28 = vadd.f32 %v398_v27, %v397_v26 }
 0x322   :  { %v400_v29 = vmul.f32 0.5, %v399_v28 }
 0x324   :  { %v401_v30 = vsub.f32 %v391_v21, %v400_v29 }
 0x326   :  { %v402_v31 = vmul.f32 %v401_v30, %v401_v30 }
 0x328   :  { %v403_v32 = vsel %vm211_vm1, %v402_v31, 0.0 }
 0x329   :  { %v404_v33 = vrot.slane %v403_v32, 4 }
 0x32b   :  { %v405_v34 = vadd.f32 %v404_v33, %v403_v32 }
 0x32d   :  { %v406_v35 = vrot.slane %v405_v34, 2 }
 0x32f   :  { %v407_v36 = vadd.f32 %v406_v35, %v405_v34 }
 0x331   :  { %v408_v37 = vrot.slane %v407_v36, 1 }
 0x333   :  { %v409_v38 = vadd.f32 %v408_v37, %v407_v36 }
 0x335   :  { %v410_v39 = vmul.f32 0.5, %v409_v38 }
 0x337   :  { %v411_v40 = vsel %vm231_vm2, %v400_v29, %v410_v39 }
 0x338   :  { %412 = vst [vmem:[%s924_s9] sm:$0x3] %v411_v40 }

// kernel: gears_forward.9
= control target key start
LH: loop header
LB: loop body
LE: loop exit
PB: predicated region body
PF: predicated region fallthrough
CT: control target
= control target key end

     0   :  { %vm315_vm0 = vcmask 1040384   ;;  %s1010_s0 = inlined_call_operand.vmem [shape: f32[128,128], index: 0, kind: input, shape index: {}]   ;;  %s1011_s1 = inlined_call_operand.vmem [shape: f32[2,128], index: 1, kind: input, shape index: {}]   ;;  %s1012_s2 = inlined_call_operand.vmem [shape: f32[128,128], index: 2, kind: output, shape index: {0}]   ;;  %s1013_s3 = inlined_call_operand.vmem [shape: f32[2,128], index: 3, kind: output, shape index: {1}]  }
   0x1   :  { %v623_v0 = vld [vmem:[%s1010_s0] sm:$0xff]  ;;  %v628_v1 = vld [vmem:[%s1010_s0 + $0x10] sm:$0xff]  ;;  %v633_v2 = vld [vmem:[%s1010_s0 + $0x8] sm:$0xff] }
   0x2   :  { %v29_v3 = vmul.f32 %v623_v0, %v623_v0  ;;  %v31_v4 = vmul.f32 %v628_v1, %v628_v1  ;;  %v642_v5 = vld [vmem:[%s1010_s0 + $0x18] sm:$0xff]  ;;  %v30_v6 = vmul.f32 %v633_v2, %v633_v2  ;;  %v651_v8 = vld [vmem:[%s1010_s0 + $0x20] sm:$0xff]  ;;  %v656_v9 = vld [vmem:[%s1010_s0 + $0x28] sm:$0xff] }
   0x3   :  { %v32_v7 = vmul.f32 %v642_v5, %v642_v5  ;;  %v33_v10 = vmul.f32 %v651_v8, %v651_v8  ;;  %v34_v11 = vmul.f32 %v656_v9, %v656_v9  ;;  %v665_v12 = vld [vmem:[%s1010_s0 + $0x30] sm:$0xff]  ;;  %v670_v13 = vld [vmem:[%s1010_s0 + $0x38] sm:$0xff]  ;;  %v679_v16 = vld [vmem:[%s1010_s0 + $0x40] sm:$0xff] }
   0x4   :  { %45 = vadd.xlane.f32.xlu0 %v29_v3  ;;  %49 = vadd.xlane.f32.xlu1 %v31_v4  ;;  %v35_v14 = vmul.f32 %v665_v12, %v665_v12  ;;  %v36_v15 = vmul.f32 %v670_v13, %v670_v13  ;;  %v684_v17 = vld [vmem:[%s1010_s0 + $0x48] sm:$0xff]  ;;  %v37_v18 = vmul.f32 %v679_v16, %v679_v16  ;;  %v693_v20 = vld [vmem:[%s1010_s0 + $0x50] sm:$0xff]  ;;  %v698_v21 = vld [vmem:[%s1010_s0 + $0x58] sm:$0xff] }
   0x5   :  { %v38_v19 = vmul.f32 %v684_v17, %v684_v17  ;;  %v39_v22 = vmul.f32 %v693_v20, %v693_v20  ;;  %v40_v23 = vmul.f32 %v698_v21, %v698_v21  ;;  %v707_v24 = vld [vmem:[%s1010_s0 + $0x60] sm:$0xff]  ;;  %v712_v25 = vld [vmem:[%s1010_s0 + $0x68] sm:$0xff]  ;;  %v721_v28 = vld [vmem:[%s1010_s0 + $0x70] sm:$0xff] }
   0x6   :  { %v41_v26 = vmul.f32 %v707_v24, %v707_v24  ;;  %v42_v27 = vmul.f32 %v712_v25, %v712_v25  ;;  %v726_v29 = vld [vmem:[%s1010_s0 + $0x78] sm:$0xff]  ;;  %v43_v30 = vmul.f32 %v721_v28, %v721_v28 }
   0x7   :  { %v44_v31 = vmul.f32 %v726_v29, %v726_v29 }
   0x8   :  { %47 = vadd.xlane.f32.xlu0 %v30_v6  ;;  %51 = vadd.xlane.f32.xlu1 %v32_v7 }
   0xc   :  { %53 = vadd.xlane.f32.xlu0 %v33_v10  ;;  %55 = vadd.xlane.f32.xlu1 %v34_v11 }
  0x10   :  { %57 = vadd.xlane.f32.xlu0 %v35_v14  ;;  %59 = vadd.xlane.f32.xlu1 %v36_v15 }
  0x14   :  { %61 = vadd.xlane.f32.xlu0 %v37_v18  ;;  %63 = vadd.xlane.f32.xlu1 %v38_v19 }
  0x18   :  { %65 = vadd.xlane.f32.xlu0 %v39_v22  ;;  %67 = vadd.xlane.f32.xlu1 %v40_v23 }
  0x1c   :  { %69 = vadd.xlane.f32.xlu0 %v41_v26  ;;  %71 = vadd.xlane.f32.xlu1 %v42_v27 }
  0x20   :  { %73 = vadd.xlane.f32.xlu0 %v43_v30  ;;  %75 = vadd.xlane.f32.xlu1 %v44_v31 }
  0x91   :  { %v46_v32 = vpop.xlane.xlu0 %45  ;;  %v50_v33 = vpop.xlane.xlu1 %49 }
  0x92   :  { %v77_v34 = vadd.f32 1e-12, %v46_v32  ;;  %v79_v35 = vadd.f32 1e-12, %v50_v33 }
  0x94   :  { %566 = vrsqrt.f32 %v77_v34 }
  0x95   :  { %v48_v36 = vpop.xlane.xlu0 %47  ;;  %v52_v37 = vpop.xlane.xlu1 %51  ;;  %568 = vrsqrt.f32 %v79_v35 }
  0x96   :  { %v78_v38 = vadd.f32 1e-12, %v48_v36  ;;  %v80_v39 = vadd.f32 1e-12, %v52_v37 }
  0x98   :  { %570 = vrsqrt.f32 %v78_v38 }
  0x99   :  { %572 = vrsqrt.f32 %v80_v39  ;;  %v54_v40 = vpop.xlane.xlu0 %53  ;;  %v56_v41 = vpop.xlane.xlu1 %55 }
  0x9a   :  { %v81_v42 = vadd.f32 1e-12, %v54_v40  ;;  %v82_v43 = vadd.f32 1e-12, %v56_v41 }
  0x9c   :  { %574 = vrsqrt.f32 %v81_v42 }
  0x9d   :  { %576 = vrsqrt.f32 %v82_v43  ;;  %v58_v44 = vpop.xlane.xlu0 %57  ;;  %v60_v45 = vpop.xlane.xlu1 %59 }
  0x9e   :  { %v567_v46 = vpop.eup %566  ;;  %v83_v47 = vadd.f32 1e-12, %v58_v44  ;;  %v84_v48 = vadd.f32 1e-12, %v60_v45 }
  0x9f   :  { %v569_v49 = vpop.eup %568  ;;  %v109_v50 = vmin.f32 %v567_v46, 1.0 }
  0xa0   :  { %578 = vrsqrt.f32 %v83_v47  ;;  %v111_v57 = vmin.f32 %v569_v49, 1.0 }
  0xa1   :  { %580 = vrsqrt.f32 %v84_v48  ;;  %v62_v51 = vpop.xlane.xlu0 %61  ;;  %v64_v52 = vpop.xlane.xlu1 %63  ;;  %v733_v59 = vmul.f32 %v109_v50, %v623_v0 }
  0xa2   :  { %v571_v53 = vpop.eup %570  ;;  %v85_v54 = vadd.f32 1e-12, %v62_v51  ;;  %v86_v55 = vadd.f32 1e-12, %v64_v52  ;;  %v739_v10 = vmul.f32 %v111_v57, %v628_v1 }
  0xa3   :  { %v573_v56 = vpop.eup %572  ;;  %v110_v58 = vmin.f32 %v571_v53, 1.0 }
  0xa4   :  { %582 = vrsqrt.f32 %v85_v54  ;;  %v112_v61 = vmin.f32 %v573_v56, 1.0 }
  0xa5   :  { %v736_v60 = vmul.f32 %v110_v58, %v633_v2  ;;  %584 = vrsqrt.f32 %v86_v55  ;;  %v66_v62 = vpop.xlane.xlu0 %65  ;;  %v68_v63 = vpop.xlane.xlu1 %67 }
  0xa6   :  { %v575_v3 = vpop.eup %574  ;;  %v87_v4 = vadd.f32 1e-12, %v66_v62  ;;  %v88_v6 = vadd.f32 1e-12, %v68_v63  ;;  %v744_v0 = vmul.f32 %v112_v61, %v642_v5 }
  0xa7   :  { %v577_v7 = vpop.eup %576  ;;  %v222_v11 = vadd.f32 %v736_v60, %v733_v59  ;;  %v113_v14 = vmin.f32 %v575_v3, 1.0 }
  0xa8   :  { %586 = vrsqrt.f32 %v87_v4  ;;  %v114_v15 = vmin.f32 %v577_v7, 1.0 }
  0xa9   :  { %v223_v2 = vadd.f32 %v222_v11, %v739_v10  ;;  %588 = vrsqrt.f32 %v88_v6  ;;  %v70_v18 = vpop.xlane.xlu0 %69  ;;  %v72_v19 = vpop.xlane.xlu1 %71  ;;  %v749_v30 = vmul.f32 %v113_v14, %v651_v8 }
  0xaa   :  { %v579_v22 = vpop.eup %578  ;;  %v89_v23 = vadd.f32 1e-12, %v70_v18  ;;  %v90_v26 = vadd.f32 1e-12, %v72_v19  ;;  %v753_v32 = vmul.f32 %v114_v15, %v656_v9 }
  0xab   :  { %v581_v27 = vpop.eup %580  ;;  %v224_v1 = vadd.f32 %v223_v2, %v744_v0  ;;  %v115_v31 = vmin.f32 %v579_v22, 1.0 }
  0xac   :  { %590 = vrsqrt.f32 %v89_v23  ;;  %v116_v33 = vmin.f32 %v581_v27, 1.0 }
  0xad   :  { %v225_v5 = vadd.f32 %v224_v1, %v749_v30  ;;  %592 = vrsqrt.f32 %v90_v26  ;;  %v74_v34 = vpop.xlane.xlu0 %73  ;;  %v76_v35 = vpop.xlane.xlu1 %75  ;;  %v757_v8 = vmul.f32 %v115_v31, %v665_v12 }
  0xae   :  { %v583_v36 = vpop.eup %582  ;;  %v91_v37 = vadd.f32 1e-12, %v74_v34  ;;  %v92_v38 = vadd.f32 1e-12, %v76_v35  ;;  %v761_v9 = vmul.f32 %v116_v33, %v670_v13 }
  0xaf   :  { %v585_v39 = vpop.eup %584  ;;  %v226_v40 = vadd.f32 %v225_v5, %v753_v32  ;;  %v117_v41 = vmin.f32 %v583_v36, 1.0 }
  0xb0   :  { %v118_v42 = vmin.f32 %v585_v39, 1.0  ;;  %594 = vrsqrt.f32 %v91_v37 }
  0xb1   :  { %v227_v43 = vadd.f32 %v226_v40, %v757_v8  ;;  %v764_v44 = vmul.f32 %v117_v41, %v679_v16  ;;  %596 = vrsqrt.f32 %v92_v38 }
  0xb2   :  { %v587_v45 = vpop.eup %586  ;;  %v767_v46 = vmul.f32 %v118_v42, %v684_v17 }
  0xb3   :  { %v589_v47 = vpop.eup %588  ;;  %v228_v12 = vadd.f32 %v227_v43, %v761_v9  ;;  %v214_v48 = vmul.f32 0.0, %v764_v44  ;;  %v119_v49 = vmin.f32 %v587_v45, 1.0 }
  0xb4   :  { %v215_v50 = vmul.f32 0.0, %v767_v46  ;;  %v120_v51 = vmin.f32 %v589_v47, 1.0 }
  0xb5   :  { %v229_v52 = vadd.f32 %v228_v12, %v214_v48  ;;  %v773_v13 = vmul.f32 %v119_v49, %v693_v20 }
  0xb6   :  { %v591_v16 = vpop.eup %590  ;;  %v776_v53 = vmul.f32 %v120_v51, %v698_v21 }
  0xb7   :  { %v593_v54 = vpop.eup %592  ;;  %v230_v17 = vadd.f32 %v229_v52, %v215_v50  ;;  %v216_v55 = vmul.f32 0.0, %v773_v13  ;;  %v121_v56 = vmin.f32 %v591_v16, 1.0 }
  0xb8   :  { %v217_v57 = vmul.f32 0.0, %v776_v53  ;;  %v122_v58 = vmin.f32 %v593_v54, 1.0 }
  0xb9   :  { %v231_v61 = vadd.f32 %v230_v17, %v216_v55  ;;  %v781_v62 = vmul.f32 %v121_v56, %v707_v24 }
  0xba   :  { %v595_v63 = vpop.eup %594  ;;  %v784_v20 = vmul.f32 %v122_v58, %v712_v25 }
  0xbb   :  { %v597_v3 = vpop.eup %596  ;;  %v232_v4 = vadd.f32 %v231_v61, %v217_v57  ;;  %v218_v21 = vmul.f32 0.0, %v781_v62  ;;  %v123_v6 = vmin.f32 %v595_v63, 1.0 }
  0xbc   :  { %v219_v7 = vmul.f32 0.0, %v784_v20  ;;  %v124_v11 = vmin.f32 %v597_v3, 1.0 }
  0xbd   :  { %v233_v14 = vadd.f32 %v232_v4, %v218_v21  ;;  %v789_v2 = vmul.f32 %v123_v6, %v721_v28 }
  0xbe   :  { %v792_v15 = vmul.f32 %v124_v11, %v726_v29 }
  0xbf   :  { %v234_v24 = vadd.f32 %v233_v14, %v219_v7  ;;  %v220_v18 = vmul.f32 0.0, %v789_v2 }
  0xc0   :  { %v221_v25 = vmul.f32 0.0, %v792_v15 }
  0xc1   :  { %v235_v19 = vadd.f32 %v234_v24, %v220_v18 }
  0xc3   :  { %v236_v22 = vadd.f32 %v235_v19, %v221_v25 }
  0xc5   :  { %v237_v23 = vrot.slane %v236_v22, 4 }
  0xc7   :  { %v238_v26 = vadd.f32 %v237_v23, %v236_v22 }
  0xc9   :  { %v239_v27 = vrot.slane %v238_v26, 2 }
  0xcb   :  { %v240_v1 = vadd.f32 %v239_v27, %v238_v26 }
  0xcd   :  { %v241_v31 = vrot.slane %v240_v1, 1 }
  0xcf   :  { %v242_v5 = vadd.f32 %v241_v31, %v240_v1 }
  0xd1   :  { %v796_v33 = vmul.f32 0.015625, %v242_v5 }
  0xd3   :  { %v245_v28 = vsub.f32 %v733_v59, %v796_v33  ;;  %v246_v29 = vsub.f32 %v736_v60, %v796_v33  ;;  %v247_v34 = vsub.f32 %v739_v10, %v796_v33  ;;  %v248_v37 = vsub.f32 %v744_v0, %v796_v33 }
  0xd4   :  { %v249_v38 = vsub.f32 %v749_v30, %v796_v33  ;;  %v250_v41 = vsub.f32 %v753_v32, %v796_v33  ;;  %v251_v45 = vsub.f32 %v757_v8, %v796_v33  ;;  %v253_v47 = vsub.f32 %v764_v44, %v796_v33 }
  0xd5   :  { %v261_v35 = vmul.f32 %v245_v28, %v245_v28  ;;  %v262_v36 = vmul.f32 %v246_v29, %v246_v29  ;;  %v263_v39 = vmul.f32 %v247_v34, %v247_v34  ;;  %v264_v42 = vmul.f32 %v248_v37, %v248_v37 }
  0xd6   :  { %v265_v12 = vmul.f32 %v249_v38, %v249_v38  ;;  %v252_v49 = vsub.f32 %v761_v9, %v796_v33  ;;  %v254_v50 = vsub.f32 %v767_v46, %v796_v33  ;;  %v266_v51 = vmul.f32 %v250_v41, %v250_v41 }
  0xd7   :  { %v293_v40 = vadd.f32 %v262_v36, %v261_v35  ;;  %v255_v16 = vsub.f32 %v773_v13, %v796_v33  ;;  %v267_v54 = vmul.f32 %v251_v45, %v251_v45  ;;  %v269_v17 = vmul.f32 %v253_v47, %v253_v47 }
  0xd8   :  { %v256_v56 = vsub.f32 %v776_v53, %v796_v33  ;;  %v268_v57 = vmul.f32 %v252_v49, %v252_v49  ;;  %v270_v58 = vmul.f32 %v254_v50, %v254_v50  ;;  %v257_v63 = vsub.f32 %v781_v62, %v796_v33 }
  0xd9   :  { %v294_v43 = vadd.f32 %v293_v40, %v263_v39  ;;  %v271_v3 = vmul.f32 %v255_v16, %v255_v16  ;;  %v285_v4 = vmul.f32 0.0, %v269_v17  ;;  %v258_v6 = vsub.f32 %v784_v20, %v796_v33 }
  0xda   :  { %v272_v7 = vmul.f32 %v256_v56, %v256_v56  ;;  %v286_v11 = vmul.f32 0.0, %v270_v58  ;;  %v259_v24 = vsub.f32 %v789_v2, %v796_v33  ;;  %v273_v18 = vmul.f32 %v257_v63, %v257_v63 }
  0xdb   :  { %v295_v48 = vadd.f32 %v294_v43, %v264_v42  ;;  %v287_v25 = vmul.f32 0.0, %v271_v3  ;;  %v260_v22 = vsub.f32 %v792_v15, %v796_v33  ;;  %v274_v23 = vmul.f32 %v258_v6, %v258_v6 }
  0xdc   :  { %v288_v26 = vmul.f32 0.0, %v272_v7  ;;  %v275_v1 = vmul.f32 %v259_v24, %v259_v24  ;;  %v289_v31 = vmul.f32 0.0, %v273_v18 }
  0xdd   :  { %v296_v52 = vadd.f32 %v295_v48, %v265_v12  ;;  %v276_v28 = vmul.f32 %v260_v22, %v260_v22  ;;  %v290_v29 = vmul.f32 0.0, %v274_v23  ;;  %v318_v48 = vlaneseq }
  0xde   :  { %v291_v35 = vmul.f32 0.0, %v275_v1 }
  0xdf   :  { %v297_v55 = vadd.f32 %v296_v52, %v266_v51  ;;  %v292_v37 = vmul.f32 0.0, %v276_v28  ;;  %v319_v50 = vshrl.u32 %v318_v48, 7 }
  0xe1   :  { %v298_v61 = vadd.f32 %v297_v55, %v267_v54  ;;  %v320_v52 = vsub.s32 0, %v319_v50  ;;  %v317_v54 = vld [vmem:[%s1011_s1] sm:$0x3]  ;;  %v342_v17 = vsub.s32 1, %v319_v50 }
  0xe3   :  { %v299_v21 = vadd.f32 %v298_v61, %v268_v57  ;;  %v363_v55 = vrot.slane %v317_v54, %v320_v52  ;;  %v835_v56 = vrot.slane %v317_v54, %v342_v17 }
  0xe5   :  { %v300_v14 = vadd.f32 %v299_v21, %v285_v4 }
  0xe7   :  { %v301_v19 = vadd.f32 %v300_v14, %v286_v11 }
  0xe9   :  { %v302_v27 = vadd.f32 %v301_v19, %v287_v25 }
  0xeb   :  { %v303_v5 = vadd.f32 %v302_v27, %v288_v26 }
  0xed   :  { %v304_v34 = vadd.f32 %v303_v5, %v289_v31 }
  0xef   :  { %v305_v36 = vadd.f32 %v304_v34, %v290_v29 }
  0xf1   :  { %v306_v38 = vadd.f32 %v305_v36, %v291_v35 }
  0xf3   :  { %v307_v39 = vadd.f32 %v306_v38, %v292_v37 }
  0xf5   :  { %v308_v40 = vrot.slane %v307_v39, 4 }
  0xf7   :  { %v309_v41 = vadd.f32 %v308_v40, %v307_v39 }
  0xf9   :  { %v310_v42 = vrot.slane %v309_v41, 2 }
  0xfb   :  { %v311_v43 = vadd.f32 %v310_v42, %v309_v41 }
  0xfd   :  { %v312_v45 = vrot.slane %v311_v43, 1 }
  0xff   :  { %v313_v47 = vadd.f32 %v312_v45, %v311_v43 }
 0x101   :  { %v314_v12 = vmul.f32 0.015625, %v313_v47 }
 0x103   :  { %v316_v49 = vsel %vm315_vm0, %v796_v33, %v314_v12 }
 0x104   :  { %v338_v51 = vadd.f32 1e-05, %v316_v49  ;;  %v321_v16 = vrot.slane %v316_v49, %v320_v52 }
 0x106   :  { %598 = vrsqrt.f32 %v338_v51  ;;  %v322_v57 = vsub.f32 %v733_v59, %v321_v16  ;;  %v323_v58 = vsub.f32 %v736_v60, %v321_v16  ;;  %v324_v61 = vsub.f32 %v739_v10, %v321_v16 }
 0x107   :  { %v325_v33 = vsub.f32 %v744_v0, %v321_v16  ;;  %v326_v63 = vsub.f32 %v749_v30, %v321_v16  ;;  %v327_v4 = vsub.f32 %v753_v32, %v321_v16  ;;  %v328_v21 = vsub.f32 %v757_v8, %v321_v16 }
 0x108   :  { %v329_v6 = vsub.f32 %v761_v9, %v321_v16  ;;  %v330_v7 = vsub.f32 %v764_v44, %v321_v16  ;;  %v331_v11 = vsub.f32 %v767_v46, %v321_v16  ;;  %v332_v59 = vsub.f32 %v773_v13, %v321_v16 }
 0x109   :  { %v333_v60 = vsub.f32 %v776_v53, %v321_v16  ;;  %v334_v0 = vsub.f32 %v781_v62, %v321_v16  ;;  %v335_v30 = vsub.f32 %v784_v20, %v321_v16  ;;  %v336_v14 = vsub.f32 %v789_v2, %v321_v16 }
 0x10a   :  { %v337_v32 = vsub.f32 %v792_v15, %v321_v16 }
 0x110   :  { %v599_v3 = vpop.eup %598 }
 0x111   :  { %v343_v10 = vrot.slane %v599_v3, %v342_v17 }
 0x113   :  { %v344_v8 = vmul.f32 %v343_v10, %v322_v57  ;;  %v345_v24 = vmul.f32 %v343_v10, %v323_v58  ;;  %v346_v9 = vmul.f32 %v343_v10, %v324_v61  ;;  %v347_v18 = vmul.f32 %v343_v10, %v325_v33 }
 0x114   :  { %v348_v44 = vmul.f32 %v343_v10, %v326_v63  ;;  %v349_v25 = vmul.f32 %v343_v10, %v327_v4  ;;  %v350_v46 = vmul.f32 %v343_v10, %v328_v21  ;;  %v351_v19 = vmul.f32 %v343_v10, %v329_v6 }
 0x115   :  { %v352_v13 = vmul.f32 %v343_v10, %v330_v7  ;;  %v353_v22 = vmul.f32 %v343_v10, %v331_v11  ;;  %v354_v53 = vmul.f32 %v343_v10, %v332_v59  ;;  %v355_v23 = vmul.f32 %v343_v10, %v333_v60 }
 0x116   :  { %v356_v26 = vmul.f32 %v343_v10, %v334_v0  ;;  %v357_v62 = vmul.f32 %v343_v10, %v335_v30  ;;  %v358_v27 = vmul.f32 %v343_v10, %v336_v14  ;;  %v359_v20 = vmul.f32 %v343_v10, %v337_v32 }
 0x117   :  { %v364_v1 = vmul.f32 %v363_v55, %v344_v8  ;;  %v365_v2 = vmul.f32 %v363_v55, %v345_v24  ;;  %v366_v31 = vmul.f32 %v363_v55, %v346_v9  ;;  %v367_v15 = vmul.f32 %v363_v55, %v347_v18 }
 0x118   :  { %v368_v5 = vmul.f32 %v363_v55, %v348_v44  ;;  %v369_v28 = vmul.f32 %v363_v55, %v349_v25  ;;  %v370_v29 = vmul.f32 %v363_v55, %v350_v46  ;;  %v371_v34 = vmul.f32 %v363_v55, %v351_v19 }
 0x119   :  { %v372_v35 = vmul.f32 %v363_v55, %v352_v13  ;;  %v373_v36 = vmul.f32 %v363_v55, %v353_v22  ;;  %v374_v37 = vmul.f32 %v363_v55, %v354_v53  ;;  %v375_v38 = vmul.f32 %v363_v55, %v355_v23 }
 0x11a   :  { %v376_v39 = vmul.f32 %v363_v55, %v356_v26  ;;  %v377_v40 = vmul.f32 %v363_v55, %v357_v62  ;;  %v378_v41 = vmul.f32 %v363_v55, %v358_v27  ;;  %v379_v42 = vmul.f32 %v363_v55, %v359_v20 }
 0x11b   :  { %v384_v43 = vadd.f32 %v835_v56, %v364_v1  ;;  %v385_v45 = vadd.f32 %v835_v56, %v365_v2  ;;  %v386_v47 = vadd.f32 %v835_v56, %v366_v31  ;;  %v387_v12 = vadd.f32 %v835_v56, %v367_v15 }
 0x11c   :  { %v388_v48 = vadd.f32 %v835_v56, %v368_v5  ;;  %v389_v49 = vadd.f32 %v835_v56, %v369_v28  ;;  %v390_v50 = vadd.f32 %v835_v56, %v370_v29  ;;  %v391_v51 = vadd.f32 %v835_v56, %v371_v34 }
 0x11d   :  { %v392_v52 = vadd.f32 %v835_v56, %v372_v35  ;;  %v393_v16 = vadd.f32 %v835_v56, %v373_v36  ;;  %v394_v54 = vadd.f32 %v835_v56, %v374_v37  ;;  %v395_v17 = vadd.f32 %v835_v56, %v375_v38 }
 0x11e   :  { %v396_v55 = vadd.f32 %v835_v56, %v376_v39  ;;  %v397_v57 = vadd.f32 %v835_v56, %v377_v40  ;;  %v398_v58 = vadd.f32 %v835_v56, %v378_v41  ;;  %v399_v61 = vadd.f32 %v835_v56, %v379_v42 }
 0x11f   :  { %v869_v33 = vmax.f32 %v384_v43, 0.0  ;;  %v871_v63 = vmax.f32 %v385_v45, 0.0  ;;  %v873_v3 = vmax.f32 %v386_v47, 0.0  ;;  %v875_v4 = vmax.f32 %v387_v12, 0.0 }
 0x120   :  { %v877_v21 = vmax.f32 %v388_v48, 0.0  ;;  %v879_v6 = vmax.f32 %v389_v49, 0.0  ;;  %v881_v7 = vmax.f32 %v390_v50, 0.0  ;;  %v883_v11 = vmax.f32 %v391_v51, 0.0 }
 0x121   :  { %v408_v59 = vmax.f32 %v392_v52, 0.0  ;;  %v409_v60 = vmax.f32 %v393_v16, 0.0  ;;  %v410_v10 = vmax.f32 %v394_v54, 0.0  ;;  %v411_v56 = vmax.f32 %v395_v17, 0.0  ;;  %432 = vst [vmem:[%s1012_s2] sm:$0xff] %v869_v33  ;;  %433 = vst [vmem:[%s1012_s2 + $0x8] sm:$0xff] %v871_v63 }
 0x122   :  { %434 = vst [vmem:[%s1012_s2 + $0x10] sm:$0xff] %v873_v3  ;;  %435 = vst [vmem:[%s1012_s2 + $0x18] sm:$0xff] %v875_v4  ;;  %v412_v0 = vmax.f32 %v396_v55, 0.0  ;;  %v413_v30 = vmax.f32 %v397_v57, 0.0  ;;  %v414_v14 = vmax.f32 %v398_v58, 0.0  ;;  %v415_v32 = vmax.f32 %v399_v61, 0.0 }
 0x123   :  { %436 = vst [vmem:[%s1012_s2 + $0x20] sm:$0xff] %v877_v21  ;;  %437 = vst [vmem:[%s1012_s2 + $0x28] sm:$0xff] %v879_v6  ;;  %v424_v8 = vmul.f32 0.0, %v408_v59  ;;  %v425_v24 = vmul.f32 0.0, %v409_v60  ;;  %v917_v9 = vmul.f32 0.0, %v410_v10  ;;  %v919_v18 = vmul.f32 0.0, %v411_v56 }
 0x124   :  { %438 = vst [vmem:[%s1012_s2 + $0x30] sm:$0xff] %v881_v7  ;;  %439 = vst [vmem:[%s1012_s2 + $0x38] sm:$0xff] %v883_v11  ;;  %v921_v44 = vmul.f32 0.0, %v412_v0  ;;  %v923_v25 = vmul.f32 0.0, %v413_v30  ;;  %v925_v46 = vmul.f32 0.0, %v414_v14  ;;  %v927_v19 = vmul.f32 0.0, %v415_v32 }
 0x125   :  { %440 = vst [vmem:[%s1012_s2 + $0x40] sm:$0xff] %v424_v8  ;;  %441 = vst [vmem:[%s1012_s2 + $0x48] sm:$0xff] %v425_v24  ;;  %v464_v13 = vadd.f32 %v871_v63, %v869_v33  ;;  %v456_v27 = vmul.f32 0.0, %v424_v8  ;;  %v457_v1 = vmul.f32 0.0, %v425_v24  ;;  %v458_v31 = vmul.f32 0.0, %v917_v9 }
 0x126   :  { %442 = vst [vmem:[%s1012_s2 + $0x50] sm:$0xff] %v917_v9  ;;  %443 = vst [vmem:[%s1012_s2 + $0x58] sm:$0xff] %v919_v18  ;;  %v459_v5 = vmul.f32 0.0, %v919_v18  ;;  %v460_v29 = vmul.f32 0.0, %v921_v44  ;;  %v461_v35 = vmul.f32 0.0, %v923_v25  ;;  %v462_v37 = vmul.f32 0.0, %v925_v46 }
 0x127   :  { %444 = vst [vmem:[%s1012_s2 + $0x60] sm:$0xff] %v921_v44  ;;  %445 = vst [vmem:[%s1012_s2 + $0x68] sm:$0xff] %v923_v25  ;;  %v465_v22 = vadd.f32 %v464_v13, %v873_v3  ;;  %v463_v39 = vmul.f32 0.0, %v927_v19 }
 0x128   :  { %446 = vst [vmem:[%s1012_s2 + $0x70] sm:$0xff] %v925_v46  ;;  %447 = vst [vmem:[%s1012_s2 + $0x78] sm:$0xff] %v927_v19 }
 0x129   :  { %v466_v53 = vadd.f32 %v465_v22, %v875_v4 }
 0x12b   :  { %v467_v23 = vadd.f32 %v466_v53, %v877_v21 }
 0x12d   :  { %v468_v26 = vadd.f32 %v467_v23, %v879_v6 }
 0x12f   :  { %v469_v62 = vadd.f32 %v468_v26, %v881_v7 }
 0x131   :  { %v470_v20 = vadd.f32 %v469_v62, %v883_v11 }
 0x133   :  { %v471_v2 = vadd.f32 %v470_v20, %v456_v27 }
 0x135   :  { %v472_v15 = vadd.f32 %v471_v2, %v457_v1 }
 0x137   :  { %v473_v28 = vadd.f32 %v472_v15, %v458_v31 }
 0x139   :  { %v474_v34 = vadd.f32 %v473_v28, %v459_v5 }
 0x13b   :  { %v475_v36 = vadd.f32 %v474_v34, %v460_v29 }
 0x13d   :  { %v476_v38 = vadd.f32 %v475_v36, %v461_v35 }
 0x13f   :  { %v477_v40 = vadd.f32 %v476_v38, %v462_v37 }
 0x141   :  { %v478_v41 = vadd.f32 %v477_v40, %v463_v39 }
 0x143   :  { %v479_v42 = vrot.slane %v478_v41, 4 }
 0x145   :  { %v480_v43 = vadd.f32 %v479_v42, %v478_v41 }
 0x147   :  { %v481_v45 = vrot.slane %v480_v43, 2 }
 0x149   :  { %v482_v47 = vadd.f32 %v481_v45, %v480_v43 }
 0x14b   :  { %v483_v12 = vrot.slane %v482_v47, 1 }
 0x14d   :  { %v484_v48 = vadd.f32 %v483_v12, %v482_v47 }
 0x14f   :  { %v973_v49 = vmul.f32 0.015625, %v484_v48 }
 0x151   :  { %v486_v50 = vsub.f32 %v869_v33, %v973_v49  ;;  %v487_v51 = vsub.f32 %v871_v63, %v973_v49  ;;  %v488_v52 = vsub.f32 %v873_v3, %v973_v49  ;;  %v489_v17 = vsub.f32 %v875_v4, %v973_v49 }
 0x152   :  { %v490_v55 = vsub.f32 %v877_v21, %v973_v49  ;;  %v491_v61 = vsub.f32 %v879_v6, %v973_v49  ;;  %v492_v63 = vsub.f32 %v881_v7, %v973_v49  ;;  %v494_v3 = vsub.f32 %v424_v8, %v973_v49 }
 0x153   :  { %v502_v16 = vmul.f32 %v486_v50, %v486_v50  ;;  %v503_v54 = vmul.f32 %v487_v51, %v487_v51  ;;  %v504_v57 = vmul.f32 %v488_v52, %v488_v52  ;;  %v505_v33 = vmul.f32 %v489_v17, %v489_v17 }
 0x154   :  { %v506_v60 = vmul.f32 %v490_v55, %v490_v55  ;;  %v493_v4 = vsub.f32 %v883_v11, %v973_v49  ;;  %v495_v56 = vsub.f32 %v425_v24, %v973_v49  ;;  %v507_v21 = vmul.f32 %v491_v61, %v491_v61 }
 0x155   :  { %v534_v58 = vadd.f32 %v503_v54, %v502_v16  ;;  %v496_v30 = vsub.f32 %v917_v9, %v973_v49  ;;  %v508_v6 = vmul.f32 %v492_v63, %v492_v63  ;;  %v510_v14 = vmul.f32 %v494_v3, %v494_v3 }
 0x156   :  { %v497_v7 = vsub.f32 %v919_v18, %v973_v49  ;;  %v509_v13 = vmul.f32 %v493_v4, %v493_v4  ;;  %v511_v8 = vmul.f32 %v495_v56, %v495_v56  ;;  %v498_v53 = vsub.f32 %v921_v44, %v973_v49 }
 0x157   :  { %v535_v59 = vadd.f32 %v534_v58, %v504_v57  ;;  %v512_v11 = vmul.f32 %v496_v30, %v496_v30  ;;  %v526_v23 = vmul.f32 0.0, %v510_v14  ;;  %v499_v26 = vsub.f32 %v923_v25, %v973_v49 }
 0x158   :  { %v513_v62 = vmul.f32 %v497_v7, %v497_v7  ;;  %v527_v9 = vmul.f32 0.0, %v511_v8  ;;  %v500_v20 = vsub.f32 %v925_v46, %v973_v49  ;;  %v514_v1 = vmul.f32 %v498_v53, %v498_v53 }
 0x159   :  { %v536_v10 = vadd.f32 %v535_v59, %v505_v33  ;;  %v528_v18 = vmul.f32 0.0, %v512_v11  ;;  %v501_v31 = vsub.f32 %v927_v19, %v973_v49  ;;  %v515_v15 = vmul.f32 %v499_v26, %v499_v26 }
 0x15a   :  { %v529_v44 = vmul.f32 0.0, %v513_v62  ;;  %v516_v28 = vmul.f32 %v500_v20, %v500_v20  ;;  %v530_v29 = vmul.f32 0.0, %v514_v1 }
 0x15b   :  { %v537_v0 = vadd.f32 %v536_v10, %v506_v60  ;;  %v517_v35 = vmul.f32 %v501_v31, %v501_v31  ;;  %v531_v25 = vmul.f32 0.0, %v515_v15 }
 0x15c   :  { %v532_v37 = vmul.f32 0.0, %v516_v28 }
 0x15d   :  { %v538_v32 = vadd.f32 %v537_v0, %v507_v21  ;;  %v533_v39 = vmul.f32 0.0, %v517_v35 }
 0x15f   :  { %v539_v22 = vadd.f32 %v538_v32, %v508_v6 }
 0x161   :  { %v540_v24 = vadd.f32 %v539_v22, %v509_v13 }
 0x163   :  { %v541_v27 = vadd.f32 %v540_v24, %v526_v23 }
 0x165   :  { %v542_v2 = vadd.f32 %v541_v27, %v527_v9 }
 0x167   :  { %v543_v5 = vadd.f32 %v542_v2, %v528_v18 }
 0x169   :  { %v544_v34 = vadd.f32 %v543_v5, %v529_v44 }
 0x16b   :  { %v545_v36 = vadd.f32 %v544_v34, %v530_v29 }
 0x16d   :  { %v546_v38 = vadd.f32 %v545_v36, %v531_v25 }
 0x16f   :  { %v547_v40 = vadd.f32 %v546_v38, %v532_v37 }
 0x171   :  { %v548_v46 = vadd.f32 %v547_v40, %v533_v39 }
 0x173   :  { %v549_v41 = vrot.slane %v548_v46, 4 }
 0x175   :  { %v550_v42 = vadd.f32 %v549_v41, %v548_v46 }
 0x177   :  { %v551_v43 = vrot.slane %v550_v42, 2 }
 0x179   :  { %v552_v45 = vadd.f32 %v551_v43, %v550_v42 }
 0x17b   :  { %v553_v47 = vrot.slane %v552_v45, 1 }
 0x17d   :  { %v554_v19 = vadd.f32 %v553_v47, %v552_v45 }
 0x17f   :  { %v555_v12 = vmul.f32 0.015625, %v554_v19 }
 0x181   :  { %v556_v48 = vsel %vm315_vm0, %v973_v49, %v555_v12 }
 0x182   :  { %557 = vst [vmem:[%s1013_s3] sm:$0x3] %v556_v48 }

// kernel: gears_forward.15
= control target key start
LH: loop header
LB: loop body
LE: loop exit
PB: predicated region body
PF: predicated region fallthrough
CT: control target
= control target key end

     0   :  { %v100_v0 = vlaneseq  ;;  %v1563_v2 = vmov 1966171168   ;;  %vm1192_vm0 = vcmask 130112   ;;  %vm1199_vm1 = vcmask 195712   ;;  %s2273_s2 = inlined_call_operand.vmem [shape: bf16[128,128], index: 2, kind: input, shape index: {}]   ;;  %s2274_s1 = inlined_call_operand.vmem [shape: f32[2,128], index: 1, kind: input, shape index: {}]   ;;  %s2275_s0 = inlined_call_operand.vmem [shape: f32[128,128], index: 0, kind: input, shape index: {}]   ;;  %s2276_s5 = inlined_call_operand.vmem [shape: bf16[128,128], index: 5, kind: input, shape index: {}]   ;;  %s2277_s9 = inlined_call_operand.vmem [shape: f32[1,128], index: 9, kind: input, shape index: {}]   ;;  %s2278_s4 = inlined_call_operand.vmem [shape: f32[2,128], index: 4, kind: input, shape index: {}]   ;;  %s2279_s3 = inlined_call_operand.vmem [shape: f32[1,128], index: 3, kind: input, shape index: {}]   ;;  %s2280_s7 = inlined_call_operand.vmem [shape: f32[2,128], index: 7, kind: input, shape index: {}]   ;;  %s2281_s6 = inlined_call_operand.vmem [shape: f32[1,128], index: 6, kind: input, shape index: {}]   ;;  %s2282_s8 = inlined_call_operand.vmem [shape: f32[128,128], index: 8, kind: input, shape index: {}]   ;;  %s2283_s10 = inlined_call_operand.vmem [shape: f32[2,128], index: 10, kind: output, shape index: {}]  }
   0x1   :  { %v1547_v1 = vld [vmem:[%s2273_s2] sm:$0xff]   ;;  %v98_v3 = vunpack.c.l.s4 %v1563_v2  ;;  %v1548_v4 = vld [vmem:[%s2273_s2 + $0x8] sm:$0xff]   ;;  %v1549_v7 = vld [vmem:[%s2273_s2 + $0x10] sm:$0xff]   ;;  %vm1206_vm2 = vcmask 261312   ;;  %vm1213_vm3 = vcmask 326912   ;;  %vm1220_vm4 = vcmask 392512  }
   0x2   :  { %v1627_v5 = vshrl.u32 %v100_v0, 7  ;;  %1447 = vmatprep.subr.bf16.mxu0 %v1547_v1  ;;  %v1550_v10 = vld [vmem:[%s2273_s2 + $0x18] sm:$0xff]   ;;  %v1644_v11 = vld.sshfl [vmem:[%s2274_s1] sm:$0x11 pattern:$0x75316420] }
   0x3   :  { %v99_v6 = vunpack.c.0.s8 %v98_v3  ;;  %1448 = vmatpush3.bf16.msra.mxu0 %v1547_v1  ;;  %v1651_v13 = vld [vmem:[%s2275_s0] sm:$0xff]  ;;  %v1656_v14 = vld [vmem:[%s2275_s0 + $0x8] sm:$0xff]  ;;  %v1680_v25 = vld [vmem:[%s2275_s0 + $0x10] sm:$0xff]  ;;  %v96_v54 = vcombine.high %v1644_v11, %v1644_v11  ;;  %vm1227_vm5 = vcmask 458112   ;;  %vm1234_vm6 = vcmask 523712  }
   0x4   :  { %1449 = vmatprep.subr.bf16.mxu0 %v1548_v4  ;;  %v1636_v9 = vsub.s32 0, %v1627_v5  ;;  %v1551_v16 = vld [vmem:[%s2273_s2 + $0x20] sm:$0xff]   ;;  %v1552_v22 = vld [vmem:[%s2273_s2 + $0x28] sm:$0xff]   ;;  %v1685_v26 = vld [vmem:[%s2275_s0 + $0x18] sm:$0xff]  ;;  %vm1241_vm7 = vcmask 589312   ;;  %vm1248_vm8 = vcmask 654912  }
   0x5   :  { %v1633_v8 = vsub.s32 %v99_v6, %v1627_v5  ;;  %v1555_v21 = vld [vmem:[%s2276_s5] sm:$0xff]   ;;  %v1556_v23 = vld [vmem:[%s2276_s5 + $0x8] sm:$0xff]   ;;  %v1553_v27 = vld [vmem:[%s2273_s2 + $0x30] sm:$0xff]   ;;  %vm1255_vm9 = vcmask 720512   ;;  %vm1262_vm10 = vcmask 786112   ;;  %vm1269_vm11 = vcmask 851712  }
   0x6   :  { %1495 = vmatprep.subr.bf16.mxu1 %v1555_v21  ;;  %v1693_v28 = vld [vmem:[%s2275_s0 + $0x20] sm:$0xff]  ;;  %v1698_v29 = vld [vmem:[%s2275_s0 + $0x28] sm:$0xff]  ;;  %v1557_v30 = vld [vmem:[%s2276_s5 + $0x10] sm:$0xff]   ;;  %vm1276_vm12 = vcmask 917312   ;;  %vm1283_vm13 = vcmask 982912   ;;  %vm1290_vm14 = vcmask 1048512  }
   0x7   :  { %1450 = vmatpush3.bf16.msra.mxu0 %v1548_v4  ;;  %v103_v12 = vrot.slane %v1644_v11, %v1633_v8  ;;  %1496 = vmatpush3.bf16.msra.mxu1 %v1555_v21  ;;  %v1558_v35 = vld [vmem:[%s2276_s5 + $0x18] sm:$0xff]   ;;  %v1720_v41 = vld [vmem:[%s2275_s0 + $0x30] sm:$0xff]  ;;  %v1559_v43 = vld [vmem:[%s2276_s5 + $0x20] sm:$0xff]   ;;  %v110_v1 = vrot.slane %v96_v54, %v1633_v8  ;;  %vm1371_vm15 = vcmask 1041409  }
   0x8   :  { %1451 = vmatprep.subr.bf16.mxu0 %v1549_v7  ;;  %1497 = vmatprep.subr.bf16.mxu1 %v1556_v23  ;;  %v1554_v36 = vld [vmem:[%s2273_s2 + $0x38] sm:$0xff]   ;;  %v1733_v44 = vld [vmem:[%s2275_s0 + $0x40] sm:$0xff]  ;;  %v1738_v45 = vld [vmem:[%s2275_s0 + $0x48] sm:$0xff] }
   0x9   :  { %v1659_v15 = vrot.slane %v103_v12, %v1636_v9  ;;  %v1725_v42 = vld [vmem:[%s2275_s0 + $0x38] sm:$0xff]  ;;  %v47_v57 = vld [vmem:[%s2275_s0 + $0x50] sm:$0xff]  ;;  %v49_v59 = vld [vmem:[%s2275_s0 + $0x60] sm:$0xff] }
   0xa   :  { %v48_v58 = vld [vmem:[%s2275_s0 + $0x58] sm:$0xff]  ;;  %v50_v60 = vld [vmem:[%s2275_s0 + $0x68] sm:$0xff] }
   0xb   :  { %1452 = vmatpush3.bf16.msra.mxu0 %v1549_v7  ;;  %v121_v17 = vadd.f32 %v1659_v15, %v1651_v13  ;;  %v122_v18 = vadd.f32 %v1659_v15, %v1656_v14  ;;  %v123_v31 = vadd.f32 %v1659_v15, %v1680_v25  ;;  %v124_v32 = vadd.f32 %v1659_v15, %v1685_v26  ;;  %v52_v8 = vld [vmem:[%s2275_s0 + $0x78] sm:$0xff] }
   0xc   :  { %1453 = vmatprep.subr.bf16.mxu0 %v1550_v10  ;;  %1498 = vmatpush3.bf16.msra.mxu1 %v1556_v23  ;;  %v125_v33 = vadd.f32 %v1659_v15, %v1693_v28  ;;  %v126_v34 = vadd.f32 %v1659_v15, %v1698_v29  ;;  %v127_v47 = vadd.f32 %v1659_v15, %v1720_v41 }
   0xd   :  { %v153_v19 = vmax.f32 %v121_v17, 0.0  ;;  %v154_v20 = vmax.f32 %v122_v18, 0.0  ;;  %1499 = vmatprep.subr.bf16.mxu1 %v1557_v30  ;;  %v155_v37 = vmax.f32 %v123_v31, 0.0  ;;  %v156_v38 = vmax.f32 %v124_v32, 0.0 }
   0xe   :  { %v157_v39 = vmax.f32 %v125_v33, 0.0  ;;  %v158_v40 = vmax.f32 %v126_v34, 0.0  ;;  %v128_v48 = vadd.f32 %v1659_v15, %v1725_v42  ;;  %v129_v50 = vadd.f32 %v1659_v15, %v1733_v44 }
   0xf   :  { %1454 = vmatpush3.bf16.msra.mxu0 %v1550_v10  ;;  %v185_v24 = vpack.c.bf16 %v154_v20, %v153_v19  ;;  %v186_v46 = vpack.c.bf16 %v156_v38, %v155_v37  ;;  %v130_v51 = vadd.f32 %v1659_v15, %v1738_v45  ;;  %v159_v52 = vmax.f32 %v127_v47, 0.0 }
  0x10   :  { %1455 = vmatprep.subr.bf16.mxu0 %v1551_v16  ;;  %1500 = vmatpush3.bf16.msra.mxu1 %v1557_v30  ;;  %v187_v49 = vpack.c.bf16 %v158_v40, %v157_v39  ;;  %v160_v53 = vmax.f32 %v128_v48, 0.0  ;;  %v161_v55 = vmax.f32 %v129_v50, 0.0  ;;  %v131_v62 = vadd.f32 %v1659_v15, %v47_v57 }
  0x11   :  { %1463 = vmatprep.mubr.bf16.mxu0 %v185_v24  ;;  %1501 = vmatprep.subr.bf16.mxu1 %v1558_v35  ;;  %v162_v56 = vmax.f32 %v130_v51, 0.0  ;;  %v132_v63 = vadd.f32 %v1659_v15, %v48_v58  ;;  %v133_v3 = vadd.f32 %v1659_v15, %v49_v59  ;;  %v134_v4 = vadd.f32 %v1659_v15, %v50_v60 }
  0x12   :  { %v188_v61 = vpack.c.bf16 %v160_v53, %v159_v52  ;;  %v163_v6 = vmax.f32 %v131_v62, 0.0  ;;  %v118_v10 = vrot.slane %v110_v1, %v1636_v9  ;;  %v136_v19 = vadd.f32 %v1659_v15, %v52_v8 }
  0x13   :  { %1456 = vmatpush3.bf16.msra.mxu0 %v1551_v16  ;;  %v189_v2 = vpack.c.bf16 %v162_v56, %v161_v55  ;;  %v164_v7 = vmax.f32 %v132_v63, 0.0  ;;  %v165_v11 = vmax.f32 %v133_v3, 0.0  ;;  %v166_v12 = vmax.f32 %v134_v4, 0.0  ;;  %v51_v16 = vld [vmem:[%s2275_s0 + $0x70] sm:$0xff]  ;;  %v1805_v4 = vld [vmem:[%s2279_s3] ss:$0 sm:$0xff] }
  0x14   :  { %1457 = vmatprep.subr.bf16.mxu0 %v1552_v22  ;;  %1502 = vmatpush3.bf16.msra.mxu1 %v1558_v35  ;;  %v135_v18 = vadd.f32 %v1659_v15, %v51_v16  ;;  %v137_v20 = vadd.f32 %v118_v10, %v1651_v13  ;;  %v138_v21 = vadd.f32 %v118_v10, %v1656_v14  ;;  %v168_v24 = vmax.f32 %v136_v19, 0.0 }
  0x15   :  { %1503 = vmatprep.subr.bf16.mxu1 %v1559_v43  ;;  %v190_v17 = vpack.c.bf16 %v164_v7, %v163_v6  ;;  %v139_v32 = vadd.f32 %v118_v10, %v1680_v25  ;;  %v140_v33 = vadd.f32 %v118_v10, %v1685_v26  ;;  %v141_v35 = vadd.f32 %v118_v10, %v1693_v28 }
  0x16   :  { %v167_v23 = vmax.f32 %v135_v18, 0.0  ;;  %v170_v30 = vmax.f32 %v138_v21, 0.0  ;;  %v142_v15 = vadd.f32 %v118_v10, %v1698_v29  ;;  %v143_v39 = vadd.f32 %v118_v10, %v1720_v41 }
  0x17   :  { %1458 = vmatpush3.bf16.msra.mxu0 %v1552_v22  ;;  %v191_v22 = vpack.c.bf16 %v166_v12, %v165_v11  ;;  %v171_v13 = vmax.f32 %v139_v32, 0.0  ;;  %v172_v14 = vmax.f32 %v140_v33, 0.0  ;;  %v144_v40 = vadd.f32 %v118_v10, %v1725_v42 }
  0x18   :  { %1459 = vmatprep.subr.bf16.mxu0 %v1553_v27  ;;  %1504 = vmatpush3.bf16.msra.mxu1 %v1559_v43  ;;  %v192_v31 = vpack.c.bf16 %v168_v24, %v167_v23  ;;  %v174_v37 = vmax.f32 %v142_v15, 0.0  ;;  %v145_v25 = vadd.f32 %v118_v10, %v1733_v44  ;;  %v146_v26 = vadd.f32 %v118_v10, %v1738_v45 }
  0x19   :  { %v194_v38 = vpack.c.bf16 %v172_v14, %v171_v13  ;;  %v175_v28 = vmax.f32 %v143_v39, 0.0  ;;  %v148_v50 = vadd.f32 %v118_v10, %v48_v58  ;;  %v149_v52 = vadd.f32 %v118_v10, %v49_v59  ;;  %v1561_v58 = vld [vmem:[%s2276_s5 + $0x30] sm:$0xff]   ;;  %v1562_v59 = vld [vmem:[%s2276_s5 + $0x38] sm:$0xff]  }
  0x1a   :  { %v177_v29 = vmax.f32 %v145_v25, 0.0  ;;  %v178_v47 = vmax.f32 %v146_v26, 0.0  ;;  %v150_v53 = vadd.f32 %v118_v10, %v50_v60  ;;  %v151_v45 = vadd.f32 %v118_v10, %v51_v16  ;;  %v1398_v60 = vld [vmem:[%s2277_s9] ss:$0 sm:$0xff] }
  0x1b   :  { %1460 = vmatpush3.bf16.msra.mxu0 %v1553_v27  ;;  %v169_v27 = vmax.f32 %v137_v20, 0.0  ;;  %v180_v42 = vmax.f32 %v148_v50, 0.0  ;;  %v181_v54 = vmax.f32 %v149_v52, 0.0  ;;  %v152_v56 = vadd.f32 %v118_v10, %v52_v8  ;;  %947 = vbcast.lane.b32.xlu1 %v1398_v60, 264 }
  0x1c   :  { %1461 = vmatprep.subr.bf16.mxu0 %v1554_v36  ;;  %v197_v51 = vpack.c.bf16 %v178_v47, %v177_v29  ;;  %v182_v44 = vmax.f32 %v150_v53, 0.0  ;;  %v183_v62 = vmax.f32 %v151_v45, 0.0  ;;  %943 = vbcast.lane.b32.xlu0 %v1398_v60, 256  ;;  %v454_v3 = vsub.s32 1, %v1627_v5 }
  0x1d   :  { %v193_v34 = vpack.c.bf16 %v170_v30, %v169_v27  ;;  %v184_v63 = vmax.f32 %v152_v56, 0.0 }
  0x1f   :  { %1462 = vmatpush3.bf16.msra.mxu0 %v1554_v36  ;;  %v173_v36 = vmax.f32 %v141_v35, 0.0  ;;  %v200_v1 = vpack.c.bf16 %v184_v63, %v183_v62  ;;  %951 = vbcast.lane.b32.xlu1 %v1398_v60, 272 }
  0x20   :  { %959 = vbcast.lane.b32.xlu0 %v1398_v60, 288 }
  0x21   :  { %v195_v43 = vpack.c.bf16 %v174_v37, %v173_v36 }
  0x22   :  { %1464 = vmatmul.mubr.bf16.vlgmr.msra.gmra.mrb[0].mxu0 %v186_v46  ;;  %v176_v46 = vmax.f32 %v144_v40, 0.0 }
  0x23   :  { %1467 = vmatprep.mubr.bf16.mxu0 %v187_v49  ;;  %v147_v49 = vadd.f32 %v118_v10, %v47_v57  ;;  %v1560_v57 = vld [vmem:[%s2276_s5 + $0x28] sm:$0xff]   ;;  %955 = vbcast.lane.b32.xlu1 %v1398_v60, 280 }
  0x24   :  { %v196_v48 = vpack.c.bf16 %v176_v46, %v175_v28  ;;  %1505 = vmatprep.subr.bf16.mxu1 %v1560_v57  ;;  %967 = vbcast.lane.b32.xlu0 %v1398_v60, 304 }
  0x25   :  { %v179_v41 = vmax.f32 %v147_v49, 0.0  ;;  %1506 = vmatpush3.bf16.msra.mxu1 %v1560_v57 }
  0x26   :  { %1507 = vmatprep.subr.bf16.mxu1 %v1561_v58 }
  0x27   :  { %v198_v55 = vpack.c.bf16 %v180_v42, %v179_v41  ;;  %963 = vbcast.lane.b32.xlu1 %v1398_v60, 296 }
  0x28   :  { %975 = vbcast.lane.b32.xlu0 %v1398_v60, 320 }
  0x29   :  { %1508 = vmatpush3.bf16.msra.mxu1 %v1561_v58 }
  0x2a   :  { %1468 = vmatmul.mubr.bf16.gmra.mrb[4].mxu0 %v188_v61  ;;  %v199_v61 = vpack.c.bf16 %v182_v44, %v181_v54  ;;  %1509 = vmatprep.subr.bf16.mxu1 %v1562_v59 }
  0x2b   :  { %1471 = vmatprep.mubr.bf16.mxu0 %v189_v2  ;;  %971 = vbcast.lane.b32.xlu1 %v1398_v60, 312  ;;  %v70_v2 = vld [vmem:[%s2278_s4] sm:$0x3] }
  0x2c   :  { %983 = vbcast.lane.b32.xlu0 %v1398_v60, 336  ;;  %v1808_v6 = vrot.slane %v70_v2, %v1636_v9  ;;  %v1813_v11 = vrot.slane %v70_v2, %v454_v3 }
  0x2d   :  { %1510 = vmatpush3.bf16.msra.mxu1 %v1562_v59 }
  0x2f   :  { %979 = vbcast.lane.b32.xlu1 %v1398_v60, 328 }
  0x30   :  { %991 = vbcast.lane.b32.xlu0 %v1398_v60, 352 }
  0x32   :  { %1472 = vmatmul.mubr.bf16.gmra.mrb[8].mxu0 %v190_v17 }
  0x33   :  { %1475 = vmatprep.mubr.bf16.mxu0 %v191_v22  ;;  %987 = vbcast.lane.b32.xlu1 %v1398_v60, 344 }
  0x34   :  { %999 = vbcast.lane.b32.xlu0 %v1398_v60, 368 }
  0x37   :  { %995 = vbcast.lane.b32.xlu1 %v1398_v60, 360 }
  0x3a   :  { %1476 = vmatmul.mubr.bf16.gmra.mrb[12].mxu0 %v192_v31 }
  0x3b   :  { %1479 = vmatprep.mubr.bf16.mxu0 %v193_v34  ;;  %1003 = vbcast.lane.b32.xlu1 %v1398_v60, 376 }
  0x42   :  { %1480 = vmatmul.mubr.bf16.gmra.mrb[16].mxu0 %v194_v38 }
  0x43   :  { %1483 = vmatprep.mubr.bf16.mxu0 %v195_v43 }
  0x4a   :  { %1484 = vmatmul.mubr.bf16.gmra.mrb[20].mxu0 %v196_v48 }
  0x4b   :  { %1487 = vmatprep.mubr.bf16.mxu0 %v197_v51 }
  0x52   :  { %1488 = vmatmul.mubr.bf16.gmra.mrb[24].mxu0 %v198_v55 }
  0x53   :  { %1491 = vmatprep.mubr.bf16.mxu0 %v199_v61 }
  0x5a   :  { %1492 = vmatmul.mubr.bf16.gmra.mrb[28].mxu0 %v200_v1 }
  0xf5   :  { %v1465_v7 = vpop.f32.mrb[0].mxu0 }
  0xf6   :  { %v298_v10 = vadd.f32 %v1465_v7, %v1805_v4  ;;  %v289_v12 = vpop.f32.mrb[1].mxu0 }
  0xf7   :  { %v290_v16 = vadd.f32 %v1805_v4, %v289_v12  ;;  %v1466_v8 = vpop.f32.mrb[2].mxu0 }
  0xf8   :  { %v422_v17 = vmul.f32 %v1808_v6, %v298_v10  ;;  %v301_v18 = vadd.f32 %v1466_v8, %v1805_v4  ;;  %v292_v19 = vpop.f32.mrb[3].mxu0 }
  0xf9   :  { %v420_v20 = vmul.f32 %v1808_v6, %v290_v16  ;;  %v293_v21 = vadd.f32 %v1805_v4, %v292_v19 }
  0xfa   :  { %v458_v22 = vadd.f32 %v1813_v11, %v422_v17  ;;  %v423_v23 = vmul.f32 %v1808_v6, %v301_v18 }
  0xfb   :  { %v421_v24 = vmul.f32 %v1808_v6, %v293_v21  ;;  %v456_v27 = vadd.f32 %v1813_v11, %v420_v20 }
  0xfc   :  { %v459_v30 = vadd.f32 %v1813_v11, %v423_v23  ;;  %v490_v33 = vmax.f32 %v458_v22, 0.0 }
  0xfd   :  { %v1469_v31 = vpop.f32.mrb[4].mxu0  ;;  %v457_v32 = vadd.f32 %v1813_v11, %v421_v24  ;;  %v488_v36 = vmax.f32 %v456_v27, 0.0 }
  0xfe   :  { %v491_v34 = vmax.f32 %v459_v30, 0.0  ;;  %v314_v35 = vadd.f32 %v1469_v31, %v1805_v4  ;;  %v305_v15 = vpop.f32.mrb[5].mxu0 }
  0xff   :  { %v306_v13 = vadd.f32 %v1805_v4, %v305_v15  ;;  %v1470_v14 = vpop.f32.mrb[6].mxu0  ;;  %v489_v37 = vmax.f32 %v457_v32, 0.0 }
 0x100   :  { %v426_v38 = vmul.f32 %v1808_v6, %v314_v35  ;;  %v317_v39 = vadd.f32 %v1470_v14, %v1805_v4  ;;  %v308_v40 = vpop.f32.mrb[7].mxu0  ;;  %v521_v43 = vpack.c.bf16 %v491_v34, %v490_v33 }
 0x101   :  { %v424_v25 = vmul.f32 %v1808_v6, %v306_v13  ;;  %v309_v26 = vadd.f32 %v1805_v4, %v308_v40  ;;  %v520_v28 = vpack.c.bf16 %v489_v37, %v488_v36 }
 0x102   :  { %v462_v46 = vadd.f32 %v1813_v11, %v426_v38  ;;  %v427_v29 = vmul.f32 %v1808_v6, %v317_v39 }
 0x103   :  { %v460_v47 = vadd.f32 %v1813_v11, %v424_v25  ;;  %v425_v48 = vmul.f32 %v1808_v6, %v309_v26  ;;  %1511 = vmatprep.mubr.bf16.mxu1 %v520_v28 }
 0x104   :  { %v463_v49 = vadd.f32 %v1813_v11, %v427_v29  ;;  %1512 = vmatmul.mubr.bf16.vlgmr.msra.gmra.mrb[0].mxu1 %v521_v43  ;;  %v494_v52 = vmax.f32 %v462_v46, 0.0 }
 0x105   :  { %v461_v50 = vadd.f32 %v1813_v11, %v425_v48  ;;  %v1473_v51 = vpop.f32.mrb[8].mxu0  ;;  %v492_v54 = vmax.f32 %v460_v47, 0.0 }
 0x106   :  { %v495_v53 = vmax.f32 %v463_v49, 0.0  ;;  %v330_v41 = vadd.f32 %v1473_v51, %v1805_v4  ;;  %v321_v42 = vpop.f32.mrb[9].mxu0 }
 0x107   :  { %v493_v44 = vmax.f32 %v461_v50, 0.0  ;;  %v322_v55 = vadd.f32 %v1805_v4, %v321_v42  ;;  %v1474_v45 = vpop.f32.mrb[10].mxu0 }
 0x108   :  { %v430_v56 = vmul.f32 %v1808_v6, %v330_v41  ;;  %v333_v61 = vadd.f32 %v1474_v45, %v1805_v4  ;;  %v324_v62 = vpop.f32.mrb[11].mxu0  ;;  %v523_v63 = vpack.c.bf16 %v495_v53, %v494_v52 }
 0x109   :  { %v428_v1 = vmul.f32 %v1808_v6, %v322_v55  ;;  %v325_v57 = vadd.f32 %v1805_v4, %v324_v62  ;;  %v522_v58 = vpack.c.bf16 %v493_v44, %v492_v54 }
 0x10a   :  { %v466_v59 = vadd.f32 %v1813_v11, %v430_v56  ;;  %v431_v60 = vmul.f32 %v1808_v6, %v333_v61 }
 0x10b   :  { %v464_v2 = vadd.f32 %v1813_v11, %v428_v1  ;;  %v429_v7 = vmul.f32 %v1808_v6, %v325_v57  ;;  %1515 = vmatprep.mubr.bf16.mxu1 %v522_v58 }
 0x10c   :  { %v467_v10 = vadd.f32 %v1813_v11, %v431_v60  ;;  %1516 = vmatmul.mubr.bf16.gmra.mrb[4].mxu1 %v523_v63  ;;  %v498_v8 = vmax.f32 %v466_v59, 0.0 }
 0x10d   :  { %v465_v12 = vadd.f32 %v1813_v11, %v429_v7  ;;  %v1477_v16 = vpop.f32.mrb[12].mxu0  ;;  %v496_v20 = vmax.f32 %v464_v2, 0.0 }
 0x10e   :  { %v499_v17 = vmax.f32 %v467_v10, 0.0  ;;  %v346_v18 = vadd.f32 %v1477_v16, %v1805_v4  ;;  %v337_v19 = vpop.f32.mrb[13].mxu0 }
 0x10f   :  { %v497_v21 = vmax.f32 %v465_v12, 0.0  ;;  %v338_v22 = vadd.f32 %v1805_v4, %v337_v19  ;;  %v1478_v23 = vpop.f32.mrb[14].mxu0 }
 0x110   :  { %v434_v24 = vmul.f32 %v1808_v6, %v346_v18  ;;  %v349_v27 = vadd.f32 %v1478_v23, %v1805_v4  ;;  %v340_v30 = vpop.f32.mrb[15].mxu0  ;;  %v525_v31 = vpack.c.bf16 %v499_v17, %v498_v8 }
 0x111   :  { %v432_v32 = vmul.f32 %v1808_v6, %v338_v22  ;;  %v341_v33 = vadd.f32 %v1805_v4, %v340_v30  ;;  %v524_v34 = vpack.c.bf16 %v497_v21, %v496_v20 }
 0x112   :  { %v470_v35 = vadd.f32 %v1813_v11, %v434_v24  ;;  %v435_v15 = vmul.f32 %v1808_v6, %v349_v27 }
 0x113   :  { %v468_v13 = vadd.f32 %v1813_v11, %v432_v32  ;;  %v433_v14 = vmul.f32 %v1808_v6, %v341_v33  ;;  %1519 = vmatprep.mubr.bf16.mxu1 %v524_v34 }
 0x114   :  { %v471_v36 = vadd.f32 %v1813_v11, %v435_v15  ;;  %1520 = vmatmul.mubr.bf16.gmra.mrb[8].mxu1 %v525_v31  ;;  %v502_v39 = vmax.f32 %v470_v35, 0.0 }
 0x115   :  { %v469_v37 = vadd.f32 %v1813_v11, %v433_v14  ;;  %v1481_v38 = vpop.f32.mrb[16].mxu0  ;;  %v500_v26 = vmax.f32 %v468_v13, 0.0 }
 0x116   :  { %v503_v40 = vmax.f32 %v471_v36, 0.0  ;;  %v362_v43 = vadd.f32 %v1481_v38, %v1805_v4  ;;  %v353_v25 = vpop.f32.mrb[17].mxu0 }
 0x117   :  { %v501_v28 = vmax.f32 %v469_v37, 0.0  ;;  %v354_v46 = vadd.f32 %v1805_v4, %v353_v25  ;;  %v1482_v29 = vpop.f32.mrb[18].mxu0 }
 0x118   :  { %v438_v47 = vmul.f32 %v1808_v6, %v362_v43  ;;  %v365_v48 = vadd.f32 %v1482_v29, %v1805_v4  ;;  %v356_v49 = vpop.f32.mrb[19].mxu0  ;;  %v527_v50 = vpack.c.bf16 %v503_v40, %v502_v39 }
 0x119   :  { %v436_v51 = vmul.f32 %v1808_v6, %v354_v46  ;;  %v357_v52 = vadd.f32 %v1805_v4, %v356_v49  ;;  %v526_v53 = vpack.c.bf16 %v501_v28, %v500_v26 }
 0x11a   :  { %v474_v41 = vadd.f32 %v1813_v11, %v438_v47  ;;  %v439_v42 = vmul.f32 %v1808_v6, %v365_v48 }
 0x11b   :  { %v472_v54 = vadd.f32 %v1813_v11, %v436_v51  ;;  %v437_v44 = vmul.f32 %v1808_v6, %v357_v52  ;;  %1523 = vmatprep.mubr.bf16.mxu1 %v526_v53 }
 0x11c   :  { %v475_v55 = vadd.f32 %v1813_v11, %v439_v42  ;;  %1524 = vmatmul.mubr.bf16.gmra.mrb[12].mxu1 %v527_v50  ;;  %v506_v61 = vmax.f32 %v474_v41, 0.0 }
 0x11d   :  { %v473_v45 = vadd.f32 %v1813_v11, %v437_v44  ;;  %v1485_v56 = vpop.f32.mrb[20].mxu0  ;;  %v504_v57 = vmax.f32 %v472_v54, 0.0 }
 0x11e   :  { %v507_v62 = vmax.f32 %v475_v55, 0.0  ;;  %v378_v63 = vadd.f32 %v1485_v56, %v1805_v4  ;;  %v369_v1 = vpop.f32.mrb[21].mxu0 }
 0x11f   :  { %v505_v58 = vmax.f32 %v473_v45, 0.0  ;;  %v370_v59 = vadd.f32 %v1805_v4, %v369_v1  ;;  %v1486_v60 = vpop.f32.mrb[22].mxu0 }
 0x120   :  { %v442_v2 = vmul.f32 %v1808_v6, %v378_v63  ;;  %v381_v7 = vadd.f32 %v1486_v60, %v1805_v4  ;;  %v372_v10 = vpop.f32.mrb[23].mxu0  ;;  %v529_v12 = vpack.c.bf16 %v507_v62, %v506_v61 }
 0x121   :  { %v440_v16 = vmul.f32 %v1808_v6, %v370_v59  ;;  %v373_v8 = vadd.f32 %v1805_v4, %v372_v10  ;;  %v528_v17 = vpack.c.bf16 %v505_v58, %v504_v57 }
 0x122   :  { %v478_v18 = vadd.f32 %v1813_v11, %v442_v2  ;;  %v443_v19 = vmul.f32 %v1808_v6, %v381_v7 }
 0x123   :  { %v476_v20 = vadd.f32 %v1813_v11, %v440_v16  ;;  %v441_v21 = vmul.f32 %v1808_v6, %v373_v8  ;;  %1527 = vmatprep.mubr.bf16.mxu1 %v528_v17  ;;  %v751_v8 = vld [vmem:[%s2280_s7] sm:$0x3] }
 0x124   :  { %v479_v22 = vadd.f32 %v1813_v11, %v443_v19  ;;  %1528 = vmatmul.mubr.bf16.gmra.mrb[16].mxu1 %v529_v12  ;;  %v510_v27 = vmax.f32 %v478_v18, 0.0  ;;  %v1919_v17 = vrot.slane %v751_v8, %v1636_v9 }
 0x125   :  { %v477_v23 = vadd.f32 %v1813_v11, %v441_v21  ;;  %v1489_v24 = vpop.f32.mrb[24].mxu0  ;;  %v508_v33 = vmax.f32 %v476_v20, 0.0  ;;  %v1924_v20 = vrot.slane %v751_v8, %v454_v3 }
 0x126   :  { %v511_v30 = vmax.f32 %v479_v22, 0.0  ;;  %v394_v31 = vadd.f32 %v1489_v24, %v1805_v4  ;;  %v385_v32 = vpop.f32.mrb[25].mxu0 }
 0x127   :  { %v509_v34 = vmax.f32 %v477_v23, 0.0  ;;  %v386_v35 = vadd.f32 %v1805_v4, %v385_v32  ;;  %v1490_v15 = vpop.f32.mrb[26].mxu0 }
 0x128   :  { %v446_v13 = vmul.f32 %v1808_v6, %v394_v31  ;;  %v397_v14 = vadd.f32 %v1490_v15, %v1805_v4  ;;  %v388_v36 = vpop.f32.mrb[27].mxu0  ;;  %v531_v37 = vpack.c.bf16 %v511_v30, %v510_v27  ;;  %v1934_v31 = vld [vmem:[%s2282_s8 + $0x10] sm:$0xff] }
 0x129   :  { %v444_v38 = vmul.f32 %v1808_v6, %v386_v35  ;;  %v389_v39 = vadd.f32 %v1805_v4, %v388_v36  ;;  %v530_v40 = vpack.c.bf16 %v509_v34, %v508_v33  ;;  %v1941_v33 = vld [vmem:[%s2282_s8] sm:$0xff] }
 0x12a   :  { %v482_v43 = vadd.f32 %v1813_v11, %v446_v13  ;;  %v447_v25 = vmul.f32 %v1808_v6, %v397_v14 }
 0x12b   :  { %v480_v26 = vadd.f32 %v1813_v11, %v444_v38  ;;  %v445_v28 = vmul.f32 %v1808_v6, %v389_v39  ;;  %1531 = vmatprep.mubr.bf16.mxu1 %v530_v40 }
 0x12c   :  { %v483_v46 = vadd.f32 %v1813_v11, %v447_v25  ;;  %1532 = vmatmul.mubr.bf16.gmra.mrb[20].mxu1 %v531_v37  ;;  %v514_v48 = vmax.f32 %v482_v43, 0.0  ;;  %v1951_v37 = vld [vmem:[%s2282_s8 + $0x18] sm:$0xff]  ;;  %v1958_v43 = vld [vmem:[%s2282_s8 + $0x8] sm:$0xff] }
 0x12d   :  { %v481_v29 = vadd.f32 %v1813_v11, %v445_v28  ;;  %v1493_v47 = vpop.f32.mrb[28].mxu0  ;;  %v512_v52 = vmax.f32 %v480_v26, 0.0 }
 0x12e   :  { %v515_v49 = vmax.f32 %v483_v46, 0.0  ;;  %v410_v50 = vadd.f32 %v1493_v47, %v1805_v4  ;;  %v401_v51 = vpop.f32.mrb[29].mxu0 }
 0x12f   :  { %v513_v53 = vmax.f32 %v481_v29, 0.0  ;;  %v402_v41 = vadd.f32 %v1805_v4, %v401_v51  ;;  %v1494_v42 = vpop.f32.mrb[30].mxu0  ;;  %v1970_v51 = vld [vmem:[%s2282_s8 + $0x30] sm:$0xff] }
 0x130   :  { %v450_v54 = vmul.f32 %v1808_v6, %v410_v50  ;;  %v413_v44 = vadd.f32 %v1494_v42, %v1805_v4  ;;  %v404_v55 = vpop.f32.mrb[31].mxu0  ;;  %v533_v45 = vpack.c.bf16 %v515_v49, %v514_v48  ;;  %v1978_v42 = vld [vmem:[%s2282_s8 + $0x38] sm:$0xff] }
 0x131   :  { %v448_v56 = vmul.f32 %v1808_v6, %v402_v41  ;;  %v405_v61 = vadd.f32 %v1805_v4, %v404_v55  ;;  %v532_v62 = vpack.c.bf16 %v513_v53, %v512_v52 }
 0x132   :  { %v486_v63 = vadd.f32 %v1813_v11, %v450_v54  ;;  %v451_v1 = vmul.f32 %v1808_v6, %v413_v44 }
 0x133   :  { %v484_v57 = vadd.f32 %v1813_v11, %v448_v56  ;;  %v449_v58 = vmul.f32 %v1808_v6, %v405_v61  ;;  %1535 = vmatprep.mubr.bf16.mxu1 %v532_v62  ;;  %v1916_v6 = vld [vmem:[%s2281_s6] ss:$0 sm:$0xff] }
 0x134   :  { %v518_v59 = vmax.f32 %v486_v63, 0.0  ;;  %v487_v60 = vadd.f32 %v1813_v11, %v451_v1  ;;  %1536 = vmatmul.mubr.bf16.gmra.mrb[24].mxu1 %v533_v45  ;;  %v1988_v63 = vld [vmem:[%s2282_s8 + $0x20] sm:$0xff] }
 0x135   :  { %v516_v2 = vmax.f32 %v484_v57, 0.0  ;;  %v485_v7 = vadd.f32 %v1813_v11, %v449_v58 }
 0x136   :  { %v519_v10 = vmax.f32 %v487_v60, 0.0 }
 0x137   :  { %v517_v12 = vmax.f32 %v485_v7, 0.0 }
 0x138   :  { %v535_v4 = vpack.c.bf16 %v519_v10, %v518_v59  ;;  %v1995_v59 = vld [vmem:[%s2282_s8 + $0x28] sm:$0xff] }
 0x139   :  { %v534_v16 = vpack.c.bf16 %v517_v12, %v516_v2 }
 0x13b   :  { %1539 = vmatprep.mubr.bf16.mxu1 %v534_v16  ;;  %v2005_v16 = vld [vmem:[%s2282_s8 + $0x50] sm:$0xff] }
 0x13c   :  { %1540 = vmatmul.mubr.bf16.gmra.mrb[28].mxu1 %v535_v4 }
 0x1d7   :  { %v1513_v18 = vpop.f32.mrb[0].mxu1 }
 0x1d8   :  { %v633_v11 = vadd.f32 %v1513_v18, %v1916_v6  ;;  %v624_v19 = vpop.f32.mrb[1].mxu1 }
 0x1d9   :  { %v625_v21 = vadd.f32 %v1916_v6, %v624_v19  ;;  %v1514_v22 = vpop.f32.mrb[2].mxu1 }
 0x1da   :  { %v758_v23 = vmul.f32 %v1919_v17, %v633_v11  ;;  %v636_v24 = vadd.f32 %v1514_v22, %v1916_v6  ;;  %v627_v27 = vpop.f32.mrb[3].mxu1 }
 0x1db   :  { %v756_v30 = vmul.f32 %v1919_v17, %v625_v21  ;;  %v628_v9 = vadd.f32 %v1916_v6, %v627_v27  ;;  %v2014_v21 = vld [vmem:[%s2282_s8 + $0x58] sm:$0xff] }
 0x1dc   :  { %v759_v3 = vmul.f32 %v1919_v17, %v636_v24  ;;  %v794_v32 = vadd.f32 %v1924_v20, %v758_v23 }
 0x1dd   :  { %v757_v34 = vmul.f32 %v1919_v17, %v628_v9  ;;  %v792_v35 = vadd.f32 %v1924_v20, %v756_v30  ;;  %v1564_v30 = vmov 0  }
 0x1de   :  { %v842_v15 = vmul.f32 %v1934_v31, %v794_v32  ;;  %v795_v13 = vadd.f32 %v1924_v20, %v759_v3  ;;  %1545 = vset.pattern.permute.xlu1 %v1564_v30  ;;  %1546 = vset.pattern.permute.xlu0 %v1564_v30 }
 0x1df   :  { %v1517_v14 = vpop.f32.mrb[4].mxu1  ;;  %v840_v36 = vmul.f32 %v1941_v33, %v792_v35  ;;  %v793_v38 = vadd.f32 %v1924_v20, %v757_v34  ;;  %v2024_v34 = vld [vmem:[%s2282_s8 + $0x40] sm:$0xff] }
 0x1e0   :  { %v649_v39 = vadd.f32 %v1517_v14, %v1916_v6  ;;  %876 = vadd.xlane.f32.xlu1 %v842_v15  ;;  %v640_v40 = vpop.f32.mrb[5].mxu1  ;;  %v843_v47 = vmul.f32 %v1951_v37, %v795_v13  ;;  %v2031_v14 = vld [vmem:[%s2282_s8 + $0x48] sm:$0xff] }
 0x1e1   :  { %v641_v25 = vadd.f32 %v1916_v6, %v640_v40  ;;  %v1518_v26 = vpop.f32.mrb[6].mxu1  ;;  %872 = vadd.xlane.f32.xlu0 %v840_v36  ;;  %v841_v50 = vmul.f32 %v1958_v43, %v793_v38 }
 0x1e2   :  { %v762_v28 = vmul.f32 %v1919_v17, %v649_v39  ;;  %v652_v46 = vadd.f32 %v1518_v26, %v1916_v6  ;;  %v643_v29 = vpop.f32.mrb[7].mxu1 }
 0x1e3   :  { %v760_v48 = vmul.f32 %v1919_v17, %v641_v25  ;;  %v644_v49 = vadd.f32 %v1916_v6, %v643_v29 }
 0x1e4   :  { %v763_v52 = vmul.f32 %v1919_v17, %v652_v46  ;;  %878 = vadd.xlane.f32.xlu1 %v843_v47  ;;  %v798_v53 = vadd.f32 %v1924_v20, %v762_v28  ;;  %v2041_v28 = vld [vmem:[%s2282_s8 + $0x70] sm:$0xff] }
 0x1e5   :  { %v761_v41 = vmul.f32 %v1919_v17, %v644_v49  ;;  %874 = vadd.xlane.f32.xlu0 %v841_v50  ;;  %v796_v45 = vadd.f32 %v1924_v20, %v760_v48  ;;  %v2050_v49 = vld [vmem:[%s2282_s8 + $0x78] sm:$0xff] }
 0x1e6   :  { %v846_v54 = vmul.f32 %v1970_v51, %v798_v53  ;;  %v799_v44 = vadd.f32 %v1924_v20, %v763_v52 }
 0x1e7   :  { %v1521_v55 = vpop.f32.mrb[8].mxu1  ;;  %v797_v1 = vadd.f32 %v1924_v20, %v761_v41  ;;  %v844_v4 = vmul.f32 %v1988_v63, %v796_v45  ;;  %v2060_v45 = vld [vmem:[%s2282_s8 + $0x60] sm:$0xff] }
 0x1e8   :  { %v665_v56 = vadd.f32 %v1521_v55, %v1916_v6  ;;  %v656_v61 = vpop.f32.mrb[9].mxu1  ;;  %v847_v62 = vmul.f32 %v1978_v42, %v799_v44 }
 0x1e9   :  { %v657_v57 = vadd.f32 %v1916_v6, %v656_v61  ;;  %v1522_v58 = vpop.f32.mrb[10].mxu1  ;;  %884 = vadd.xlane.f32.xlu0 %v846_v54  ;;  %v845_v18 = vmul.f32 %v1995_v59, %v797_v1  ;;  %v2067_v1 = vld [vmem:[%s2282_s8 + $0x68] sm:$0xff] }
 0x1ea   :  { %v766_v60 = vmul.f32 %v1919_v17, %v665_v56  ;;  %v668_v2 = vadd.f32 %v1522_v58, %v1916_v6  ;;  %886 = vadd.xlane.f32.xlu1 %v847_v62  ;;  %v659_v7 = vpop.f32.mrb[11].mxu1 }
 0x1eb   :  { %v764_v10 = vmul.f32 %v1919_v17, %v657_v57  ;;  %v660_v12 = vadd.f32 %v1916_v6, %v659_v7 }
 0x1ec   :  { %v767_v8 = vmul.f32 %v1919_v17, %v668_v2  ;;  %v802_v11 = vadd.f32 %v1924_v20, %v766_v60 }
 0x1ed   :  { %v765_v19 = vmul.f32 %v1919_v17, %v660_v12  ;;  %880 = vadd.xlane.f32.xlu0 %v844_v4  ;;  %v800_v27 = vadd.f32 %v1924_v20, %v764_v10 }
 0x1ee   :  { %882 = vadd.xlane.f32.xlu1 %v845_v18  ;;  %v850_v22 = vmul.f32 %v2005_v16, %v802_v11  ;;  %v803_v23 = vadd.f32 %v1924_v20, %v767_v8 }
 0x1ef   :  { %v1525_v24 = vpop.f32.mrb[12].mxu1  ;;  %v801_v35 = vadd.f32 %v1924_v20, %v765_v19  ;;  %v848_v26 = vmul.f32 %v2024_v34, %v800_v27 }
 0x1f0   :  { %v681_v9 = vadd.f32 %v1525_v24, %v1916_v6  ;;  %v672_v3 = vpop.f32.mrb[13].mxu1  ;;  %v851_v32 = vmul.f32 %v2014_v21, %v803_v23 }
 0x1f1   :  { %v673_v15 = vadd.f32 %v1916_v6, %v672_v3  ;;  %v1526_v13 = vpop.f32.mrb[14].mxu1  ;;  %892 = vadd.xlane.f32.xlu0 %v850_v22  ;;  %v849_v29 = vmul.f32 %v2031_v14, %v801_v35 }
 0x1f2   :  { %v770_v36 = vmul.f32 %v1919_v17, %v681_v9  ;;  %v684_v38 = vadd.f32 %v1526_v13, %v1916_v6  ;;  %v675_v39 = vpop.f32.mrb[15].mxu1  ;;  %894 = vadd.xlane.f32.xlu1 %v851_v32 }
 0x1f3   :  { %v768_v40 = vmul.f32 %v1919_v17, %v673_v15  ;;  %v676_v25 = vadd.f32 %v1916_v6, %v675_v39 }
 0x1f4   :  { %v771_v46 = vmul.f32 %v1919_v17, %v684_v38  ;;  %v806_v47 = vadd.f32 %v1924_v20, %v770_v36 }
 0x1f5   :  { %v769_v48 = vmul.f32 %v1919_v17, %v676_v25  ;;  %888 = vadd.xlane.f32.xlu0 %v848_v26  ;;  %v804_v41 = vadd.f32 %v1924_v20, %v768_v40 }
 0x1f6   :  { %890 = vadd.xlane.f32.xlu1 %v849_v29  ;;  %v854_v50 = vmul.f32 %v2041_v28, %v806_v47  ;;  %v807_v52 = vadd.f32 %v1924_v20, %v771_v46 }
 0x1f7   :  { %v1529_v53 = vpop.f32.mrb[16].mxu1  ;;  %v805_v56 = vadd.f32 %v1924_v20, %v769_v48  ;;  %v852_v10 = vmul.f32 %v2060_v45, %v804_v41 }
 0x1f8   :  { %v697_v54 = vadd.f32 %v1529_v53, %v1916_v6  ;;  %v688_v44 = vpop.f32.mrb[17].mxu1  ;;  %v855_v55 = vmul.f32 %v2050_v49, %v807_v52 }
 0x1f9   :  { %v689_v61 = vadd.f32 %v1916_v6, %v688_v44  ;;  %v1530_v62 = vpop.f32.mrb[18].mxu1  ;;  %900 = vadd.xlane.f32.xlu0 %v854_v50  ;;  %v853_v4 = vmul.f32 %v2067_v1, %v805_v56 }
 0x1fa   :  { %v774_v57 = vmul.f32 %v1919_v17, %v697_v54  ;;  %v700_v58 = vadd.f32 %v1530_v62, %v1916_v6  ;;  %v691_v60 = vpop.f32.mrb[19].mxu1  ;;  %902 = vadd.xlane.f32.xlu1 %v855_v55 }
 0x1fb   :  { %v772_v2 = vmul.f32 %v1919_v17, %v689_v61  ;;  %v692_v7 = vadd.f32 %v1916_v6, %v691_v60 }
 0x1fc   :  { %v775_v12 = vmul.f32 %v1919_v17, %v700_v58  ;;  %v810_v8 = vadd.f32 %v1924_v20, %v774_v57 }
 0x1fd   :  { %v773_v18 = vmul.f32 %v1919_v17, %v692_v7  ;;  %896 = vadd.xlane.f32.xlu0 %v852_v10  ;;  %v808_v23 = vadd.f32 %v1924_v20, %v772_v2 }
 0x1fe   :  { %898 = vadd.xlane.f32.xlu1 %v853_v4  ;;  %v858_v11 = vmul.f32 %v1934_v31, %v810_v8  ;;  %v811_v19 = vadd.f32 %v1924_v20, %v775_v12 }
 0x1ff   :  { %v1533_v22 = vpop.f32.mrb[20].mxu1  ;;  %v809_v9 = vadd.f32 %v1924_v20, %v773_v18  ;;  %v856_v38 = vmul.f32 %v1941_v33, %v808_v23 }
 0x200   :  { %v713_v24 = vadd.f32 %v1533_v22, %v1916_v6  ;;  %v704_v27 = vpop.f32.mrb[21].mxu1  ;;  %v859_v30 = vmul.f32 %v1951_v37, %v811_v19 }
 0x201   :  { %v705_v3 = vadd.f32 %v1916_v6, %v704_v27  ;;  %v1534_v32 = vpop.f32.mrb[22].mxu1  ;;  %908 = vadd.xlane.f32.xlu0 %v858_v11  ;;  %v857_v39 = vmul.f32 %v1958_v43, %v809_v9 }
 0x202   :  { %v778_v35 = vmul.f32 %v1919_v17, %v713_v24  ;;  %v716_v31 = vadd.f32 %v1534_v32, %v1916_v6  ;;  %v707_v15 = vpop.f32.mrb[23].mxu1  ;;  %910 = vadd.xlane.f32.xlu1 %v859_v30 }
 0x203   :  { %v776_v13 = vmul.f32 %v1919_v17, %v705_v3  ;;  %v708_v36 = vadd.f32 %v1916_v6, %v707_v15  ;;  %v2137_v15 = vpop.permute.xlu0 %943 }
 0x204   :  { %v779_v37 = vmul.f32 %v1919_v17, %v716_v31  ;;  %v814_v40 = vadd.f32 %v1924_v20, %v778_v35 }
 0x205   :  { %v777_v25 = vmul.f32 %v1919_v17, %v708_v36  ;;  %904 = vadd.xlane.f32.xlu0 %v856_v38  ;;  %v812_v47 = vadd.f32 %v1924_v20, %v776_v13 }
 0x206   :  { %906 = vadd.xlane.f32.xlu1 %v857_v39  ;;  %v862_v26 = vmul.f32 %v1970_v51, %v814_v40  ;;  %v815_v46 = vadd.f32 %v1924_v20, %v779_v37 }
 0x207   :  { %v1537_v29 = vpop.f32.mrb[24].mxu1  ;;  %v813_v43 = vadd.f32 %v1924_v20, %v777_v25  ;;  %v860_v56 = vmul.f32 %v1988_v63, %v812_v47 }
 0x208   :  { %v729_v48 = vadd.f32 %v1537_v29, %v1916_v6  ;;  %v720_v33 = vpop.f32.mrb[25].mxu1  ;;  %v863_v50 = vmul.f32 %v1978_v42, %v815_v46 }
 0x209   :  { %v721_v52 = vadd.f32 %v1916_v6, %v720_v33  ;;  %v1538_v53 = vpop.f32.mrb[26].mxu1  ;;  %916 = vadd.xlane.f32.xlu0 %v862_v26  ;;  %v861_v61 = vmul.f32 %v1995_v59, %v813_v43 }
 0x20a   :  { %v782_v41 = vmul.f32 %v1919_v17, %v729_v48  ;;  %v732_v51 = vadd.f32 %v1538_v53, %v1916_v6  ;;  %v723_v54 = vpop.f32.mrb[27].mxu1  ;;  %918 = vadd.xlane.f32.xlu1 %v863_v50 }
 0x20b   :  { %v780_v44 = vmul.f32 %v1919_v17, %v721_v52  ;;  %v724_v55 = vadd.f32 %v1916_v6, %v723_v54 }
 0x20c   :  { %v783_v42 = vmul.f32 %v1919_v17, %v732_v51  ;;  %v818_v62 = vadd.f32 %v1924_v20, %v782_v41 }
 0x20d   :  { %v781_v57 = vmul.f32 %v1919_v17, %v724_v55  ;;  %912 = vadd.xlane.f32.xlu0 %v860_v56  ;;  %v816_v7 = vadd.f32 %v1924_v20, %v780_v44 }
 0x20e   :  { %914 = vadd.xlane.f32.xlu1 %v861_v61  ;;  %v866_v58 = vmul.f32 %v2005_v16, %v818_v62  ;;  %v819_v60 = vadd.f32 %v1924_v20, %v783_v42 }
 0x20f   :  { %v1541_v2 = vpop.f32.mrb[28].mxu1  ;;  %v817_v59 = vadd.f32 %v1924_v20, %v781_v57  ;;  %v864_v23 = vmul.f32 %v2024_v34, %v816_v7 }
 0x210   :  { %v745_v10 = vadd.f32 %v1541_v2, %v1916_v6  ;;  %v736_v63 = vpop.f32.mrb[29].mxu1  ;;  %v867_v12 = vmul.f32 %v2014_v21, %v819_v60 }
 0x211   :  { %v737_v4 = vadd.f32 %v1916_v6, %v736_v63  ;;  %v1542_v8 = vpop.f32.mrb[30].mxu1  ;;  %924 = vadd.xlane.f32.xlu0 %v866_v58  ;;  %v865_v24 = vmul.f32 %v2031_v14, %v817_v59 }
 0x212   :  { %v786_v18 = vmul.f32 %v1919_v17, %v745_v10  ;;  %v748_v16 = vadd.f32 %v1542_v8, %v1916_v6  ;;  %v739_v11 = vpop.f32.mrb[31].mxu1  ;;  %926 = vadd.xlane.f32.xlu1 %v867_v12 }
 0x213   :  { %v784_v19 = vmul.f32 %v1919_v17, %v737_v4  ;;  %v740_v22 = vadd.f32 %v1916_v6, %v739_v11 }
 0x214   :  { %v787_v21 = vmul.f32 %v1919_v17, %v748_v16  ;;  %v822_v27 = vadd.f32 %v1924_v20, %v786_v18 }
 0x215   :  { %v785_v30 = vmul.f32 %v1919_v17, %v740_v22  ;;  %920 = vadd.xlane.f32.xlu0 %v864_v23  ;;  %v820_v32 = vadd.f32 %v1924_v20, %v784_v19  ;;  %v2133_v17 = vpop.permute.xlu1 %947 }
 0x216   :  { %922 = vadd.xlane.f32.xlu1 %v865_v24  ;;  %v870_v9 = vmul.f32 %v2041_v28, %v822_v27  ;;  %v823_v3 = vadd.f32 %v1924_v20, %v787_v21 }
 0x217   :  { %v821_v34 = vadd.f32 %v1924_v20, %v785_v30  ;;  %v868_v14 = vmul.f32 %v2060_v45, %v820_v32 }
 0x218   :  { %v871_v6 = vmul.f32 %v2050_v49, %v823_v3  ;;  %v2141_v49 = vpop.permute.xlu0 %959 }
 0x219   :  { %932 = vadd.xlane.f32.xlu0 %v870_v9  ;;  %v869_v35 = vmul.f32 %v2067_v1, %v821_v34  ;;  %v2135_v31 = vpop.permute.xlu1 %951 }
 0x21a   :  { %934 = vadd.xlane.f32.xlu1 %v871_v6 }
 0x21c   :  { %v2145_v36 = vpop.permute.xlu0 %967 }
 0x21d   :  { %928 = vadd.xlane.f32.xlu0 %v868_v14  ;;  %v956_v28 = vpop.permute.xlu1 %955 }
 0x21e   :  { %930 = vadd.xlane.f32.xlu1 %v869_v35 }
 0x220   :  { %v2149_v1 = vpop.permute.xlu0 %975 }
 0x221   :  { %v2139_v13 = vpop.permute.xlu1 %963 }
 0x224   :  { %v2153_v37 = vpop.permute.xlu0 %983 }
 0x225   :  { %v2143_v20 = vpop.permute.xlu1 %971 }
 0x228   :  { %v2157_v40 = vpop.permute.xlu0 %991 }
 0x229   :  { %v2147_v45 = vpop.permute.xlu1 %979 }
 0x22c   :  { %v2161_v26 = vpop.permute.xlu0 %999 }
 0x22d   :  { %v2151_v38 = vpop.permute.xlu1 %987 }
 0x231   :  { %v2155_v39 = vpop.permute.xlu1 %995 }
 0x235   :  { %v2159_v25 = vpop.permute.xlu1 %1003 }
 0x26d   :  { %v877_v46 = vpop.xlane.xlu1 %876 }
 0x26e   :  { %v1023_v29 = vadd.f32 %v2135_v31, %v877_v46  ;;  %v873_v47 = vpop.xlane.xlu0 %872 }
 0x26f   :  { %v1021_v48 = vadd.f32 %v2137_v15, %v873_v47 }
 0x270   :  { %1092 = vperm.xlu1 %1545, %v1023_v29  }
 0x271   :  { %v879_v33 = vpop.xlane.xlu1 %878  ;;  %1086 = vperm.xlu0 %1546, %v1021_v48  }
 0x272   :  { %v1024_v50 = vadd.f32 %v956_v28, %v879_v33  ;;  %v875_v43 = vpop.xlane.xlu0 %874 }
 0x273   :  { %v1022_v52 = vadd.f32 %v2133_v17, %v875_v43 }
 0x275   :  { %1095 = vperm.xlu0 %1546, %v1024_v50   ;;  %1089 = vperm.xlu1 %1545, %v1022_v52  }
 0x276   :  { %v885_v53 = vpop.xlane.xlu0 %884 }
 0x277   :  { %v1027_v41 = vadd.f32 %v2145_v36, %v885_v53  ;;  %v887_v51 = vpop.xlane.xlu1 %886 }
 0x278   :  { %v1028_v54 = vadd.f32 %v2143_v20, %v887_v51 }
 0x279   :  { %1104 = vperm.xlu1 %1545, %v1027_v41  }
 0x27a   :  { %1107 = vperm.xlu0 %1546, %v1028_v54   ;;  %v881_v44 = vpop.xlane.xlu0 %880 }
 0x27b   :  { %v1025_v55 = vadd.f32 %v2141_v49, %v881_v44  ;;  %v883_v56 = vpop.xlane.xlu1 %882 }
 0x27c   :  { %v1026_v42 = vadd.f32 %v2139_v13, %v883_v56 }
 0x27d   :  { %1098 = vperm.xlu1 %1545, %v1025_v55  }
 0x27e   :  { %1101 = vperm.xlu0 %1546, %v1026_v42   ;;  %v893_v61 = vpop.xlane.xlu0 %892 }
 0x27f   :  { %v1031_v62 = vadd.f32 %v2153_v37, %v893_v61  ;;  %v895_v57 = vpop.xlane.xlu1 %894 }
 0x280   :  { %v1032_v58 = vadd.f32 %v2151_v38, %v895_v57 }
 0x281   :  { %1116 = vperm.xlu1 %1545, %v1031_v62  }
 0x282   :  { %1119 = vperm.xlu0 %1546, %v1032_v58   ;;  %v889_v60 = vpop.xlane.xlu0 %888 }
 0x283   :  { %v1029_v2 = vadd.f32 %v2149_v1, %v889_v60  ;;  %v891_v7 = vpop.xlane.xlu1 %890 }
 0x284   :  { %v1030_v10 = vadd.f32 %v2147_v45, %v891_v7 }
 0x285   :  { %1110 = vperm.xlu1 %1545, %v1029_v2  }
 0x286   :  { %1113 = vperm.xlu0 %1546, %v1030_v10   ;;  %v901_v63 = vpop.xlane.xlu0 %900 }
 0x287   :  { %v903_v12 = vpop.xlane.xlu1 %902 }
 0x28a   :  { %v897_v59 = vpop.xlane.xlu0 %896 }
 0x28b   :  { %v1033_v4 = vadd.f32 %v2157_v40, %v897_v59  ;;  %v899_v8 = vpop.xlane.xlu1 %898 }
 0x28c   :  { %v1034_v16 = vadd.f32 %v2155_v39, %v899_v8 }
 0x28d   :  { %1122 = vperm.xlu1 %1545, %v1033_v4  }
 0x28e   :  { %v909_v18 = vpop.xlane.xlu0 %908 }
 0x28f   :  { %v911_v11 = vpop.xlane.xlu1 %910  ;;  %v1039_v23 = vadd.f32 %v2135_v31, %v909_v18 }
 0x290   :  { %v1040_v19 = vadd.f32 %v956_v28, %v911_v11 }
 0x291   :  { %1125 = vperm.xlu1 %1545, %v1034_v16  }
 0x292   :  { %1143 = vperm.xlu0 %1546, %v1040_v19   ;;  %v905_v22 = vpop.xlane.xlu0 %904 }
 0x293   :  { %v907_v21 = vpop.xlane.xlu1 %906  ;;  %v1037_v30 = vadd.f32 %v2137_v15, %v905_v22 }
 0x294   :  { %v1038_v24 = vadd.f32 %v2133_v17, %v907_v21 }
 0x295   :  { %1140 = vperm.xlu1 %1545, %v1039_v23  }
 0x296   :  { %1137 = vperm.xlu0 %1546, %v1038_v24   ;;  %v917_v27 = vpop.xlane.xlu0 %916 }
 0x297   :  { %v919_v9 = vpop.xlane.xlu1 %918  ;;  %v1043_v6 = vadd.f32 %v2145_v36, %v917_v27 }
 0x298   :  { %v1044_v3 = vadd.f32 %v2143_v20, %v919_v9 }
 0x299   :  { %1134 = vperm.xlu1 %1545, %v1037_v30  }
 0x29a   :  { %1155 = vperm.xlu0 %1546, %v1044_v3   ;;  %v913_v32 = vpop.xlane.xlu0 %912 }
 0x29b   :  { %v915_v34 = vpop.xlane.xlu1 %914  ;;  %v1041_v17 = vadd.f32 %v2141_v49, %v913_v32 }
 0x29c   :  { %v1042_v14 = vadd.f32 %v2139_v13, %v915_v34 }
 0x29d   :  { %1152 = vperm.xlu1 %1545, %v1043_v6  }
 0x29e   :  { %1149 = vperm.xlu0 %1546, %v1042_v14   ;;  %v925_v35 = vpop.xlane.xlu0 %924 }
 0x29f   :  { %v927_v31 = vpop.xlane.xlu1 %926  ;;  %v1047_v20 = vadd.f32 %v2153_v37, %v925_v35 }
 0x2a0   :  { %v1048_v28 = vadd.f32 %v2151_v38, %v927_v31  ;;  %v1035_v38 = vadd.f32 %v2161_v26, %v901_v63 }
 0x2a1   :  { %1146 = vperm.xlu1 %1545, %v1041_v17  }
 0x2a2   :  { %1167 = vperm.xlu0 %1546, %v1048_v28   ;;  %v921_v15 = vpop.xlane.xlu0 %920 }
 0x2a3   :  { %v923_v46 = vpop.xlane.xlu1 %922  ;;  %v1045_v13 = vadd.f32 %v2149_v1, %v921_v15 }
 0x2a4   :  { %v1046_v29 = vadd.f32 %v2147_v45, %v923_v46  ;;  %v1036_v45 = vadd.f32 %v2159_v25, %v903_v12 }
 0x2a5   :  { %1164 = vperm.xlu1 %1545, %v1047_v20  }
 0x2a6   :  { %1161 = vperm.xlu0 %1546, %v1046_v29   ;;  %v933_v36 = vpop.xlane.xlu0 %932 }
 0x2a7   :  { %v1051_v47 = vadd.f32 %v2161_v26, %v933_v36  ;;  %v935_v48 = vpop.xlane.xlu1 %934 }
 0x2a8   :  { %v1052_v1 = vadd.f32 %v2159_v25, %v935_v48  ;;  %v2206_v25 = vand.u32 127, %v100_v0 }
 0x2a9   :  { %1158 = vperm.xlu1 %1545, %v1045_v13  }
 0x2aa   :  { %1176 = vperm.xlu0 %1546, %v1051_v47   ;;  %v929_v49 = vpop.xlane.xlu0 %928  ;;  %v1187_v61 = vadd.s32 4294967288, %v2206_v25  ;;  %v1194_v60 = vadd.s32 4294967280, %v2206_v25  ;;  %v1185_v2 = vsub.s32 %v2206_v25, %v1627_v5  ;;  %v1208_v0 = vadd.s32 4294967264, %v2206_v25 }
 0x2ab   :  { %v1049_v33 = vadd.f32 %v2157_v40, %v929_v49  ;;  %v931_v50 = vpop.xlane.xlu1 %930  ;;  %v1201_v12 = vadd.s32 4294967272, %v2206_v25  ;;  %v1215_v8 = vadd.s32 4294967256, %v2206_v25  ;;  %v1222_v27 = vadd.s32 4294967248, %v2206_v25 }
 0x2ac   :  { %v1050_v37 = vadd.f32 %v2155_v39, %v931_v50  ;;  %v1190_v58 = vsub.s32 %v1187_v61, %v1627_v5  ;;  %v1197_v59 = vsub.s32 %v1194_v60, %v1627_v5  ;;  %v1211_v16 = vsub.s32 %v1208_v0, %v1627_v5 }
 0x2ad   :  { %1128 = vperm.xlu1 %1545, %v1035_v38   ;;  %v1204_v23 = vsub.s32 %v1201_v12, %v1627_v5  ;;  %v1218_v30 = vsub.s32 %v1215_v8, %v1627_v5  ;;  %v1236_v17 = vadd.s32 4294967232, %v2206_v25  ;;  %v1229_v15 = vadd.s32 4294967240, %v2206_v25 }
 0x2ae   :  { %1170 = vperm.xlu0 %1546, %v1049_v33   ;;  %v1225_v36 = vsub.s32 %v1222_v27, %v1627_v5  ;;  %v1243_v49 = vadd.s32 4294967224, %v2206_v25  ;;  %v1271_v12 = vadd.s32 4294967192, %v2206_v25 }
 0x2af   :  { %v1239_v50 = vsub.s32 %v1236_v17, %v1627_v5 }
 0x2b0   :  { %v1246_v61 = vsub.s32 %v1243_v49, %v1627_v5 }
 0x2b1   :  { %1131 = vperm.xlu1 %1545, %v1036_v45  }
 0x2b2   :  { %1173 = vperm.xlu0 %1546, %v1050_v37   ;;  %v1232_v37 = vsub.s32 %v1229_v15, %v1627_v5 }
 0x2b6   :  { %1179 = vperm.xlu0 %1546, %v1052_v1  }
 0x2ef   :  { %v1093_v43 = vpop.permute.xlu1 %1092 }
 0x2f0   :  { %v1087_v52 = vpop.permute.xlu0 %1086  ;;  %v1198_v24 = vrot.slane %v1093_v43, %v1197_v59 }
 0x2f1   :  { %v1186_v4 = vrot.slane %v1087_v52, %v1185_v2 }
 0x2f4   :  { %v1090_v53 = vpop.permute.xlu1 %1089  ;;  %v1096_v41 = vpop.permute.xlu0 %1095 }
 0x2f5   :  { %v1191_v63 = vrot.slane %v1090_v53, %v1190_v58  ;;  %v1205_v35 = vrot.slane %v1096_v41, %v1204_v23  ;;  %v1250_v41 = vadd.s32 4294967216, %v2206_v25 }
 0x2f7   :  { %v1193_v22 = vsel %vm1192_vm0, %v1191_v63, %v1186_v4  ;;  %v1264_v63 = vadd.s32 4294967200, %v2206_v25 }
 0x2f8   :  { %v2193_v51 = vpop.permute.xlu1 %1104  ;;  %v1200_v32 = vsel %vm1199_vm1, %v1198_v24, %v1193_v22  ;;  %v1285_v24 = vadd.s32 4294967176, %v2206_v25 }
 0x2f9   :  { %v2195_v26 = vpop.permute.xlu0 %1107  ;;  %v1207_v28 = vsel %vm1206_vm2, %v1205_v35, %v1200_v32  ;;  %v1226_v53 = vrot.slane %v2193_v51, %v1225_v36  ;;  %v1253_v51 = vsub.s32 %v1250_v41, %v1627_v5  ;;  %v1267_v27 = vsub.s32 %v1264_v63, %v1627_v5 }
 0x2fa   :  { %v1274_v32 = vsub.s32 %v1271_v12, %v1627_v5  ;;  %v1288_v17 = vsub.s32 %v1285_v24, %v1627_v5 }
 0x2fc   :  { %v1099_v40 = vpop.permute.xlu1 %1098 }
 0x2fd   :  { %v2197_v54 = vpop.permute.xlu0 %1101  ;;  %v1212_v6 = vrot.slane %v1099_v40, %v1211_v16 }
 0x2fe   :  { %v1219_v20 = vrot.slane %v2197_v54, %v1218_v30 }
 0x2ff   :  { %v1214_v13 = vsel %vm1213_vm3, %v1212_v6, %v1207_v28 }
 0x300   :  { %v2199_v44 = vpop.permute.xlu1 %1116  ;;  %v1221_v1 = vsel %vm1220_vm4, %v1219_v20, %v1214_v13 }
 0x301   :  { %v2201_v55 = vpop.permute.xlu0 %1119 }
 0x304   :  { %v2203_v39 = vpop.permute.xlu1 %1110 }
 0x305   :  { %v2210_v42 = vpop.permute.xlu0 %1113 }
 0x30c   :  { %v2208_v56 = vpop.permute.xlu1 %1122 }
 0x30d   :  { %v1268_v28 = vrot.slane %v2208_v56, %v1267_v27 }
 0x310   :  { %v2213_v62 = vpop.permute.xlu1 %1125 }
 0x311   :  { %v1144_v57 = vpop.permute.xlu0 %1143 }
 0x312   :  { %v1309_v46 = vrot.slane %v1144_v57, %v1204_v23  ;;  %v1228_v57 = vsel %vm1227_vm5, %v1226_v53, %v1221_v1 }
 0x314   :  { %v1141_v7 = vpop.permute.xlu1 %1140 }
 0x315   :  { %v1138_v10 = vpop.permute.xlu0 %1137  ;;  %v1304_v34 = vrot.slane %v1141_v7, %v1197_v59  ;;  %v1257_v7 = vadd.s32 4294967208, %v2206_v25 }
 0x316   :  { %v1299_v21 = vrot.slane %v1138_v10, %v1190_v58  ;;  %v1240_v58 = vrot.slane %v2203_v39, %v1239_v50  ;;  %v1247_v39 = vrot.slane %v2210_v42, %v1246_v61 }
 0x317   :  { %v1260_v22 = vsub.s32 %v1257_v7, %v1627_v5 }
 0x318   :  { %v1135_v18 = vpop.permute.xlu1 %1134 }
 0x319   :  { %v1295_v11 = vrot.slane %v1135_v18, %v1185_v2  ;;  %v2224_v19 = vpop.permute.xlu0 %1155  ;;  %v1233_v2 = vrot.slane %v2195_v26, %v1232_v37 }
 0x31a   :  { %v1329_v0 = vrot.slane %v2224_v19, %v1232_v37 }
 0x31b   :  { %v1300_v9 = vsel %vm1192_vm0, %v1299_v21, %v1295_v11  ;;  %v1235_v8 = vsel %vm1234_vm6, %v1233_v2, %v1228_v57 }
 0x31c   :  { %v1153_v3 = vpop.permute.xlu1 %1152  ;;  %v1305_v31 = vsel %vm1199_vm1, %v1304_v34, %v1300_v9  ;;  %v1254_v34 = vrot.slane %v2199_v44, %v1253_v51 }
 0x31d   :  { %v1150_v14 = vpop.permute.xlu0 %1149  ;;  %v1310_v33 = vsel %vm1206_vm2, %v1309_v46, %v1305_v31  ;;  %v1324_v40 = vrot.slane %v1153_v3, %v1225_v36  ;;  %v1261_v46 = vrot.slane %v2201_v55, %v1260_v22 }
 0x31e   :  { %v1319_v38 = vrot.slane %v1150_v14, %v1218_v30  ;;  %v1278_v30 = vadd.s32 4294967184, %v2206_v25 }
 0x320   :  { %v1147_v29 = vpop.permute.xlu1 %1146  ;;  %v1281_v25 = vsub.s32 %v1278_v30, %v1627_v5 }
 0x321   :  { %v1314_v47 = vrot.slane %v1147_v29, %v1211_v16  ;;  %v1168_v48 = vpop.permute.xlu0 %1167  ;;  %v1242_v16 = vsel %vm1241_vm7, %v1240_v58, %v1235_v8  ;;  %v1275_v29 = vrot.slane %v2213_v62, %v1274_v32 }
 0x322   :  { %v1249_v3 = vsel %vm1248_vm8, %v1247_v39, %v1242_v16  ;;  %v1349_v6 = vrot.slane %v1168_v48, %v1260_v22 }
 0x323   :  { %v1315_v45 = vsel %vm1213_vm3, %v1314_v47, %v1310_v33  ;;  %v1256_v31 = vsel %vm1255_vm9, %v1254_v34, %v1249_v3 }
 0x324   :  { %v1320_v43 = vsel %vm1220_vm4, %v1319_v38, %v1315_v45  ;;  %v1165_v52 = vpop.permute.xlu1 %1164  ;;  %v1263_v47 = vsel %vm1262_vm10, %v1261_v46, %v1256_v31 }
 0x325   :  { %v1162_v54 = vpop.permute.xlu0 %1161  ;;  %v1325_v60 = vsel %vm1227_vm5, %v1324_v40, %v1320_v43  ;;  %v1344_v11 = vrot.slane %v1165_v52, %v1253_v51  ;;  %v1270_v38 = vsel %vm1269_vm11, %v1268_v28, %v1263_v47 }
 0x326   :  { %v1339_v18 = vrot.slane %v1162_v54, %v1246_v61  ;;  %v1330_v26 = vsel %vm1234_vm6, %v1329_v0, %v1325_v60  ;;  %v1277_v33 = vsel %vm1276_vm12, %v1275_v29, %v1270_v38 }
 0x328   :  { %v1159_v10 = vpop.permute.xlu1 %1158 }
 0x329   :  { %v1334_v59 = vrot.slane %v1159_v10, %v1239_v50  ;;  %v1177_v4 = vpop.permute.xlu0 %1176 }
 0x32a   :  { %v1364_v56 = vrot.slane %v1177_v4, %v1281_v25 }
 0x32b   :  { %v1335_v19 = vsel %vm1241_vm7, %v1334_v59, %v1330_v26 }
 0x32c   :  { %v1340_v23 = vsel %vm1248_vm8, %v1339_v18, %v1335_v19  ;;  %v1129_v21 = vpop.permute.xlu1 %1128 }
 0x32d   :  { %v1345_v42 = vsel %vm1255_vm9, %v1344_v11, %v1340_v23  ;;  %v1171_v9 = vpop.permute.xlu0 %1170  ;;  %v1282_v36 = vrot.slane %v1129_v21, %v1281_v25 }
 0x32e   :  { %v1354_v14 = vrot.slane %v1171_v9, %v1267_v27  ;;  %v1350_v35 = vsel %vm1262_vm10, %v1349_v6, %v1345_v42 }
 0x32f   :  { %v1284_v55 = vsel %vm1283_vm13, %v1282_v36, %v1277_v33 }
 0x330   :  { %v1132_v15 = vpop.permute.xlu1 %1131  ;;  %v1355_v13 = vsel %vm1269_vm11, %v1354_v14, %v1350_v35 }
 0x331   :  { %v1174_v20 = vpop.permute.xlu0 %1173  ;;  %v1289_v48 = vrot.slane %v1132_v15, %v1288_v17 }
 0x332   :  { %v1359_v44 = vrot.slane %v1174_v20, %v1274_v32 }
 0x333   :  { %v1291_v37 = vsel %vm1290_vm14, %v1289_v48, %v1284_v55 }
 0x334   :  { %v1360_v49 = vsel %vm1276_vm12, %v1359_v44, %v1355_v13 }
 0x335   :  { %v1180_v5 = vpop.permute.xlu0 %1179  ;;  %v1365_v45 = vsel %vm1283_vm13, %v1364_v56, %v1360_v49 }
 0x336   :  { %v1369_v50 = vrot.slane %v1180_v5, %v1288_v17 }
 0x338   :  { %v1370_v62 = vsel %vm1290_vm14, %v1369_v50, %v1365_v45 }
 0x339   :  { %v1372_v1 = vsel %vm1371_vm15, %v1370_v62, %v1291_v37 }
 0x33a   :  { %1374 = vst [vmem:[%s2283_s10] sm:$0x3] %v1372_v1 }

// kernel: gears_forward.13
= control target key start
LH: loop header
LB: loop body
LE: loop exit
PB: predicated region body
PF: predicated region fallthrough
CT: control target
= control target key end

     0   :  { %v69_v0 = vlaneseq  ;;  %v1352_v2 = vmov 1966171168   ;;  %vm1106_vm0 = vcmask 1040384   ;;  %s1590_s2 = inlined_call_operand.vmem [shape: bf16[128,128], index: 2, kind: input, shape index: {}]   ;;  %s1591_s1 = inlined_call_operand.vmem [shape: f32[2,128], index: 1, kind: input, shape index: {}]   ;;  %s1592_s0 = inlined_call_operand.vmem [shape: f32[128,128], index: 0, kind: input, shape index: {}]   ;;  %s1593_s4 = inlined_call_operand.vmem [shape: f32[2,128], index: 4, kind: output, shape index: {}]   ;;  %s1594_s3 = inlined_call_operand.vmem [shape: f32[1,128], index: 3, kind: input, shape index: {}]  }
   0x1   :  { %v1344_v1 = vld [vmem:[%s1590_s2] sm:$0xff]   ;;  %v67_v3 = vunpack.c.l.s4 %v1352_v2  ;;  %v1345_v4 = vld [vmem:[%s1590_s2 + $0x8] sm:$0xff]   ;;  %v1346_v7 = vld [vmem:[%s1590_s2 + $0x10] sm:$0xff]  }
   0x2   :  { %v70_v5 = vshrl.u32 %v69_v0, 7  ;;  %1278 = vmatprep.subr.bf16.mxu0 %v1344_v1  ;;  %1326 = vmatprep.subr.bf16.mxu1 %v1344_v1  ;;  %v1347_v10 = vld [vmem:[%s1590_s2 + $0x18] sm:$0xff]   ;;  %v1244_v11 = vld.sshfl [vmem:[%s1591_s1] sm:$0x11 pattern:$0x75316420] }
   0x3   :  { %v68_v6 = vunpack.c.0.s8 %v67_v3  ;;  %1279 = vmatpush3.bf16.msra.mxu0 %v1344_v1  ;;  %1334 = vmatpush3.bf16.msra.mxu1 %v1344_v1  ;;  %v24_v13 = vld [vmem:[%s1592_s0] sm:$0xff]  ;;  %v25_v14 = vld [vmem:[%s1592_s0 + $0x8] sm:$0xff]  ;;  %v65_v19 = vcombine.high %v1244_v11, %v1244_v11  ;;  %v26_v25 = vld [vmem:[%s1592_s0 + $0x10] sm:$0xff] }
   0x4   :  { %1280 = vmatprep.subr.bf16.mxu0 %v1345_v4  ;;  %1327 = vmatprep.subr.bf16.mxu1 %v1345_v4  ;;  %v82_v9 = vsub.s32 0, %v70_v5  ;;  %v1348_v16 = vld [vmem:[%s1590_s2 + $0x20] sm:$0xff]   ;;  %v1349_v22 = vld [vmem:[%s1590_s2 + $0x28] sm:$0xff]   ;;  %v27_v26 = vld [vmem:[%s1592_s0 + $0x18] sm:$0xff] }
   0x5   :  { %v71_v8 = vsub.s32 %v68_v6, %v70_v5  ;;  %v28_v27 = vld [vmem:[%s1592_s0 + $0x20] sm:$0xff]  ;;  %v1350_v28 = vld [vmem:[%s1590_s2 + $0x30] sm:$0xff]   ;;  %v29_v29 = vld [vmem:[%s1592_s0 + $0x28] sm:$0xff] }
   0x6   :  { %v1351_v38 = vld [vmem:[%s1590_s2 + $0x38] sm:$0xff]   ;;  %v30_v47 = vld [vmem:[%s1592_s0 + $0x30] sm:$0xff]  ;;  %v32_v50 = vld [vmem:[%s1592_s0 + $0x40] sm:$0xff] }
   0x7   :  { %1281 = vmatpush3.bf16.msra.mxu0 %v1345_v4  ;;  %1335 = vmatpush3.bf16.msra.mxu1 %v1345_v4  ;;  %v72_v12 = vrot.slane %v1244_v11, %v71_v8  ;;  %v79_v24 = vrot.slane %v65_v19, %v71_v8  ;;  %v31_v48 = vld [vmem:[%s1592_s0 + $0x38] sm:$0xff]  ;;  %v33_v51 = vld [vmem:[%s1592_s0 + $0x48] sm:$0xff]  ;;  %v36_v11 = vld [vmem:[%s1592_s0 + $0x60] sm:$0xff] }
   0x8   :  { %1282 = vmatprep.subr.bf16.mxu0 %v1346_v7  ;;  %1328 = vmatprep.subr.bf16.mxu1 %v1346_v7  ;;  %v35_v8 = vld [vmem:[%s1592_s0 + $0x58] sm:$0xff] }
   0x9   :  { %v1400_v15 = vrot.slane %v72_v12, %v82_v9  ;;  %v1425_v30 = vrot.slane %v79_v24, %v82_v9  ;;  %v37_v12 = vld [vmem:[%s1592_s0 + $0x68] sm:$0xff] }
   0xb   :  { %1283 = vmatpush3.bf16.msra.mxu0 %v1346_v7  ;;  %1336 = vmatpush3.bf16.msra.mxu1 %v1346_v7  ;;  %v90_v17 = vadd.f32 %v1400_v15, %v24_v13  ;;  %v91_v18 = vadd.f32 %v1400_v15, %v25_v14  ;;  %v92_v31 = vadd.f32 %v1400_v15, %v26_v25  ;;  %v34_v7 = vld [vmem:[%s1592_s0 + $0x50] sm:$0xff] }
   0xc   :  { %1284 = vmatprep.subr.bf16.mxu0 %v1347_v10  ;;  %1329 = vmatprep.subr.bf16.mxu1 %v1347_v10  ;;  %v93_v32 = vadd.f32 %v1400_v15, %v27_v26  ;;  %v94_v33 = vadd.f32 %v1400_v15, %v28_v27  ;;  %v95_v34 = vadd.f32 %v1400_v15, %v29_v29 }
   0xd   :  { %v122_v20 = vmax.f32 %v90_v17, 0.0  ;;  %v123_v21 = vmax.f32 %v91_v18, 0.0  ;;  %v106_v35 = vadd.f32 %v1425_v30, %v24_v13  ;;  %v107_v36 = vadd.f32 %v1425_v30, %v25_v14 }
   0xe   :  { %v108_v37 = vadd.f32 %v1425_v30, %v26_v25  ;;  %v109_v39 = vadd.f32 %v1425_v30, %v27_v26  ;;  %v110_v40 = vadd.f32 %v1425_v30, %v28_v27  ;;  %v111_v43 = vadd.f32 %v1425_v30, %v29_v29 }
   0xf   :  { %1285 = vmatpush3.bf16.msra.mxu0 %v1347_v10  ;;  %1337 = vmatpush3.bf16.msra.mxu1 %v1347_v10  ;;  %v154_v23 = vpack.c.bf16 %v123_v21, %v122_v20  ;;  %v138_v41 = vmax.f32 %v106_v35, 0.0  ;;  %v139_v42 = vmax.f32 %v107_v36, 0.0  ;;  %v124_v44 = vmax.f32 %v92_v31, 0.0  ;;  %v38_v35 = vld [vmem:[%s1592_s0 + $0x70] sm:$0xff]  ;;  %v39_v36 = vld [vmem:[%s1592_s0 + $0x78] sm:$0xff] }
  0x10   :  { %1286 = vmatprep.subr.bf16.mxu0 %v1348_v16  ;;  %1330 = vmatprep.subr.bf16.mxu1 %v1348_v16  ;;  %v125_v45 = vmax.f32 %v93_v32, 0.0  ;;  %v126_v46 = vmax.f32 %v94_v33, 0.0  ;;  %v127_v49 = vmax.f32 %v95_v34, 0.0  ;;  %v140_v53 = vmax.f32 %v108_v37, 0.0 }
  0x11   :  { %1294 = vmatprep.mubr.bf16.mxu0 %v154_v23  ;;  %v162_v52 = vpack.c.bf16 %v139_v42, %v138_v41  ;;  %v141_v54 = vmax.f32 %v109_v39, 0.0  ;;  %v142_v55 = vmax.f32 %v110_v40, 0.0  ;;  %v143_v56 = vmax.f32 %v111_v43, 0.0 }
  0x12   :  { %v96_v57 = vadd.f32 %v1400_v15, %v30_v47  ;;  %v97_v58 = vadd.f32 %v1400_v15, %v31_v48  ;;  %v155_v59 = vpack.c.bf16 %v125_v45, %v124_v44  ;;  %v98_v60 = vadd.f32 %v1400_v15, %v32_v50 }
  0x13   :  { %1287 = vmatpush3.bf16.msra.mxu0 %v1348_v16  ;;  %1338 = vmatpush3.bf16.msra.mxu1 %v1348_v16  ;;  %v99_v61 = vadd.f32 %v1400_v15, %v33_v51  ;;  %v156_v62 = vpack.c.bf16 %v127_v49, %v126_v46  ;;  %v163_v63 = vpack.c.bf16 %v141_v54, %v140_v53 }
  0x14   :  { %1288 = vmatprep.subr.bf16.mxu0 %v1349_v22  ;;  %1331 = vmatprep.subr.bf16.mxu1 %v1349_v22  ;;  %v112_v0 = vadd.f32 %v1425_v30, %v30_v47  ;;  %v113_v1 = vadd.f32 %v1425_v30, %v31_v48  ;;  %v164_v2 = vpack.c.bf16 %v143_v56, %v142_v55  ;;  %v128_v5 = vmax.f32 %v96_v57, 0.0 }
  0x15   :  { %1310 = vmatprep.mubr.bf16.mxu1 %v162_v52  ;;  %v114_v3 = vadd.f32 %v1425_v30, %v32_v50  ;;  %v115_v4 = vadd.f32 %v1425_v30, %v33_v51  ;;  %v129_v6 = vmax.f32 %v97_v58, 0.0  ;;  %v130_v9 = vmax.f32 %v98_v60, 0.0 }
  0x16   :  { %v131_v10 = vmax.f32 %v99_v61, 0.0  ;;  %v144_v13 = vmax.f32 %v112_v0, 0.0  ;;  %v145_v14 = vmax.f32 %v113_v1, 0.0  ;;  %v100_v19 = vadd.f32 %v1400_v15, %v34_v7 }
  0x17   :  { %1289 = vmatpush3.bf16.msra.mxu0 %v1349_v22  ;;  %1339 = vmatpush3.bf16.msra.mxu1 %v1349_v22  ;;  %v146_v16 = vmax.f32 %v114_v3, 0.0  ;;  %v147_v17 = vmax.f32 %v115_v4, 0.0  ;;  %v157_v18 = vpack.c.bf16 %v129_v6, %v128_v5  ;;  %v101_v20 = vadd.f32 %v1400_v15, %v35_v8 }
  0x18   :  { %1290 = vmatprep.subr.bf16.mxu0 %v1350_v28  ;;  %1332 = vmatprep.subr.bf16.mxu1 %v1350_v28  ;;  %v102_v21 = vadd.f32 %v1400_v15, %v36_v11  ;;  %v103_v22 = vadd.f32 %v1400_v15, %v37_v12  ;;  %v158_v23 = vpack.c.bf16 %v131_v10, %v130_v9  ;;  %v132_v31 = vmax.f32 %v100_v19, 0.0 }
  0x19   :  { %v165_v24 = vpack.c.bf16 %v145_v14, %v144_v13  ;;  %v116_v25 = vadd.f32 %v1425_v30, %v34_v7  ;;  %v117_v26 = vadd.f32 %v1425_v30, %v35_v8  ;;  %v166_v27 = vpack.c.bf16 %v147_v17, %v146_v16 }
  0x1a   :  { %v119_v29 = vadd.f32 %v1425_v30, %v37_v12  ;;  %v133_v32 = vmax.f32 %v101_v20, 0.0  ;;  %v134_v33 = vmax.f32 %v102_v21, 0.0  ;;  %v135_v34 = vmax.f32 %v103_v22, 0.0 }
  0x1b   :  { %1291 = vmatpush3.bf16.msra.mxu0 %v1350_v28  ;;  %1340 = vmatpush3.bf16.msra.mxu1 %v1350_v28  ;;  %v118_v28 = vadd.f32 %v1425_v30, %v36_v11  ;;  %v148_v37 = vmax.f32 %v116_v25, 0.0  ;;  %v104_v42 = vadd.f32 %v1400_v15, %v38_v35  ;;  %v105_v43 = vadd.f32 %v1400_v15, %v39_v36 }
  0x1c   :  { %1292 = vmatprep.subr.bf16.mxu0 %v1351_v38  ;;  %1333 = vmatprep.subr.bf16.mxu1 %v1351_v38  ;;  %v151_v40 = vmax.f32 %v119_v29, 0.0  ;;  %v159_v41 = vpack.c.bf16 %v133_v32, %v132_v31  ;;  %v160_v44 = vpack.c.bf16 %v135_v34, %v134_v33  ;;  %v120_v46 = vadd.f32 %v1425_v30, %v38_v35 }
  0x1d   :  { %v150_v39 = vmax.f32 %v118_v28, 0.0  ;;  %v121_v47 = vadd.f32 %v1425_v30, %v39_v36  ;;  %v136_v49 = vmax.f32 %v104_v42, 0.0  ;;  %v137_v50 = vmax.f32 %v105_v43, 0.0  ;;  %v1496_v30 = vld [vmem:[%s1594_s3] ss:$0 sm:$0xff] }
  0x1e   :  { %v152_v51 = vmax.f32 %v120_v46, 0.0  ;;  %v1353_v15 = vmov 0.0  }
  0x1f   :  { %1293 = vmatpush3.bf16.msra.mxu0 %v1351_v38  ;;  %1341 = vmatpush3.bf16.msra.mxu1 %v1351_v38  ;;  %v149_v38 = vmax.f32 %v117_v26, 0.0  ;;  %v168_v48 = vpack.c.bf16 %v151_v40, %v150_v39  ;;  %v153_v52 = vmax.f32 %v121_v47, 0.0  ;;  %v161_v53 = vpack.c.bf16 %v137_v50, %v136_v49  ;;  %22 = vst [vmem:[%s1593_s4] sm:$0x3] %v1353_v15 }
  0x21   :  { %v167_v45 = vpack.c.bf16 %v149_v38, %v148_v37  ;;  %v169_v54 = vpack.c.bf16 %v153_v52, %v152_v51 }
  0x22   :  { %1295 = vmatmul.mubr.bf16.vlgmr.msra.gmra.mrb[0].mxu0 %v155_v59  ;;  %1311 = vmatmul.mubr.bf16.vlgmr.msra.gmra.mrb[0].mxu1 %v163_v63 }
  0x23   :  { %1298 = vmatprep.mubr.bf16.mxu0 %v156_v62  ;;  %1314 = vmatprep.mubr.bf16.mxu1 %v164_v2 }
  0x2a   :  { %1299 = vmatmul.mubr.bf16.gmra.mrb[4].mxu0 %v157_v18  ;;  %1315 = vmatmul.mubr.bf16.gmra.mrb[4].mxu1 %v165_v24 }
  0x2b   :  { %1302 = vmatprep.mubr.bf16.mxu0 %v158_v23  ;;  %1318 = vmatprep.mubr.bf16.mxu1 %v166_v27 }
  0x32   :  { %1303 = vmatmul.mubr.bf16.gmra.mrb[8].mxu0 %v159_v41  ;;  %1319 = vmatmul.mubr.bf16.gmra.mrb[8].mxu1 %v167_v45 }
  0x33   :  { %1306 = vmatprep.mubr.bf16.mxu0 %v160_v44  ;;  %1322 = vmatprep.mubr.bf16.mxu1 %v168_v48 }
  0x3a   :  { %1307 = vmatmul.mubr.bf16.gmra.mrb[12].mxu0 %v161_v53  ;;  %1323 = vmatmul.mubr.bf16.gmra.mrb[12].mxu1 %v169_v54 }
  0xf5   :  { %v1296_v55 = vpop.f32.mrb[0].mxu0  ;;  %v1498_v57 = vpop.f32.mrb[0].mxu1 }
  0xf6   :  { %v258_v56 = vpop.f32.mrb[1].mxu0  ;;  %v1501_v60 = vpop.f32.mrb[1].mxu1  ;;  %v267_v63 = vadd.f32 %v1296_v55, %v1496_v30 }
  0xf7   :  { %v259_v58 = vadd.f32 %v1496_v30, %v258_v56  ;;  %v1297_v59 = vpop.f32.mrb[2].mxu0  ;;  %v1503_v62 = vpop.f32.mrb[2].mxu1 }
  0xf8   :  { %v261_v61 = vpop.f32.mrb[3].mxu0  ;;  %v1507_v1 = vpop.f32.mrb[3].mxu1  ;;  %v270_v3 = vadd.f32 %v1297_v59, %v1496_v30  ;;  %v1007_v6 = vmul.f32 %v267_v63, %v267_v63 }
  0xf9   :  { %v262_v0 = vadd.f32 %v1496_v30, %v261_v61  ;;  %v1005_v2 = vmul.f32 %v259_v58, %v259_v58 }
  0xfa   :  { %v1008_v12 = vmul.f32 %v270_v3, %v270_v3 }
  0xfb   :  { %v968_v4 = vadd.f32 %v262_v0, %v259_v58  ;;  %v1006_v5 = vmul.f32 %v262_v0, %v262_v0 }
  0xfd   :  { %v969_v7 = vadd.f32 %v968_v4, %v267_v63  ;;  %v1069_v8 = vadd.f32 %v1006_v5, %v1005_v2  ;;  %v1300_v9 = vpop.f32.mrb[4].mxu0  ;;  %v1510_v11 = vpop.f32.mrb[4].mxu1 }
  0xfe   :  { %v274_v10 = vpop.f32.mrb[5].mxu0  ;;  %v1513_v18 = vpop.f32.mrb[5].mxu1  ;;  %v283_v19 = vadd.f32 %v1300_v9, %v1496_v30 }
  0xff   :  { %v1070_v13 = vadd.f32 %v1069_v8, %v1007_v6  ;;  %v275_v14 = vadd.f32 %v1496_v30, %v274_v10  ;;  %v970_v16 = vadd.f32 %v969_v7, %v270_v3  ;;  %v1301_v17 = vpop.f32.mrb[6].mxu0  ;;  %v1516_v21 = vpop.f32.mrb[6].mxu1 }
 0x100   :  { %v277_v20 = vpop.f32.mrb[7].mxu0  ;;  %v1519_v26 = vpop.f32.mrb[7].mxu1  ;;  %v286_v28 = vadd.f32 %v1301_v17, %v1496_v30  ;;  %v1011_v32 = vmul.f32 %v283_v19, %v283_v19 }
 0x101   :  { %v971_v22 = vadd.f32 %v970_v16, %v275_v14  ;;  %v1009_v23 = vmul.f32 %v275_v14, %v275_v14  ;;  %v1071_v24 = vadd.f32 %v1070_v13, %v1008_v12  ;;  %v278_v25 = vadd.f32 %v1496_v30, %v277_v20 }
 0x102   :  { %v1012_v39 = vmul.f32 %v286_v28, %v286_v28 }
 0x103   :  { %v1072_v27 = vadd.f32 %v1071_v24, %v1009_v23  ;;  %v972_v29 = vadd.f32 %v971_v22, %v278_v25  ;;  %v1010_v31 = vmul.f32 %v278_v25, %v278_v25 }
 0x105   :  { %v973_v33 = vadd.f32 %v972_v29, %v283_v19  ;;  %v1073_v34 = vadd.f32 %v1072_v27, %v1010_v31  ;;  %v1304_v35 = vpop.f32.mrb[8].mxu0  ;;  %v1523_v38 = vpop.f32.mrb[8].mxu1 }
 0x106   :  { %v299_v36 = vadd.f32 %v1304_v35, %v1496_v30  ;;  %v290_v37 = vpop.f32.mrb[9].mxu0  ;;  %v1526_v44 = vpop.f32.mrb[9].mxu1 }
 0x107   :  { %v1074_v40 = vadd.f32 %v1073_v34, %v1011_v32  ;;  %v291_v41 = vadd.f32 %v1496_v30, %v290_v37  ;;  %v974_v42 = vadd.f32 %v973_v33, %v286_v28  ;;  %v1305_v43 = vpop.f32.mrb[10].mxu0  ;;  %v1529_v47 = vpop.f32.mrb[10].mxu1 }
 0x108   :  { %v302_v45 = vadd.f32 %v1305_v43, %v1496_v30  ;;  %v293_v46 = vpop.f32.mrb[11].mxu0  ;;  %v1532_v52 = vpop.f32.mrb[11].mxu1  ;;  %v1015_v53 = vmul.f32 %v299_v36, %v299_v36  ;;  %v946_v59 = vmul.f32 0.0, %v299_v36 }
 0x109   :  { %v944_v48 = vmul.f32 0.0, %v291_v41  ;;  %v1013_v49 = vmul.f32 %v291_v41, %v291_v41  ;;  %v1075_v50 = vadd.f32 %v1074_v40, %v1012_v39  ;;  %v294_v51 = vadd.f32 %v1496_v30, %v293_v46 }
 0x10a   :  { %v1016_v58 = vmul.f32 %v302_v45, %v302_v45  ;;  %v1047_v3 = vmul.f32 0.0, %v1015_v53  ;;  %v947_v6 = vmul.f32 0.0, %v302_v45  ;;  %v323_v41 = vadd.f32 %v1496_v30, %v1501_v60 }
 0x10b   :  { %v975_v54 = vadd.f32 %v974_v42, %v944_v48  ;;  %v1045_v15 = vmul.f32 0.0, %v1013_v49  ;;  %v945_v55 = vmul.f32 0.0, %v294_v51  ;;  %v1014_v56 = vmul.f32 %v294_v51, %v294_v51 }
 0x10c   :  { %v1048_v13 = vmul.f32 0.0, %v1016_v58  ;;  %v326_v51 = vadd.f32 %v1496_v30, %v1507_v1  ;;  %v331_v53 = vadd.f32 %v1498_v57, %v1496_v30  ;;  %v334_v60 = vadd.f32 %v1503_v62, %v1496_v30 }
 0x10d   :  { %v1076_v61 = vadd.f32 %v1075_v50, %v1045_v15  ;;  %v976_v63 = vadd.f32 %v975_v54, %v945_v55  ;;  %v1046_v0 = vmul.f32 0.0, %v1014_v56  ;;  %v1308_v2 = vpop.f32.mrb[12].mxu0  ;;  %v1534_v5 = vpop.f32.mrb[12].mxu1  ;;  %v1021_v15 = vmul.f32 %v323_v41, %v323_v41 }
 0x10e   :  { %v306_v4 = vpop.f32.mrb[13].mxu0  ;;  %v1537_v12 = vpop.f32.mrb[13].mxu1  ;;  %v315_v14 = vadd.f32 %v1308_v2, %v1496_v30  ;;  %v339_v2 = vadd.f32 %v1496_v30, %v1513_v18  ;;  %v355_v1 = vadd.f32 %v1496_v30, %v1526_v44  ;;  %v347_v62 = vadd.f32 %v1510_v11, %v1496_v30 }
 0x10f   :  { %v977_v7 = vadd.f32 %v976_v63, %v946_v59  ;;  %v1077_v8 = vadd.f32 %v1076_v61, %v1046_v0  ;;  %v307_v9 = vadd.f32 %v1496_v30, %v306_v4  ;;  %v1309_v10 = vpop.f32.mrb[14].mxu0  ;;  %v1540_v17 = vpop.f32.mrb[14].mxu1  ;;  %v1022_v59 = vmul.f32 %v326_v51, %v326_v51 }
 0x110   :  { %v309_v16 = vpop.f32.mrb[15].mxu0  ;;  %v1542_v24 = vpop.f32.mrb[15].mxu1  ;;  %v318_v25 = vadd.f32 %v1309_v10, %v1496_v30  ;;  %v1019_v32 = vmul.f32 %v315_v14, %v315_v14  ;;  %v950_v36 = vmul.f32 0.0, %v315_v14  ;;  %v1023_v61 = vmul.f32 %v331_v53, %v331_v53 }
 0x111   :  { %v1078_v19 = vadd.f32 %v1077_v8, %v1047_v3  ;;  %v948_v20 = vmul.f32 0.0, %v307_v9  ;;  %v978_v22 = vadd.f32 %v977_v7, %v947_v6  ;;  %v1017_v23 = vmul.f32 %v307_v9, %v307_v9 }
 0x112   :  { %v310_v27 = vadd.f32 %v1496_v30, %v309_v16  ;;  %v1020_v37 = vmul.f32 %v318_v25, %v318_v25  ;;  %v1051_v42 = vmul.f32 0.0, %v1019_v32  ;;  %v951_v43 = vmul.f32 0.0, %v318_v25 }
 0x113   :  { %v979_v28 = vadd.f32 %v978_v22, %v948_v20  ;;  %v1049_v29 = vmul.f32 0.0, %v1017_v23  ;;  %v1079_v31 = vadd.f32 %v1078_v19, %v1048_v13  ;;  %v1024_v3 = vmul.f32 %v334_v60, %v334_v60 }
 0x114   :  { %v949_v33 = vmul.f32 0.0, %v310_v27  ;;  %v1018_v34 = vmul.f32 %v310_v27, %v310_v27  ;;  %v1052_v48 = vmul.f32 0.0, %v1020_v37  ;;  %v342_v6 = vadd.f32 %v1496_v30, %v1519_v26 }
 0x115   :  { %v1080_v35 = vadd.f32 %v1079_v31, %v1049_v29  ;;  %v1025_v8 = vmul.f32 %v339_v2, %v339_v2  ;;  %v350_v10 = vadd.f32 %v1516_v21, %v1496_v30  ;;  %v1029_v13 = vmul.f32 %v355_v1, %v355_v1 }
 0x116   :  { %v980_v39 = vadd.f32 %v979_v28, %v949_v33  ;;  %v1050_v40 = vmul.f32 0.0, %v1018_v34  ;;  %v1026_v16 = vmul.f32 %v342_v6, %v342_v6  ;;  %v358_v44 = vadd.f32 %v1496_v30, %v1532_v52 }
 0x117   :  { %v363_v19 = vadd.f32 %v1523_v38, %v1496_v30  ;;  %v1027_v26 = vmul.f32 %v347_v62, %v347_v62  ;;  %v960_v11 = vmul.f32 0.0, %v355_v1  ;;  %v1028_v23 = vmul.f32 %v350_v10, %v350_v10 }
 0x118   :  { %v1081_v45 = vadd.f32 %v1080_v35, %v1050_v40  ;;  %v981_v46 = vadd.f32 %v980_v39, %v950_v36  ;;  %v1061_v25 = vmul.f32 0.0, %v1029_v13  ;;  %v366_v27 = vadd.f32 %v1529_v47, %v1496_v30 }
 0x119   :  { %v1030_v29 = vmul.f32 %v358_v44, %v358_v44  ;;  %v371_v31 = vadd.f32 %v1496_v30, %v1537_v12  ;;  %v1031_v32 = vmul.f32 %v363_v19, %v363_v19  ;;  %v961_v34 = vmul.f32 0.0, %v358_v44 }
 0x11a   :  { %v1082_v49 = vadd.f32 %v1081_v45, %v1051_v42  ;;  %v982_v50 = vadd.f32 %v981_v46, %v951_v43  ;;  %v962_v38 = vmul.f32 0.0, %v363_v19  ;;  %v1032_v35 = vmul.f32 %v366_v27, %v366_v27 }
 0x11b   :  { %v374_v36 = vadd.f32 %v1496_v30, %v1542_v24  ;;  %v1062_v40 = vmul.f32 0.0, %v1030_v29  ;;  %v1063_v47 = vmul.f32 0.0, %v1031_v32  ;;  %v963_v42 = vmul.f32 0.0, %v366_v27 }
 0x11c   :  { %v983_v54 = vadd.f32 %v982_v50, %v323_v41  ;;  %v1083_v55 = vadd.f32 %v1082_v49, %v1052_v48  ;;  %v1033_v41 = vmul.f32 %v371_v31, %v371_v31  ;;  %v379_v12 = vadd.f32 %v1534_v5, %v1496_v30 }
 0x11d   :  { %v964_v46 = vmul.f32 0.0, %v371_v31  ;;  %v1064_v48 = vmul.f32 0.0, %v1032_v35  ;;  %v382_v49 = vadd.f32 %v1540_v17, %v1496_v30  ;;  %v1034_v24 = vmul.f32 %v374_v36, %v374_v36 }
 0x11e   :  { %v1084_v56 = vadd.f32 %v1083_v55, %v1021_v15  ;;  %v984_v58 = vadd.f32 %v983_v54, %v326_v51  ;;  %v1035_v54 = vmul.f32 %v379_v12, %v379_v12 }
 0x11f   :  { %v967_v5 = vmul.f32 0.0, %v382_v49 }
 0x120   :  { %v985_v63 = vadd.f32 %v984_v58, %v331_v53  ;;  %v1085_v0 = vadd.f32 %v1084_v56, %v1022_v59  ;;  %v1065_v53 = vmul.f32 0.0, %v1033_v41  ;;  %v965_v56 = vmul.f32 0.0, %v374_v36 }
 0x121   :  { %v1036_v59 = vmul.f32 %v382_v49, %v382_v49 }
 0x122   :  { %v1086_v57 = vadd.f32 %v1085_v0, %v1023_v61  ;;  %v986_v4 = vadd.f32 %v985_v63, %v334_v60  ;;  %v966_v60 = vmul.f32 0.0, %v379_v12  ;;  %v1066_v63 = vmul.f32 0.0, %v1034_v24 }
 0x123   :  { %v1067_v0 = vmul.f32 0.0, %v1035_v54 }
 0x124   :  { %v987_v7 = vadd.f32 %v986_v4, %v339_v2  ;;  %v1087_v9 = vadd.f32 %v1086_v57, %v1024_v3  ;;  %v1068_v3 = vmul.f32 0.0, %v1036_v59 }
 0x126   :  { %v1088_v18 = vadd.f32 %v1087_v9, %v1025_v8  ;;  %v988_v14 = vadd.f32 %v987_v7, %v342_v6 }
 0x128   :  { %v989_v20 = vadd.f32 %v988_v14, %v347_v62  ;;  %v1089_v22 = vadd.f32 %v1088_v18, %v1026_v16  ;;  %v935_v16 = vld [vmem:[%s1593_s4] sm:$0x3] }
 0x12a   :  { %v1090_v21 = vadd.f32 %v1089_v22, %v1027_v26  ;;  %v990_v28 = vadd.f32 %v989_v20, %v350_v10 }
 0x12c   :  { %v991_v52 = vadd.f32 %v990_v28, %v960_v11  ;;  %v1091_v33 = vadd.f32 %v1090_v21, %v1028_v23 }
 0x12e   :  { %v1092_v37 = vadd.f32 %v1091_v33, %v1061_v25  ;;  %v992_v39 = vadd.f32 %v991_v52, %v961_v34 }
 0x130   :  { %v993_v43 = vadd.f32 %v992_v39, %v962_v38  ;;  %v1093_v45 = vadd.f32 %v1092_v37, %v1062_v40 }
 0x132   :  { %v1094_v50 = vadd.f32 %v1093_v45, %v1063_v47  ;;  %v994_v51 = vadd.f32 %v993_v43, %v963_v42 }
 0x134   :  { %v995_v15 = vadd.f32 %v994_v51, %v964_v46  ;;  %v1095_v55 = vadd.f32 %v1094_v50, %v1064_v48 }
 0x136   :  { %v1096_v58 = vadd.f32 %v1095_v55, %v1065_v53  ;;  %v996_v61 = vadd.f32 %v995_v15, %v965_v56 }
 0x138   :  { %v997_v2 = vadd.f32 %v996_v61, %v966_v60  ;;  %v1097_v1 = vadd.f32 %v1096_v58, %v1066_v63 }
 0x13a   :  { %v998_v57 = vadd.f32 %v997_v2, %v967_v5  ;;  %v1098_v30 = vadd.f32 %v1097_v1, %v1067_v0 }
 0x13c   :  { %v999_v17 = vrot.slane %v998_v57, 4  ;;  %v1099_v4 = vadd.f32 %v1098_v30, %v1068_v3 }
 0x13e   :  { %v1000_v6 = vadd.f32 %v999_v17, %v998_v57  ;;  %v1100_v62 = vrot.slane %v1099_v4, 4 }
 0x140   :  { %v1001_v7 = vrot.slane %v1000_v6, 2  ;;  %v1101_v8 = vadd.f32 %v1100_v62, %v1099_v4 }
 0x142   :  { %v1002_v9 = vadd.f32 %v1001_v7, %v1000_v6  ;;  %v1102_v10 = vrot.slane %v1101_v8, 2 }
 0x144   :  { %v1003_v13 = vrot.slane %v1002_v9, 1  ;;  %v1103_v18 = vadd.f32 %v1102_v10, %v1101_v8 }
 0x146   :  { %v1104_v14 = vrot.slane %v1103_v18, 1  ;;  %v1004_v44 = vadd.f32 %v1003_v13, %v1002_v9 }
 0x148   :  { %v1105_v19 = vadd.f32 %v1104_v14, %v1103_v18 }
 0x14a   :  { %v1107_v26 = vsel %vm1106_vm0, %v1004_v44, %v1105_v19 }
 0x14b   :  { %v1108_v20 = vadd.f32 %v1107_v26, %v935_v16 }
 0x14d   :  { %1109 = vst [vmem:[%s1593_s4] sm:$0x3] %v1108_v20 }
 0x154   :  { %v1228_v22 = vld [vmem:[%s1593_s4] sm:$0x3] }
 0x155   :  { %v1230_v11 = vmul.f32 0.0078125, %v1228_v22 }
 0x157   :  { %v1231_v23 = vmul.f32 %v1230_v11, %v1230_v11 }
 0x159   :  { %v1233_v25 = vrot.slane %v1231_v23, 7 }
 0x15b   :  { %v1235_v27 = vsub.f32 %v1230_v11, %v1233_v25 }
 0x15d   :  { %v1236_v21 = vmax.f32 %v1235_v27, 0.0 }
 0x15f   :  { %v1238_v28 = vsel %vm1106_vm0, %v1230_v11, %v1236_v21 }
 0x160   :  { %1239 = vst [vmem:[%s1593_s4] sm:$0x3] %v1238_v28 }

// kernel: gears_forward.14
= control target key start
LH: loop header
LB: loop body
LE: loop exit
PB: predicated region body
PF: predicated region fallthrough
CT: control target
= control target key end

     0   :  { %v96_v0 = vlaneseq  ;;  %v1787_v2 = vmov 1966171168   ;;  %vm1468_vm0 = vcmask 1040384   ;;  %s2165_s2 = inlined_call_operand.vmem [shape: bf16[128,128], index: 2, kind: input, shape index: {}]   ;;  %s2166_s1 = inlined_call_operand.vmem [shape: f32[2,128], index: 1, kind: input, shape index: {}]   ;;  %s2167_s0 = inlined_call_operand.vmem [shape: f32[128,128], index: 0, kind: input, shape index: {}]   ;;  %s2168_s5 = inlined_call_operand.vmem [shape: bf16[128,128], index: 5, kind: input, shape index: {}]   ;;  %s2169_s4 = inlined_call_operand.vmem [shape: f32[2,128], index: 4, kind: input, shape index: {}]   ;;  %s2170_s3 = inlined_call_operand.vmem [shape: f32[1,128], index: 3, kind: input, shape index: {}]   ;;  %s2171_s7 = inlined_call_operand.vmem [shape: f32[2,128], index: 7, kind: output, shape index: {}]   ;;  %s2172_s6 = inlined_call_operand.vmem [shape: f32[1,128], index: 6, kind: input, shape index: {}]  }
   0x1   :  { %v1771_v1 = vld [vmem:[%s2165_s2] sm:$0xff]   ;;  %v94_v3 = vunpack.c.l.s4 %v1787_v2  ;;  %v1772_v4 = vld [vmem:[%s2165_s2 + $0x8] sm:$0xff]   ;;  %v1773_v7 = vld [vmem:[%s2165_s2 + $0x10] sm:$0xff]  }
   0x2   :  { %v1835_v5 = vshrl.u32 %v96_v0, 7  ;;  %1673 = vmatprep.subr.bf16.mxu0 %v1771_v1  ;;  %v1774_v10 = vld [vmem:[%s2165_s2 + $0x18] sm:$0xff]   ;;  %v1852_v11 = vld.sshfl [vmem:[%s2166_s1] sm:$0x11 pattern:$0x75316420] }
   0x3   :  { %v95_v6 = vunpack.c.0.s8 %v94_v3  ;;  %1674 = vmatpush3.bf16.msra.mxu0 %v1771_v1  ;;  %v1859_v13 = vld [vmem:[%s2167_s0] sm:$0xff]  ;;  %v1864_v14 = vld [vmem:[%s2167_s0 + $0x8] sm:$0xff]  ;;  %v1888_v25 = vld [vmem:[%s2167_s0 + $0x10] sm:$0xff]  ;;  %v92_v54 = vcombine.high %v1852_v11, %v1852_v11 }
   0x4   :  { %1675 = vmatprep.subr.bf16.mxu0 %v1772_v4  ;;  %v1844_v9 = vsub.s32 0, %v1835_v5  ;;  %v1775_v16 = vld [vmem:[%s2165_s2 + $0x20] sm:$0xff]   ;;  %v1776_v22 = vld [vmem:[%s2165_s2 + $0x28] sm:$0xff]   ;;  %v1893_v26 = vld [vmem:[%s2167_s0 + $0x18] sm:$0xff] }
   0x5   :  { %v1841_v8 = vsub.s32 %v95_v6, %v1835_v5  ;;  %v1779_v19 = vld [vmem:[%s2168_s5] sm:$0xff]   ;;  %v1780_v23 = vld [vmem:[%s2168_s5 + $0x8] sm:$0xff]   ;;  %v1777_v27 = vld [vmem:[%s2165_s2 + $0x30] sm:$0xff]  }
   0x6   :  { %1721 = vmatprep.subr.bf16.mxu1 %v1779_v19  ;;  %v1781_v28 = vld [vmem:[%s2168_s5 + $0x10] sm:$0xff]   ;;  %v1904_v29 = vld [vmem:[%s2167_s0 + $0x20] sm:$0xff]  ;;  %v1909_v30 = vld [vmem:[%s2167_s0 + $0x28] sm:$0xff] }
   0x7   :  { %1676 = vmatpush3.bf16.msra.mxu0 %v1772_v4  ;;  %v99_v12 = vrot.slane %v1852_v11, %v1841_v8  ;;  %1722 = vmatpush3.bf16.msra.mxu1 %v1779_v19  ;;  %v1782_v33 = vld [vmem:[%s2168_s5 + $0x18] sm:$0xff]   ;;  %v1783_v39 = vld [vmem:[%s2168_s5 + $0x20] sm:$0xff]   ;;  %v1931_v42 = vld [vmem:[%s2167_s0 + $0x30] sm:$0xff]  ;;  %v106_v0 = vrot.slane %v92_v54, %v1841_v8 }
   0x8   :  { %1677 = vmatprep.subr.bf16.mxu0 %v1773_v7  ;;  %1723 = vmatprep.subr.bf16.mxu1 %v1780_v23  ;;  %v1778_v36 = vld [vmem:[%s2165_s2 + $0x38] sm:$0xff]   ;;  %v1941_v44 = vld [vmem:[%s2167_s0 + $0x40] sm:$0xff]  ;;  %v1946_v45 = vld [vmem:[%s2167_s0 + $0x48] sm:$0xff] }
   0x9   :  { %v1867_v15 = vrot.slane %v99_v12, %v1844_v9  ;;  %v1936_v43 = vld [vmem:[%s2167_s0 + $0x38] sm:$0xff]  ;;  %v43_v57 = vld [vmem:[%s2167_s0 + $0x50] sm:$0xff]  ;;  %v45_v59 = vld [vmem:[%s2167_s0 + $0x60] sm:$0xff] }
   0xa   :  { %v44_v58 = vld [vmem:[%s2167_s0 + $0x58] sm:$0xff]  ;;  %v46_v60 = vld [vmem:[%s2167_s0 + $0x68] sm:$0xff]  ;;  %v47_v12 = vld [vmem:[%s2167_s0 + $0x70] sm:$0xff] }
   0xb   :  { %1678 = vmatpush3.bf16.msra.mxu0 %v1773_v7  ;;  %v117_v17 = vadd.f32 %v1867_v15, %v1859_v13  ;;  %v118_v18 = vadd.f32 %v1867_v15, %v1864_v14  ;;  %1724 = vmatpush3.bf16.msra.mxu1 %v1780_v23  ;;  %v119_v31 = vadd.f32 %v1867_v15, %v1888_v25  ;;  %v48_v8 = vld [vmem:[%s2167_s0 + $0x78] sm:$0xff] }
   0xc   :  { %1679 = vmatprep.subr.bf16.mxu0 %v1774_v10  ;;  %v120_v32 = vadd.f32 %v1867_v15, %v1893_v26  ;;  %1725 = vmatprep.subr.bf16.mxu1 %v1781_v28  ;;  %v121_v34 = vadd.f32 %v1867_v15, %v1904_v29  ;;  %v122_v35 = vadd.f32 %v1867_v15, %v1909_v30 }
   0xd   :  { %v149_v20 = vmax.f32 %v117_v17, 0.0  ;;  %v150_v21 = vmax.f32 %v118_v18, 0.0  ;;  %v151_v37 = vmax.f32 %v119_v31, 0.0  ;;  %v123_v47 = vadd.f32 %v1867_v15, %v1931_v42 }
   0xe   :  { %v152_v38 = vmax.f32 %v120_v32, 0.0  ;;  %v153_v40 = vmax.f32 %v121_v34, 0.0  ;;  %v154_v41 = vmax.f32 %v122_v35, 0.0  ;;  %v124_v48 = vadd.f32 %v1867_v15, %v1936_v43 }
   0xf   :  { %1680 = vmatpush3.bf16.msra.mxu0 %v1774_v10  ;;  %v181_v24 = vpack.c.bf16 %v150_v21, %v149_v20  ;;  %1726 = vmatpush3.bf16.msra.mxu1 %v1781_v28  ;;  %v125_v50 = vadd.f32 %v1867_v15, %v1941_v44  ;;  %v126_v51 = vadd.f32 %v1867_v15, %v1946_v45  ;;  %v155_v52 = vmax.f32 %v123_v47, 0.0 }
  0x10   :  { %1681 = vmatprep.subr.bf16.mxu0 %v1775_v16  ;;  %1727 = vmatprep.subr.bf16.mxu1 %v1782_v33  ;;  %v182_v46 = vpack.c.bf16 %v152_v38, %v151_v37  ;;  %v183_v49 = vpack.c.bf16 %v154_v41, %v153_v40  ;;  %v156_v53 = vmax.f32 %v124_v48, 0.0  ;;  %v127_v62 = vadd.f32 %v1867_v15, %v43_v57 }
  0x11   :  { %1689 = vmatprep.mubr.bf16.mxu0 %v181_v24  ;;  %v157_v55 = vmax.f32 %v125_v50, 0.0  ;;  %v158_v56 = vmax.f32 %v126_v51, 0.0  ;;  %v128_v63 = vadd.f32 %v1867_v15, %v44_v58  ;;  %v129_v2 = vadd.f32 %v1867_v15, %v45_v59 }
  0x12   :  { %v184_v61 = vpack.c.bf16 %v156_v53, %v155_v52  ;;  %v130_v3 = vadd.f32 %v1867_v15, %v46_v60  ;;  %v159_v4 = vmax.f32 %v127_v62, 0.0  ;;  %v114_v7 = vrot.slane %v106_v0, %v1844_v9 }
  0x13   :  { %1682 = vmatpush3.bf16.msra.mxu0 %v1775_v16  ;;  %1728 = vmatpush3.bf16.msra.mxu1 %v1782_v33  ;;  %v185_v1 = vpack.c.bf16 %v158_v56, %v157_v55  ;;  %v160_v6 = vmax.f32 %v128_v63, 0.0  ;;  %v161_v10 = vmax.f32 %v129_v2, 0.0  ;;  %v131_v17 = vadd.f32 %v1867_v15, %v47_v12 }
  0x14   :  { %1683 = vmatprep.subr.bf16.mxu0 %v1776_v22  ;;  %1729 = vmatprep.subr.bf16.mxu1 %v1783_v39  ;;  %v162_v11 = vmax.f32 %v130_v3, 0.0  ;;  %v132_v18 = vadd.f32 %v1867_v15, %v48_v8  ;;  %v133_v19 = vadd.f32 %v114_v7, %v1859_v13  ;;  %v134_v20 = vadd.f32 %v114_v7, %v1864_v14 }
  0x15   :  { %v186_v16 = vpack.c.bf16 %v160_v6, %v159_v4  ;;  %v135_v31 = vadd.f32 %v114_v7, %v1888_v25  ;;  %v136_v32 = vadd.f32 %v114_v7, %v1893_v26  ;;  %v137_v34 = vadd.f32 %v114_v7, %v1904_v29 }
  0x16   :  { %v187_v21 = vpack.c.bf16 %v162_v11, %v161_v10  ;;  %v164_v23 = vmax.f32 %v132_v18, 0.0  ;;  %v165_v24 = vmax.f32 %v133_v19, 0.0  ;;  %v138_v15 = vadd.f32 %v114_v7, %v1909_v30 }
  0x17   :  { %1684 = vmatpush3.bf16.msra.mxu0 %v1776_v22  ;;  %1730 = vmatpush3.bf16.msra.mxu1 %v1783_v39  ;;  %v163_v22 = vmax.f32 %v131_v17, 0.0  ;;  %v167_v13 = vmax.f32 %v135_v31, 0.0  ;;  %v168_v14 = vmax.f32 %v136_v32, 0.0  ;;  %v169_v35 = vmax.f32 %v137_v34, 0.0 }
  0x18   :  { %1685 = vmatprep.subr.bf16.mxu0 %v1777_v27  ;;  %v139_v38 = vadd.f32 %v114_v7, %v1931_v42  ;;  %v140_v39 = vadd.f32 %v114_v7, %v1936_v43  ;;  %v141_v25 = vadd.f32 %v114_v7, %v1941_v44  ;;  %v142_v26 = vadd.f32 %v114_v7, %v1946_v45 }
  0x19   :  { %v188_v28 = vpack.c.bf16 %v164_v23, %v163_v22  ;;  %v190_v37 = vpack.c.bf16 %v168_v14, %v167_v13  ;;  %v143_v48 = vadd.f32 %v114_v7, %v43_v57  ;;  %v145_v51 = vadd.f32 %v114_v7, %v45_v59  ;;  %v1784_v57 = vld [vmem:[%s2168_s5 + $0x28] sm:$0xff]   ;;  %v1786_v59 = vld [vmem:[%s2168_s5 + $0x38] sm:$0xff]  }
  0x1a   :  { %v171_v29 = vmax.f32 %v139_v38, 0.0  ;;  %v172_v41 = vmax.f32 %v140_v39, 0.0  ;;  %v173_v30 = vmax.f32 %v141_v25, 0.0  ;;  %v146_v52 = vadd.f32 %v114_v7, %v46_v60  ;;  %1731 = vmatprep.subr.bf16.mxu1 %v1784_v57  ;;  %v66_v60 = vld [vmem:[%s2169_s4] sm:$0x3] }
  0x1b   :  { %1686 = vmatpush3.bf16.msra.mxu0 %v1777_v27  ;;  %v166_v27 = vmax.f32 %v134_v20, 0.0  ;;  %v175_v42 = vmax.f32 %v143_v48, 0.0  ;;  %v177_v53 = vmax.f32 %v145_v51, 0.0  ;;  %v147_v45 = vadd.f32 %v114_v7, %v47_v12  ;;  %1732 = vmatpush3.bf16.msra.mxu1 %v1784_v57 }
  0x1c   :  { %1687 = vmatprep.subr.bf16.mxu0 %v1778_v36  ;;  %v192_v47 = vpack.c.bf16 %v172_v41, %v171_v29  ;;  %v178_v44 = vmax.f32 %v146_v52, 0.0  ;;  %v148_v55 = vadd.f32 %v114_v7, %v48_v8  ;;  %v450_v0 = vsub.s32 1, %v1835_v5 }
  0x1d   :  { %v189_v33 = vpack.c.bf16 %v166_v27, %v165_v24  ;;  %v2013_v2 = vrot.slane %v66_v60, %v1844_v9 }
  0x1e   :  { %v195_v56 = vpack.c.bf16 %v178_v44, %v177_v53  ;;  %v180_v62 = vmax.f32 %v148_v55, 0.0  ;;  %v2015_v4 = vrot.slane %v66_v60, %v450_v0 }
  0x1f   :  { %1688 = vmatpush3.bf16.msra.mxu0 %v1778_v36  ;;  %v170_v36 = vmax.f32 %v138_v15, 0.0 }
  0x21   :  { %v191_v40 = vpack.c.bf16 %v170_v36, %v169_v35 }
  0x22   :  { %1690 = vmatmul.mubr.bf16.vlgmr.msra.gmra.mrb[0].mxu0 %v182_v46  ;;  %v174_v46 = vmax.f32 %v142_v26, 0.0 }
  0x23   :  { %1693 = vmatprep.mubr.bf16.mxu0 %v183_v49  ;;  %v144_v49 = vadd.f32 %v114_v7, %v44_v58  ;;  %v1785_v58 = vld [vmem:[%s2168_s5 + $0x30] sm:$0xff]  }
  0x24   :  { %v193_v50 = vpack.c.bf16 %v174_v46, %v173_v30  ;;  %1733 = vmatprep.subr.bf16.mxu1 %v1785_v58 }
  0x25   :  { %v176_v43 = vmax.f32 %v144_v49, 0.0  ;;  %1734 = vmatpush3.bf16.msra.mxu1 %v1785_v58 }
  0x26   :  { %1735 = vmatprep.subr.bf16.mxu1 %v1786_v59 }
  0x27   :  { %v194_v54 = vpack.c.bf16 %v176_v43, %v175_v42 }
  0x29   :  { %1736 = vmatpush3.bf16.msra.mxu1 %v1786_v59 }
  0x2a   :  { %1694 = vmatmul.mubr.bf16.gmra.mrb[4].mxu0 %v184_v61  ;;  %v179_v61 = vmax.f32 %v147_v45, 0.0 }
  0x2b   :  { %1697 = vmatprep.mubr.bf16.mxu0 %v185_v1  ;;  %v2010_v1 = vld [vmem:[%s2170_s3] ss:$0 sm:$0xff] }
  0x2c   :  { %v196_v63 = vpack.c.bf16 %v180_v62, %v179_v61 }
  0x32   :  { %1698 = vmatmul.mubr.bf16.gmra.mrb[8].mxu0 %v186_v16 }
  0x33   :  { %1701 = vmatprep.mubr.bf16.mxu0 %v187_v21 }
  0x3a   :  { %1702 = vmatmul.mubr.bf16.gmra.mrb[12].mxu0 %v188_v28 }
  0x3b   :  { %1705 = vmatprep.mubr.bf16.mxu0 %v189_v33 }
  0x42   :  { %1706 = vmatmul.mubr.bf16.gmra.mrb[16].mxu0 %v190_v37 }
  0x43   :  { %1709 = vmatprep.mubr.bf16.mxu0 %v191_v40 }
  0x4a   :  { %1710 = vmatmul.mubr.bf16.gmra.mrb[20].mxu0 %v192_v47 }
  0x4b   :  { %1713 = vmatprep.mubr.bf16.mxu0 %v193_v50 }
  0x52   :  { %1714 = vmatmul.mubr.bf16.gmra.mrb[24].mxu0 %v194_v54 }
  0x53   :  { %1717 = vmatprep.mubr.bf16.mxu0 %v195_v56 }
  0x5a   :  { %1718 = vmatmul.mubr.bf16.gmra.mrb[28].mxu0 %v196_v63 }
  0xf5   :  { %v1691_v3 = vpop.f32.mrb[0].mxu0 }
  0xf6   :  { %v294_v6 = vadd.f32 %v1691_v3, %v2010_v1  ;;  %v285_v7 = vpop.f32.mrb[1].mxu0 }
  0xf7   :  { %v286_v10 = vadd.f32 %v2010_v1, %v285_v7  ;;  %v1692_v11 = vpop.f32.mrb[2].mxu0 }
  0xf8   :  { %v418_v12 = vmul.f32 %v2013_v2, %v294_v6  ;;  %v297_v5 = vadd.f32 %v1692_v11, %v2010_v1  ;;  %v288_v8 = vpop.f32.mrb[3].mxu0 }
  0xf9   :  { %v416_v16 = vmul.f32 %v2013_v2, %v286_v10  ;;  %v289_v17 = vadd.f32 %v2010_v1, %v288_v8 }
  0xfa   :  { %v454_v9 = vadd.f32 %v2015_v4, %v418_v12  ;;  %v419_v18 = vmul.f32 %v2013_v2, %v297_v5 }
  0xfb   :  { %v417_v19 = vmul.f32 %v2013_v2, %v289_v17  ;;  %v452_v20 = vadd.f32 %v2015_v4, %v416_v16 }
  0xfc   :  { %v455_v21 = vadd.f32 %v2015_v4, %v419_v18  ;;  %v486_v24 = vmax.f32 %v454_v9, 0.0 }
  0xfd   :  { %v1695_v22 = vpop.f32.mrb[4].mxu0  ;;  %v453_v23 = vadd.f32 %v2015_v4, %v417_v19  ;;  %v484_v34 = vmax.f32 %v452_v20, 0.0 }
  0xfe   :  { %v487_v27 = vmax.f32 %v455_v21, 0.0  ;;  %v310_v28 = vadd.f32 %v1695_v22, %v2010_v1  ;;  %v301_v31 = vpop.f32.mrb[5].mxu0 }
  0xff   :  { %v302_v32 = vadd.f32 %v2010_v1, %v301_v31  ;;  %v1696_v33 = vpop.f32.mrb[6].mxu0  ;;  %v485_v15 = vmax.f32 %v453_v23, 0.0 }
 0x100   :  { %v422_v13 = vmul.f32 %v2013_v2, %v310_v28  ;;  %v313_v14 = vadd.f32 %v1696_v33, %v2010_v1  ;;  %v304_v35 = vpop.f32.mrb[7].mxu0  ;;  %v517_v36 = vpack.c.bf16 %v487_v27, %v486_v24 }
 0x101   :  { %v420_v37 = vmul.f32 %v2013_v2, %v302_v32  ;;  %v305_v38 = vadd.f32 %v2010_v1, %v304_v35  ;;  %v516_v39 = vpack.c.bf16 %v485_v15, %v484_v34 }
 0x102   :  { %v458_v40 = vadd.f32 %v2015_v4, %v422_v13  ;;  %v423_v25 = vmul.f32 %v2013_v2, %v313_v14 }
 0x103   :  { %v456_v26 = vadd.f32 %v2015_v4, %v420_v37  ;;  %v421_v29 = vmul.f32 %v2013_v2, %v305_v38  ;;  %1737 = vmatprep.mubr.bf16.mxu1 %v516_v39 }
 0x104   :  { %v459_v41 = vadd.f32 %v2015_v4, %v423_v25  ;;  %1738 = vmatmul.mubr.bf16.vlgmr.msra.gmra.mrb[0].mxu1 %v517_v36  ;;  %v490_v47 = vmax.f32 %v458_v40, 0.0 }
 0x105   :  { %v457_v30 = vadd.f32 %v2015_v4, %v421_v29  ;;  %v1699_v46 = vpop.f32.mrb[8].mxu0  ;;  %v488_v51 = vmax.f32 %v456_v26, 0.0 }
 0x106   :  { %v491_v48 = vmax.f32 %v459_v41, 0.0  ;;  %v326_v49 = vadd.f32 %v1699_v46, %v2010_v1  ;;  %v317_v50 = vpop.f32.mrb[9].mxu0 }
 0x107   :  { %v489_v52 = vmax.f32 %v457_v30, 0.0  ;;  %v318_v42 = vadd.f32 %v2010_v1, %v317_v50  ;;  %v1700_v43 = vpop.f32.mrb[10].mxu0 }
 0x108   :  { %v426_v53 = vmul.f32 %v2013_v2, %v326_v49  ;;  %v329_v44 = vadd.f32 %v1700_v43, %v2010_v1  ;;  %v320_v54 = vpop.f32.mrb[11].mxu0  ;;  %v519_v45 = vpack.c.bf16 %v491_v48, %v490_v47 }
 0x109   :  { %v424_v55 = vmul.f32 %v2013_v2, %v318_v42  ;;  %v321_v56 = vadd.f32 %v2010_v1, %v320_v54  ;;  %v518_v61 = vpack.c.bf16 %v489_v52, %v488_v51 }
 0x10a   :  { %v462_v62 = vadd.f32 %v2015_v4, %v426_v53  ;;  %v427_v63 = vmul.f32 %v2013_v2, %v329_v44 }
 0x10b   :  { %v460_v57 = vadd.f32 %v2015_v4, %v424_v55  ;;  %v425_v58 = vmul.f32 %v2013_v2, %v321_v56  ;;  %1741 = vmatprep.mubr.bf16.mxu1 %v518_v61 }
 0x10c   :  { %v463_v59 = vadd.f32 %v2015_v4, %v427_v63  ;;  %1742 = vmatmul.mubr.bf16.gmra.mrb[4].mxu1 %v519_v45  ;;  %v494_v3 = vmax.f32 %v462_v62, 0.0 }
 0x10d   :  { %v461_v60 = vadd.f32 %v2015_v4, %v425_v58  ;;  %v1703_v0 = vpop.f32.mrb[12].mxu0  ;;  %v492_v11 = vmax.f32 %v460_v57, 0.0 }
 0x10e   :  { %v495_v6 = vmax.f32 %v463_v59, 0.0  ;;  %v342_v7 = vadd.f32 %v1703_v0, %v2010_v1  ;;  %v333_v10 = vpop.f32.mrb[13].mxu0 }
 0x10f   :  { %v493_v12 = vmax.f32 %v461_v60, 0.0  ;;  %v334_v5 = vadd.f32 %v2010_v1, %v333_v10  ;;  %v1704_v8 = vpop.f32.mrb[14].mxu0 }
 0x110   :  { %v430_v16 = vmul.f32 %v2013_v2, %v342_v7  ;;  %v345_v17 = vadd.f32 %v1704_v8, %v2010_v1  ;;  %v336_v9 = vpop.f32.mrb[15].mxu0  ;;  %v521_v18 = vpack.c.bf16 %v495_v6, %v494_v3 }
 0x111   :  { %v428_v19 = vmul.f32 %v2013_v2, %v334_v5  ;;  %v337_v20 = vadd.f32 %v2010_v1, %v336_v9  ;;  %v520_v21 = vpack.c.bf16 %v493_v12, %v492_v11 }
 0x112   :  { %v466_v22 = vadd.f32 %v2015_v4, %v430_v16  ;;  %v431_v23 = vmul.f32 %v2013_v2, %v345_v17 }
 0x113   :  { %v464_v24 = vadd.f32 %v2015_v4, %v428_v19  ;;  %v429_v27 = vmul.f32 %v2013_v2, %v337_v20  ;;  %1745 = vmatprep.mubr.bf16.mxu1 %v520_v21 }
 0x114   :  { %v467_v28 = vadd.f32 %v2015_v4, %v431_v23  ;;  %1746 = vmatmul.mubr.bf16.gmra.mrb[8].mxu1 %v521_v18  ;;  %v498_v33 = vmax.f32 %v466_v22, 0.0 }
 0x115   :  { %v465_v31 = vadd.f32 %v2015_v4, %v429_v27  ;;  %v1707_v32 = vpop.f32.mrb[16].mxu0  ;;  %v496_v14 = vmax.f32 %v464_v24, 0.0 }
 0x116   :  { %v499_v34 = vmax.f32 %v467_v28, 0.0  ;;  %v358_v15 = vadd.f32 %v1707_v32, %v2010_v1  ;;  %v349_v13 = vpop.f32.mrb[17].mxu0 }
 0x117   :  { %v497_v35 = vmax.f32 %v465_v31, 0.0  ;;  %v350_v36 = vadd.f32 %v2010_v1, %v349_v13  ;;  %v1708_v37 = vpop.f32.mrb[18].mxu0 }
 0x118   :  { %v434_v38 = vmul.f32 %v2013_v2, %v358_v15  ;;  %v361_v39 = vadd.f32 %v1708_v37, %v2010_v1  ;;  %v352_v40 = vpop.f32.mrb[19].mxu0  ;;  %v523_v25 = vpack.c.bf16 %v499_v34, %v498_v33 }
 0x119   :  { %v432_v26 = vmul.f32 %v2013_v2, %v350_v36  ;;  %v353_v29 = vadd.f32 %v2010_v1, %v352_v40  ;;  %v522_v41 = vpack.c.bf16 %v497_v35, %v496_v14 }
 0x11a   :  { %v470_v30 = vadd.f32 %v2015_v4, %v434_v38  ;;  %v435_v46 = vmul.f32 %v2013_v2, %v361_v39 }
 0x11b   :  { %v468_v47 = vadd.f32 %v2015_v4, %v432_v26  ;;  %v433_v48 = vmul.f32 %v2013_v2, %v353_v29  ;;  %1749 = vmatprep.mubr.bf16.mxu1 %v522_v41 }
 0x11c   :  { %v471_v49 = vadd.f32 %v2015_v4, %v435_v46  ;;  %1750 = vmatmul.mubr.bf16.gmra.mrb[12].mxu1 %v523_v25  ;;  %v502_v52 = vmax.f32 %v470_v30, 0.0 }
 0x11d   :  { %v469_v50 = vadd.f32 %v2015_v4, %v433_v48  ;;  %v1711_v51 = vpop.f32.mrb[20].mxu0  ;;  %v500_v44 = vmax.f32 %v468_v47, 0.0 }
 0x11e   :  { %v503_v42 = vmax.f32 %v471_v49, 0.0  ;;  %v374_v43 = vadd.f32 %v1711_v51, %v2010_v1  ;;  %v365_v53 = vpop.f32.mrb[21].mxu0 }
 0x11f   :  { %v501_v54 = vmax.f32 %v469_v50, 0.0  ;;  %v366_v45 = vadd.f32 %v2010_v1, %v365_v53  ;;  %v1712_v55 = vpop.f32.mrb[22].mxu0 }
 0x120   :  { %v438_v56 = vmul.f32 %v2013_v2, %v374_v43  ;;  %v377_v61 = vadd.f32 %v1712_v55, %v2010_v1  ;;  %v368_v62 = vpop.f32.mrb[23].mxu0  ;;  %v525_v63 = vpack.c.bf16 %v503_v42, %v502_v52 }
 0x121   :  { %v436_v57 = vmul.f32 %v2013_v2, %v366_v45  ;;  %v369_v58 = vadd.f32 %v2010_v1, %v368_v62  ;;  %v524_v59 = vpack.c.bf16 %v501_v54, %v500_v44 }
 0x122   :  { %v474_v60 = vadd.f32 %v2015_v4, %v438_v56  ;;  %v439_v0 = vmul.f32 %v2013_v2, %v377_v61  ;;  %v1788_v61 = vmov 0.0  }
 0x123   :  { %v472_v3 = vadd.f32 %v2015_v4, %v436_v57  ;;  %v437_v6 = vmul.f32 %v2013_v2, %v369_v58  ;;  %1753 = vmatprep.mubr.bf16.mxu1 %v524_v59  ;;  %31 = vst [vmem:[%s2171_s7] sm:$0x3] %v1788_v61 }
 0x124   :  { %v475_v7 = vadd.f32 %v2015_v4, %v439_v0  ;;  %1754 = vmatmul.mubr.bf16.gmra.mrb[16].mxu1 %v525_v63  ;;  %v506_v12 = vmax.f32 %v474_v60, 0.0 }
 0x125   :  { %v473_v10 = vadd.f32 %v2015_v4, %v437_v6  ;;  %v1715_v11 = vpop.f32.mrb[24].mxu0  ;;  %v504_v17 = vmax.f32 %v472_v3, 0.0 }
 0x126   :  { %v507_v5 = vmax.f32 %v475_v7, 0.0  ;;  %v390_v8 = vadd.f32 %v1715_v11, %v2010_v1  ;;  %v381_v16 = vpop.f32.mrb[25].mxu0 }
 0x127   :  { %v505_v9 = vmax.f32 %v473_v10, 0.0  ;;  %v382_v18 = vadd.f32 %v2010_v1, %v381_v16  ;;  %v1716_v19 = vpop.f32.mrb[26].mxu0 }
 0x128   :  { %v442_v20 = vmul.f32 %v2013_v2, %v390_v8  ;;  %v393_v21 = vadd.f32 %v1716_v19, %v2010_v1  ;;  %v384_v22 = vpop.f32.mrb[27].mxu0  ;;  %v527_v23 = vpack.c.bf16 %v507_v5, %v506_v12 }
 0x129   :  { %v440_v24 = vmul.f32 %v2013_v2, %v382_v18  ;;  %v385_v27 = vadd.f32 %v2010_v1, %v384_v22  ;;  %v526_v28 = vpack.c.bf16 %v505_v9, %v504_v17 }
 0x12a   :  { %v478_v31 = vadd.f32 %v2015_v4, %v442_v20  ;;  %v443_v32 = vmul.f32 %v2013_v2, %v393_v21 }
 0x12b   :  { %v476_v33 = vadd.f32 %v2015_v4, %v440_v24  ;;  %v441_v34 = vmul.f32 %v2013_v2, %v385_v27  ;;  %1757 = vmatprep.mubr.bf16.mxu1 %v526_v28 }
 0x12c   :  { %v479_v15 = vadd.f32 %v2015_v4, %v443_v32  ;;  %1758 = vmatmul.mubr.bf16.gmra.mrb[20].mxu1 %v527_v23  ;;  %v510_v35 = vmax.f32 %v478_v31, 0.0 }
 0x12d   :  { %v477_v13 = vadd.f32 %v2015_v4, %v441_v34  ;;  %v1719_v14 = vpop.f32.mrb[28].mxu0  ;;  %v508_v39 = vmax.f32 %v476_v33, 0.0 }
 0x12e   :  { %v511_v36 = vmax.f32 %v479_v15, 0.0  ;;  %v406_v37 = vadd.f32 %v1719_v14, %v2010_v1  ;;  %v397_v38 = vpop.f32.mrb[29].mxu0 }
 0x12f   :  { %v509_v40 = vmax.f32 %v477_v13, 0.0  ;;  %v398_v25 = vadd.f32 %v2010_v1, %v397_v38  ;;  %v1720_v26 = vpop.f32.mrb[30].mxu0 }
 0x130   :  { %v446_v29 = vmul.f32 %v2013_v2, %v406_v37  ;;  %v409_v41 = vadd.f32 %v1720_v26, %v2010_v1  ;;  %v400_v30 = vpop.f32.mrb[31].mxu0  ;;  %v529_v46 = vpack.c.bf16 %v511_v36, %v510_v35 }
 0x131   :  { %v444_v47 = vmul.f32 %v2013_v2, %v398_v25  ;;  %v401_v48 = vadd.f32 %v2010_v1, %v400_v30  ;;  %v528_v49 = vpack.c.bf16 %v509_v40, %v508_v39 }
 0x132   :  { %v482_v50 = vadd.f32 %v2015_v4, %v446_v29  ;;  %v447_v51 = vmul.f32 %v2013_v2, %v409_v41 }
 0x133   :  { %v480_v52 = vadd.f32 %v2015_v4, %v444_v47  ;;  %v445_v42 = vmul.f32 %v2013_v2, %v401_v48  ;;  %1761 = vmatprep.mubr.bf16.mxu1 %v528_v49  ;;  %v2119_v2 = vld [vmem:[%s2172_s6] ss:$0 sm:$0xff] }
 0x134   :  { %v483_v43 = vadd.f32 %v2015_v4, %v447_v51  ;;  %1762 = vmatmul.mubr.bf16.gmra.mrb[24].mxu1 %v529_v46  ;;  %v514_v44 = vmax.f32 %v482_v50, 0.0 }
 0x135   :  { %v481_v53 = vadd.f32 %v2015_v4, %v445_v42  ;;  %v512_v45 = vmax.f32 %v480_v52, 0.0 }
 0x136   :  { %v515_v54 = vmax.f32 %v483_v43, 0.0 }
 0x137   :  { %v513_v55 = vmax.f32 %v481_v53, 0.0 }
 0x138   :  { %v531_v1 = vpack.c.bf16 %v515_v54, %v514_v44 }
 0x139   :  { %v530_v56 = vpack.c.bf16 %v513_v55, %v512_v45 }
 0x13b   :  { %1765 = vmatprep.mubr.bf16.mxu1 %v530_v56 }
 0x13c   :  { %1766 = vmatmul.mubr.bf16.gmra.mrb[28].mxu1 %v531_v1 }
 0x1d7   :  { %v1739_v62 = vpop.f32.mrb[0].mxu1 }
 0x1d8   :  { %v620_v4 = vpop.f32.mrb[1].mxu1  ;;  %v629_v59 = vadd.f32 %v1739_v62, %v2119_v2 }
 0x1d9   :  { %v621_v63 = vadd.f32 %v2119_v2, %v620_v4  ;;  %v1740_v57 = vpop.f32.mrb[2].mxu1 }
 0x1da   :  { %v623_v58 = vpop.f32.mrb[3].mxu1  ;;  %v632_v3 = vadd.f32 %v1740_v57, %v2119_v2  ;;  %v1369_v10 = vmul.f32 %v629_v59, %v629_v59 }
 0x1db   :  { %v624_v60 = vadd.f32 %v2119_v2, %v623_v58  ;;  %v1367_v0 = vmul.f32 %v621_v63, %v621_v63 }
 0x1dc   :  { %v1370_v16 = vmul.f32 %v632_v3, %v632_v3 }
 0x1dd   :  { %v1330_v6 = vadd.f32 %v624_v60, %v621_v63  ;;  %v1368_v7 = vmul.f32 %v624_v60, %v624_v60 }
 0x1df   :  { %v1331_v11 = vadd.f32 %v1330_v6, %v629_v59  ;;  %v1431_v12 = vadd.f32 %v1368_v7, %v1367_v0  ;;  %v1743_v5 = vpop.f32.mrb[4].mxu1 }
 0x1e0   :  { %v636_v8 = vpop.f32.mrb[5].mxu1  ;;  %v645_v20 = vadd.f32 %v1743_v5, %v2119_v2 }
 0x1e1   :  { %v1432_v17 = vadd.f32 %v1431_v12, %v1369_v10  ;;  %v637_v9 = vadd.f32 %v2119_v2, %v636_v8  ;;  %v1332_v18 = vadd.f32 %v1331_v11, %v632_v3  ;;  %v1744_v19 = vpop.f32.mrb[6].mxu1 }
 0x1e2   :  { %v639_v21 = vpop.f32.mrb[7].mxu1  ;;  %v648_v31 = vadd.f32 %v1744_v19, %v2119_v2  ;;  %v1373_v34 = vmul.f32 %v645_v20, %v645_v20 }
 0x1e3   :  { %v1333_v22 = vadd.f32 %v1332_v18, %v637_v9  ;;  %v1371_v23 = vmul.f32 %v637_v9, %v637_v9  ;;  %v1433_v24 = vadd.f32 %v1432_v17, %v1370_v16  ;;  %v640_v27 = vadd.f32 %v2119_v2, %v639_v21 }
 0x1e4   :  { %v1374_v37 = vmul.f32 %v648_v31, %v648_v31 }
 0x1e5   :  { %v1434_v28 = vadd.f32 %v1433_v24, %v1371_v23  ;;  %v1334_v32 = vadd.f32 %v1333_v22, %v640_v27  ;;  %v1372_v33 = vmul.f32 %v640_v27, %v640_v27 }
 0x1e7   :  { %v1335_v15 = vadd.f32 %v1334_v32, %v645_v20  ;;  %v1435_v13 = vadd.f32 %v1434_v28, %v1372_v33  ;;  %v1747_v14 = vpop.f32.mrb[8].mxu1 }
 0x1e8   :  { %v661_v35 = vadd.f32 %v1747_v14, %v2119_v2  ;;  %v652_v36 = vpop.f32.mrb[9].mxu1 }
 0x1e9   :  { %v1436_v38 = vadd.f32 %v1435_v13, %v1373_v34  ;;  %v653_v39 = vadd.f32 %v2119_v2, %v652_v36  ;;  %v1336_v40 = vadd.f32 %v1335_v15, %v648_v31  ;;  %v1748_v25 = vpop.f32.mrb[10].mxu1 }
 0x1ea   :  { %v664_v26 = vadd.f32 %v1748_v25, %v2119_v2  ;;  %v655_v29 = vpop.f32.mrb[11].mxu1  ;;  %v1377_v48 = vmul.f32 %v661_v35, %v661_v35  ;;  %v1308_v43 = vmul.f32 0.0, %v661_v35 }
 0x1eb   :  { %v1306_v41 = vmul.f32 0.0, %v653_v39  ;;  %v1375_v30 = vmul.f32 %v653_v39, %v653_v39  ;;  %v1437_v46 = vadd.f32 %v1436_v38, %v1374_v37  ;;  %v656_v47 = vadd.f32 %v2119_v2, %v655_v29 }
 0x1ec   :  { %v1378_v42 = vmul.f32 %v664_v26, %v664_v26  ;;  %v1409_v55 = vmul.f32 0.0, %v1377_v48  ;;  %v1309_v1 = vmul.f32 0.0, %v664_v26 }
 0x1ed   :  { %v1337_v49 = vadd.f32 %v1336_v40, %v1306_v41  ;;  %v1407_v50 = vmul.f32 0.0, %v1375_v30  ;;  %v1307_v51 = vmul.f32 0.0, %v656_v47  ;;  %v1376_v52 = vmul.f32 %v656_v47, %v656_v47 }
 0x1ee   :  { %v1410_v58 = vmul.f32 0.0, %v1378_v42 }
 0x1ef   :  { %v1438_v53 = vadd.f32 %v1437_v46, %v1407_v50  ;;  %v1338_v44 = vadd.f32 %v1337_v49, %v1307_v51  ;;  %v1408_v54 = vmul.f32 0.0, %v1376_v52  ;;  %v1751_v45 = vpop.f32.mrb[12].mxu1 }
 0x1f0   :  { %v668_v56 = vpop.f32.mrb[13].mxu1  ;;  %v677_v4 = vadd.f32 %v1751_v45, %v2119_v2 }
 0x1f1   :  { %v1339_v61 = vadd.f32 %v1338_v44, %v1308_v43  ;;  %v1439_v62 = vadd.f32 %v1438_v53, %v1408_v54  ;;  %v669_v63 = vadd.f32 %v2119_v2, %v668_v56  ;;  %v1752_v57 = vpop.f32.mrb[14].mxu1 }
 0x1f2   :  { %v671_v59 = vpop.f32.mrb[15].mxu1  ;;  %v680_v7 = vadd.f32 %v1752_v57, %v2119_v2  ;;  %v1381_v11 = vmul.f32 %v677_v4, %v677_v4  ;;  %v1312_v19 = vmul.f32 0.0, %v677_v4 }
 0x1f3   :  { %v1440_v60 = vadd.f32 %v1439_v62, %v1409_v55  ;;  %v1310_v0 = vmul.f32 0.0, %v669_v63  ;;  %v1340_v3 = vadd.f32 %v1339_v61, %v1309_v1  ;;  %v1379_v6 = vmul.f32 %v669_v63, %v669_v63 }
 0x1f4   :  { %v672_v10 = vadd.f32 %v2119_v2, %v671_v59  ;;  %v1382_v20 = vmul.f32 %v680_v7, %v680_v7  ;;  %v1413_v24 = vmul.f32 0.0, %v1381_v11  ;;  %v1313_v28 = vmul.f32 0.0, %v680_v7 }
 0x1f5   :  { %v1341_v12 = vadd.f32 %v1340_v3, %v1310_v0  ;;  %v1411_v5 = vmul.f32 0.0, %v1379_v6  ;;  %v1441_v8 = vadd.f32 %v1440_v60, %v1410_v58 }
 0x1f6   :  { %v1311_v16 = vmul.f32 0.0, %v672_v10  ;;  %v1380_v17 = vmul.f32 %v672_v10, %v672_v10  ;;  %v1414_v15 = vmul.f32 0.0, %v1382_v20 }
 0x1f7   :  { %v1442_v9 = vadd.f32 %v1441_v8, %v1411_v5  ;;  %v1755_v18 = vpop.f32.mrb[16].mxu1 }
 0x1f8   :  { %v1342_v21 = vadd.f32 %v1341_v12, %v1311_v16  ;;  %v1412_v22 = vmul.f32 0.0, %v1380_v17  ;;  %v684_v23 = vpop.f32.mrb[17].mxu1  ;;  %v693_v36 = vadd.f32 %v1755_v18, %v2119_v2 }
 0x1f9   :  { %v1756_v27 = vpop.f32.mrb[18].mxu1  ;;  %v685_v32 = vadd.f32 %v2119_v2, %v684_v23 }
 0x1fa   :  { %v1443_v31 = vadd.f32 %v1442_v9, %v1412_v22  ;;  %v1343_v33 = vadd.f32 %v1342_v21, %v1312_v19  ;;  %v687_v34 = vpop.f32.mrb[19].mxu1  ;;  %v696_v26 = vadd.f32 %v1756_v27, %v2119_v2  ;;  %v1385_v47 = vmul.f32 %v693_v36, %v693_v36 }
 0x1fb   :  { %v688_v35 = vadd.f32 %v2119_v2, %v687_v34  ;;  %v1383_v38 = vmul.f32 %v685_v32, %v685_v32 }
 0x1fc   :  { %v1444_v13 = vadd.f32 %v1443_v31, %v1413_v24  ;;  %v1344_v14 = vadd.f32 %v1343_v33, %v1313_v28  ;;  %v1386_v52 = vmul.f32 %v696_v26, %v696_v26 }
 0x1fd   :  { %v1384_v41 = vmul.f32 %v688_v35, %v688_v35 }
 0x1fe   :  { %v1345_v37 = vadd.f32 %v1344_v14, %v685_v32  ;;  %v1445_v39 = vadd.f32 %v1444_v13, %v1414_v15 }
 0x1ff   :  { %v1759_v40 = vpop.f32.mrb[20].mxu1 }
 0x200   :  { %v1446_v25 = vadd.f32 %v1445_v39, %v1383_v38  ;;  %v1346_v29 = vadd.f32 %v1345_v37, %v688_v35  ;;  %v700_v30 = vpop.f32.mrb[21].mxu1  ;;  %v709_v44 = vadd.f32 %v1759_v40, %v2119_v2 }
 0x201   :  { %v1760_v46 = vpop.f32.mrb[22].mxu1  ;;  %v701_v50 = vadd.f32 %v2119_v2, %v700_v30 }
 0x202   :  { %v1347_v48 = vadd.f32 %v1346_v29, %v693_v36  ;;  %v1447_v49 = vadd.f32 %v1446_v25, %v1384_v41  ;;  %v703_v51 = vpop.f32.mrb[23].mxu1  ;;  %v712_v61 = vadd.f32 %v1760_v46, %v2119_v2  ;;  %v1389_v60 = vmul.f32 %v709_v44, %v709_v44 }
 0x203   :  { %v704_v53 = vadd.f32 %v2119_v2, %v703_v51  ;;  %v1387_v45 = vmul.f32 %v701_v50, %v701_v50 }
 0x204   :  { %v1448_v42 = vadd.f32 %v1447_v49, %v1385_v47  ;;  %v1348_v43 = vadd.f32 %v1347_v48, %v696_v26  ;;  %v1390_v12 = vmul.f32 %v712_v61, %v712_v61 }
 0x205   :  { %v1388_v4 = vmul.f32 %v704_v53, %v704_v53 }
 0x206   :  { %v1349_v54 = vadd.f32 %v1348_v43, %v701_v50  ;;  %v1449_v55 = vadd.f32 %v1448_v42, %v1386_v52 }
 0x207   :  { %v1763_v1 = vpop.f32.mrb[24].mxu1 }
 0x208   :  { %v1450_v56 = vadd.f32 %v1449_v55, %v1387_v45  ;;  %v1350_v62 = vadd.f32 %v1349_v54, %v704_v53  ;;  %v716_v63 = vpop.f32.mrb[25].mxu1  ;;  %v725_v57 = vadd.f32 %v1763_v1, %v2119_v2 }
 0x209   :  { %v717_v58 = vadd.f32 %v2119_v2, %v716_v63  ;;  %v1764_v59 = vpop.f32.mrb[26].mxu1 }
 0x20a   :  { %v1351_v0 = vadd.f32 %v1350_v62, %v709_v44  ;;  %v1451_v3 = vadd.f32 %v1450_v56, %v1388_v4  ;;  %v719_v6 = vpop.f32.mrb[27].mxu1  ;;  %v728_v16 = vadd.f32 %v1764_v59, %v2119_v2  ;;  %v1393_v17 = vmul.f32 %v725_v57, %v725_v57 }
 0x20b   :  { %v1322_v7 = vmul.f32 0.0, %v717_v58  ;;  %v1391_v10 = vmul.f32 %v717_v58, %v717_v58  ;;  %v720_v11 = vadd.f32 %v2119_v2, %v719_v6  ;;  %v1324_v22 = vmul.f32 0.0, %v725_v57 }
 0x20c   :  { %v1452_v5 = vadd.f32 %v1451_v3, %v1389_v60  ;;  %v1352_v8 = vadd.f32 %v1351_v0, %v712_v61  ;;  %v1394_v27 = vmul.f32 %v728_v16, %v728_v16  ;;  %v1425_v33 = vmul.f32 0.0, %v1393_v17 }
 0x20d   :  { %v1423_v9 = vmul.f32 0.0, %v1391_v10  ;;  %v1323_v18 = vmul.f32 0.0, %v720_v11  ;;  %v1392_v21 = vmul.f32 %v720_v11, %v720_v11  ;;  %v1325_v13 = vmul.f32 0.0, %v728_v16 }
 0x20e   :  { %v1353_v19 = vadd.f32 %v1352_v8, %v1322_v7  ;;  %v1453_v20 = vadd.f32 %v1452_v5, %v1390_v12  ;;  %v1426_v25 = vmul.f32 0.0, %v1394_v27  ;;  %v1297_v7 = vld [vmem:[%s2171_s7] sm:$0x3] }
 0x20f   :  { %v1767_v23 = vpop.f32.mrb[28].mxu1  ;;  %v1424_v31 = vmul.f32 0.0, %v1392_v21 }
 0x210   :  { %v1454_v24 = vadd.f32 %v1453_v20, %v1423_v9  ;;  %v1354_v28 = vadd.f32 %v1353_v19, %v1323_v18  ;;  %v732_v32 = vpop.f32.mrb[29].mxu1  ;;  %v741_v36 = vadd.f32 %v1767_v23, %v2119_v2 }
 0x211   :  { %v733_v34 = vadd.f32 %v2119_v2, %v732_v32  ;;  %v1768_v15 = vpop.f32.mrb[30].mxu1 }
 0x212   :  { %v1355_v14 = vadd.f32 %v1354_v28, %v1324_v22  ;;  %v1455_v35 = vadd.f32 %v1454_v24, %v1424_v31  ;;  %v735_v37 = vpop.f32.mrb[31].mxu1  ;;  %v744_v41 = vadd.f32 %v1768_v15, %v2119_v2  ;;  %v1397_v47 = vmul.f32 %v741_v36, %v741_v36 }
 0x213   :  { %v1326_v38 = vmul.f32 0.0, %v733_v34  ;;  %v1395_v39 = vmul.f32 %v733_v34, %v733_v34  ;;  %v736_v40 = vadd.f32 %v2119_v2, %v735_v37  ;;  %v1328_v51 = vmul.f32 0.0, %v741_v36 }
 0x214   :  { %v1456_v26 = vadd.f32 %v1455_v35, %v1425_v33  ;;  %v1356_v29 = vadd.f32 %v1355_v14, %v1325_v13  ;;  %v1398_v42 = vmul.f32 %v744_v41, %v744_v41  ;;  %v1429_v44 = vmul.f32 0.0, %v1397_v47 }
 0x215   :  { %v1427_v30 = vmul.f32 0.0, %v1395_v39  ;;  %v1327_v46 = vmul.f32 0.0, %v736_v40  ;;  %v1396_v50 = vmul.f32 %v736_v40, %v736_v40  ;;  %v1329_v54 = vmul.f32 0.0, %v744_v41 }
 0x216   :  { %v1357_v48 = vadd.f32 %v1356_v29, %v1326_v38  ;;  %v1457_v49 = vadd.f32 %v1456_v26, %v1426_v25  ;;  %v1430_v1 = vmul.f32 0.0, %v1398_v42 }
 0x217   :  { %v1428_v53 = vmul.f32 0.0, %v1396_v50 }
 0x218   :  { %v1458_v52 = vadd.f32 %v1457_v49, %v1427_v30  ;;  %v1358_v43 = vadd.f32 %v1357_v48, %v1327_v46 }
 0x21a   :  { %v1359_v45 = vadd.f32 %v1358_v43, %v1328_v51  ;;  %v1459_v55 = vadd.f32 %v1458_v52, %v1428_v53 }
 0x21c   :  { %v1360_v56 = vadd.f32 %v1359_v45, %v1329_v54  ;;  %v1460_v61 = vadd.f32 %v1459_v55, %v1429_v44 }
 0x21e   :  { %v1361_v62 = vrot.slane %v1360_v56, 4  ;;  %v1461_v2 = vadd.f32 %v1460_v61, %v1430_v1 }
 0x220   :  { %v1362_v4 = vadd.f32 %v1361_v62, %v1360_v56  ;;  %v1462_v63 = vrot.slane %v1461_v2, 4 }
 0x222   :  { %v1363_v57 = vrot.slane %v1362_v4, 2  ;;  %v1463_v58 = vadd.f32 %v1462_v63, %v1461_v2 }
 0x224   :  { %v1364_v59 = vadd.f32 %v1363_v57, %v1362_v4  ;;  %v1464_v60 = vrot.slane %v1463_v58, 2 }
 0x226   :  { %v1365_v0 = vrot.slane %v1364_v59, 1  ;;  %v1465_v3 = vadd.f32 %v1464_v60, %v1463_v58 }
 0x228   :  { %v1466_v6 = vrot.slane %v1465_v3, 1  ;;  %v1366_v10 = vadd.f32 %v1365_v0, %v1364_v59 }
 0x22a   :  { %v1467_v11 = vadd.f32 %v1466_v6, %v1465_v3 }
 0x22c   :  { %v1469_v12 = vsel %vm1468_vm0, %v1366_v10, %v1467_v11 }
 0x22d   :  { %v1470_v5 = vadd.f32 %v1469_v12, %v1297_v7 }
 0x22f   :  { %1471 = vst [vmem:[%s2171_s7] sm:$0x3] %v1470_v5 }
 0x236   :  { %v1590_v8 = vld [vmem:[%s2171_s7] sm:$0x3] }
 0x237   :  { %v1592_v16 = vmul.f32 0.0078125, %v1590_v8 }
 0x239   :  { %v1593_v17 = vmul.f32 %v1592_v16, %v1592_v16 }
 0x23b   :  { %v1595_v9 = vrot.slane %v1593_v17, 7 }
 0x23d   :  { %v1597_v18 = vsub.f32 %v1592_v16, %v1595_v9 }
 0x23f   :  { %v1598_v19 = vmax.f32 %v1597_v18, 0.0 }
 0x241   :  { %v1600_v20 = vsel %vm1468_vm0, %v1592_v16, %v1598_v19 }
 0x242   :  { %1601 = vst [vmem:[%s2171_s7] sm:$0x3] %v1600_v20 }

// kernel: gears_forward.16
= control target key start
LH: loop header
LB: loop body
LE: loop exit
PB: predicated region body
PF: predicated region fallthrough
CT: control target
= control target key end

     0   :  { %v469_v0 = vmov 0.0   ;;  %vm470_vm0 = vmmov 0   ;;  %v471_v11 = vmov 0.0|0.0   ;;  %vm153_vm1 = vcmask 1041408   ;;  %s608_s1 = inlined_call_operand.vmem [shape: bf16[128,128], index: 1, kind: input, shape index: {}]   ;;  %s609_s0 = inlined_call_operand.vmem [shape: f32[2,128], index: 0, kind: input, shape index: {}]   ;;  %s610_s4 = inlined_call_operand.vmem [shape: f32[128,128], index: 4, kind: input, shape index: {}]   ;;  %s611_s2 = inlined_call_operand.vmem [shape: f32[1,128], index: 2, kind: input, shape index: {}]   ;;  %s612_s3 = inlined_call_operand.vmem [shape: f32[2,128], index: 3, kind: input, shape index: {}]   ;;  %s613_s5 = inlined_call_operand.vmem [shape: f32[1,128], index: 5, kind: input, shape index: {}]   ;;  %s614_s6 = inlined_call_operand.vmem [shape: f32[2,128], index: 6, kind: input, shape index: {}]   ;;  %s615_s7 = inlined_call_operand.vmem [shape: f32[2,128], index: 7, kind: output, shape index: {}]  }
   0x1   :  { %375 = vmatprep.subr.bf16.mxu0 %v469_v0  ;;  %31 = vst [vmem:[#allocation2] sm:$0x3] %v469_v0  ;;  %v457_v1 = vld [vmem:[%s608_s1] sm:$0xff]   ;;  %391 = vmatprep.mubr.msk.bf16.mxu0 %vm470_vm0, %v469_v0  ;;  %v458_v2 = vld [vmem:[%s608_s1 + $0x8] sm:$0xff]   ;;  %v459_v3 = vld [vmem:[%s608_s1 + $0x10] sm:$0xff]   ;;  %vm173_vm2 = vcmask 1040384   ;;  %v176_v63 = vlaneseq }
   0x2   :  { %427 = vmatprep.mubr.msk.f32.mxu1 %vm470_vm0, %v469_v0  ;;  %376 = vmatpush3.bf16.msra.mxu0 %v457_v1  ;;  %v460_v4 = vld [vmem:[%s608_s1 + $0x18] sm:$0xff]   ;;  %v461_v5 = vld [vmem:[%s608_s1 + $0x20] sm:$0xff]   ;;  %v462_v6 = vld [vmem:[%s608_s1 + $0x28] sm:$0xff]  }
   0x3   :  { %377 = vmatprep.subr.bf16.mxu0 %v469_v0  ;;  %v463_v7 = vld [vmem:[%s608_s1 + $0x30] sm:$0xff]   ;;  %v464_v8 = vld [vmem:[%s608_s1 + $0x38] sm:$0xff]   ;;  %v33_v9 = vld [vmem:[%s609_s0] sm:$0x3]  ;;  %430 = vmatprep.subr.bf16.mxu1 %v471_v11 }
   0x4   :  { %v34_v10 = vpack.c.bf16 %v33_v9, %v33_v9  ;;  %v199_v12 = vld [vmem:[%s610_s4] sm:$0xff]  ;;  %v200_v13 = vld [vmem:[%s610_s4 + $0x8] sm:$0xff]  ;;  %v201_v14 = vld [vmem:[%s610_s4 + $0x10] sm:$0xff] }
   0x5   :  { %v431_v15 = vpack.c.bf16 %v200_v13, %v199_v12  ;;  %v202_v16 = vld [vmem:[%s610_s4 + $0x18] sm:$0xff]  ;;  %v203_v18 = vld [vmem:[%s610_s4 + $0x20] sm:$0xff]  ;;  %v204_v19 = vld [vmem:[%s610_s4 + $0x28] sm:$0xff] }
   0x6   :  { %378 = vmatpush3.bf16.msra.mxu0 %v458_v2  ;;  %v434_v17 = vpack.c.bf16 %v202_v16, %v201_v14  ;;  %v437_v20 = vpack.c.bf16 %v204_v19, %v203_v18  ;;  %v205_v21 = vld [vmem:[%s610_s4 + $0x30] sm:$0xff]  ;;  %v206_v22 = vld [vmem:[%s610_s4 + $0x38] sm:$0xff]  ;;  %v207_v24 = vld [vmem:[%s610_s4 + $0x40] sm:$0xff]  ;;  %v177_v2 = vshrl.u32 %v176_v63, 7 }
   0x7   :  { %379 = vmatprep.subr.bf16.mxu0 %v469_v0  ;;  %432 = vmatpush3.bf16.msra.mxu1 %v431_v15  ;;  %v440_v23 = vpack.c.bf16 %v206_v22, %v205_v21  ;;  %v208_v25 = vld [vmem:[%s610_s4 + $0x48] sm:$0xff]  ;;  %v209_v27 = vld [vmem:[%s610_s4 + $0x50] sm:$0xff]  ;;  %v210_v28 = vld [vmem:[%s610_s4 + $0x58] sm:$0xff] }
   0x8   :  { %433 = vmatprep.subr.bf16.mxu1 %v471_v11  ;;  %v443_v26 = vpack.c.bf16 %v208_v25, %v207_v24  ;;  %v446_v29 = vpack.c.bf16 %v210_v28, %v209_v27  ;;  %v211_v30 = vld [vmem:[%s610_s4 + $0x60] sm:$0xff]  ;;  %v212_v31 = vld [vmem:[%s610_s4 + $0x68] sm:$0xff]  ;;  %v213_v33 = vld [vmem:[%s610_s4 + $0x70] sm:$0xff] }
   0x9   :  { %v449_v32 = vpack.c.bf16 %v212_v31, %v211_v30  ;;  %v214_v34 = vld [vmem:[%s610_s4 + $0x78] sm:$0xff]  ;;  %v32_v36 = vld [vmem:[#allocation2] sm:$0x3] }
   0xa   :  { %380 = vmatpush3.bf16.msra.mxu0 %v459_v3  ;;  %v452_v35 = vpack.c.bf16 %v214_v34, %v213_v33  ;;  %v347_v42 = vld [vmem:[%s611_s2] ss:$0 sm:$0xff]  ;;  %v178_v3 = vsub.s32 0, %v177_v2 }
   0xb   :  { %381 = vmatprep.subr.bf16.mxu0 %v469_v0  ;;  %435 = vmatpush3.bf16.msra.mxu1 %v434_v17  ;;  %v348_v16 = vld [vmem:[%s613_s5] ss:$0 sm:$0xff] }
   0xc   :  { %436 = vmatprep.subr.bf16.mxu1 %v471_v11 }
   0xe   :  { %382 = vmatpush3.bf16.msra.mxu0 %v460_v4 }
   0xf   :  { %383 = vmatprep.subr.bf16.mxu0 %v469_v0  ;;  %438 = vmatpush3.bf16.msra.mxu1 %v437_v20 }
  0x10   :  { %439 = vmatprep.subr.bf16.mxu1 %v471_v11 }
  0x12   :  { %384 = vmatpush3.bf16.msra.mxu0 %v461_v5  ;;  %v185_v5 = vsub.s32 1, %v177_v2 }
  0x13   :  { %385 = vmatprep.subr.bf16.mxu0 %v469_v0  ;;  %441 = vmatpush3.bf16.msra.mxu1 %v440_v23 }
  0x14   :  { %442 = vmatprep.subr.bf16.mxu1 %v471_v11 }
  0x16   :  { %386 = vmatpush3.bf16.msra.mxu0 %v462_v6  ;;  %v175_v6 = vld [vmem:[%s612_s3] sm:$0x3] }
  0x17   :  { %387 = vmatprep.subr.bf16.mxu0 %v469_v0  ;;  %444 = vmatpush3.bf16.msra.mxu1 %v443_v26  ;;  %v196_v12 = vrot.slane %v175_v6, %v185_v5 }
  0x18   :  { %445 = vmatprep.subr.bf16.mxu1 %v471_v11 }
  0x1a   :  { %388 = vmatpush3.bf16.msra.mxu0 %v463_v7 }
  0x1b   :  { %389 = vmatprep.subr.bf16.mxu0 %v469_v0  ;;  %447 = vmatpush3.bf16.msra.mxu1 %v446_v29 }
  0x1c   :  { %448 = vmatprep.subr.bf16.mxu1 %v471_v11 }
  0x1e   :  { %390 = vmatpush3.bf16.msra.mxu0 %v464_v8 }
  0x1f   :  { %450 = vmatpush3.bf16.msra.mxu1 %v449_v32 }
  0x20   :  { %451 = vmatprep.subr.bf16.mxu1 %v471_v11 }
  0x21   :  { %392 = vmatmul.mubr.bf16.vlgmr.msra.gmra.mrb[0].mxu0 %v34_v10  ;;  %v191_v10 = vrot.slane %v175_v6, %v178_v3 }
  0x23   :  { %453 = vmatpush3.bf16.msra.mxu1 %v452_v35 }
  0xf4   :  { %v133_v37 = vpop.f32.mrb[0].mxu0 }
  0xf5   :  { %v139_v38 = vadd.f32 %v133_v37, %v32_v36  ;;  %v393_v39 = vpop.f32.mrb[1].mxu0 }
  0xf6   :  { %v136_v40 = vpop.f32.mrb[2].mxu0 }
  0xf7   :  { %140 = vst [vmem:[#allocation2] sm:$0x3] %v139_v38  ;;  %v394_v41 = vpop.f32.mrb[3].mxu0 }
  0xf8   :  { %v311_v41 = vld [vmem:[%s614_s6] sm:$0x3] }
  0xfe   :  { %v144_v43 = vld [vmem:[#allocation2] sm:$0x3] }
  0xff   :  { %v152_v44 = vadd.f32 %v347_v42, %v144_v43 }
 0x101   :  { %v154_v45 = vsel %vm153_vm1, %v152_v44, 0.0 }
 0x102   :  { %v155_v46 = vrot.slane %v154_v45, 4 }
 0x104   :  { %v156_v47 = vadd.f32 %v155_v46, %v154_v45  ;;  %v327_v45 = vrot.slane %v311_v41, %v178_v3 }
 0x106   :  { %v157_v48 = vrot.slane %v156_v47, 2 }
 0x108   :  { %v158_v49 = vadd.f32 %v157_v48, %v156_v47  ;;  %v332_v47 = vrot.slane %v311_v41, %v185_v5 }
 0x10a   :  { %v159_v50 = vrot.slane %v158_v49, 1 }
 0x10c   :  { %v160_v51 = vadd.f32 %v159_v50, %v158_v49 }
 0x10e   :  { %v162_v52 = vmul.f32 0.5, %v160_v51 }
 0x110   :  { %v163_v53 = vsub.f32 %v152_v44, %v162_v52 }
 0x112   :  { %v164_v54 = vmul.f32 %v163_v53, %v163_v53 }
 0x114   :  { %v165_v55 = vsel %vm153_vm1, %v164_v54, 0.0 }
 0x115   :  { %v166_v56 = vrot.slane %v165_v55, 4 }
 0x117   :  { %v167_v57 = vadd.f32 %v166_v56, %v165_v55 }
 0x119   :  { %v168_v58 = vrot.slane %v167_v57, 2 }
 0x11b   :  { %v169_v59 = vadd.f32 %v168_v58, %v167_v57 }
 0x11d   :  { %v170_v60 = vrot.slane %v169_v59, 1 }
 0x11f   :  { %v171_v61 = vadd.f32 %v170_v60, %v169_v59 }
 0x121   :  { %v172_v62 = vmul.f32 0.5, %v171_v61 }
 0x123   :  { %v174_v0 = vsel %vm173_vm2, %v162_v52, %v172_v62 }
 0x124   :  { %v181_v1 = vadd.f32 1e-05, %v174_v0  ;;  %v179_v4 = vrot.slane %v174_v0, %v178_v3 }
 0x126   :  { %465 = vrsqrt.f32 %v181_v1  ;;  %v180_v8 = vsub.f32 %v152_v44, %v179_v4 }
 0x130   :  { %v466_v7 = vpop.eup %465 }
 0x131   :  { %v186_v9 = vrot.slane %v466_v7, %v185_v5 }
 0x133   :  { %v187_v11 = vmul.f32 %v186_v9, %v180_v8 }
 0x135   :  { %v192_v13 = vmul.f32 %v191_v10, %v187_v11 }
 0x137   :  { %v197_v14 = vadd.f32 %v196_v12, %v192_v13 }
 0x139   :  { %v198_v15 = vmax.f32 %v197_v14, 0.0 }
 0x13b   :  { %428 = vmatmul.mubr.f32.vlgmr.msra.gmra.mrb[0].mxu1 %v198_v15 }
 0x20e   :  { %v288_v17 = vpop.f32.mrb[0].mxu1 }
 0x20f   :  { %v289_v18 = vadd.f32 %v348_v16, %v288_v17  ;;  %v429_v19 = vpop.f32.mrb[1].mxu1 }
 0x211   :  { %v292_v20 = vsel %vm153_vm1, %v289_v18, 0.0 }
 0x212   :  { %v293_v21 = vrot.slane %v292_v20, 4 }
 0x214   :  { %v294_v22 = vadd.f32 %v293_v21, %v292_v20 }
 0x216   :  { %v295_v23 = vrot.slane %v294_v22, 2 }
 0x218   :  { %v296_v24 = vadd.f32 %v295_v23, %v294_v22 }
 0x21a   :  { %v297_v25 = vrot.slane %v296_v24, 1 }
 0x21c   :  { %v298_v26 = vadd.f32 %v297_v25, %v296_v24 }
 0x21e   :  { %v299_v27 = vmul.f32 0.5, %v298_v26 }
 0x220   :  { %v300_v28 = vsub.f32 %v289_v18, %v299_v27 }
 0x222   :  { %v301_v29 = vmul.f32 %v300_v28, %v300_v28 }
 0x224   :  { %v302_v30 = vsel %vm153_vm1, %v301_v29, 0.0 }
 0x225   :  { %v303_v31 = vrot.slane %v302_v30, 4 }
 0x227   :  { %v304_v32 = vadd.f32 %v303_v31, %v302_v30 }
 0x229   :  { %v305_v33 = vrot.slane %v304_v32, 2 }
 0x22b   :  { %v306_v34 = vadd.f32 %v305_v33, %v304_v32 }
 0x22d   :  { %v307_v35 = vrot.slane %v306_v34, 1 }
 0x22f   :  { %v308_v36 = vadd.f32 %v307_v35, %v306_v34 }
 0x231   :  { %v309_v37 = vmul.f32 0.5, %v308_v36 }
 0x233   :  { %v310_v38 = vsel %vm173_vm2, %v299_v27, %v309_v37 }
 0x234   :  { %v317_v39 = vadd.f32 1e-05, %v310_v38  ;;  %v315_v40 = vrot.slane %v310_v38, %v178_v3 }
 0x236   :  { %467 = vrsqrt.f32 %v317_v39  ;;  %v316_v43 = vsub.f32 %v289_v18, %v315_v40 }
 0x240   :  { %v468_v42 = vpop.eup %467 }
 0x241   :  { %v322_v44 = vrot.slane %v468_v42, %v185_v5 }
 0x243   :  { %v323_v46 = vmul.f32 %v322_v44, %v316_v43 }
 0x245   :  { %v328_v48 = vmul.f32 %v327_v45, %v323_v46 }
 0x247   :  { %v333_v49 = vadd.f32 %v332_v47, %v328_v48 }
 0x249   :  { %334 = vst [vmem:[%s615_s7] sm:$0x3] %v333_v49 }

// kernel: gears_forward.17
= control target key start
LH: loop header
LB: loop body
LE: loop exit
PB: predicated region body
PF: predicated region fallthrough
CT: control target
= control target key end

     0   :  { %v211_v0 = vmov 0.0|0.0   ;;  %vm212_vm0 = vmmov 0   ;;  %v213_v4 = vmov 0.0   ;;  %s307_s3 = inlined_call_operand.vmem [shape: f32[128,128], index: 3, kind: input, shape index: {}]   ;;  %s308_s1 = inlined_call_operand.vmem [shape: f32[2,128], index: 1, kind: input, shape index: {}]   ;;  %s309_s0 = inlined_call_operand.vmem [shape: f32[2,128], index: 0, kind: input, shape index: {}]   ;;  %s310_s2 = inlined_call_operand.vmem [shape: f32[1,128], index: 2, kind: input, shape index: {}]   ;;  %s311_s4 = inlined_call_operand.vmem [shape: f32[1,128], index: 4, kind: input, shape index: {}]   ;;  %s312_s5 = inlined_call_operand.vmem [shape: f32[2,128], index: 5, kind: output, shape index: {}]  }
   0x1   :  { %184 = vmatprep.subr.bf16.mxu0 %v211_v0  ;;  %v21_v1 = vld [vmem:[%s307_s3] sm:$0xff]  ;;  %v22_v2 = vld [vmem:[%s307_s3 + $0x8] sm:$0xff]  ;;  %v23_v3 = vld [vmem:[%s307_s3 + $0x10] sm:$0xff]  ;;  %181 = vmatprep.mubr.msk.f32.mxu0 %vm212_vm0, %v213_v4 }
   0x2   :  { %v185_v5 = vpack.c.bf16 %v22_v2, %v21_v1  ;;  %v24_v6 = vld [vmem:[%s307_s3 + $0x18] sm:$0xff]  ;;  %v25_v8 = vld [vmem:[%s307_s3 + $0x20] sm:$0xff]  ;;  %v26_v9 = vld [vmem:[%s307_s3 + $0x28] sm:$0xff] }
   0x3   :  { %v188_v7 = vpack.c.bf16 %v24_v6, %v23_v3  ;;  %v191_v10 = vpack.c.bf16 %v26_v9, %v25_v8  ;;  %v27_v11 = vld [vmem:[%s307_s3 + $0x30] sm:$0xff]  ;;  %v28_v12 = vld [vmem:[%s307_s3 + $0x38] sm:$0xff]  ;;  %v29_v14 = vld [vmem:[%s307_s3 + $0x40] sm:$0xff] }
   0x4   :  { %186 = vmatpush3.bf16.msra.mxu0 %v185_v5  ;;  %v194_v13 = vpack.c.bf16 %v28_v12, %v27_v11  ;;  %v30_v15 = vld [vmem:[%s307_s3 + $0x48] sm:$0xff]  ;;  %v31_v17 = vld [vmem:[%s307_s3 + $0x50] sm:$0xff]  ;;  %v32_v18 = vld [vmem:[%s307_s3 + $0x58] sm:$0xff] }
   0x5   :  { %187 = vmatprep.subr.bf16.mxu0 %v211_v0  ;;  %v197_v16 = vpack.c.bf16 %v30_v15, %v29_v14  ;;  %v200_v19 = vpack.c.bf16 %v32_v18, %v31_v17  ;;  %v33_v20 = vld [vmem:[%s307_s3 + $0x60] sm:$0xff]  ;;  %v34_v21 = vld [vmem:[%s307_s3 + $0x68] sm:$0xff]  ;;  %v35_v23 = vld [vmem:[%s307_s3 + $0x70] sm:$0xff] }
   0x6   :  { %v203_v22 = vpack.c.bf16 %v34_v21, %v33_v20  ;;  %v36_v24 = vld [vmem:[%s307_s3 + $0x78] sm:$0xff]  ;;  %v20_v26 = vld [vmem:[%s308_s1] sm:$0x3] }
   0x7   :  { %v206_v25 = vpack.c.bf16 %v36_v24, %v35_v23  ;;  %v107_v27 = vld [vmem:[%s309_s0] sm:$0x3] }
   0x8   :  { %189 = vmatpush3.bf16.msra.mxu0 %v188_v7  ;;  %v130_v28 = vld [vmem:[%s310_s2] ss:$0 sm:$0xff] }
   0x9   :  { %190 = vmatprep.subr.bf16.mxu0 %v211_v0  ;;  %v115_v29 = vmul.f32 %v130_v28, %v107_v27  ;;  %v131_v31 = vld [vmem:[%s311_s4] ss:$0 sm:$0xff] }
   0xc   :  { %192 = vmatpush3.bf16.msra.mxu0 %v191_v10 }
   0xd   :  { %193 = vmatprep.subr.bf16.mxu0 %v211_v0 }
  0x10   :  { %195 = vmatpush3.bf16.msra.mxu0 %v194_v13 }
  0x11   :  { %196 = vmatprep.subr.bf16.mxu0 %v211_v0 }
  0x14   :  { %198 = vmatpush3.bf16.msra.mxu0 %v197_v16 }
  0x15   :  { %199 = vmatprep.subr.bf16.mxu0 %v211_v0 }
  0x18   :  { %201 = vmatpush3.bf16.msra.mxu0 %v200_v19 }
  0x19   :  { %202 = vmatprep.subr.bf16.mxu0 %v211_v0 }
  0x1c   :  { %204 = vmatpush3.bf16.msra.mxu0 %v203_v22 }
  0x1d   :  { %205 = vmatprep.subr.bf16.mxu0 %v211_v0 }
  0x20   :  { %207 = vmatpush3.bf16.msra.mxu0 %v206_v25 }
  0x23   :  { %182 = vmatmul.mubr.f32.vlgmr.msra.gmra.mrb[0].mxu0 %v20_v26 }
  0xf6   :  { %v103_v30 = vpop.f32.mrb[0].mxu0 }
  0xf7   :  { %v116_v32 = vadd.f32 %v115_v29, %v103_v30  ;;  %v183_v33 = vpop.f32.mrb[1].mxu0 }
  0xf9   :  { %v124_v34 = vadd.f32 %v131_v31, %v116_v32 }
  0xfb   :  { %125 = vst [vmem:[%s312_s5] sm:$0x3] %v124_v34 }

</bundles_post_ra>
